<compile_context>
chip_gen: v5e
topology: v5e:2x2
jax: 0.10.0
libtpu: 0.0.40
codegen_flags: <defaults>
</compile_context>

<pallas_src>
import functools
import math

import jax
import jax.numpy as jnp
from jax.experimental import pallas as pl
from jax.experimental.pallas import tpu as pltpu  # noqa: F401  (TPU backend)

NEG_INF = -1e30


# ----------------------------------------------------------------------------
# Kernel 1: plain linear (visual encoder, Conv1D kernel=1)
# ----------------------------------------------------------------------------

def _linear_kernel(x_ref, w_ref, b_ref, o_ref):
    o_ref[...] = (jnp.dot(x_ref[...], w_ref[...],
                          preferred_element_type=jnp.float32) + b_ref[...])


def pallas_linear(x, w, b):
    M = x.shape[0]
    N = w.shape[1]
    return pl.pallas_call(
        _linear_kernel,
        out_shape=jax.ShapeDtypeStruct((M, N), jnp.float32),
    )(x, w, b.reshape(1, N))


# ----------------------------------------------------------------------------
# Kernel 2: fused per-view block
#   temporal conv (k=3, pad=1) + ReLU
#   -> in-view visual/text projections (ReLU)
#   -> consensus transformer (single consensus-token query, in-kernel masks)
#   -> grounding attention (per-head weights only)
#   -> LSTM over frames (input proj hoisted, unrolled) -> final cell state
#   -> ReLU + weighted sum over frames ('bv,bvf->bf')
# Outputs: cnn_feature (B, Lv, Cv) and grounding feature (B, Cv)
# ----------------------------------------------------------------------------

def _view_block_kernel(
        xp_ref, text_ref, vm_ref, tm_ref,
        cw0_ref, cw1_ref, cw2_ref, cb_ref,
        visw_ref, visb_ref, txtw_ref, txtb_ref,
        ctok_ref, cwq_ref, cbq_ref, cwkv_ref, cbkv_ref, cwo_ref, cbo_ref,
        gwq_ref, gbq_ref, gwk_ref, gbk_ref,
        lwih_ref, lwhh_ref, lb_ref,
        cnn_ref, gfeat_ref,
        *, B, Lv, Lt, Cin, Cv, Fd, Td, Hc, Hg, Hl):
    # ---- temporal conv, kernel=3, pad=1, + ReLU -------------------------
    xp = xp_ref[...]                                      # (B, Lv+2, Cin)
    x_m1 = xp[:, 0:Lv, :].reshape(B * Lv, Cin)
    x_00 = xp[:, 1:Lv + 1, :].reshape(B * Lv, Cin)
    x_p1 = xp[:, 2:Lv + 2, :].reshape(B * Lv, Cin)
    y = (jnp.dot(x_m1, cw0_ref[...], preferred_element_type=jnp.float32)
         + jnp.dot(x_00, cw1_ref[...], preferred_element_type=jnp.float32)
         + jnp.dot(x_p1, cw2_ref[...], preferred_element_type=jnp.float32)
         + cb_ref[...])
    cnn2 = jnp.maximum(y, 0.0)                            # (B*Lv, Cv)
    cnn3 = cnn2.reshape(B, Lv, Cv)
    cnn_ref[...] = cnn3

    # ---- in-view projections into the consensus transformer ------------
    vis2 = jnp.maximum(
        jnp.dot(cnn2, visw_ref[...], preferred_element_type=jnp.float32)
        + visb_ref[...], 0.0)                             # (B*Lv, Fd)
    text2 = text_ref[...].reshape(B * Lt, Td)
    txt2 = jnp.maximum(
        jnp.dot(text2, txtw_ref[...], preferred_element_type=jnp.float32)
        + txtb_ref[...], 0.0)                             # (B*Lt, Fd)

    # ---- consensus transformer: only the consensus-token query row of the
    #      transformer output is consumed downstream, so attend with that
    #      single query.  Its attn_mask row is all-unmasked; only key padding
    #      applies (built here from the tiny per-key 0/1 vectors).
    tok = ctok_ref[...]                                   # (1, Fd)
    q = jnp.dot(tok, cwq_ref[...], preferred_element_type=jnp.float32) + cbq_ref[...]
    kv_vis = (jnp.dot(vis2, cwkv_ref[...], preferred_element_type=jnp.float32)
              + cbkv_ref[...])                            # (B*Lv, 2Fd)
    kv_txt = (jnp.dot(txt2, cwkv_ref[...], preferred_element_type=jnp.float32)
              + cbkv_ref[...])                            # (B*Lt, 2Fd)
    kv_tok = (jnp.dot(tok, cwkv_ref[...], preferred_element_type=jnp.float32)
              + cbkv_ref[...])                            # (1, 2Fd)
    k_vis = kv_vis[:, :Fd].reshape(B, Lv, Fd)
    v_vis = kv_vis[:, Fd:].reshape(B, Lv, Fd)
    k_txt = kv_txt[:, :Fd].reshape(B, Lt, Fd)
    v_txt = kv_txt[:, Fd:].reshape(B, Lt, Fd)
    k_tok = kv_tok[:, :Fd]                                # (1, Fd)
    v_tok = kv_tok[:, Fd:]                                # (1, Fd)

    bias_vis = jnp.where(vm_ref[...] > 0.5, 0.0, NEG_INF)  # (B, Lv)
    bias_txt = jnp.where(tm_ref[...] > 0.5, 0.0, NEG_INF)  # (B, Lt)

    Dc = Fd // Hc
    scale_c = 1.0 / math.sqrt(Dc)
    wo_c = cwo_ref[...]                                   # (Fd, Fd)
    cons = cbo_ref[...]                                   # (1, Fd) -> (B, Fd)
    for h in range(Hc):
        lo, hi = h * Dc, (h + 1) * Dc
        qh = q[:, lo:hi]                                  # (1, Dc)
        s_vis = (jnp.sum(k_vis[:, :, lo:hi] * qh[:, None, :], axis=-1) * scale_c
                 + bias_vis)                              # (B, Lv)
        s_txt = (jnp.sum(k_txt[:, :, lo:hi] * qh[:, None, :], axis=-1) * scale_c
                 + bias_txt)                              # (B, Lt)
        s_tok = jnp.sum(k_tok[:, lo:hi] * qh, axis=-1, keepdims=True) * scale_c  # (1, 1)
        m = jnp.maximum(
            jnp.maximum(jnp.max(s_vis, axis=-1, keepdims=True),
                        jnp.max(s_txt, axis=-1, keepdims=True)),
            s_tok)                                        # (B, 1)
        e_vis = jnp.exp(s_vis - m)
        e_txt = jnp.exp(s_txt - m)
        e_tok = jnp.exp(s_tok - m)                        # (B, 1)
        inv = 1.0 / (jnp.sum(e_vis, axis=-1, keepdims=True)
                     + jnp.sum(e_txt, axis=-1, keepdims=True) + e_tok)
        o_h = (jnp.sum((e_vis * inv)[:, :, None] * v_vis[:, :, lo:hi], axis=1)
               + (e_tok * inv) * v_tok[:, lo:hi]
               + jnp.sum((e_txt * inv)[:, :, None] * v_txt[:, :, lo:hi], axis=1))
        # out-proj split per head avoids an in-kernel concat
        cons = cons + jnp.dot(o_h, wo_c[lo:hi, :],
                              preferred_element_type=jnp.float32)  # (B, Fd)

    # ---- grounding attention: per-head attention weights over frames ----
    gq = (jnp.dot(cons, gwq_ref[...], preferred_element_type=jnp.float32)
          + gbq_ref[...])                                 # (B, Fd)
    gk = (jnp.dot(cnn2, gwk_ref[...], preferred_element_type=jnp.float32)
          + gbk_ref[...]).reshape(B, Lv, Fd)
    Dg = Fd // Hg
    scale_g = 1.0 / math.sqrt(Dg)
    w_ih = lwih_ref[...]                                  # (Hg, 4*Hl)
    # LSTM input projection (clue @ w_ih) hoisted out of the recurrence and
    # accumulated head-by-head (clue[:, :, h] is the head-h attention weight).
    xproj = jnp.zeros((B, Lv, 4 * Hl), jnp.float32)
    for h in range(Hg):
        lo, hi = h * Dg, (h + 1) * Dg
        s = jnp.sum(gk[:, :, lo:hi] * gq[:, None, lo:hi], axis=-1) * scale_g  # (B, Lv)
        s = s - jnp.max(s, axis=-1, keepdims=True)
        p = jnp.exp(s)
        p = p / jnp.sum(p, axis=-1, keepdims=True)        # attention clue, head h
        xproj = xproj + p[:, :, None] * w_ih[h:h + 1, :][None, :, :]

    # ---- LSTM over the Lv frames, final cell state ----------------------
    whh = lwhh_ref[...]                                   # (Hl, 4*Hl)
    bl = lb_ref[...]                                      # (1, 4*Hl)
    h_t = jnp.zeros((B, Hl), jnp.float32)
    c_t = jnp.zeros((B, Hl), jnp.float32)
    for t in range(Lv):                                   # static unroll (Lv small)
        g = (xproj[:, t, :]
             + jnp.dot(h_t, whh, preferred_element_type=jnp.float32) + bl)
        i_g = jax.nn.sigmoid(g[:, 0:Hl])
        f_g = jax.nn.sigmoid(g[:, Hl:2 * Hl])
        g_g = jnp.tanh(g[:, 2 * Hl:3 * Hl])
        o_g = jax.nn.sigmoid(g[:, 3 * Hl:4 * Hl])
        c_t = f_g * c_t + i_g * g_g
        h_t = o_g * jnp.tanh(c_t)

    # ---- ground_weight_filter (ReLU) + einsum('bv,bvf->bf') --------------
    cg = jnp.maximum(c_t, 0.0)                            # (B, Lv)  (Hl == Lv)
    gfeat_ref[...] = jnp.sum(cg[:, :, None] * cnn3, axis=1)  # (B, Cv)


def pallas_view_block(x_in, text_feat, vm, tm, conv_p, cons_p, ground_p, lstm_p,
                      consensus_token, cfg):
    B, Lv, Cin = x_in.shape
    Lt, Td = text_feat.shape[1], text_feat.shape[2]
    Cv = conv_p["w"].shape[-1]
    Fd = cfg["consensus_Transformer_fdim"]
    Hc = cfg["consensus_Transformer_head"]
    Hg = cfg["groundAttention_head"]
    Hl = cfg["visual_length"]

    # tiny temporal zero-pad for the k=3 conv (a few hundred floats)
    xp = jnp.pad(x_in, ((0, 0), (1, 1), (0, 0)))

    mha = cons_p["mha"]
    cwkv = jnp.concatenate([mha["wk"], mha["wv"]], axis=1)            # (Fd, 2Fd)
    cbkv = jnp.concatenate([mha["bk"], mha["bv"]], axis=0).reshape(1, 2 * Fd)

    kernel = functools.partial(
        _view_block_kernel, B=B, Lv=Lv, Lt=Lt, Cin=Cin, Cv=Cv, Fd=Fd, Td=Td,
        Hc=Hc, Hg=Hg, Hl=Hl)
    return pl.pallas_call(
        kernel,
        out_shape=(jax.ShapeDtypeStruct((B, Lv, Cv), jnp.float32),
                   jax.ShapeDtypeStruct((B, Cv), jnp.float32)),
    )(xp, text_feat, vm, tm,
      conv_p["w"][0], conv_p["w"][1], conv_p["w"][2], conv_p["b"].reshape(1, Cv),
      cons_p["vis_w"], cons_p["vis_b"].reshape(1, Fd),
      cons_p["txt_w"], cons_p["txt_b"].reshape(1, Fd),
      consensus_token,
      mha["wq"], mha["bq"].reshape(1, Fd), cwkv, cbkv,
      mha["wo"], mha["bo"].reshape(1, Fd),
      ground_p["wq"], ground_p["bq"].reshape(1, Fd),
      ground_p["wk"], ground_p["bk"].reshape(1, Fd),
      lstm_p["w_ih"], lstm_p["w_hh"], lstm_p["b"].reshape(1, 4 * Hl))


# ----------------------------------------------------------------------------
# Kernel 3: fused final head
#   Multiview_Attention fusion -> mask multiply -> fusion linear + ReLU
#   -> final text self-attention (fused QKV, in-kernel key-padding mask)
#   -> max-pool over sequence -> merged opinion+emotion heads + softmax
# ----------------------------------------------------------------------------

def _final_head_kernel(*refs, B, Lt, Td, Cv, V, G, H, n_op, n_em):
    text_ref, tm_ref = refs[0], refs[1]
    g_refs = refs[2:2 + V]
    (tw_ref, tb_ref, vw_ref, vb_ref, fw_ref, fb_ref,
     wqkv_ref, bqkv_ref, wo_ref, bo_ref, hw_ref, hb_ref) = refs[2 + V:2 + V + 12]
    op_ref, em_ref = refs[2 + V + 12], refs[2 + V + 13]

    text3 = text_ref[...]                                 # (B, Lt, Td)
    text2 = text3.reshape(B * Lt, Td)
    tmask = tm_ref[...]                                   # (B, Lt) 0/1 float

    # ---- Multiview_Attention fusion (softmax over V views, piecewise) ----
    tproj = (jnp.dot(text2, tw_ref[...], preferred_element_type=jnp.float32)
             + tb_ref[...]).reshape(B, Lt, G)
    mvs, scores = [], []
    for v in range(V):
        gv = g_refs[v][...]                               # (B, Cv)
        mvs.append(gv)
        mp = (jnp.dot(gv, vw_ref[...], preferred_element_type=jnp.float32)
              + vb_ref[...])                              # (B, G)
        scores.append(jnp.sum(tproj * mp[:, None, :], axis=-1, keepdims=True))
    m = scores[0]
    for v in range(1, V):
        m = jnp.maximum(m, scores[v])
    exps = [jnp.exp(s - m) for s in scores]
    denom = exps[0]
    for v in range(1, V):
        denom = denom + exps[v]
    inv = 1.0 / denom
    fusion = (exps[0] * inv) * mvs[0][:, None, :]
    for v in range(1, V):
        fusion = fusion + (exps[v] * inv) * mvs[v][:, None, :]   # (B, Lt, Cv)
    fusion = fusion * tmask[:, :, None]

    # ---- fusion linear (weight split across the concat boundary) + ReLU --
    fw = fw_ref[...]                                      # (Td+Cv, Td)
    xf = jnp.maximum(
        jnp.dot(text2, fw[:Td, :], preferred_element_type=jnp.float32)
        + jnp.dot(fusion.reshape(B * Lt, Cv), fw[Td:, :],
                  preferred_element_type=jnp.float32)
        + fb_ref[...], 0.0)                               # (B*Lt, Td)

    # ---- final text self-attention (fused QKV, per-head) -----------------
    Dh = Td // H
    scale = 1.0 / math.sqrt(Dh)
    qkv = (jnp.dot(xf, wqkv_ref[...], preferred_element_type=jnp.float32)
           + bqkv_ref[...])                               # (B*Lt, 3Td)
    q = qkv[:, 0:Td].reshape(B, Lt, Td)
    k = qkv[:, Td:2 * Td].reshape(B, Lt, Td)
    vv = qkv[:, 2 * Td:3 * Td].reshape(B, Lt, Td)
    key_bias = jnp.where(tmask > 0.5, 0.0, NEG_INF)[:, None, :]  # (B, 1, Lt)
    wo = wo_ref[...]                                      # (Td, Td)
    tf2 = bo_ref[...]                                     # (1, Td) -> (B*Lt, Td)
    for h in range(H):
        lo, hi = h * Dh, (h + 1) * Dh
        sh = (jnp.einsum('bqd,bkd->bqk', q[:, :, lo:hi], k[:, :, lo:hi],
                         preferred_element_type=jnp.float32) * scale + key_bias)
        sh = sh - jnp.max(sh, axis=-1, keepdims=True)
        ph = jnp.exp(sh)
        ph = ph / jnp.sum(ph, axis=-1, keepdims=True)
        oh = jnp.einsum('bqk,bkd->bqd', ph, vv[:, :, lo:hi],
                        preferred_element_type=jnp.float32)  # (B, Lt, Dh)
        tf2 = tf2 + jnp.dot(oh.reshape(B * Lt, Dh), wo[lo:hi, :],
                            preferred_element_type=jnp.float32)

    # ---- max-pool over the sequence --------------------------------------
    final = jnp.max(tf2.reshape(B, Lt, Td), axis=1)       # (B, Td)

    # ---- merged classifier heads + per-head softmax -----------------------
    logits = (jnp.dot(final, hw_ref[...], preferred_element_type=jnp.float32)
              + hb_ref[...])                              # (B, n_op + n_em)
    lop = logits[:, 0:n_op]
    lop = lop - jnp.max(lop, axis=-1, keepdims=True)
    eop = jnp.exp(lop)
    op_ref[...] = eop / jnp.sum(eop, axis=-1, keepdims=True)
    lem = logits[:, n_op:n_op + n_em]
    lem = lem - jnp.max(lem, axis=-1, keepdims=True)
    eem = jnp.exp(lem)
    em_ref[...] = eem / jnp.sum(eem, axis=-1, keepdims=True)


def pallas_final_head(text_feat, text_mask_f, g_feats, mv_p, fus_p, txt_tr_p,
                      op_p, em_p, cfg):
    B, Lt, Td = text_feat.shape
    Cv = g_feats[0].shape[-1]
    V = len(g_feats)
    G = mv_p["text_w"].shape[1]
    H = cfg["final_Transformer_head"]
    n_op = op_p["w"].shape[1]
    n_em = em_p["w"].shape[1]

    wqkv = jnp.concatenate([txt_tr_p["wq"], txt_tr_p["wk"], txt_tr_p["wv"]], axis=1)
    bqkv = jnp.concatenate([txt_tr_p["bq"], txt_tr_p["bk"], txt_tr_p["bv"]],
                           axis=0).reshape(1, 3 * Td)
    hw = jnp.concatenate([op_p["w"], em_p["w"]], axis=1)
    hb = jnp.concatenate([op_p["b"], em_p["b"]], axis=0).reshape(1, n_op + n_em)

    kernel = functools.partial(_final_head_kernel, B=B, Lt=Lt, Td=Td, Cv=Cv,
                               V=V, G=G, H=H, n_op=n_op, n_em=n_em)
    return pl.pallas_call(
        kernel,
        out_shape=(jax.ShapeDtypeStruct((B, n_op), jnp.float32),
                   jax.ShapeDtypeStruct((B, n_em), jnp.float32)),
    )(text_feat, text_mask_f, *g_feats,
      mv_p["text_w"], mv_p["text_b"].reshape(1, G),
      mv_p["vis_w"], mv_p["vis_b"].reshape(1, G),
      fus_p["w"], fus_p["b"].reshape(1, Td),
      wqkv, bqkv, txt_tr_p["wo"], txt_tr_p["bo"].reshape(1, Td),
      hw, hb)


# ----------------------------------------------------------------------------
# Forward pass
# ----------------------------------------------------------------------------

def mvc_forward(params, cfg, video_feat, video_mask, text_token_feat, text_mask):
    B, Lv, _ = video_feat.shape

    # VisualEncoder: Conv1D(kernel=1) == pointwise linear (single launch)
    ve = params["visual_encoder"]
    vfeat = pallas_linear(video_feat.reshape(B * Lv, -1), ve["w"], ve["b"])
    vfeat = vfeat.reshape(B, Lv, -1)

    vm = video_mask.astype(jnp.float32)     # (B, Lv)  1 = valid
    tm = text_mask.astype(jnp.float32)      # (B, Lt)  1 = valid

    cnn_in = vfeat
    g_feats = []
    for i in range(cfg["multiview_num"]):   # serial through cnn_feature by design
        cnn_in, g_feat = pallas_view_block(
            cnn_in, text_token_feat, vm, tm,
            params["stack_cnn"][i], params["stack_consensus"][i],
            params["grounding_attention"], params["ground_lstm"],
            params["consensus_token"], cfg)
        g_feats.append(g_feat)

    opinion, emotion = pallas_final_head(
        text_token_feat, tm, g_feats,
        params["multiview_attention"], params["fusion_linear"],
        params["text_transformer"], params["opinion_head"],
        params["emotion_head"], cfg)
    # dropout: eval mode -> identity
    return {"opinion_predict": opinion, "emotion_predict": emotion}


# ----------------------------------------------------------------------------
# Deterministic parameter initialization (shapes mirror the PyTorch __init__)
# ----------------------------------------------------------------------------

def init_params(key, cfg):
    ks = list(jax.random.split(key, 256))
    idx = [0]

    def nrm(shape, s=0.05):
        k = ks[idx[0]]
        idx[0] += 1
        return jax.random.normal(k, shape, jnp.float32) * s

    V = cfg["multiview_num"]
    Fd = cfg["consensus_Transformer_fdim"]
    Cv = cfg["visualcnn_dim"]
    Td = cfg["text_dim"]

    def mha_params(e_q, e_k, e_v, e):
        return {"wq": nrm((e_q, e)), "bq": nrm((e,)),
                "wk": nrm((e_k, e)), "bk": nrm((e,)),
                "wv": nrm((e_v, e)), "bv": nrm((e,)),
                "wo": nrm((e, e)), "bo": nrm((e,))}

    p = {}
    p["visual_encoder"] = {"w": nrm((cfg["visual_dim"], cfg["visual_out_dim"])),
                           "b": nrm((cfg["visual_out_dim"],))}
    p["consensus_token"] = nrm((1, Fd))
    p["stack_cnn"] = [{"w": nrm((3, cfg["visual_out_dim"], Cv)), "b": nrm((Cv,))}
                      for _ in range(V)]
    p["stack_consensus"] = [{"vis_w": nrm((Cv, Fd)), "vis_b": nrm((Fd,)),
                             "txt_w": nrm((Td, Fd)), "txt_b": nrm((Fd,)),
                             "mha": mha_params(Fd, Fd, Fd, Fd)} for _ in range(V)]
    p["grounding_attention"] = mha_params(Fd, Cv, Cv, Fd)
    Hl = cfg["visual_length"]
    p["ground_lstm"] = {"w_ih": nrm((cfg["groundAttention_head"], 4 * Hl)),
                        "w_hh": nrm((Hl, 4 * Hl)),
                        "b": nrm((4 * Hl,))}          # b_ih + b_hh combined
    p["text_transformer"] = mha_params(Td, Td, Td, Td)
    p["multiview_attention"] = {"text_w": nrm((Td, cfg["vtalign_ground_dim"])),
                                "text_b": nrm((cfg["vtalign_ground_dim"],)),
                                "vis_w": nrm((Cv, cfg["vtalign_ground_dim"])),
                                "vis_b": nrm((cfg["vtalign_ground_dim"],))}
    p["fusion_linear"] = {"w": nrm((Td + Cv, Td)), "b": nrm((Td,))}
    p["opinion_head"] = {"w": nrm((Td, cfg["opinion_num"])), "b": nrm((cfg["opinion_num"],))}
    p["emotion_head"] = {"w": nrm((Td, cfg["emotion_num"])), "b": nrm((cfg["emotion_num"],))}
    return p


# ----------------------------------------------------------------------------
# Main
# ----------------------------------------------------------------------------

if __name__ == "__main__":
    cfg = dict(
        visual_dim=32, visual_out_dim=16, visualcnn_dim=16, text_dim=32,
        consensus_Transformer_fdim=32, consensus_Transformer_head=4,
        groundAttention_head=4, visual_length=8, text_len=8,
        final_Transformer_head=4, vtalign_ground_dim=16,
        multiview_num=2, opinion_num=3, emotion_num=4,
    )

    key = jax.random.PRNGKey(0)
    k_params, k_video, k_text = jax.random.split(key, 3)
    params = init_params(k_params, cfg)

    B, Lv, Lt = 2, cfg["visual_length"], cfg["text_len"]
    video_feat = jax.random.normal(k_video, (B, Lv, cfg["visual_dim"]), jnp.float32)
    text_token_feat = jax.random.normal(k_text, (B, Lt, cfg["text_dim"]), jnp.float32)
    video_mask = jnp.ones((B, Lv), jnp.int32)
    text_mask = jnp.ones((B, Lt), jnp.int32).at[1, Lt - 2:].set(0)

    fwd = jax.jit(lambda p, vf, vm, tf, tm: mvc_forward(p, cfg, vf, vm, tf, tm))
    out = fwd(params, video_feat, video_mask, text_token_feat, text_mask)
    jax.block_until_ready(out)

    assert out["opinion_predict"].shape == (B, cfg["opinion_num"])
    assert out["emotion_predict"].shape == (B, cfg["emotion_num"])
    # TODO(synk): TextEncoder (pretrained RoBERTa + tokenizer) replaced by
    # precomputed text token features; Focal losses (training-only) not computed.
    print("KERNEL_OK")
</pallas_src>

<mosaic_0001>
module attributes {stable_mosaic.version = 11 : i64} {
  func.func @_linear_kernel(%arg0: memref<16x32xf32, #tpu.memory_space<vmem>>, %arg1: memref<32x16xf32, #tpu.memory_space<vmem>>, %arg2: memref<1x16xf32, #tpu.memory_space<vmem>>, %arg3: memref<16x16xf32, #tpu.memory_space<vmem>>) attributes {dimension_semantics = [], scalar_prefetch = 0 : i64, scratch_operands = 0 : i64, tpu.core_type = #tpu.core_type<tc>} {
    %c0 = arith.constant 0 : index
    %c0_0 = arith.constant 0 : index
    %0 = vector.load %arg0[%c0, %c0_0] : memref<16x32xf32, #tpu.memory_space<vmem>>, vector<16x32xf32>
    %c0_1 = arith.constant 0 : index
    %c0_2 = arith.constant 0 : index
    %1 = vector.load %arg1[%c0_1, %c0_2] : memref<32x16xf32, #tpu.memory_space<vmem>>, vector<32x16xf32>
    %cst = arith.constant dense<0.000000e+00> : vector<16x16xf32>
    %2 = tpu.matmul %0, %1, %cst {dimension_numbers = #tpu.dot_dimension_numbers<[1], [0], [0], [1], [0, 0, 1, 1], [], []>} : vector<16x32xf32>, vector<32x16xf32>, vector<16x16xf32> -> vector<16x16xf32>
    %c0_3 = arith.constant 0 : index
    %c0_4 = arith.constant 0 : index
    %3 = vector.load %arg2[%c0_3, %c0_4] : memref<1x16xf32, #tpu.memory_space<vmem>>, vector<1x16xf32>
    %4 = vector.broadcast %3 : vector<1x16xf32> to vector<16x16xf32>
    %5 = arith.addf %2, %4 : vector<16x16xf32>
    %c0_5 = arith.constant 0 : index
    %c0_6 = arith.constant 0 : index
    %6 = vector.load %arg3[%c0_5, %c0_6] : memref<16x16xf32, #tpu.memory_space<vmem>>, vector<16x16xf32>
    tpu.vector_store %arg3[%c0_5, %c0_6], %5 {strides = array<i32>} : memref<16x16xf32, #tpu.memory_space<vmem>>, vector<16x16xf32>,
    return
  }
}

module attributes {stable_mosaic.version = 11 : i64} {
  func.func @_view_block_kernel(%arg0: memref<2x10x16xf32, #tpu.memory_space<vmem>>, %arg1: memref<2x8x32xf32, #tpu.memory_space<vmem>>, %arg2: memref<2x8xf32, #tpu.memory_space<vmem>>, %arg3: memref<2x8xf32, #tpu.memory_space<vmem>>, %arg4: memref<16x16xf32, #tpu.memory_space<vmem>>, %arg5: memref<16x16xf32, #tpu.memory_space<vmem>>, %arg6: memref<16x16xf32, #tpu.memory_space<vmem>>, %arg7: memref<1x16xf32, #tpu.memory_space<vmem>>, %arg8: memref<16x32xf32, #tpu.memory_space<vmem>>, %arg9: memref<1x32xf32, #tpu.memory_space<vmem>>, %arg10: memref<32x32xf32, #tpu.memory_space<vmem>>, %arg11: memref<1x32xf32, #tpu.memory_space<vmem>>, %arg12: memref<1x32xf32, #tpu.memory_space<vmem>>, %arg13: memref<32x32xf32, #tpu.memory_space<vmem>>, %arg14: memref<1x32xf32, #tpu.memory_space<vmem>>, %arg15: memref<32x64xf32, #tpu.memory_space<vmem>>, %arg16: memref<1x64xf32, #tpu.memory_space<vmem>>, %arg17: memref<32x32xf32, #tpu.memory_space<vmem>>, %arg18: memref<1x32xf32, #tpu.memory_space<vmem>>, %arg19: memref<32x32xf32, #tpu.memory_space<vmem>>, %arg20: memref<1x32xf32, #tpu.memory_space<vmem>>, %arg21: memref<16x32xf32, #tpu.memory_space<vmem>>, %arg22: memref<1x32xf32, #tpu.memory_space<vmem>>, %arg23: memref<4x32xf32, #tpu.memory_space<vmem>>, %arg24: memref<8x32xf32, #tpu.memory_space<vmem>>, %arg25: memref<1x32xf32, #tpu.memory_space<vmem>>, %arg26: memref<2x8x16xf32, #tpu.memory_space<vmem>>, %arg27: memref<2x16xf32, #tpu.memory_space<vmem>>) attributes {dimension_semantics = [], scalar_prefetch = 0 : i64, scratch_operands = 0 : i64, tpu.core_type = #tpu.core_type<tc>} {
    %c0 = arith.constant 0 : index
    %c0_0 = arith.constant 0 : index
    %c0_1 = arith.constant 0 : index
    %0 = vector.load %arg0[%c0, %c0_0, %c0_1] : memref<2x10x16xf32, #tpu.memory_space<vmem>>, vector<2x10x16xf32>
    %1 = vector.extract_strided_slice %0 {offsets = [0, 0, 0], sizes = [2, 8, 16], strides = [1, 1, 1]} : vector<2x10x16xf32> to vector<2x8x16xf32>
    %2 = vector.shape_cast %1 : vector<2x8x16xf32> to vector<16x16xf32>
    %3 = vector.extract_strided_slice %0 {offsets = [0, 1, 0], sizes = [2, 8, 16], strides = [1, 1, 1]} : vector<2x10x16xf32> to vector<2x8x16xf32>
    %4 = vector.shape_cast %3 : vector<2x8x16xf32> to vector<16x16xf32>
    %5 = vector.extract_strided_slice %0 {offsets = [0, 2, 0], sizes = [2, 8, 16], strides = [1, 1, 1]} : vector<2x10x16xf32> to vector<2x8x16xf32>
    %6 = vector.shape_cast %5 : vector<2x8x16xf32> to vector<16x16xf32>
    %c0_2 = arith.constant 0 : index
    %c0_3 = arith.constant 0 : index
    %7 = vector.load %arg4[%c0_2, %c0_3] : memref<16x16xf32, #tpu.memory_space<vmem>>, vector<16x16xf32>
    %cst = arith.constant dense<0.000000e+00> : vector<16x16xf32>
    %8 = tpu.matmul %2, %7, %cst {dimension_numbers = #tpu.dot_dimension_numbers<[1], [0], [0], [1], [0, 0, 1, 1], [], []>} : vector<16x16xf32>, vector<16x16xf32>, vector<16x16xf32> -> vector<16x16xf32>
    %c0_4 = arith.constant 0 : index
    %c0_5 = arith.constant 0 : index
    %9 = vector.load %arg5[%c0_4, %c0_5] : memref<16x16xf32, #tpu.memory_space<vmem>>, vector<16x16xf32>
    %cst_6 = arith.constant dense<0.000000e+00> : vector<16x16xf32>
    %10 = tpu.matmul %4, %9, %cst_6 {dimension_numbers = #tpu.dot_dimension_numbers<[1], [0], [0], [1], [0, 0, 1, 1], [], []>} : vector<16x16xf32>, vector<16x16xf32>, vector<16x16xf32> -> vector<16x16xf32>
    %11 = arith.addf %8, %10 : vector<16x16xf32>
    %c0_7 = arith.constant 0 : index
    %c0_8 = arith.constant 0 : index
    %12 = vector.load %arg6[%c0_7, %c0_8] : memref<16x16xf32, #tpu.memory_space<vmem>>, vector<16x16xf32>
    %cst_9 = arith.constant dense<0.000000e+00> : vector<16x16xf32>
    %13 = tpu.matmul %6, %12, %cst_9 {dimension_numbers = #tpu.dot_dimension_numbers<[1], [0], [0], [1], [0, 0, 1, 1], [], []>} : vector<16x16xf32>, vector<16x16xf32>, vector<16x16xf32> -> vector<16x16xf32>
    %14 = arith.addf %11, %13 : vector<16x16xf32>
    %c0_10 = arith.constant 0 : index
    %c0_11 = arith.constant 0 : index
    %15 = vector.load %arg7[%c0_10, %c0_11] : memref<1x16xf32, #tpu.memory_space<vmem>>, vector<1x16xf32>
    %16 = vector.broadcast %15 : vector<1x16xf32> to vector<16x16xf32>
    %17 = arith.addf %14, %16 : vector<16x16xf32>
    %cst_12 = arith.constant 0.000000e+00 : f32
    %18 = vector.broadcast %cst_12 : f32 to vector<16x16xf32>
    %19 = arith.maximumf %17, %18 : vector<16x16xf32>
    %20 = vector.shape_cast %19 : vector<16x16xf32> to vector<2x8x16xf32>
    %c0_13 = arith.constant 0 : index
    %c0_14 = arith.constant 0 : index
    %c0_15 = arith.constant 0 : index
    %21 = vector.load %arg26[%c0_13, %c0_14, %c0_15] : memref<2x8x16xf32, #tpu.memory_space<vmem>>, vector<2x8x16xf32>
    tpu.vector_store %arg26[%c0_13, %c0_14, %c0_15], %20 {strides = array<i32>} : memref<2x8x16xf32, #tpu.memory_space<vmem>>, vector<2x8x16xf32>,
    %c0_16 = arith.constant 0 : index
    %c0_17 = arith.constant 0 : index
    %22 = vector.load %arg8[%c0_16, %c0_17] : memref<16x32xf32, #tpu.memory_space<vmem>>, vector<16x32xf32>
    %cst_18 = arith.constant dense<0.000000e+00> : vector<16x32xf32>
    %23 = tpu.matmul %19, %22, %cst_18 {dimension_numbers = #tpu.dot_dimension_numbers<[1], [0], [0], [1], [0, 0, 1, 1], [], []>} : vector<16x16xf32>, vector<16x32xf32>, vector<16x32xf32> -> vector<16x32xf32>
    %c0_19 = arith.constant 0 : index
    %c0_20 = arith.constant 0 : index
    %24 = vector.load %arg9[%c0_19, %c0_20] : memref<1x32xf32, #tpu.memory_space<vmem>>, vector<1x32xf32>
    %25 = vector.broadcast %24 : vector<1x32xf32> to vector<16x32xf32>
    %26 = arith.addf %23, %25 : vector<16x32xf32>
    %cst_21 = arith.constant 0.000000e+00 : f32
    %27 = vector.broadcast %cst_21 : f32 to vector<16x32xf32>
    %28 = arith.maximumf %26, %27 : vector<16x32xf32>
    %c0_22 = arith.constant 0 : index
    %c0_23 = arith.constant 0 : index
    %c0_24 = arith.constant 0 : index
    %29 = vector.load %arg1[%c0_22, %c0_23, %c0_24] : memref<2x8x32xf32, #tpu.memory_space<vmem>>, vector<2x8x32xf32>
    %30 = vector.shape_cast %29 : vector<2x8x32xf32> to vector<16x32xf32>
    %c0_25 = arith.constant 0 : index
    %c0_26 = arith.constant 0 : index
    %31 = vector.load %arg10[%c0_25, %c0_26] : memref<32x32xf32, #tpu.memory_space<vmem>>, vector<32x32xf32>
    %cst_27 = arith.constant dense<0.000000e+00> : vector<16x32xf32>
    %32 = tpu.matmul %30, %31, %cst_27 {dimension_numbers = #tpu.dot_dimension_numbers<[1], [0], [0], [1], [0, 0, 1, 1], [], []>} : vector<16x32xf32>, vector<32x32xf32>, vector<16x32xf32> -> vector<16x32xf32>
    %c0_28 = arith.constant 0 : index
    %c0_29 = arith.constant 0 : index
    %33 = vector.load %arg11[%c0_28, %c0_29] : memref<1x32xf32, #tpu.memory_space<vmem>>, vector<1x32xf32>
    %34 = vector.broadcast %33 : vector<1x32xf32> to vector<16x32xf32>
    %35 = arith.addf %32, %34 : vector<16x32xf32>
    %cst_30 = arith.constant 0.000000e+00 : f32
    %36 = vector.broadcast %cst_30 : f32 to vector<16x32xf32>
    %37 = arith.maximumf %35, %36 : vector<16x32xf32>
    %c0_31 = arith.constant 0 : index
    %c0_32 = arith.constant 0 : index
    %38 = vector.load %arg12[%c0_31, %c0_32] : memref<1x32xf32, #tpu.memory_space<vmem>>, vector<1x32xf32>
    %c0_33 = arith.constant 0 : index
    %c0_34 = arith.constant 0 : index
    %39 = vector.load %arg13[%c0_33, %c0_34] : memref<32x32xf32, #tpu.memory_space<vmem>>, vector<32x32xf32>
    %cst_35 = arith.constant dense<0.000000e+00> : vector<1x32xf32>
    %40 = tpu.matmul %38, %39, %cst_35 {dimension_numbers = #tpu.dot_dimension_numbers<[1], [0], [0], [1], [0, 0, 1, 1], [], []>} : vector<1x32xf32>, vector<32x32xf32>, vector<1x32xf32> -> vector<1x32xf32>
    %c0_36 = arith.constant 0 : index
    %c0_37 = arith.constant 0 : index
    %41 = vector.load %arg14[%c0_36, %c0_37] : memref<1x32xf32, #tpu.memory_space<vmem>>, vector<1x32xf32>
    %42 = arith.addf %40, %41 : vector<1x32xf32>
    %c0_38 = arith.constant 0 : index
    %c0_39 = arith.constant 0 : index
    %43 = vector.load %arg15[%c0_38, %c0_39] : memref<32x64xf32, #tpu.memory_space<vmem>>, vector<32x64xf32>
    %cst_40 = arith.constant dense<0.000000e+00> : vector<16x64xf32>
    %44 = tpu.matmul %28, %43, %cst_40 {dimension_numbers = #tpu.dot_dimension_numbers<[1], [0], [0], [1], [0, 0, 1, 1], [], []>} : vector<16x32xf32>, vector<32x64xf32>, vector<16x64xf32> -> vector<16x64xf32>
    %c0_41 = arith.constant 0 : index
    %c0_42 = arith.constant 0 : index
    %45 = vector.load %arg16[%c0_41, %c0_42] : memref<1x64xf32, #tpu.memory_space<vmem>>, vector<1x64xf32>
    %46 = vector.broadcast %45 : vector<1x64xf32> to vector<16x64xf32>
    %47 = arith.addf %44, %46 : vector<16x64xf32>
    %c0_43 = arith.constant 0 : index
    %c0_44 = arith.constant 0 : index
    %48 = vector.load %arg15[%c0_43, %c0_44] : memref<32x64xf32, #tpu.memory_space<vmem>>, vector<32x64xf32>
    %cst_45 = arith.constant dense<0.000000e+00> : vector<16x64xf32>
    %49 = tpu.matmul %37, %48, %cst_45 {dimension_numbers = #tpu.dot_dimension_numbers<[1], [0], [0], [1], [0, 0, 1, 1], [], []>} : vector<16x32xf32>, vector<32x64xf32>, vector<16x64xf32> -> vector<16x64xf32>
    %c0_46 = arith.constant 0 : index
    %c0_47 = arith.constant 0 : index
    %50 = vector.load %arg16[%c0_46, %c0_47] : memref<1x64xf32, #tpu.memory_space<vmem>>, vector<1x64xf32>
    %51 = vector.broadcast %50 : vector<1x64xf32> to vector<16x64xf32>
    %52 = arith.addf %49, %51 : vector<16x64xf32>
    %c0_48 = arith.constant 0 : index
    %c0_49 = arith.constant 0 : index
    %53 = vector.load %arg15[%c0_48, %c0_49] : memref<32x64xf32, #tpu.memory_space<vmem>>, vector<32x64xf32>
    %cst_50 = arith.constant dense<0.000000e+00> : vector<1x64xf32>
    %54 = tpu.matmul %38, %53, %cst_50 {dimension_numbers = #tpu.dot_dimension_numbers<[1], [0], [0], [1], [0, 0, 1, 1], [], []>} : vector<1x32xf32>, vector<32x64xf32>, vector<1x64xf32> -> vector<1x64xf32>
    %c0_51 = arith.constant 0 : index
    %c0_52 = arith.constant 0 : index
    %55 = vector.load %arg16[%c0_51, %c0_52] : memref<1x64xf32, #tpu.memory_space<vmem>>, vector<1x64xf32>
    %56 = arith.addf %54, %55 : vector<1x64xf32>
    %57 = vector.extract_strided_slice %47 {offsets = [0, 0], sizes = [16, 32], strides = [1, 1]} : vector<16x64xf32> to vector<16x32xf32>
    %58 = vector.shape_cast %57 : vector<16x32xf32> to vector<2x8x32xf32>
    %59 = vector.extract_strided_slice %47 {offsets = [0, 32], sizes = [16, 32], strides = [1, 1]} : vector<16x64xf32> to vector<16x32xf32>
    %60 = vector.shape_cast %59 : vector<16x32xf32> to vector<2x8x32xf32>
    %61 = vector.extract_strided_slice %52 {offsets = [0, 0], sizes = [16, 32], strides = [1, 1]} : vector<16x64xf32> to vector<16x32xf32>
    %62 = vector.shape_cast %61 : vector<16x32xf32> to vector<2x8x32xf32>
    %63 = vector.extract_strided_slice %52 {offsets = [0, 32], sizes = [16, 32], strides = [1, 1]} : vector<16x64xf32> to vector<16x32xf32>
    %64 = vector.shape_cast %63 : vector<16x32xf32> to vector<2x8x32xf32>
    %65 = vector.extract_strided_slice %56 {offsets = [0, 0], sizes = [1, 32], strides = [1, 1]} : vector<1x64xf32> to vector<1x32xf32>
    %66 = vector.extract_strided_slice %56 {offsets = [0, 32], sizes = [1, 32], strides = [1, 1]} : vector<1x64xf32> to vector<1x32xf32>
    %c0_53 = arith.constant 0 : index
    %c0_54 = arith.constant 0 : index
    %67 = vector.load %arg2[%c0_53, %c0_54] : memref<2x8xf32, #tpu.memory_space<vmem>>, vector<2x8xf32>
    %cst_55 = arith.constant 5.000000e-01 : f32
    %68 = vector.broadcast %cst_55 : f32 to vector<2x8xf32>
    %69 = arith.cmpf ogt, %67, %68 : vector<2x8xf32>
    %cst_56 = arith.constant 0.000000e+00 : f32
    %cst_57 = arith.constant -1.000000e+30 : f32
    %70 = vector.broadcast %cst_56 : f32 to vector<2x8xf32>
    %71 = vector.broadcast %cst_57 : f32 to vector<2x8xf32>
    %72 = arith.select %69, %70, %71 : vector<2x8xi1>, vector<2x8xf32>
    %c0_58 = arith.constant 0 : index
    %c0_59 = arith.constant 0 : index
    %73 = vector.load %arg3[%c0_58, %c0_59] : memref<2x8xf32, #tpu.memory_space<vmem>>, vector<2x8xf32>
    %cst_60 = arith.constant 5.000000e-01 : f32
    %74 = vector.broadcast %cst_60 : f32 to vector<2x8xf32>
    %75 = arith.cmpf ogt, %73, %74 : vector<2x8xf32>
    %cst_61 = arith.constant 0.000000e+00 : f32
    %cst_62 = arith.constant -1.000000e+30 : f32
    %76 = vector.broadcast %cst_61 : f32 to vector<2x8xf32>
    %77 = vector.broadcast %cst_62 : f32 to vector<2x8xf32>
    %78 = arith.select %75, %76, %77 : vector<2x8xi1>, vector<2x8xf32>
    %c0_63 = arith.constant 0 : index
    %c0_64 = arith.constant 0 : index
    %79 = vector.load %arg17[%c0_63, %c0_64] : memref<32x32xf32, #tpu.memory_space<vmem>>, vector<32x32xf32>
    %c0_65 = arith.constant 0 : index
    %c0_66 = arith.constant 0 : index
    %80 = vector.load %arg18[%c0_65, %c0_66] : memref<1x32xf32, #tpu.memory_space<vmem>>, vector<1x32xf32>
    %81 = vector.extract_strided_slice %42 {offsets = [0, 0], sizes = [1, 8], strides = [1, 1]} : vector<1x32xf32> to vector<1x8xf32>
    %82 = vector.extract_strided_slice %58 {offsets = [0, 0, 0], sizes = [2, 8, 8], strides = [1, 1, 1]} : vector<2x8x32xf32> to vector<2x8x8xf32>
    %83 = vector.shape_cast %81 : vector<1x8xf32> to vector<1x1x8xf32>
    %84 = vector.broadcast %83 : vector<1x1x8xf32> to vector<2x8x8xf32>
    %85 = arith.mulf %82, %84 : vector<2x8x8xf32>
    %cst_67 = arith.constant dense<0.000000e+00> : vector<2x8xf32>
    %86 = vector.multi_reduction <add>, %85, %cst_67 [2] : vector<2x8x8xf32> to vector<2x8xf32>
    %cst_68 = arith.constant 0.353553385 : f32
    %87 = vector.broadcast %cst_68 : f32 to vector<2x8xf32>
    %88 = arith.mulf %86, %87 : vector<2x8xf32>
    %89 = arith.addf %88, %72 : vector<2x8xf32>
    %90 = vector.extract_strided_slice %62 {offsets = [0, 0, 0], sizes = [2, 8, 8], strides = [1, 1, 1]} : vector<2x8x32xf32> to vector<2x8x8xf32>
    %91 = vector.shape_cast %81 : vector<1x8xf32> to vector<1x1x8xf32>
    %92 = vector.broadcast %91 : vector<1x1x8xf32> to vector<2x8x8xf32>
    %93 = arith.mulf %90, %92 : vector<2x8x8xf32>
    %cst_69 = arith.constant dense<0.000000e+00> : vector<2x8xf32>
    %94 = vector.multi_reduction <add>, %93, %cst_69 [2] : vector<2x8x8xf32> to vector<2x8xf32>
    %cst_70 = arith.constant 0.353553385 : f32
    %95 = vector.broadcast %cst_70 : f32 to vector<2x8xf32>
    %96 = arith.mulf %94, %95 : vector<2x8xf32>
    %97 = arith.addf %96, %78 : vector<2x8xf32>
    %98 = vector.extract_strided_slice %65 {offsets = [0, 0], sizes = [1, 8], strides = [1, 1]} : vector<1x32xf32> to vector<1x8xf32>
    %99 = arith.mulf %98, %81 : vector<1x8xf32>
    %cst_71 = arith.constant dense<0.000000e+00> : vector<1xf32>
    %100 = vector.multi_reduction <add>, %99, %cst_71 [1] : vector<1x8xf32> to vector<1xf32>
    %101 = vector.shape_cast %100 : vector<1xf32> to vector<1x1xf32>
    %cst_72 = arith.constant 0.353553385 : f32
    %102 = vector.broadcast %cst_72 : f32 to vector<1x1xf32>
    %103 = arith.mulf %101, %102 : vector<1x1xf32>
    %cst_73 = arith.constant dense<0xFF800000> : vector<2xf32>
    %104 = vector.multi_reduction <maximumf>, %89, %cst_73 [1] : vector<2x8xf32> to vector<2xf32>
    %105 = vector.shape_cast %104 : vector<2xf32> to vector<2x1xf32>
    %cst_74 = arith.constant dense<0xFF800000> : vector<2xf32>
    %106 = vector.multi_reduction <maximumf>, %97, %cst_74 [1] : vector<2x8xf32> to vector<2xf32>
    %107 = vector.shape_cast %106 : vector<2xf32> to vector<2x1xf32>
    %108 = arith.maximumf %105, %107 : vector<2x1xf32>
    %109 = vector.broadcast %103 : vector<1x1xf32> to vector<2x1xf32>
    %110 = arith.maximumf %108, %109 : vector<2x1xf32>
    %111 = vector.broadcast %110 : vector<2x1xf32> to vector<2x8xf32>
    %112 = arith.subf %89, %111 : vector<2x8xf32>
    %113 = math.exp %112 : vector<2x8xf32>
    %114 = vector.broadcast %110 : vector<2x1xf32> to vector<2x8xf32>
    %115 = arith.subf %97, %114 : vector<2x8xf32>
    %116 = math.exp %115 : vector<2x8xf32>
    %117 = vector.broadcast %103 : vector<1x1xf32> to vector<2x1xf32>
    %118 = arith.subf %117, %110 : vector<2x1xf32>
    %119 = math.exp %118 : vector<2x1xf32>
    %cst_75 = arith.constant dense<0.000000e+00> : vector<2xf32>
    %120 = vector.multi_reduction <add>, %113, %cst_75 [1] : vector<2x8xf32> to vector<2xf32>
    %121 = vector.shape_cast %120 : vector<2xf32> to vector<2x1xf32>
    %cst_76 = arith.constant dense<0.000000e+00> : vector<2xf32>
    %122 = vector.multi_reduction <add>, %116, %cst_76 [1] : vector<2x8xf32> to vector<2xf32>
    %123 = vector.shape_cast %122 : vector<2xf32> to vector<2x1xf32>
    %124 = arith.addf %121, %123 : vector<2x1xf32>
    %125 = arith.addf %124, %119 : vector<2x1xf32>
    %cst_77 = arith.constant 1.000000e+00 : f32
    %126 = vector.broadcast %cst_77 : f32 to vector<2x1xf32>
    %127 = arith.divf %126, %125 : vector<2x1xf32>
    %128 = vector.broadcast %127 : vector<2x1xf32> to vector<2x8xf32>
    %129 = arith.mulf %113, %128 : vector<2x8xf32>
    %130 = vector.shape_cast %129 : vector<2x8xf32> to vector<2x8x1xf32>
    %131 = vector.extract_strided_slice %60 {offsets = [0, 0, 0], sizes = [2, 8, 8], strides = [1, 1, 1]} : vector<2x8x32xf32> to vector<2x8x8xf32>
    %132 = vector.broadcast %130 : vector<2x8x1xf32> to vector<2x8x8xf32>
    %133 = arith.mulf %132, %131 : vector<2x8x8xf32>
    %cst_78 = arith.constant dense<0.000000e+00> : vector<2x8xf32>
    %134 = vector.multi_reduction <add>, %133, %cst_78 [1] : vector<2x8x8xf32> to vector<2x8xf32>
    %135 = arith.mulf %119, %127 : vector<2x1xf32>
    %136 = vector.extract_strided_slice %66 {offsets = [0, 0], sizes = [1, 8], strides = [1, 1]} : vector<1x32xf32> to vector<1x8xf32>
    %137 = vector.broadcast %135 : vector<2x1xf32> to vector<2x8xf32>
    %138 = vector.broadcast %136 : vector<1x8xf32> to vector<2x8xf32>
    %139 = arith.mulf %137, %138 : vector<2x8xf32>
    %140 = arith.addf %134, %139 : vector<2x8xf32>
    %141 = vector.broadcast %127 : vector<2x1xf32> to vector<2x8xf32>
    %142 = arith.mulf %116, %141 : vector<2x8xf32>
    %143 = vector.shape_cast %142 : vector<2x8xf32> to vector<2x8x1xf32>
    %144 = vector.extract_strided_slice %64 {offsets = [0, 0, 0], sizes = [2, 8, 8], strides = [1, 1, 1]} : vector<2x8x32xf32> to vector<2x8x8xf32>
    %145 = vector.broadcast %143 : vector<2x8x1xf32> to vector<2x8x8xf32>
    %146 = arith.mulf %145, %144 : vector<2x8x8xf32>
    %cst_79 = arith.constant dense<0.000000e+00> : vector<2x8xf32>
    %147 = vector.multi_reduction <add>, %146, %cst_79 [1] : vector<2x8x8xf32> to vector<2x8xf32>
    %148 = arith.addf %140, %147 : vector<2x8xf32>
    %149 = vector.extract_strided_slice %79 {offsets = [0, 0], sizes = [8, 32], strides = [1, 1]} : vector<32x32xf32> to vector<8x32xf32>
    %cst_80 = arith.constant dense<0.000000e+00> : vector<2x32xf32>
    %150 = tpu.matmul %148, %149, %cst_80 {dimension_numbers = #tpu.dot_dimension_numbers<[1], [0], [0], [1], [0, 0, 1, 1], [], []>} : vector<2x8xf32>, vector<8x32xf32>, vector<2x32xf32> -> vector<2x32xf32>
    %151 = vector.broadcast %80 : vector<1x32xf32> to vector<2x32xf32>
    %152 = arith.addf %151, %150 : vector<2x32xf32>
    %153 = vector.extract_strided_slice %42 {offsets = [0, 8], sizes = [1, 8], strides = [1, 1]} : vector<1x32xf32> to vector<1x8xf32>
    %154 = vector.extract_strided_slice %58 {offsets = [0, 0, 8], sizes = [2, 8, 8], strides = [1, 1, 1]} : vector<2x8x32xf32> to vector<2x8x8xf32>
    %155 = vector.shape_cast %153 : vector<1x8xf32> to vector<1x1x8xf32>
    %156 = vector.broadcast %155 : vector<1x1x8xf32> to vector<2x8x8xf32>
    %157 = arith.mulf %154, %156 : vector<2x8x8xf32>
    %cst_81 = arith.constant dense<0.000000e+00> : vector<2x8xf32>
    %158 = vector.multi_reduction <add>, %157, %cst_81 [2] : vector<2x8x8xf32> to vector<2x8xf32>
    %cst_82 = arith.constant 0.353553385 : f32
    %159 = vector.broadcast %cst_82 : f32 to vector<2x8xf32>
    %160 = arith.mulf %158, %159 : vector<2x8xf32>
    %161 = arith.addf %160, %72 : vector<2x8xf32>
    %162 = vector.extract_strided_slice %62 {offsets = [0, 0, 8], sizes = [2, 8, 8], strides = [1, 1, 1]} : vector<2x8x32xf32> to vector<2x8x8xf32>
    %163 = vector.shape_cast %153 : vector<1x8xf32> to vector<1x1x8xf32>
    %164 = vector.broadcast %163 : vector<1x1x8xf32> to vector<2x8x8xf32>
    %165 = arith.mulf %162, %164 : vector<2x8x8xf32>
    %cst_83 = arith.constant dense<0.000000e+00> : vector<2x8xf32>
    %166 = vector.multi_reduction <add>, %165, %cst_83 [2] : vector<2x8x8xf32> to vector<2x8xf32>
    %cst_84 = arith.constant 0.353553385 : f32
    %167 = vector.broadcast %cst_84 : f32 to vector<2x8xf32>
    %168 = arith.mulf %166, %167 : vector<2x8xf32>
    %169 = arith.addf %168, %78 : vector<2x8xf32>
    %170 = vector.extract_strided_slice %65 {offsets = [0, 8], sizes = [1, 8], strides = [1, 1]} : vector<1x32xf32> to vector<1x8xf32>
    %171 = arith.mulf %170, %153 : vector<1x8xf32>
    %cst_85 = arith.constant dense<0.000000e+00> : vector<1xf32>
    %172 = vector.multi_reduction <add>, %171, %cst_85 [1] : vector<1x8xf32> to vector<1xf32>
    %173 = vector.shape_cast %172 : vector<1xf32> to vector<1x1xf32>
    %cst_86 = arith.constant 0.353553385 : f32
    %174 = vector.broadcast %cst_86 : f32 to vector<1x1xf32>
    %175 = arith.mulf %173, %174 : vector<1x1xf32>
    %cst_87 = arith.constant dense<0xFF800000> : vector<2xf32>
    %176 = vector.multi_reduction <maximumf>, %161, %cst_87 [1] : vector<2x8xf32> to vector<2xf32>
    %177 = vector.shape_cast %176 : vector<2xf32> to vector<2x1xf32>
    %cst_88 = arith.constant dense<0xFF800000> : vector<2xf32>
    %178 = vector.multi_reduction <maximumf>, %169, %cst_88 [1] : vector<2x8xf32> to vector<2xf32>
    %179 = vector.shape_cast %178 : vector<2xf32> to vector<2x1xf32>
    %180 = arith.maximumf %177, %179 : vector<2x1xf32>
    %181 = vector.broadcast %175 : vector<1x1xf32> to vector<2x1xf32>
    %182 = arith.maximumf %180, %181 : vector<2x1xf32>
    %183 = vector.broadcast %182 : vector<2x1xf32> to vector<2x8xf32>
    %184 = arith.subf %161, %183 : vector<2x8xf32>
    %185 = math.exp %184 : vector<2x8xf32>
    %186 = vector.broadcast %182 : vector<2x1xf32> to vector<2x8xf32>
    %187 = arith.subf %169, %186 : vector<2x8xf32>
    %188 = math.exp %187 : vector<2x8xf32>
    %189 = vector.broadcast %175 : vector<1x1xf32> to vector<2x1xf32>
    %190 = arith.subf %189, %182 : vector<2x1xf32>
    %191 = math.exp %190 : vector<2x1xf32>
    %cst_89 = arith.constant dense<0.000000e+00> : vector<2xf32>
    %192 = vector.multi_reduction <add>, %185, %cst_89 [1] : vector<2x8xf32> to vector<2xf32>
    %193 = vector.shape_cast %192 : vector<2xf32> to vector<2x1xf32>
    %cst_90 = arith.constant dense<0.000000e+00> : vector<2xf32>
    %194 = vector.multi_reduction <add>, %188, %cst_90 [1] : vector<2x8xf32> to vector<2xf32>
    %195 = vector.shape_cast %194 : vector<2xf32> to vector<2x1xf32>
    %196 = arith.addf %193, %195 : vector<2x1xf32>
    %197 = arith.addf %196, %191 : vector<2x1xf32>
    %cst_91 = arith.constant 1.000000e+00 : f32
    %198 = vector.broadcast %cst_91 : f32 to vector<2x1xf32>
    %199 = arith.divf %198, %197 : vector<2x1xf32>
    %200 = vector.broadcast %199 : vector<2x1xf32> to vector<2x8xf32>
    %201 = arith.mulf %185, %200 : vector<2x8xf32>
    %202 = vector.shape_cast %201 : vector<2x8xf32> to vector<2x8x1xf32>
    %203 = vector.extract_strided_slice %60 {offsets = [0, 0, 8], sizes = [2, 8, 8], strides = [1, 1, 1]} : vector<2x8x32xf32> to vector<2x8x8xf32>
    %204 = vector.broadcast %202 : vector<2x8x1xf32> to vector<2x8x8xf32>
    %205 = arith.mulf %204, %203 : vector<2x8x8xf32>
    %cst_92 = arith.constant dense<0.000000e+00> : vector<2x8xf32>
    %206 = vector.multi_reduction <add>, %205, %cst_92 [1] : vector<2x8x8xf32> to vector<2x8xf32>
    %207 = arith.mulf %191, %199 : vector<2x1xf32>
    %208 = vector.extract_strided_slice %66 {offsets = [0, 8], sizes = [1, 8], strides = [1, 1]} : vector<1x32xf32> to vector<1x8xf32>
    %209 = vector.broadcast %207 : vector<2x1xf32> to vector<2x8xf32>
    %210 = vector.broadcast %208 : vector<1x8xf32> to vector<2x8xf32>
    %211 = arith.mulf %209, %210 : vector<2x8xf32>
    %212 = arith.addf %206, %211 : vector<2x8xf32>
    %213 = vector.broadcast %199 : vector<2x1xf32> to vector<2x8xf32>
    %214 = arith.mulf %188, %213 : vector<2x8xf32>
    %215 = vector.shape_cast %214 : vector<2x8xf32> to vector<2x8x1xf32>
    %216 = vector.extract_strided_slice %64 {offsets = [0, 0, 8], sizes = [2, 8, 8], strides = [1, 1, 1]} : vector<2x8x32xf32> to vector<2x8x8xf32>
    %217 = vector.broadcast %215 : vector<2x8x1xf32> to vector<2x8x8xf32>
    %218 = arith.mulf %217, %216 : vector<2x8x8xf32>
    %cst_93 = arith.constant dense<0.000000e+00> : vector<2x8xf32>
    %219 = vector.multi_reduction <add>, %218, %cst_93 [1] : vector<2x8x8xf32> to vector<2x8xf32>
    %220 = arith.addf %212, %219 : vector<2x8xf32>
    %221 = vector.extract_strided_slice %79 {offsets = [8, 0], sizes = [8, 32], strides = [1, 1]} : vector<32x32xf32> to vector<8x32xf32>
    %cst_94 = arith.constant dense<0.000000e+00> : vector<2x32xf32>
    %222 = tpu.matmul %220, %221, %cst_94 {dimension_numbers = #tpu.dot_dimension_numbers<[1], [0], [0], [1], [0, 0, 1, 1], [], []>} : vector<2x8xf32>, vector<8x32xf32>, vector<2x32xf32> -> vector<2x32xf32>
    %223 = arith.addf %152, %222 : vector<2x32xf32>
    %224 = vector.extract_strided_slice %42 {offsets = [0, 16], sizes = [1, 8], strides = [1, 1]} : vector<1x32xf32> to vector<1x8xf32>
    %225 = vector.extract_strided_slice %58 {offsets = [0, 0, 16], sizes = [2, 8, 8], strides = [1, 1, 1]} : vector<2x8x32xf32> to vector<2x8x8xf32>
    %226 = vector.shape_cast %224 : vector<1x8xf32> to vector<1x1x8xf32>
    %227 = vector.broadcast %226 : vector<1x1x8xf32> to vector<2x8x8xf32>
    %228 = arith.mulf %225, %227 : vector<2x8x8xf32>
    %cst_95 = arith.constant dense<0.000000e+00> : vector<2x8xf32>
    %229 = vector.multi_reduction <add>, %228, %cst_95 [2] : vector<2x8x8xf32> to vector<2x8xf32>
    %cst_96 = arith.constant 0.353553385 : f32
    %230 = vector.broadcast %cst_96 : f32 to vector<2x8xf32>
    %231 = arith.mulf %229, %230 : vector<2x8xf32>
    %232 = arith.addf %231, %72 : vector<2x8xf32>
    %233 = vector.extract_strided_slice %62 {offsets = [0, 0, 16], sizes = [2, 8, 8], strides = [1, 1, 1]} : vector<2x8x32xf32> to vector<2x8x8xf32>
    %234 = vector.shape_cast %224 : vector<1x8xf32> to vector<1x1x8xf32>
    %235 = vector.broadcast %234 : vector<1x1x8xf32> to vector<2x8x8xf32>
    %236 = arith.mulf %233, %235 : vector<2x8x8xf32>
    %cst_97 = arith.constant dense<0.000000e+00> : vector<2x8xf32>
    %237 = vector.multi_reduction <add>, %236, %cst_97 [2] : vector<2x8x8xf32> to vector<2x8xf32>
    %cst_98 = arith.constant 0.353553385 : f32
    %238 = vector.broadcast %cst_98 : f32 to vector<2x8xf32>
    %239 = arith.mulf %237, %238 : vector<2x8xf32>
    %240 = arith.addf %239, %78 : vector<2x8xf32>
    %241 = vector.extract_strided_slice %65 {offsets = [0, 16], sizes = [1, 8], strides = [1, 1]} : vector<1x32xf32> to vector<1x8xf32>
    %242 = arith.mulf %241, %224 : vector<1x8xf32>
    %cst_99 = arith.constant dense<0.000000e+00> : vector<1xf32>
    %243 = vector.multi_reduction <add>, %242, %cst_99 [1] : vector<1x8xf32> to vector<1xf32>
    %244 = vector.shape_cast %243 : vector<1xf32> to vector<1x1xf32>
    %cst_100 = arith.constant 0.353553385 : f32
    %245 = vector.broadcast %cst_100 : f32 to vector<1x1xf32>
    %246 = arith.mulf %244, %245 : vector<1x1xf32>
    %cst_101 = arith.constant dense<0xFF800000> : vector<2xf32>
    %247 = vector.multi_reduction <maximumf>, %232, %cst_101 [1] : vector<2x8xf32> to vector<2xf32>
    %248 = vector.shape_cast %247 : vector<2xf32> to vector<2x1xf32>
    %cst_102 = arith.constant dense<0xFF800000> : vector<2xf32>
    %249 = vector.multi_reduction <maximumf>, %240, %cst_102 [1] : vector<2x8xf32> to vector<2xf32>
    %250 = vector.shape_cast %249 : vector<2xf32> to vector<2x1xf32>
    %251 = arith.maximumf %248, %250 : vector<2x1xf32>
    %252 = vector.broadcast %246 : vector<1x1xf32> to vector<2x1xf32>
    %253 = arith.maximumf %251, %252 : vector<2x1xf32>
    %254 = vector.broadcast %253 : vector<2x1xf32> to vector<2x8xf32>
    %255 = arith.subf %232, %254 : vector<2x8xf32>
    %256 = math.exp %255 : vector<2x8xf32>
    %257 = vector.broadcast %253 : vector<2x1xf32> to vector<2x8xf32>
    %258 = arith.subf %240, %257 : vector<2x8xf32>
    %259 = math.exp %258 : vector<2x8xf32>
    %260 = vector.broadcast %246 : vector<1x1xf32> to vector<2x1xf32>
    %261 = arith.subf %260, %253 : vector<2x1xf32>
    %262 = math.exp %261 : vector<2x1xf32>
    %cst_103 = arith.constant dense<0.000000e+00> : vector<2xf32>
    %263 = vector.multi_reduction <add>, %256, %cst_103 [1] : vector<2x8xf32> to vector<2xf32>
    %264 = vector.shape_cast %263 : vector<2xf32> to vector<2x1xf32>
    %cst_104 = arith.constant dense<0.000000e+00> : vector<2xf32>
    %265 = vector.multi_reduction <add>, %259, %cst_104 [1] : vector<2x8xf32> to vector<2xf32>
    %266 = vector.shape_cast %265 : vector<2xf32> to vector<2x1xf32>
    %267 = arith.addf %264, %266 : vector<2x1xf32>
    %268 = arith.addf %267, %262 : vector<2x1xf32>
    %cst_105 = arith.constant 1.000000e+00 : f32
    %269 = vector.broadcast %cst_105 : f32 to vector<2x1xf32>
    %270 = arith.divf %269, %268 : vector<2x1xf32>
    %271 = vector.broadcast %270 : vector<2x1xf32> to vector<2x8xf32>
    %272 = arith.mulf %256, %271 : vector<2x8xf32>
    %273 = vector.shape_cast %272 : vector<2x8xf32> to vector<2x8x1xf32>
    %274 = vector.extract_strided_slice %60 {offsets = [0, 0, 16], sizes = [2, 8, 8], strides = [1, 1, 1]} : vector<2x8x32xf32> to vector<2x8x8xf32>
    %275 = vector.broadcast %273 : vector<2x8x1xf32> to vector<2x8x8xf32>
    %276 = arith.mulf %275, %274 : vector<2x8x8xf32>
    %cst_106 = arith.constant dense<0.000000e+00> : vector<2x8xf32>
    %277 = vector.multi_reduction <add>, %276, %cst_106 [1] : vector<2x8x8xf32> to vector<2x8xf32>
    %278 = arith.mulf %262, %270 : vector<2x1xf32>
    %279 = vector.extract_strided_slice %66 {offsets = [0, 16], sizes = [1, 8], strides = [1, 1]} : vector<1x32xf32> to vector<1x8xf32>
    %280 = vector.broadcast %278 : vector<2x1xf32> to vector<2x8xf32>
    %281 = vector.broadcast %279 : vector<1x8xf32> to vector<2x8xf32>
    %282 = arith.mulf %280, %281 : vector<2x8xf32>
    %283 = arith.addf %277, %282 : vector<2x8xf32>
    %284 = vector.broadcast %270 : vector<2x1xf32> to vector<2x8xf32>
    %285 = arith.mulf %259, %284 : vector<2x8xf32>
    %286 = vector.shape_cast %285 : vector<2x8xf32> to vector<2x8x1xf32>
    %287 = vector.extract_strided_slice %64 {offsets = [0, 0, 16], sizes = [2, 8, 8], strides = [1, 1, 1]} : vector<2x8x32xf32> to vector<2x8x8xf32>
    %288 = vector.broadcast %286 : vector<2x8x1xf32> to vector<2x8x8xf32>
    %289 = arith.mulf %288, %287 : vector<2x8x8xf32>
    %cst_107 = arith.constant dense<0.000000e+00> : vector<2x8xf32>
    %290 = vector.multi_reduction <add>, %289, %cst_107 [1] : vector<2x8x8xf32> to vector<2x8xf32>
    %291 = arith.addf %283, %290 : vector<2x8xf32>
    %292 = vector.extract_strided_slice %79 {offsets = [16, 0], sizes = [8, 32], strides = [1, 1]} : vector<32x32xf32> to vector<8x32xf32>
    %cst_108 = arith.constant dense<0.000000e+00> : vector<2x32xf32>
    %293 = tpu.matmul %291, %292, %cst_108 {dimension_numbers = #tpu.dot_dimension_numbers<[1], [0], [0], [1], [0, 0, 1, 1], [], []>} : vector<2x8xf32>, vector<8x32xf32>, vector<2x32xf32> -> vector<2x32xf32>
    %294 = arith.addf %223, %293 : vector<2x32xf32>
    %295 = vector.extract_strided_slice %42 {offsets = [0, 24], sizes = [1, 8], strides = [1, 1]} : vector<1x32xf32> to vector<1x8xf32>
    %296 = vector.extract_strided_slice %58 {offsets = [0, 0, 24], sizes = [2, 8, 8], strides = [1, 1, 1]} : vector<2x8x32xf32> to vector<2x8x8xf32>
    %297 = vector.shape_cast %295 : vector<1x8xf32> to vector<1x1x8xf32>
    %298 = vector.broadcast %297 : vector<1x1x8xf32> to vector<2x8x8xf32>
    %299 = arith.mulf %296, %298 : vector<2x8x8xf32>
    %cst_109 = arith.constant dense<0.000000e+00> : vector<2x8xf32>
    %300 = vector.multi_reduction <add>, %299, %cst_109 [2] : vector<2x8x8xf32> to vector<2x8xf32>
    %cst_110 = arith.constant 0.353553385 : f32
    %301 = vector.broadcast %cst_110 : f32 to vector<2x8xf32>
    %302 = arith.mulf %300, %301 : vector<2x8xf32>
    %303 = arith.addf %302, %72 : vector<2x8xf32>
    %304 = vector.extract_strided_slice %62 {offsets = [0, 0, 24], sizes = [2, 8, 8], strides = [1, 1, 1]} : vector<2x8x32xf32> to vector<2x8x8xf32>
    %305 = vector.shape_cast %295 : vector<1x8xf32> to vector<1x1x8xf32>
    %306 = vector.broadcast %305 : vector<1x1x8xf32> to vector<2x8x8xf32>
    %307 = arith.mulf %304, %306 : vector<2x8x8xf32>
    %cst_111 = arith.constant dense<0.000000e+00> : vector<2x8xf32>
    %308 = vector.multi_reduction <add>, %307, %cst_111 [2] : vector<2x8x8xf32> to vector<2x8xf32>
    %cst_112 = arith.constant 0.353553385 : f32
    %309 = vector.broadcast %cst_112 : f32 to vector<2x8xf32>
    %310 = arith.mulf %308, %309 : vector<2x8xf32>
    %311 = arith.addf %310, %78 : vector<2x8xf32>
    %312 = vector.extract_strided_slice %65 {offsets = [0, 24], sizes = [1, 8], strides = [1, 1]} : vector<1x32xf32> to vector<1x8xf32>
    %313 = arith.mulf %312, %295 : vector<1x8xf32>
    %cst_113 = arith.constant dense<0.000000e+00> : vector<1xf32>
    %314 = vector.multi_reduction <add>, %313, %cst_113 [1] : vector<1x8xf32> to vector<1xf32>
    %315 = vector.shape_cast %314 : vector<1xf32> to vector<1x1xf32>
    %cst_114 = arith.constant 0.353553385 : f32
    %316 = vector.broadcast %cst_114 : f32 to vector<1x1xf32>
    %317 = arith.mulf %315, %316 : vector<1x1xf32>
    %cst_115 = arith.constant dense<0xFF800000> : vector<2xf32>
    %318 = vector.multi_reduction <maximumf>, %303, %cst_115 [1] : vector<2x8xf32> to vector<2xf32>
    %319 = vector.shape_cast %318 : vector<2xf32> to vector<2x1xf32>
    %cst_116 = arith.constant dense<0xFF800000> : vector<2xf32>
    %320 = vector.multi_reduction <maximumf>, %311, %cst_116 [1] : vector<2x8xf32> to vector<2xf32>
    %321 = vector.shape_cast %320 : vector<2xf32> to vector<2x1xf32>
    %322 = arith.maximumf %319, %321 : vector<2x1xf32>
    %323 = vector.broadcast %317 : vector<1x1xf32> to vector<2x1xf32>
    %324 = arith.maximumf %322, %323 : vector<2x1xf32>
    %325 = vector.broadcast %324 : vector<2x1xf32> to vector<2x8xf32>
    %326 = arith.subf %303, %325 : vector<2x8xf32>
    %327 = math.exp %326 : vector<2x8xf32>
    %328 = vector.broadcast %324 : vector<2x1xf32> to vector<2x8xf32>
    %329 = arith.subf %311, %328 : vector<2x8xf32>
    %330 = math.exp %329 : vector<2x8xf32>
    %331 = vector.broadcast %317 : vector<1x1xf32> to vector<2x1xf32>
    %332 = arith.subf %331, %324 : vector<2x1xf32>
    %333 = math.exp %332 : vector<2x1xf32>
    %cst_117 = arith.constant dense<0.000000e+00> : vector<2xf32>
    %334 = vector.multi_reduction <add>, %327, %cst_117 [1] : vector<2x8xf32> to vector<2xf32>
    %335 = vector.shape_cast %334 : vector<2xf32> to vector<2x1xf32>
    %cst_118 = arith.constant dense<0.000000e+00> : vector<2xf32>
    %336 = vector.multi_reduction <add>, %330, %cst_118 [1] : vector<2x8xf32> to vector<2xf32>
    %337 = vector.shape_cast %336 : vector<2xf32> to vector<2x1xf32>
    %338 = arith.addf %335, %337 : vector<2x1xf32>
    %339 = arith.addf %338, %333 : vector<2x1xf32>
    %cst_119 = arith.constant 1.000000e+00 : f32
    %340 = vector.broadcast %cst_119 : f32 to vector<2x1xf32>
    %341 = arith.divf %340, %339 : vector<2x1xf32>
    %342 = vector.broadcast %341 : vector<2x1xf32> to vector<2x8xf32>
    %343 = arith.mulf %327, %342 : vector<2x8xf32>
    %344 = vector.shape_cast %343 : vector<2x8xf32> to vector<2x8x1xf32>
    %345 = vector.extract_strided_slice %60 {offsets = [0, 0, 24], sizes = [2, 8, 8], strides = [1, 1, 1]} : vector<2x8x32xf32> to vector<2x8x8xf32>
    %346 = vector.broadcast %344 : vector<2x8x1xf32> to vector<2x8x8xf32>
    %347 = arith.mulf %346, %345 : vector<2x8x8xf32>
    %cst_120 = arith.constant dense<0.000000e+00> : vector<2x8xf32>
    %348 = vector.multi_reduction <add>, %347, %cst_120 [1] : vector<2x8x8xf32> to vector<2x8xf32>
    %349 = arith.mulf %333, %341 : vector<2x1xf32>
    %350 = vector.extract_strided_slice %66 {offsets = [0, 24], sizes = [1, 8], strides = [1, 1]} : vector<1x32xf32> to vector<1x8xf32>
    %351 = vector.broadcast %349 : vector<2x1xf32> to vector<2x8xf32>
    %352 = vector.broadcast %350 : vector<1x8xf32> to vector<2x8xf32>
    %353 = arith.mulf %351, %352 : vector<2x8xf32>
    %354 = arith.addf %348, %353 : vector<2x8xf32>
    %355 = vector.broadcast %341 : vector<2x1xf32> to vector<2x8xf32>
    %356 = arith.mulf %330, %355 : vector<2x8xf32>
    %357 = vector.shape_cast %356 : vector<2x8xf32> to vector<2x8x1xf32>
    %358 = vector.extract_strided_slice %64 {offsets = [0, 0, 24], sizes = [2, 8, 8], strides = [1, 1, 1]} : vector<2x8x32xf32> to vector<2x8x8xf32>
    %359 = vector.broadcast %357 : vector<2x8x1xf32> to vector<2x8x8xf32>
    %360 = arith.mulf %359, %358 : vector<2x8x8xf32>
    %cst_121 = arith.constant dense<0.000000e+00> : vector<2x8xf32>
    %361 = vector.multi_reduction <add>, %360, %cst_121 [1] : vector<2x8x8xf32> to vector<2x8xf32>
    %362 = arith.addf %354, %361 : vector<2x8xf32>
    %363 = vector.extract_strided_slice %79 {offsets = [24, 0], sizes = [8, 32], strides = [1, 1]} : vector<32x32xf32> to vector<8x32xf32>
    %cst_122 = arith.constant dense<0.000000e+00> : vector<2x32xf32>
    %364 = tpu.matmul %362, %363, %cst_122 {dimension_numbers = #tpu.dot_dimension_numbers<[1], [0], [0], [1], [0, 0, 1, 1], [], []>} : vector<2x8xf32>, vector<8x32xf32>, vector<2x32xf32> -> vector<2x32xf32>
    %365 = arith.addf %294, %364 : vector<2x32xf32>
    %c0_123 = arith.constant 0 : index
    %c0_124 = arith.constant 0 : index
    %366 = vector.load %arg19[%c0_123, %c0_124] : memref<32x32xf32, #tpu.memory_space<vmem>>, vector<32x32xf32>
    %cst_125 = arith.constant dense<0.000000e+00> : vector<2x32xf32>
    %367 = tpu.matmul %365, %366, %cst_125 {dimension_numbers = #tpu.dot_dimension_numbers<[1], [0], [0], [1], [0, 0, 1, 1], [], []>} : vector<2x32xf32>, vector<32x32xf32>, vector<2x32xf32> -> vector<2x32xf32>
    %c0_126 = arith.constant 0 : index
    %c0_127 = arith.constant 0 : index
    %368 = vector.load %arg20[%c0_126, %c0_127] : memref<1x32xf32, #tpu.memory_space<vmem>>, vector<1x32xf32>
    %369 = vector.broadcast %368 : vector<1x32xf32> to vector<2x32xf32>
    %370 = arith.addf %367, %369 : vector<2x32xf32>
    %c0_128 = arith.constant 0 : index
    %c0_129 = arith.constant 0 : index
    %371 = vector.load %arg21[%c0_128, %c0_129] : memref<16x32xf32, #tpu.memory_space<vmem>>, vector<16x32xf32>
    %cst_130 = arith.constant dense<0.000000e+00> : vector<16x32xf32>
    %372 = tpu.matmul %19, %371, %cst_130 {dimension_numbers = #tpu.dot_dimension_numbers<[1], [0], [0], [1], [0, 0, 1, 1], [], []>} : vector<16x16xf32>, vector<16x32xf32>, vector<16x32xf32> -> vector<16x32xf32>
    %c0_131 = arith.constant 0 : index
    %c0_132 = arith.constant 0 : index
    %373 = vector.load %arg22[%c0_131, %c0_132] : memref<1x32xf32, #tpu.memory_space<vmem>>, vector<1x32xf32>
    %374 = vector.broadcast %373 : vector<1x32xf32> to vector<16x32xf32>
    %375 = arith.addf %372, %374 : vector<16x32xf32>
    %376 = vector.shape_cast %375 : vector<16x32xf32> to vector<2x8x32xf32>
    %c0_133 = arith.constant 0 : index
    %c0_134 = arith.constant 0 : index
    %377 = vector.load %arg23[%c0_133, %c0_134] : memref<4x32xf32, #tpu.memory_space<vmem>>, vector<4x32xf32>
    %cst_135 = arith.constant 0.000000e+00 : f32
    %378 = vector.broadcast %cst_135 : f32 to vector<2x8x32xf32>
    %379 = vector.extract_strided_slice %376 {offsets = [0, 0, 0], sizes = [2, 8, 8], strides = [1, 1, 1]} : vector<2x8x32xf32> to vector<2x8x8xf32>
    %380 = vector.extract_strided_slice %370 {offsets = [0, 0], sizes = [2, 8], strides = [1, 1]} : vector<2x32xf32> to vector<2x8xf32>
    %381 = vector.shape_cast %380 : vector<2x8xf32> to vector<2x1x8xf32>
    %382 = vector.broadcast %381 : vector<2x1x8xf32> to vector<2x8x8xf32>
    %383 = arith.mulf %379, %382 : vector<2x8x8xf32>
    %cst_136 = arith.constant dense<0.000000e+00> : vector<2x8xf32>
    %384 = vector.multi_reduction <add>, %383, %cst_136 [2] : vector<2x8x8xf32> to vector<2x8xf32>
    %cst_137 = arith.constant 0.353553385 : f32
    %385 = vector.broadcast %cst_137 : f32 to vector<2x8xf32>
    %386 = arith.mulf %384, %385 : vector<2x8xf32>
    %cst_138 = arith.constant dense<0xFF800000> : vector<2xf32>
    %387 = vector.multi_reduction <maximumf>, %386, %cst_138 [1] : vector<2x8xf32> to vector<2xf32>
    %388 = vector.shape_cast %387 : vector<2xf32> to vector<2x1xf32>
    %389 = vector.broadcast %388 : vector<2x1xf32> to vector<2x8xf32>
    %390 = arith.subf %386, %389 : vector<2x8xf32>
    %391 = math.exp %390 : vector<2x8xf32>
    %cst_139 = arith.constant dense<0.000000e+00> : vector<2xf32>
    %392 = vector.multi_reduction <add>, %391, %cst_139 [1] : vector<2x8xf32> to vector<2xf32>
    %393 = vector.shape_cast %392 : vector<2xf32> to vector<2x1xf32>
    %394 = vector.broadcast %393 : vector<2x1xf32> to vector<2x8xf32>
    %395 = arith.divf %391, %394 : vector<2x8xf32>
    %396 = vector.shape_cast %395 : vector<2x8xf32> to vector<2x8x1xf32>
    %397 = vector.extract_strided_slice %377 {offsets = [0, 0], sizes = [1, 32], strides = [1, 1]} : vector<4x32xf32> to vector<1x32xf32>
    %398 = vector.shape_cast %397 : vector<1x32xf32> to vector<1x1x32xf32>
    %399 = vector.broadcast %396 : vector<2x8x1xf32> to vector<2x8x32xf32>
    %400 = vector.broadcast %398 : vector<1x1x32xf32> to vector<2x8x32xf32>
    %401 = arith.mulf %399, %400 : vector<2x8x32xf32>
    %402 = arith.addf %378, %401 : vector<2x8x32xf32>
    %403 = vector.extract_strided_slice %376 {offsets = [0, 0, 8], sizes = [2, 8, 8], strides = [1, 1, 1]} : vector<2x8x32xf32> to vector<2x8x8xf32>
    %404 = vector.extract_strided_slice %370 {offsets = [0, 8], sizes = [2, 8], strides = [1, 1]} : vector<2x32xf32> to vector<2x8xf32>
    %405 = vector.shape_cast %404 : vector<2x8xf32> to vector<2x1x8xf32>
    %406 = vector.broadcast %405 : vector<2x1x8xf32> to vector<2x8x8xf32>
    %407 = arith.mulf %403, %406 : vector<2x8x8xf32>
    %cst_140 = arith.constant dense<0.000000e+00> : vector<2x8xf32>
    %408 = vector.multi_reduction <add>, %407, %cst_140 [2] : vector<2x8x8xf32> to vector<2x8xf32>
    %cst_141 = arith.constant 0.353553385 : f32
    %409 = vector.broadcast %cst_141 : f32 to vector<2x8xf32>
    %410 = arith.mulf %408, %409 : vector<2x8xf32>
    %cst_142 = arith.constant dense<0xFF800000> : vector<2xf32>
    %411 = vector.multi_reduction <maximumf>, %410, %cst_142 [1] : vector<2x8xf32> to vector<2xf32>
    %412 = vector.shape_cast %411 : vector<2xf32> to vector<2x1xf32>
    %413 = vector.broadcast %412 : vector<2x1xf32> to vector<2x8xf32>
    %414 = arith.subf %410, %413 : vector<2x8xf32>
    %415 = math.exp %414 : vector<2x8xf32>
    %cst_143 = arith.constant dense<0.000000e+00> : vector<2xf32>
    %416 = vector.multi_reduction <add>, %415, %cst_143 [1] : vector<2x8xf32> to vector<2xf32>
    %417 = vector.shape_cast %416 : vector<2xf32> to vector<2x1xf32>
    %418 = vector.broadcast %417 : vector<2x1xf32> to vector<2x8xf32>
    %419 = arith.divf %415, %418 : vector<2x8xf32>
    %420 = vector.shape_cast %419 : vector<2x8xf32> to vector<2x8x1xf32>
    %421 = vector.extract_strided_slice %377 {offsets = [1, 0], sizes = [1, 32], strides = [1, 1]} : vector<4x32xf32> to vector<1x32xf32>
    %422 = vector.shape_cast %421 : vector<1x32xf32> to vector<1x1x32xf32>
    %423 = vector.broadcast %420 : vector<2x8x1xf32> to vector<2x8x32xf32>
    %424 = vector.broadcast %422 : vector<1x1x32xf32> to vector<2x8x32xf32>
    %425 = arith.mulf %423, %424 : vector<2x8x32xf32>
    %426 = arith.addf %402, %425 : vector<2x8x32xf32>
    %427 = vector.extract_strided_slice %376 {offsets = [0, 0, 16], sizes = [2, 8, 8], strides = [1, 1, 1]} : vector<2x8x32xf32> to vector<2x8x8xf32>
    %428 = vector.extract_strided_slice %370 {offsets = [0, 16], sizes = [2, 8], strides = [1, 1]} : vector<2x32xf32> to vector<2x8xf32>
    %429 = vector.shape_cast %428 : vector<2x8xf32> to vector<2x1x8xf32>
    %430 = vector.broadcast %429 : vector<2x1x8xf32> to vector<2x8x8xf32>
    %431 = arith.mulf %427, %430 : vector<2x8x8xf32>
    %cst_144 = arith.constant dense<0.000000e+00> : vector<2x8xf32>
    %432 = vector.multi_reduction <add>, %431, %cst_144 [2] : vector<2x8x8xf32> to vector<2x8xf32>
    %cst_145 = arith.constant 0.353553385 : f32
    %433 = vector.broadcast %cst_145 : f32 to vector<2x8xf32>
    %434 = arith.mulf %432, %433 : vector<2x8xf32>
    %cst_146 = arith.constant dense<0xFF800000> : vector<2xf32>
    %435 = vector.multi_reduction <maximumf>, %434, %cst_146 [1] : vector<2x8xf32> to vector<2xf32>
    %436 = vector.shape_cast %435 : vector<2xf32> to vector<2x1xf32>
    %437 = vector.broadcast %436 : vector<2x1xf32> to vector<2x8xf32>
    %438 = arith.subf %434, %437 : vector<2x8xf32>
    %439 = math.exp %438 : vector<2x8xf32>
    %cst_147 = arith.constant dense<0.000000e+00> : vector<2xf32>
    %440 = vector.multi_reduction <add>, %439, %cst_147 [1] : vector<2x8xf32> to vector<2xf32>
    %441 = vector.shape_cast %440 : vector<2xf32> to vector<2x1xf32>
    %442 = vector.broadcast %441 : vector<2x1xf32> to vector<2x8xf32>
    %443 = arith.divf %439, %442 : vector<2x8xf32>
    %444 = vector.shape_cast %443 : vector<2x8xf32> to vector<2x8x1xf32>
    %445 = vector.extract_strided_slice %377 {offsets = [2, 0], sizes = [1, 32], strides = [1, 1]} : vector<4x32xf32> to vector<1x32xf32>
    %446 = vector.shape_cast %445 : vector<1x32xf32> to vector<1x1x32xf32>
    %447 = vector.broadcast %444 : vector<2x8x1xf32> to vector<2x8x32xf32>
    %448 = vector.broadcast %446 : vector<1x1x32xf32> to vector<2x8x32xf32>
    %449 = arith.mulf %447, %448 : vector<2x8x32xf32>
    %450 = arith.addf %426, %449 : vector<2x8x32xf32>
    %451 = vector.extract_strided_slice %376 {offsets = [0, 0, 24], sizes = [2, 8, 8], strides = [1, 1, 1]} : vector<2x8x32xf32> to vector<2x8x8xf32>
    %452 = vector.extract_strided_slice %370 {offsets = [0, 24], sizes = [2, 8], strides = [1, 1]} : vector<2x32xf32> to vector<2x8xf32>
    %453 = vector.shape_cast %452 : vector<2x8xf32> to vector<2x1x8xf32>
    %454 = vector.broadcast %453 : vector<2x1x8xf32> to vector<2x8x8xf32>
    %455 = arith.mulf %451, %454 : vector<2x8x8xf32>
    %cst_148 = arith.constant dense<0.000000e+00> : vector<2x8xf32>
    %456 = vector.multi_reduction <add>, %455, %cst_148 [2] : vector<2x8x8xf32> to vector<2x8xf32>
    %cst_149 = arith.constant 0.353553385 : f32
    %457 = vector.broadcast %cst_149 : f32 to vector<2x8xf32>
    %458 = arith.mulf %456, %457 : vector<2x8xf32>
    %cst_150 = arith.constant dense<0xFF800000> : vector<2xf32>
    %459 = vector.multi_reduction <maximumf>, %458, %cst_150 [1] : vector<2x8xf32> to vector<2xf32>
    %460 = vector.shape_cast %459 : vector<2xf32> to vector<2x1xf32>
    %461 = vector.broadcast %460 : vector<2x1xf32> to vector<2x8xf32>
    %462 = arith.subf %458, %461 : vector<2x8xf32>
    %463 = math.exp %462 : vector<2x8xf32>
    %cst_151 = arith.constant dense<0.000000e+00> : vector<2xf32>
    %464 = vector.multi_reduction <add>, %463, %cst_151 [1] : vector<2x8xf32> to vector<2xf32>
    %465 = vector.shape_cast %464 : vector<2xf32> to vector<2x1xf32>
    %466 = vector.broadcast %465 : vector<2x1xf32> to vector<2x8xf32>
    %467 = arith.divf %463, %466 : vector<2x8xf32>
    %468 = vector.shape_cast %467 : vector<2x8xf32> to vector<2x8x1xf32>
    %469 = vector.extract_strided_slice %377 {offsets = [3, 0], sizes = [1, 32], strides = [1, 1]} : vector<4x32xf32> to vector<1x32xf32>
    %470 = vector.shape_cast %469 : vector<1x32xf32> to vector<1x1x32xf32>
    %471 = vector.broadcast %468 : vector<2x8x1xf32> to vector<2x8x32xf32>
    %472 = vector.broadcast %470 : vector<1x1x32xf32> to vector<2x8x32xf32>
    %473 = arith.mulf %471, %472 : vector<2x8x32xf32>
    %474 = arith.addf %450, %473 : vector<2x8x32xf32>
    %c0_152 = arith.constant 0 : index
    %c0_153 = arith.constant 0 : index
    %475 = vector.load %arg24[%c0_152, %c0_153] : memref<8x32xf32, #tpu.memory_space<vmem>>, vector<8x32xf32>
    %c0_154 = arith.constant 0 : index
    %c0_155 = arith.constant 0 : index
    %476 = vector.load %arg25[%c0_154, %c0_155] : memref<1x32xf32, #tpu.memory_space<vmem>>, vector<1x32xf32>
    %cst_156 = arith.constant 0.000000e+00 : f32
    %477 = vector.broadcast %cst_156 : f32 to vector<2x8xf32>
    %cst_157 = arith.constant 0.000000e+00 : f32
    %478 = vector.broadcast %cst_157 : f32 to vector<2x8xf32>
    %479 = vector.extract_strided_slice %474 {offsets = [0, 0, 0], sizes = [2, 1, 32], strides = [1, 1, 1]} : vector<2x8x32xf32> to vector<2x1x32xf32>
    %480 = vector.shape_cast %479 : vector<2x1x32xf32> to vector<2x32xf32>
    %cst_158 = arith.constant dense<0.000000e+00> : vector<2x32xf32>
    %481 = tpu.matmul %477, %475, %cst_158 {dimension_numbers = #tpu.dot_dimension_numbers<[1], [0], [0], [1], [0, 0, 1, 1], [], []>} : vector<2x8xf32>, vector<8x32xf32>, vector<2x32xf32> -> vector<2x32xf32>
    %482 = arith.addf %480, %481 : vector<2x32xf32>
    %483 = vector.broadcast %476 : vector<1x32xf32> to vector<2x32xf32>
    %484 = arith.addf %482, %483 : vector<2x32xf32>
    %485 = vector.extract_strided_slice %484 {offsets = [0, 0], sizes = [2, 8], strides = [1, 1]} : vector<2x32xf32> to vector<2x8xf32>
    %486 = arith.negf %485 : vector<2x8xf32>
    %487 = math.exp %486 : vector<2x8xf32>
    %cst_159 = arith.constant 1.000000e+00 : f32
    %488 = vector.broadcast %cst_159 : f32 to vector<2x8xf32>
    %489 = arith.addf %488, %487 : vector<2x8xf32>
    %490 = arith.divf %488, %489 : vector<2x8xf32>
    %491 = vector.extract_strided_slice %484 {offsets = [0, 8], sizes = [2, 8], strides = [1, 1]} : vector<2x32xf32> to vector<2x8xf32>
    %492 = arith.negf %491 : vector<2x8xf32>
    %493 = math.exp %492 : vector<2x8xf32>
    %cst_160 = arith.constant 1.000000e+00 : f32
    %494 = vector.broadcast %cst_160 : f32 to vector<2x8xf32>
    %495 = arith.addf %494, %493 : vector<2x8xf32>
    %496 = arith.divf %494, %495 : vector<2x8xf32>
    %497 = vector.extract_strided_slice %484 {offsets = [0, 16], sizes = [2, 8], strides = [1, 1]} : vector<2x32xf32> to vector<2x8xf32>
    %498 = math.tanh %497 : vector<2x8xf32>
    %499 = vector.extract_strided_slice %484 {offsets = [0, 24], sizes = [2, 8], strides = [1, 1]} : vector<2x32xf32> to vector<2x8xf32>
    %500 = arith.negf %499 : vector<2x8xf32>
    %501 = math.exp %500 : vector<2x8xf32>
    %cst_161 = arith.constant 1.000000e+00 : f32
    %502 = vector.broadcast %cst_161 : f32 to vector<2x8xf32>
    %503 = arith.addf %502, %501 : vector<2x8xf32>
    %504 = arith.divf %502, %503 : vector<2x8xf32>
    %505 = arith.mulf %496, %478 : vector<2x8xf32>
    %506 = arith.mulf %490, %498 : vector<2x8xf32>
    %507 = arith.addf %505, %506 : vector<2x8xf32>
    %508 = math.tanh %507 : vector<2x8xf32>
    %509 = arith.mulf %504, %508 : vector<2x8xf32>
    %510 = vector.extract_strided_slice %474 {offsets = [0, 1, 0], sizes = [2, 1, 32], strides = [1, 1, 1]} : vector<2x8x32xf32> to vector<2x1x32xf32>
    %511 = vector.shape_cast %510 : vector<2x1x32xf32> to vector<2x32xf32>
    %cst_162 = arith.constant dense<0.000000e+00> : vector<2x32xf32>
    %512 = tpu.matmul %509, %475, %cst_162 {dimension_numbers = #tpu.dot_dimension_numbers<[1], [0], [0], [1], [0, 0, 1, 1], [], []>} : vector<2x8xf32>, vector<8x32xf32>, vector<2x32xf32> -> vector<2x32xf32>
    %513 = arith.addf %511, %512 : vector<2x32xf32>
    %514 = vector.broadcast %476 : vector<1x32xf32> to vector<2x32xf32>
    %515 = arith.addf %513, %514 : vector<2x32xf32>
    %516 = vector.extract_strided_slice %515 {offsets = [0, 0], sizes = [2, 8], strides = [1, 1]} : vector<2x32xf32> to vector<2x8xf32>
    %517 = arith.negf %516 : vector<2x8xf32>
    %518 = math.exp %517 : vector<2x8xf32>
    %cst_163 = arith.constant 1.000000e+00 : f32
    %519 = vector.broadcast %cst_163 : f32 to vector<2x8xf32>
    %520 = arith.addf %519, %518 : vector<2x8xf32>
    %521 = arith.divf %519, %520 : vector<2x8xf32>
    %522 = vector.extract_strided_slice %515 {offsets = [0, 8], sizes = [2, 8], strides = [1, 1]} : vector<2x32xf32> to vector<2x8xf32>
    %523 = arith.negf %522 : vector<2x8xf32>
    %524 = math.exp %523 : vector<2x8xf32>
    %cst_164 = arith.constant 1.000000e+00 : f32
    %525 = vector.broadcast %cst_164 : f32 to vector<2x8xf32>
    %526 = arith.addf %525, %524 : vector<2x8xf32>
    %527 = arith.divf %525, %526 : vector<2x8xf32>
    %528 = vector.extract_strided_slice %515 {offsets = [0, 16], sizes = [2, 8], strides = [1, 1]} : vector<2x32xf32> to vector<2x8xf32>
    %529 = math.tanh %528 : vector<2x8xf32>
    %530 = vector.extract_strided_slice %515 {offsets = [0, 24], sizes = [2, 8], strides = [1, 1]} : vector<2x32xf32> to vector<2x8xf32>
    %531 = arith.negf %530 : vector<2x8xf32>
    %532 = math.exp %531 : vector<2x8xf32>
    %cst_165 = arith.constant 1.000000e+00 : f32
    %533 = vector.broadcast %cst_165 : f32 to vector<2x8xf32>
    %534 = arith.addf %533, %532 : vector<2x8xf32>
    %535 = arith.divf %533, %534 : vector<2x8xf32>
    %536 = arith.mulf %527, %507 : vector<2x8xf32>
    %537 = arith.mulf %521, %529 : vector<2x8xf32>
    %538 = arith.addf %536, %537 : vector<2x8xf32>
    %539 = math.tanh %538 : vector<2x8xf32>
    %540 = arith.mulf %535, %539 : vector<2x8xf32>
    %541 = vector.extract_strided_slice %474 {offsets = [0, 2, 0], sizes = [2, 1, 32], strides = [1, 1, 1]} : vector<2x8x32xf32> to vector<2x1x32xf32>
    %542 = vector.shape_cast %541 : vector<2x1x32xf32> to vector<2x32xf32>
    %cst_166 = arith.constant dense<0.000000e+00> : vector<2x32xf32>
    %543 = tpu.matmul %540, %475, %cst_166 {dimension_numbers = #tpu.dot_dimension_numbers<[1], [0], [0], [1], [0, 0, 1, 1], [], []>} : vector<2x8xf32>, vector<8x32xf32>, vector<2x32xf32> -> vector<2x32xf32>
    %544 = arith.addf %542, %543 : vector<2x32xf32>
    %545 = vector.broadcast %476 : vector<1x32xf32> to vector<2x32xf32>
    %546 = arith.addf %544, %545 : vector<2x32xf32>
    %547 = vector.extract_strided_slice %546 {offsets = [0, 0], sizes = [2, 8], strides = [1, 1]} : vector<2x32xf32> to vector<2x8xf32>
    %548 = arith.negf %547 : vector<2x8xf32>
    %549 = math.exp %548 : vector<2x8xf32>
    %cst_167 = arith.constant 1.000000e+00 : f32
    %550 = vector.broadcast %cst_167 : f32 to vector<2x8xf32>
    %551 = arith.addf %550, %549 : vector<2x8xf32>
    %552 = arith.divf %550, %551 : vector<2x8xf32>
    %553 = vector.extract_strided_slice %546 {offsets = [0, 8], sizes = [2, 8], strides = [1, 1]} : vector<2x32xf32> to vector<2x8xf32>
    %554 = arith.negf %553 : vector<2x8xf32>
    %555 = math.exp %554 : vector<2x8xf32>
    %cst_168 = arith.constant 1.000000e+00 : f32
    %556 = vector.broadcast %cst_168 : f32 to vector<2x8xf32>
    %557 = arith.addf %556, %555 : vector<2x8xf32>
    %558 = arith.divf %556, %557 : vector<2x8xf32>
    %559 = vector.extract_strided_slice %546 {offsets = [0, 16], sizes = [2, 8], strides = [1, 1]} : vector<2x32xf32> to vector<2x8xf32>
    %560 = math.tanh %559 : vector<2x8xf32>
    %561 = vector.extract_strided_slice %546 {offsets = [0, 24], sizes = [2, 8], strides = [1, 1]} : vector<2x32xf32> to vector<2x8xf32>
    %562 = arith.negf %561 : vector<2x8xf32>
    %563 = math.exp %562 : vector<2x8xf32>
    %cst_169 = arith.constant 1.000000e+00 : f32
    %564 = vector.broadcast %cst_169 : f32 to vector<2x8xf32>
    %565 = arith.addf %564, %563 : vector<2x8xf32>
    %566 = arith.divf %564, %565 : vector<2x8xf32>
    %567 = arith.mulf %558, %538 : vector<2x8xf32>
    %568 = arith.mulf %552, %560 : vector<2x8xf32>
    %569 = arith.addf %567, %568 : vector<2x8xf32>
    %570 = math.tanh %569 : vector<2x8xf32>
    %571 = arith.mulf %566, %570 : vector<2x8xf32>
    %572 = vector.extract_strided_slice %474 {offsets = [0, 3, 0], sizes = [2, 1, 32], strides = [1, 1, 1]} : vector<2x8x32xf32> to vector<2x1x32xf32>
    %573 = vector.shape_cast %572 : vector<2x1x32xf32> to vector<2x32xf32>
    %cst_170 = arith.constant dense<0.000000e+00> : vector<2x32xf32>
    %574 = tpu.matmul %571, %475, %cst_170 {dimension_numbers = #tpu.dot_dimension_numbers<[1], [0], [0], [1], [0, 0, 1, 1], [], []>} : vector<2x8xf32>, vector<8x32xf32>, vector<2x32xf32> -> vector<2x32xf32>
    %575 = arith.addf %573, %574 : vector<2x32xf32>
    %576 = vector.broadcast %476 : vector<1x32xf32> to vector<2x32xf32>
    %577 = arith.addf %575, %576 : vector<2x32xf32>
    %578 = vector.extract_strided_slice %577 {offsets = [0, 0], sizes = [2, 8], strides = [1, 1]} : vector<2x32xf32> to vector<2x8xf32>
    %579 = arith.negf %578 : vector<2x8xf32>
    %580 = math.exp %579 : vector<2x8xf32>
    %cst_171 = arith.constant 1.000000e+00 : f32
    %581 = vector.broadcast %cst_171 : f32 to vector<2x8xf32>
    %582 = arith.addf %581, %580 : vector<2x8xf32>
    %583 = arith.divf %581, %582 : vector<2x8xf32>
    %584 = vector.extract_strided_slice %577 {offsets = [0, 8], sizes = [2, 8], strides = [1, 1]} : vector<2x32xf32> to vector<2x8xf32>
    %585 = arith.negf %584 : vector<2x8xf32>
    %586 = math.exp %585 : vector<2x8xf32>
    %cst_172 = arith.constant 1.000000e+00 : f32
    %587 = vector.broadcast %cst_172 : f32 to vector<2x8xf32>
    %588 = arith.addf %587, %586 : vector<2x8xf32>
    %589 = arith.divf %587, %588 : vector<2x8xf32>
    %590 = vector.extract_strided_slice %577 {offsets = [0, 16], sizes = [2, 8], strides = [1, 1]} : vector<2x32xf32> to vector<2x8xf32>
    %591 = math.tanh %590 : vector<2x8xf32>
    %592 = vector.extract_strided_slice %577 {offsets = [0, 24], sizes = [2, 8], strides = [1, 1]} : vector<2x32xf32> to vector<2x8xf32>
    %593 = arith.negf %592 : vector<2x8xf32>
    %594 = math.exp %593 : vector<2x8xf32>
    %cst_173 = arith.constant 1.000000e+00 : f32
    %595 = vector.broadcast %cst_173 : f32 to vector<2x8xf32>
    %596 = arith.addf %595, %594 : vector<2x8xf32>
    %597 = arith.divf %595, %596 : vector<2x8xf32>
    %598 = arith.mulf %589, %569 : vector<2x8xf32>
    %599 = arith.mulf %583, %591 : vector<2x8xf32>
    %600 = arith.addf %598, %599 : vector<2x8xf32>
    %601 = math.tanh %600 : vector<2x8xf32>
    %602 = arith.mulf %597, %601 : vector<2x8xf32>
    %603 = vector.extract_strided_slice %474 {offsets = [0, 4, 0], sizes = [2, 1, 32], strides = [1, 1, 1]} : vector<2x8x32xf32> to vector<2x1x32xf32>
    %604 = vector.shape_cast %603 : vector<2x1x32xf32> to vector<2x32xf32>
    %cst_174 = arith.constant dense<0.000000e+00> : vector<2x32xf32>
    %605 = tpu.matmul %602, %475, %cst_174 {dimension_numbers = #tpu.dot_dimension_numbers<[1], [0], [0], [1], [0, 0, 1, 1], [], []>} : vector<2x8xf32>, vector<8x32xf32>, vector<2x32xf32> -> vector<2x32xf32>
    %606 = arith.addf %604, %605 : vector<2x32xf32>
    %607 = vector.broadcast %476 : vector<1x32xf32> to vector<2x32xf32>
    %608 = arith.addf %606, %607 : vector<2x32xf32>
    %609 = vector.extract_strided_slice %608 {offsets = [0, 0], sizes = [2, 8], strides = [1, 1]} : vector<2x32xf32> to vector<2x8xf32>
    %610 = arith.negf %609 : vector<2x8xf32>
    %611 = math.exp %610 : vector<2x8xf32>
    %cst_175 = arith.constant 1.000000e+00 : f32
    %612 = vector.broadcast %cst_175 : f32 to vector<2x8xf32>
    %613 = arith.addf %612, %611 : vector<2x8xf32>
    %614 = arith.divf %612, %613 : vector<2x8xf32>
    %615 = vector.extract_strided_slice %608 {offsets = [0, 8], sizes = [2, 8], strides = [1, 1]} : vector<2x32xf32> to vector<2x8xf32>
    %616 = arith.negf %615 : vector<2x8xf32>
    %617 = math.exp %616 : vector<2x8xf32>
    %cst_176 = arith.constant 1.000000e+00 : f32
    %618 = vector.broadcast %cst_176 : f32 to vector<2x8xf32>
    %619 = arith.addf %618, %617 : vector<2x8xf32>
    %620 = arith.divf %618, %619 : vector<2x8xf32>
    %621 = vector.extract_strided_slice %608 {offsets = [0, 16], sizes = [2, 8], strides = [1, 1]} : vector<2x32xf32> to vector<2x8xf32>
    %622 = math.tanh %621 : vector<2x8xf32>
    %623 = vector.extract_strided_slice %608 {offsets = [0, 24], sizes = [2, 8], strides = [1, 1]} : vector<2x32xf32> to vector<2x8xf32>
    %624 = arith.negf %623 : vector<2x8xf32>
    %625 = math.exp %624 : vector<2x8xf32>
    %cst_177 = arith.constant 1.000000e+00 : f32
    %626 = vector.broadcast %cst_177 : f32 to vector<2x8xf32>
    %627 = arith.addf %626, %625 : vector<2x8xf32>
    %628 = arith.divf %626, %627 : vector<2x8xf32>
    %629 = arith.mulf %620, %600 : vector<2x8xf32>
    %630 = arith.mulf %614, %622 : vector<2x8xf32>
    %631 = arith.addf %629, %630 : vector<2x8xf32>
    %632 = math.tanh %631 : vector<2x8xf32>
    %633 = arith.mulf %628, %632 : vector<2x8xf32>
    %634 = vector.extract_strided_slice %474 {offsets = [0, 5, 0], sizes = [2, 1, 32], strides = [1, 1, 1]} : vector<2x8x32xf32> to vector<2x1x32xf32>
    %635 = vector.shape_cast %634 : vector<2x1x32xf32> to vector<2x32xf32>
    %cst_178 = arith.constant dense<0.000000e+00> : vector<2x32xf32>
    %636 = tpu.matmul %633, %475, %cst_178 {dimension_numbers = #tpu.dot_dimension_numbers<[1], [0], [0], [1], [0, 0, 1, 1], [], []>} : vector<2x8xf32>, vector<8x32xf32>, vector<2x32xf32> -> vector<2x32xf32>
    %637 = arith.addf %635, %636 : vector<2x32xf32>
    %638 = vector.broadcast %476 : vector<1x32xf32> to vector<2x32xf32>
    %639 = arith.addf %637, %638 : vector<2x32xf32>
    %640 = vector.extract_strided_slice %639 {offsets = [0, 0], sizes = [2, 8], strides = [1, 1]} : vector<2x32xf32> to vector<2x8xf32>
    %641 = arith.negf %640 : vector<2x8xf32>
    %642 = math.exp %641 : vector<2x8xf32>
    %cst_179 = arith.constant 1.000000e+00 : f32
    %643 = vector.broadcast %cst_179 : f32 to vector<2x8xf32>
    %644 = arith.addf %643, %642 : vector<2x8xf32>
    %645 = arith.divf %643, %644 : vector<2x8xf32>
    %646 = vector.extract_strided_slice %639 {offsets = [0, 8], sizes = [2, 8], strides = [1, 1]} : vector<2x32xf32> to vector<2x8xf32>
    %647 = arith.negf %646 : vector<2x8xf32>
    %648 = math.exp %647 : vector<2x8xf32>
    %cst_180 = arith.constant 1.000000e+00 : f32
    %649 = vector.broadcast %cst_180 : f32 to vector<2x8xf32>
    %650 = arith.addf %649, %648 : vector<2x8xf32>
    %651 = arith.divf %649, %650 : vector<2x8xf32>
    %652 = vector.extract_strided_slice %639 {offsets = [0, 16], sizes = [2, 8], strides = [1, 1]} : vector<2x32xf32> to vector<2x8xf32>
    %653 = math.tanh %652 : vector<2x8xf32>
    %654 = vector.extract_strided_slice %639 {offsets = [0, 24], sizes = [2, 8], strides = [1, 1]} : vector<2x32xf32> to vector<2x8xf32>
    %655 = arith.negf %654 : vector<2x8xf32>
    %656 = math.exp %655 : vector<2x8xf32>
    %cst_181 = arith.constant 1.000000e+00 : f32
    %657 = vector.broadcast %cst_181 : f32 to vector<2x8xf32>
    %658 = arith.addf %657, %656 : vector<2x8xf32>
    %659 = arith.divf %657, %658 : vector<2x8xf32>
    %660 = arith.mulf %651, %631 : vector<2x8xf32>
    %661 = arith.mulf %645, %653 : vector<2x8xf32>
    %662 = arith.addf %660, %661 : vector<2x8xf32>
    %663 = math.tanh %662 : vector<2x8xf32>
    %664 = arith.mulf %659, %663 : vector<2x8xf32>
    %665 = vector.extract_strided_slice %474 {offsets = [0, 6, 0], sizes = [2, 1, 32], strides = [1, 1, 1]} : vector<2x8x32xf32> to vector<2x1x32xf32>
    %666 = vector.shape_cast %665 : vector<2x1x32xf32> to vector<2x32xf32>
    %cst_182 = arith.constant dense<0.000000e+00> : vector<2x32xf32>
    %667 = tpu.matmul %664, %475, %cst_182 {dimension_numbers = #tpu.dot_dimension_numbers<[1], [0], [0], [1], [0, 0, 1, 1], [], []>} : vector<2x8xf32>, vector<8x32xf32>, vector<2x32xf32> -> vector<2x32xf32>
    %668 = arith.addf %666, %667 : vector<2x32xf32>
    %669 = vector.broadcast %476 : vector<1x32xf32> to vector<2x32xf32>
    %670 = arith.addf %668, %669 : vector<2x32xf32>
    %671 = vector.extract_strided_slice %670 {offsets = [0, 0], sizes = [2, 8], strides = [1, 1]} : vector<2x32xf32> to vector<2x8xf32>
    %672 = arith.negf %671 : vector<2x8xf32>
    %673 = math.exp %672 : vector<2x8xf32>
    %cst_183 = arith.constant 1.000000e+00 : f32
    %674 = vector.broadcast %cst_183 : f32 to vector<2x8xf32>
    %675 = arith.addf %674, %673 : vector<2x8xf32>
    %676 = arith.divf %674, %675 : vector<2x8xf32>
    %677 = vector.extract_strided_slice %670 {offsets = [0, 8], sizes = [2, 8], strides = [1, 1]} : vector<2x32xf32> to vector<2x8xf32>
    %678 = arith.negf %677 : vector<2x8xf32>
    %679 = math.exp %678 : vector<2x8xf32>
    %cst_184 = arith.constant 1.000000e+00 : f32
    %680 = vector.broadcast %cst_184 : f32 to vector<2x8xf32>
    %681 = arith.addf %680, %679 : vector<2x8xf32>
    %682 = arith.divf %680, %681 : vector<2x8xf32>
    %683 = vector.extract_strided_slice %670 {offsets = [0, 16], sizes = [2, 8], strides = [1, 1]} : vector<2x32xf32> to vector<2x8xf32>
    %684 = math.tanh %683 : vector<2x8xf32>
    %685 = vector.extract_strided_slice %670 {offsets = [0, 24], sizes = [2, 8], strides = [1, 1]} : vector<2x32xf32> to vector<2x8xf32>
    %686 = arith.negf %685 : vector<2x8xf32>
    %687 = math.exp %686 : vector<2x8xf32>
    %cst_185 = arith.constant 1.000000e+00 : f32
    %688 = vector.broadcast %cst_185 : f32 to vector<2x8xf32>
    %689 = arith.addf %688, %687 : vector<2x8xf32>
    %690 = arith.divf %688, %689 : vector<2x8xf32>
    %691 = arith.mulf %682, %662 : vector<2x8xf32>
    %692 = arith.mulf %676, %684 : vector<2x8xf32>
    %693 = arith.addf %691, %692 : vector<2x8xf32>
    %694 = math.tanh %693 : vector<2x8xf32>
    %695 = arith.mulf %690, %694 : vector<2x8xf32>
    %696 = vector.extract_strided_slice %474 {offsets = [0, 7, 0], sizes = [2, 1, 32], strides = [1, 1, 1]} : vector<2x8x32xf32> to vector<2x1x32xf32>
    %697 = vector.shape_cast %696 : vector<2x1x32xf32> to vector<2x32xf32>
    %cst_186 = arith.constant dense<0.000000e+00> : vector<2x32xf32>
    %698 = tpu.matmul %695, %475, %cst_186 {dimension_numbers = #tpu.dot_dimension_numbers<[1], [0], [0], [1], [0, 0, 1, 1], [], []>} : vector<2x8xf32>, vector<8x32xf32>, vector<2x32xf32> -> vector<2x32xf32>
    %699 = arith.addf %697, %698 : vector<2x32xf32>
    %700 = vector.broadcast %476 : vector<1x32xf32> to vector<2x32xf32>
    %701 = arith.addf %699, %700 : vector<2x32xf32>
    %702 = vector.extract_strided_slice %701 {offsets = [0, 0], sizes = [2, 8], strides = [1, 1]} : vector<2x32xf32> to vector<2x8xf32>
    %703 = arith.negf %702 : vector<2x8xf32>
    %704 = math.exp %703 : vector<2x8xf32>
    %cst_187 = arith.constant 1.000000e+00 : f32
    %705 = vector.broadcast %cst_187 : f32 to vector<2x8xf32>
    %706 = arith.addf %705, %704 : vector<2x8xf32>
    %707 = arith.divf %705, %706 : vector<2x8xf32>
    %708 = vector.extract_strided_slice %701 {offsets = [0, 8], sizes = [2, 8], strides = [1, 1]} : vector<2x32xf32> to vector<2x8xf32>
    %709 = arith.negf %708 : vector<2x8xf32>
    %710 = math.exp %709 : vector<2x8xf32>
    %cst_188 = arith.constant 1.000000e+00 : f32
    %711 = vector.broadcast %cst_188 : f32 to vector<2x8xf32>
    %712 = arith.addf %711, %710 : vector<2x8xf32>
    %713 = arith.divf %711, %712 : vector<2x8xf32>
    %714 = vector.extract_strided_slice %701 {offsets = [0, 16], sizes = [2, 8], strides = [1, 1]} : vector<2x32xf32> to vector<2x8xf32>
    %715 = math.tanh %714 : vector<2x8xf32>
    %716 = arith.mulf %713, %693 : vector<2x8xf32>
    %717 = arith.mulf %707, %715 : vector<2x8xf32>
    %718 = arith.addf %716, %717 : vector<2x8xf32>
    %cst_189 = arith.constant 0.000000e+00 : f32
    %719 = vector.broadcast %cst_189 : f32 to vector<2x8xf32>
    %720 = arith.maximumf %718, %719 : vector<2x8xf32>
    %721 = vector.shape_cast %720 : vector<2x8xf32> to vector<2x8x1xf32>
    %722 = vector.broadcast %721 : vector<2x8x1xf32> to vector<2x8x16xf32>
    %723 = arith.mulf %722, %20 : vector<2x8x16xf32>
    %cst_190 = arith.constant dense<0.000000e+00> : vector<2x16xf32>
    %724 = vector.multi_reduction <add>, %723, %cst_190 [1] : vector<2x8x16xf32> to vector<2x16xf32>
    %c0_191 = arith.constant 0 : index
    %c0_192 = arith.constant 0 : index
    %725 = vector.load %arg27[%c0_191, %c0_192] : memref<2x16xf32, #tpu.memory_space<vmem>>, vector<2x16xf32>
    tpu.vector_store %arg27[%c0_191, %c0_192], %724 {strides = array<i32>} : memref<2x16xf32, #tpu.memory_space<vmem>>, vector<2x16xf32>,
    return
  }
}

module attributes {stable_mosaic.version = 11 : i64} {
  func.func @_view_block_kernel(%arg0: memref<2x10x16xf32, #tpu.memory_space<vmem>>, %arg1: memref<2x8x32xf32, #tpu.memory_space<vmem>>, %arg2: memref<2x8xf32, #tpu.memory_space<vmem>>, %arg3: memref<2x8xf32, #tpu.memory_space<vmem>>, %arg4: memref<16x16xf32, #tpu.memory_space<vmem>>, %arg5: memref<16x16xf32, #tpu.memory_space<vmem>>, %arg6: memref<16x16xf32, #tpu.memory_space<vmem>>, %arg7: memref<1x16xf32, #tpu.memory_space<vmem>>, %arg8: memref<16x32xf32, #tpu.memory_space<vmem>>, %arg9: memref<1x32xf32, #tpu.memory_space<vmem>>, %arg10: memref<32x32xf32, #tpu.memory_space<vmem>>, %arg11: memref<1x32xf32, #tpu.memory_space<vmem>>, %arg12: memref<1x32xf32, #tpu.memory_space<vmem>>, %arg13: memref<32x32xf32, #tpu.memory_space<vmem>>, %arg14: memref<1x32xf32, #tpu.memory_space<vmem>>, %arg15: memref<32x64xf32, #tpu.memory_space<vmem>>, %arg16: memref<1x64xf32, #tpu.memory_space<vmem>>, %arg17: memref<32x32xf32, #tpu.memory_space<vmem>>, %arg18: memref<1x32xf32, #tpu.memory_space<vmem>>, %arg19: memref<32x32xf32, #tpu.memory_space<vmem>>, %arg20: memref<1x32xf32, #tpu.memory_space<vmem>>, %arg21: memref<16x32xf32, #tpu.memory_space<vmem>>, %arg22: memref<1x32xf32, #tpu.memory_space<vmem>>, %arg23: memref<4x32xf32, #tpu.memory_space<vmem>>, %arg24: memref<8x32xf32, #tpu.memory_space<vmem>>, %arg25: memref<1x32xf32, #tpu.memory_space<vmem>>, %arg26: memref<2x8x16xf32, #tpu.memory_space<vmem>>, %arg27: memref<2x16xf32, #tpu.memory_space<vmem>>) attributes {dimension_semantics = [], scalar_prefetch = 0 : i64, scratch_operands = 0 : i64, tpu.core_type = #tpu.core_type<tc>} {
    %c0 = arith.constant 0 : index
    %c0_0 = arith.constant 0 : index
    %c0_1 = arith.constant 0 : index
    %0 = vector.load %arg0[%c0, %c0_0, %c0_1] : memref<2x10x16xf32, #tpu.memory_space<vmem>>, vector<2x10x16xf32>
    %1 = vector.extract_strided_slice %0 {offsets = [0, 0, 0], sizes = [2, 8, 16], strides = [1, 1, 1]} : vector<2x10x16xf32> to vector<2x8x16xf32>
    %2 = vector.shape_cast %1 : vector<2x8x16xf32> to vector<16x16xf32>
    %3 = vector.extract_strided_slice %0 {offsets = [0, 1, 0], sizes = [2, 8, 16], strides = [1, 1, 1]} : vector<2x10x16xf32> to vector<2x8x16xf32>
    %4 = vector.shape_cast %3 : vector<2x8x16xf32> to vector<16x16xf32>
    %5 = vector.extract_strided_slice %0 {offsets = [0, 2, 0], sizes = [2, 8, 16], strides = [1, 1, 1]} : vector<2x10x16xf32> to vector<2x8x16xf32>
    %6 = vector.shape_cast %5 : vector<2x8x16xf32> to vector<16x16xf32>
    %c0_2 = arith.constant 0 : index
    %c0_3 = arith.constant 0 : index
    %7 = vector.load %arg4[%c0_2, %c0_3] : memref<16x16xf32, #tpu.memory_space<vmem>>, vector<16x16xf32>
    %cst = arith.constant dense<0.000000e+00> : vector<16x16xf32>
    %8 = tpu.matmul %2, %7, %cst {dimension_numbers = #tpu.dot_dimension_numbers<[1], [0], [0], [1], [0, 0, 1, 1], [], []>} : vector<16x16xf32>, vector<16x16xf32>, vector<16x16xf32> -> vector<16x16xf32>
    %c0_4 = arith.constant 0 : index
    %c0_5 = arith.constant 0 : index
    %9 = vector.load %arg5[%c0_4, %c0_5] : memref<16x16xf32, #tpu.memory_space<vmem>>, vector<16x16xf32>
    %cst_6 = arith.constant dense<0.000000e+00> : vector<16x16xf32>
    %10 = tpu.matmul %4, %9, %cst_6 {dimension_numbers = #tpu.dot_dimension_numbers<[1], [0], [0], [1], [0, 0, 1, 1], [], []>} : vector<16x16xf32>, vector<16x16xf32>, vector<16x16xf32> -> vector<16x16xf32>
    %11 = arith.addf %8, %10 : vector<16x16xf32>
    %c0_7 = arith.constant 0 : index
    %c0_8 = arith.constant 0 : index
    %12 = vector.load %arg6[%c0_7, %c0_8] : memref<16x16xf32, #tpu.memory_space<vmem>>, vector<16x16xf32>
    %cst_9 = arith.constant dense<0.000000e+00> : vector<16x16xf32>
    %13 = tpu.matmul %6, %12, %cst_9 {dimension_numbers = #tpu.dot_dimension_numbers<[1], [0], [0], [1], [0, 0, 1, 1], [], []>} : vector<16x16xf32>, vector<16x16xf32>, vector<16x16xf32> -> vector<16x16xf32>
    %14 = arith.addf %11, %13 : vector<16x16xf32>
    %c0_10 = arith.constant 0 : index
    %c0_11 = arith.constant 0 : index
    %15 = vector.load %arg7[%c0_10, %c0_11] : memref<1x16xf32, #tpu.memory_space<vmem>>, vector<1x16xf32>
    %16 = vector.broadcast %15 : vector<1x16xf32> to vector<16x16xf32>
    %17 = arith.addf %14, %16 : vector<16x16xf32>
    %cst_12 = arith.constant 0.000000e+00 : f32
    %18 = vector.broadcast %cst_12 : f32 to vector<16x16xf32>
    %19 = arith.maximumf %17, %18 : vector<16x16xf32>
    %20 = vector.shape_cast %19 : vector<16x16xf32> to vector<2x8x16xf32>
    %c0_13 = arith.constant 0 : index
    %c0_14 = arith.constant 0 : index
    %c0_15 = arith.constant 0 : index
    %21 = vector.load %arg26[%c0_13, %c0_14, %c0_15] : memref<2x8x16xf32, #tpu.memory_space<vmem>>, vector<2x8x16xf32>
    tpu.vector_store %arg26[%c0_13, %c0_14, %c0_15], %20 {strides = array<i32>} : memref<2x8x16xf32, #tpu.memory_space<vmem>>, vector<2x8x16xf32>,
    %c0_16 = arith.constant 0 : index
    %c0_17 = arith.constant 0 : index
    %22 = vector.load %arg8[%c0_16, %c0_17] : memref<16x32xf32, #tpu.memory_space<vmem>>, vector<16x32xf32>
    %cst_18 = arith.constant dense<0.000000e+00> : vector<16x32xf32>
    %23 = tpu.matmul %19, %22, %cst_18 {dimension_numbers = #tpu.dot_dimension_numbers<[1], [0], [0], [1], [0, 0, 1, 1], [], []>} : vector<16x16xf32>, vector<16x32xf32>, vector<16x32xf32> -> vector<16x32xf32>
    %c0_19 = arith.constant 0 : index
    %c0_20 = arith.constant 0 : index
    %24 = vector.load %arg9[%c0_19, %c0_20] : memref<1x32xf32, #tpu.memory_space<vmem>>, vector<1x32xf32>
    %25 = vector.broadcast %24 : vector<1x32xf32> to vector<16x32xf32>
    %26 = arith.addf %23, %25 : vector<16x32xf32>
    %cst_21 = arith.constant 0.000000e+00 : f32
    %27 = vector.broadcast %cst_21 : f32 to vector<16x32xf32>
    %28 = arith.maximumf %26, %27 : vector<16x32xf32>
    %c0_22 = arith.constant 0 : index
    %c0_23 = arith.constant 0 : index
    %c0_24 = arith.constant 0 : index
    %29 = vector.load %arg1[%c0_22, %c0_23, %c0_24] : memref<2x8x32xf32, #tpu.memory_space<vmem>>, vector<2x8x32xf32>
    %30 = vector.shape_cast %29 : vector<2x8x32xf32> to vector<16x32xf32>
    %c0_25 = arith.constant 0 : index
    %c0_26 = arith.constant 0 : index
    %31 = vector.load %arg10[%c0_25, %c0_26] : memref<32x32xf32, #tpu.memory_space<vmem>>, vector<32x32xf32>
    %cst_27 = arith.constant dense<0.000000e+00> : vector<16x32xf32>
    %32 = tpu.matmul %30, %31, %cst_27 {dimension_numbers = #tpu.dot_dimension_numbers<[1], [0], [0], [1], [0, 0, 1, 1], [], []>} : vector<16x32xf32>, vector<32x32xf32>, vector<16x32xf32> -> vector<16x32xf32>
    %c0_28 = arith.constant 0 : index
    %c0_29 = arith.constant 0 : index
    %33 = vector.load %arg11[%c0_28, %c0_29] : memref<1x32xf32, #tpu.memory_space<vmem>>, vector<1x32xf32>
    %34 = vector.broadcast %33 : vector<1x32xf32> to vector<16x32xf32>
    %35 = arith.addf %32, %34 : vector<16x32xf32>
    %cst_30 = arith.constant 0.000000e+00 : f32
    %36 = vector.broadcast %cst_30 : f32 to vector<16x32xf32>
    %37 = arith.maximumf %35, %36 : vector<16x32xf32>
    %c0_31 = arith.constant 0 : index
    %c0_32 = arith.constant 0 : index
    %38 = vector.load %arg12[%c0_31, %c0_32] : memref<1x32xf32, #tpu.memory_space<vmem>>, vector<1x32xf32>
    %c0_33 = arith.constant 0 : index
    %c0_34 = arith.constant 0 : index
    %39 = vector.load %arg13[%c0_33, %c0_34] : memref<32x32xf32, #tpu.memory_space<vmem>>, vector<32x32xf32>
    %cst_35 = arith.constant dense<0.000000e+00> : vector<1x32xf32>
    %40 = tpu.matmul %38, %39, %cst_35 {dimension_numbers = #tpu.dot_dimension_numbers<[1], [0], [0], [1], [0, 0, 1, 1], [], []>} : vector<1x32xf32>, vector<32x32xf32>, vector<1x32xf32> -> vector<1x32xf32>
    %c0_36 = arith.constant 0 : index
    %c0_37 = arith.constant 0 : index
    %41 = vector.load %arg14[%c0_36, %c0_37] : memref<1x32xf32, #tpu.memory_space<vmem>>, vector<1x32xf32>
    %42 = arith.addf %40, %41 : vector<1x32xf32>
    %c0_38 = arith.constant 0 : index
    %c0_39 = arith.constant 0 : index
    %43 = vector.load %arg15[%c0_38, %c0_39] : memref<32x64xf32, #tpu.memory_space<vmem>>, vector<32x64xf32>
    %cst_40 = arith.constant dense<0.000000e+00> : vector<16x64xf32>
    %44 = tpu.matmul %28, %43, %cst_40 {dimension_numbers = #tpu.dot_dimension_numbers<[1], [0], [0], [1], [0, 0, 1, 1], [], []>} : vector<16x32xf32>, vector<32x64xf32>, vector<16x64xf32> -> vector<16x64xf32>
    %c0_41 = arith.constant 0 : index
    %c0_42 = arith.constant 0 : index
    %45 = vector.load %arg16[%c0_41, %c0_42] : memref<1x64xf32, #tpu.memory_space<vmem>>, vector<1x64xf32>
    %46 = vector.broadcast %45 : vector<1x64xf32> to vector<16x64xf32>
    %47 = arith.addf %44, %46 : vector<16x64xf32>
    %c0_43 = arith.constant 0 : index
    %c0_44 = arith.constant 0 : index
    %48 = vector.load %arg15[%c0_43, %c0_44] : memref<32x64xf32, #tpu.memory_space<vmem>>, vector<32x64xf32>
    %cst_45 = arith.constant dense<0.000000e+00> : vector<16x64xf32>
    %49 = tpu.matmul %37, %48, %cst_45 {dimension_numbers = #tpu.dot_dimension_numbers<[1], [0], [0], [1], [0, 0, 1, 1], [], []>} : vector<16x32xf32>, vector<32x64xf32>, vector<16x64xf32> -> vector<16x64xf32>
    %c0_46 = arith.constant 0 : index
    %c0_47 = arith.constant 0 : index
    %50 = vector.load %arg16[%c0_46, %c0_47] : memref<1x64xf32, #tpu.memory_space<vmem>>, vector<1x64xf32>
    %51 = vector.broadcast %50 : vector<1x64xf32> to vector<16x64xf32>
    %52 = arith.addf %49, %51 : vector<16x64xf32>
    %c0_48 = arith.constant 0 : index
    %c0_49 = arith.constant 0 : index
    %53 = vector.load %arg15[%c0_48, %c0_49] : memref<32x64xf32, #tpu.memory_space<vmem>>, vector<32x64xf32>
    %cst_50 = arith.constant dense<0.000000e+00> : vector<1x64xf32>
    %54 = tpu.matmul %38, %53, %cst_50 {dimension_numbers = #tpu.dot_dimension_numbers<[1], [0], [0], [1], [0, 0, 1, 1], [], []>} : vector<1x32xf32>, vector<32x64xf32>, vector<1x64xf32> -> vector<1x64xf32>
    %c0_51 = arith.constant 0 : index
    %c0_52 = arith.constant 0 : index
    %55 = vector.load %arg16[%c0_51, %c0_52] : memref<1x64xf32, #tpu.memory_space<vmem>>, vector<1x64xf32>
    %56 = arith.addf %54, %55 : vector<1x64xf32>
    %57 = vector.extract_strided_slice %47 {offsets = [0, 0], sizes = [16, 32], strides = [1, 1]} : vector<16x64xf32> to vector<16x32xf32>
    %58 = vector.shape_cast %57 : vector<16x32xf32> to vector<2x8x32xf32>
    %59 = vector.extract_strided_slice %47 {offsets = [0, 32], sizes = [16, 32], strides = [1, 1]} : vector<16x64xf32> to vector<16x32xf32>
    %60 = vector.shape_cast %59 : vector<16x32xf32> to vector<2x8x32xf32>
    %61 = vector.extract_strided_slice %52 {offsets = [0, 0], sizes = [16, 32], strides = [1, 1]} : vector<16x64xf32> to vector<16x32xf32>
    %62 = vector.shape_cast %61 : vector<16x32xf32> to vector<2x8x32xf32>
    %63 = vector.extract_strided_slice %52 {offsets = [0, 32], sizes = [16, 32], strides = [1, 1]} : vector<16x64xf32> to vector<16x32xf32>
    %64 = vector.shape_cast %63 : vector<16x32xf32> to vector<2x8x32xf32>
    %65 = vector.extract_strided_slice %56 {offsets = [0, 0], sizes = [1, 32], strides = [1, 1]} : vector<1x64xf32> to vector<1x32xf32>
    %66 = vector.extract_strided_slice %56 {offsets = [0, 32], sizes = [1, 32], strides = [1, 1]} : vector<1x64xf32> to vector<1x32xf32>
    %c0_53 = arith.constant 0 : index
    %c0_54 = arith.constant 0 : index
    %67 = vector.load %arg2[%c0_53, %c0_54] : memref<2x8xf32, #tpu.memory_space<vmem>>, vector<2x8xf32>
    %cst_55 = arith.constant 5.000000e-01 : f32
    %68 = vector.broadcast %cst_55 : f32 to vector<2x8xf32>
    %69 = arith.cmpf ogt, %67, %68 : vector<2x8xf32>
    %cst_56 = arith.constant 0.000000e+00 : f32
    %cst_57 = arith.constant -1.000000e+30 : f32
    %70 = vector.broadcast %cst_56 : f32 to vector<2x8xf32>
    %71 = vector.broadcast %cst_57 : f32 to vector<2x8xf32>
    %72 = arith.select %69, %70, %71 : vector<2x8xi1>, vector<2x8xf32>
    %c0_58 = arith.constant 0 : index
    %c0_59 = arith.constant 0 : index
    %73 = vector.load %arg3[%c0_58, %c0_59] : memref<2x8xf32, #tpu.memory_space<vmem>>, vector<2x8xf32>
    %cst_60 = arith.constant 5.000000e-01 : f32
    %74 = vector.broadcast %cst_60 : f32 to vector<2x8xf32>
    %75 = arith.cmpf ogt, %73, %74 : vector<2x8xf32>
    %cst_61 = arith.constant 0.000000e+00 : f32
    %cst_62 = arith.constant -1.000000e+30 : f32
    %76 = vector.broadcast %cst_61 : f32 to vector<2x8xf32>
    %77 = vector.broadcast %cst_62 : f32 to vector<2x8xf32>
    %78 = arith.select %75, %76, %77 : vector<2x8xi1>, vector<2x8xf32>
    %c0_63 = arith.constant 0 : index
    %c0_64 = arith.constant 0 : index
    %79 = vector.load %arg17[%c0_63, %c0_64] : memref<32x32xf32, #tpu.memory_space<vmem>>, vector<32x32xf32>
    %c0_65 = arith.constant 0 : index
    %c0_66 = arith.constant 0 : index
    %80 = vector.load %arg18[%c0_65, %c0_66] : memref<1x32xf32, #tpu.memory_space<vmem>>, vector<1x32xf32>
    %81 = vector.extract_strided_slice %42 {offsets = [0, 0], sizes = [1, 8], strides = [1, 1]} : vector<1x32xf32> to vector<1x8xf32>
    %82 = vector.extract_strided_slice %58 {offsets = [0, 0, 0], sizes = [2, 8, 8], strides = [1, 1, 1]} : vector<2x8x32xf32> to vector<2x8x8xf32>
    %83 = vector.shape_cast %81 : vector<1x8xf32> to vector<1x1x8xf32>
    %84 = vector.broadcast %83 : vector<1x1x8xf32> to vector<2x8x8xf32>
    %85 = arith.mulf %82, %84 : vector<2x8x8xf32>
    %cst_67 = arith.constant dense<0.000000e+00> : vector<2x8xf32>
    %86 = vector.multi_reduction <add>, %85, %cst_67 [2] : vector<2x8x8xf32> to vector<2x8xf32>
    %cst_68 = arith.constant 0.353553385 : f32
    %87 = vector.broadcast %cst_68 : f32 to vector<2x8xf32>
    %88 = arith.mulf %86, %87 : vector<2x8xf32>
    %89 = arith.addf %88, %72 : vector<2x8xf32>
    %90 = vector.extract_strided_slice %62 {offsets = [0, 0, 0], sizes = [2, 8, 8], strides = [1, 1, 1]} : vector<2x8x32xf32> to vector<2x8x8xf32>
    %91 = vector.shape_cast %81 : vector<1x8xf32> to vector<1x1x8xf32>
    %92 = vector.broadcast %91 : vector<1x1x8xf32> to vector<2x8x8xf32>
    %93 = arith.mulf %90, %92 : vector<2x8x8xf32>
    %cst_69 = arith.constant dense<0.000000e+00> : vector<2x8xf32>
    %94 = vector.multi_reduction <add>, %93, %cst_69 [2] : vector<2x8x8xf32> to vector<2x8xf32>
    %cst_70 = arith.constant 0.353553385 : f32
    %95 = vector.broadcast %cst_70 : f32 to vector<2x8xf32>
    %96 = arith.mulf %94, %95 : vector<2x8xf32>
    %97 = arith.addf %96, %78 : vector<2x8xf32>
    %98 = vector.extract_strided_slice %65 {offsets = [0, 0], sizes = [1, 8], strides = [1, 1]} : vector<1x32xf32> to vector<1x8xf32>
    %99 = arith.mulf %98, %81 : vector<1x8xf32>
    %cst_71 = arith.constant dense<0.000000e+00> : vector<1xf32>
    %100 = vector.multi_reduction <add>, %99, %cst_71 [1] : vector<1x8xf32> to vector<1xf32>
    %101 = vector.shape_cast %100 : vector<1xf32> to vector<1x1xf32>
    %cst_72 = arith.constant 0.353553385 : f32
    %102 = vector.broadcast %cst_72 : f32 to vector<1x1xf32>
    %103 = arith.mulf %101, %102 : vector<1x1xf32>
    %cst_73 = arith.constant dense<0xFF800000> : vector<2xf32>
    %104 = vector.multi_reduction <maximumf>, %89, %cst_73 [1] : vector<2x8xf32> to vector<2xf32>
    %105 = vector.shape_cast %104 : vector<2xf32> to vector<2x1xf32>
    %cst_74 = arith.constant dense<0xFF800000> : vector<2xf32>
    %106 = vector.multi_reduction <maximumf>, %97, %cst_74 [1] : vector<2x8xf32> to vector<2xf32>
    %107 = vector.shape_cast %106 : vector<2xf32> to vector<2x1xf32>
    %108 = arith.maximumf %105, %107 : vector<2x1xf32>
    %109 = vector.broadcast %103 : vector<1x1xf32> to vector<2x1xf32>
    %110 = arith.maximumf %108, %109 : vector<2x1xf32>
    %111 = vector.broadcast %110 : vector<2x1xf32> to vector<2x8xf32>
    %112 = arith.subf %89, %111 : vector<2x8xf32>
    %113 = math.exp %112 : vector<2x8xf32>
    %114 = vector.broadcast %110 : vector<2x1xf32> to vector<2x8xf32>
    %115 = arith.subf %97, %114 : vector<2x8xf32>
    %116 = math.exp %115 : vector<2x8xf32>
    %117 = vector.broadcast %103 : vector<1x1xf32> to vector<2x1xf32>
    %118 = arith.subf %117, %110 : vector<2x1xf32>
    %119 = math.exp %118 : vector<2x1xf32>
    %cst_75 = arith.constant dense<0.000000e+00> : vector<2xf32>
    %120 = vector.multi_reduction <add>, %113, %cst_75 [1] : vector<2x8xf32> to vector<2xf32>
    %121 = vector.shape_cast %120 : vector<2xf32> to vector<2x1xf32>
    %cst_76 = arith.constant dense<0.000000e+00> : vector<2xf32>
    %122 = vector.multi_reduction <add>, %116, %cst_76 [1] : vector<2x8xf32> to vector<2xf32>
    %123 = vector.shape_cast %122 : vector<2xf32> to vector<2x1xf32>
    %124 = arith.addf %121, %123 : vector<2x1xf32>
    %125 = arith.addf %124, %119 : vector<2x1xf32>
    %cst_77 = arith.constant 1.000000e+00 : f32
    %126 = vector.broadcast %cst_77 : f32 to vector<2x1xf32>
    %127 = arith.divf %126, %125 : vector<2x1xf32>
    %128 = vector.broadcast %127 : vector<2x1xf32> to vector<2x8xf32>
    %129 = arith.mulf %113, %128 : vector<2x8xf32>
    %130 = vector.shape_cast %129 : vector<2x8xf32> to vector<2x8x1xf32>
    %131 = vector.extract_strided_slice %60 {offsets = [0, 0, 0], sizes = [2, 8, 8], strides = [1, 1, 1]} : vector<2x8x32xf32> to vector<2x8x8xf32>
    %132 = vector.broadcast %130 : vector<2x8x1xf32> to vector<2x8x8xf32>
    %133 = arith.mulf %132, %131 : vector<2x8x8xf32>
    %cst_78 = arith.constant dense<0.000000e+00> : vector<2x8xf32>
    %134 = vector.multi_reduction <add>, %133, %cst_78 [1] : vector<2x8x8xf32> to vector<2x8xf32>
    %135 = arith.mulf %119, %127 : vector<2x1xf32>
    %136 = vector.extract_strided_slice %66 {offsets = [0, 0], sizes = [1, 8], strides = [1, 1]} : vector<1x32xf32> to vector<1x8xf32>
    %137 = vector.broadcast %135 : vector<2x1xf32> to vector<2x8xf32>
    %138 = vector.broadcast %136 : vector<1x8xf32> to vector<2x8xf32>
    %139 = arith.mulf %137, %138 : vector<2x8xf32>
    %140 = arith.addf %134, %139 : vector<2x8xf32>
    %141 = vector.broadcast %127 : vector<2x1xf32> to vector<2x8xf32>
    %142 = arith.mulf %116, %141 : vector<2x8xf32>
    %143 = vector.shape_cast %142 : vector<2x8xf32> to vector<2x8x1xf32>
    %144 = vector.extract_strided_slice %64 {offsets = [0, 0, 0], sizes = [2, 8, 8], strides = [1, 1, 1]} : vector<2x8x32xf32> to vector<2x8x8xf32>
    %145 = vector.broadcast %143 : vector<2x8x1xf32> to vector<2x8x8xf32>
    %146 = arith.mulf %145, %144 : vector<2x8x8xf32>
    %cst_79 = arith.constant dense<0.000000e+00> : vector<2x8xf32>
    %147 = vector.multi_reduction <add>, %146, %cst_79 [1] : vector<2x8x8xf32> to vector<2x8xf32>
    %148 = arith.addf %140, %147 : vector<2x8xf32>
    %149 = vector.extract_strided_slice %79 {offsets = [0, 0], sizes = [8, 32], strides = [1, 1]} : vector<32x32xf32> to vector<8x32xf32>
    %cst_80 = arith.constant dense<0.000000e+00> : vector<2x32xf32>
    %150 = tpu.matmul %148, %149, %cst_80 {dimension_numbers = #tpu.dot_dimension_numbers<[1], [0], [0], [1], [0, 0, 1, 1], [], []>} : vector<2x8xf32>, vector<8x32xf32>, vector<2x32xf32> -> vector<2x32xf32>
    %151 = vector.broadcast %80 : vector<1x32xf32> to vector<2x32xf32>
    %152 = arith.addf %151, %150 : vector<2x32xf32>
    %153 = vector.extract_strided_slice %42 {offsets = [0, 8], sizes = [1, 8], strides = [1, 1]} : vector<1x32xf32> to vector<1x8xf32>
    %154 = vector.extract_strided_slice %58 {offsets = [0, 0, 8], sizes = [2, 8, 8], strides = [1, 1, 1]} : vector<2x8x32xf32> to vector<2x8x8xf32>
    %155 = vector.shape_cast %153 : vector<1x8xf32> to vector<1x1x8xf32>
    %156 = vector.broadcast %155 : vector<1x1x8xf32> to vector<2x8x8xf32>
    %157 = arith.mulf %154, %156 : vector<2x8x8xf32>
    %cst_81 = arith.constant dense<0.000000e+00> : vector<2x8xf32>
    %158 = vector.multi_reduction <add>, %157, %cst_81 [2] : vector<2x8x8xf32> to vector<2x8xf32>
    %cst_82 = arith.constant 0.353553385 : f32
    %159 = vector.broadcast %cst_82 : f32 to vector<2x8xf32>
    %160 = arith.mulf %158, %159 : vector<2x8xf32>
    %161 = arith.addf %160, %72 : vector<2x8xf32>
    %162 = vector.extract_strided_slice %62 {offsets = [0, 0, 8], sizes = [2, 8, 8], strides = [1, 1, 1]} : vector<2x8x32xf32> to vector<2x8x8xf32>
    %163 = vector.shape_cast %153 : vector<1x8xf32> to vector<1x1x8xf32>
    %164 = vector.broadcast %163 : vector<1x1x8xf32> to vector<2x8x8xf32>
    %165 = arith.mulf %162, %164 : vector<2x8x8xf32>
    %cst_83 = arith.constant dense<0.000000e+00> : vector<2x8xf32>
    %166 = vector.multi_reduction <add>, %165, %cst_83 [2] : vector<2x8x8xf32> to vector<2x8xf32>
    %cst_84 = arith.constant 0.353553385 : f32
    %167 = vector.broadcast %cst_84 : f32 to vector<2x8xf32>
    %168 = arith.mulf %166, %167 : vector<2x8xf32>
    %169 = arith.addf %168, %78 : vector<2x8xf32>
    %170 = vector.extract_strided_slice %65 {offsets = [0, 8], sizes = [1, 8], strides = [1, 1]} : vector<1x32xf32> to vector<1x8xf32>
    %171 = arith.mulf %170, %153 : vector<1x8xf32>
    %cst_85 = arith.constant dense<0.000000e+00> : vector<1xf32>
    %172 = vector.multi_reduction <add>, %171, %cst_85 [1] : vector<1x8xf32> to vector<1xf32>
    %173 = vector.shape_cast %172 : vector<1xf32> to vector<1x1xf32>
    %cst_86 = arith.constant 0.353553385 : f32
    %174 = vector.broadcast %cst_86 : f32 to vector<1x1xf32>
    %175 = arith.mulf %173, %174 : vector<1x1xf32>
    %cst_87 = arith.constant dense<0xFF800000> : vector<2xf32>
    %176 = vector.multi_reduction <maximumf>, %161, %cst_87 [1] : vector<2x8xf32> to vector<2xf32>
    %177 = vector.shape_cast %176 : vector<2xf32> to vector<2x1xf32>
    %cst_88 = arith.constant dense<0xFF800000> : vector<2xf32>
    %178 = vector.multi_reduction <maximumf>, %169, %cst_88 [1] : vector<2x8xf32> to vector<2xf32>
    %179 = vector.shape_cast %178 : vector<2xf32> to vector<2x1xf32>
    %180 = arith.maximumf %177, %179 : vector<2x1xf32>
    %181 = vector.broadcast %175 : vector<1x1xf32> to vector<2x1xf32>
    %182 = arith.maximumf %180, %181 : vector<2x1xf32>
    %183 = vector.broadcast %182 : vector<2x1xf32> to vector<2x8xf32>
    %184 = arith.subf %161, %183 : vector<2x8xf32>
    %185 = math.exp %184 : vector<2x8xf32>
    %186 = vector.broadcast %182 : vector<2x1xf32> to vector<2x8xf32>
    %187 = arith.subf %169, %186 : vector<2x8xf32>
    %188 = math.exp %187 : vector<2x8xf32>
    %189 = vector.broadcast %175 : vector<1x1xf32> to vector<2x1xf32>
    %190 = arith.subf %189, %182 : vector<2x1xf32>
    %191 = math.exp %190 : vector<2x1xf32>
    %cst_89 = arith.constant dense<0.000000e+00> : vector<2xf32>
    %192 = vector.multi_reduction <add>, %185, %cst_89 [1] : vector<2x8xf32> to vector<2xf32>
    %193 = vector.shape_cast %192 : vector<2xf32> to vector<2x1xf32>
    %cst_90 = arith.constant dense<0.000000e+00> : vector<2xf32>
    %194 = vector.multi_reduction <add>, %188, %cst_90 [1] : vector<2x8xf32> to vector<2xf32>
    %195 = vector.shape_cast %194 : vector<2xf32> to vector<2x1xf32>
    %196 = arith.addf %193, %195 : vector<2x1xf32>
    %197 = arith.addf %196, %191 : vector<2x1xf32>
    %cst_91 = arith.constant 1.000000e+00 : f32
    %198 = vector.broadcast %cst_91 : f32 to vector<2x1xf32>
    %199 = arith.divf %198, %197 : vector<2x1xf32>
    %200 = vector.broadcast %199 : vector<2x1xf32> to vector<2x8xf32>
    %201 = arith.mulf %185, %200 : vector<2x8xf32>
    %202 = vector.shape_cast %201 : vector<2x8xf32> to vector<2x8x1xf32>
    %203 = vector.extract_strided_slice %60 {offsets = [0, 0, 8], sizes = [2, 8, 8], strides = [1, 1, 1]} : vector<2x8x32xf32> to vector<2x8x8xf32>
    %204 = vector.broadcast %202 : vector<2x8x1xf32> to vector<2x8x8xf32>
    %205 = arith.mulf %204, %203 : vector<2x8x8xf32>
    %cst_92 = arith.constant dense<0.000000e+00> : vector<2x8xf32>
    %206 = vector.multi_reduction <add>, %205, %cst_92 [1] : vector<2x8x8xf32> to vector<2x8xf32>
    %207 = arith.mulf %191, %199 : vector<2x1xf32>
    %208 = vector.extract_strided_slice %66 {offsets = [0, 8], sizes = [1, 8], strides = [1, 1]} : vector<1x32xf32> to vector<1x8xf32>
    %209 = vector.broadcast %207 : vector<2x1xf32> to vector<2x8xf32>
    %210 = vector.broadcast %208 : vector<1x8xf32> to vector<2x8xf32>
    %211 = arith.mulf %209, %210 : vector<2x8xf32>
    %212 = arith.addf %206, %211 : vector<2x8xf32>
    %213 = vector.broadcast %199 : vector<2x1xf32> to vector<2x8xf32>
    %214 = arith.mulf %188, %213 : vector<2x8xf32>
    %215 = vector.shape_cast %214 : vector<2x8xf32> to vector<2x8x1xf32>
    %216 = vector.extract_strided_slice %64 {offsets = [0, 0, 8], sizes = [2, 8, 8], strides = [1, 1, 1]} : vector<2x8x32xf32> to vector<2x8x8xf32>
    %217 = vector.broadcast %215 : vector<2x8x1xf32> to vector<2x8x8xf32>
    %218 = arith.mulf %217, %216 : vector<2x8x8xf32>
    %cst_93 = arith.constant dense<0.000000e+00> : vector<2x8xf32>
    %219 = vector.multi_reduction <add>, %218, %cst_93 [1] : vector<2x8x8xf32> to vector<2x8xf32>
    %220 = arith.addf %212, %219 : vector<2x8xf32>
    %221 = vector.extract_strided_slice %79 {offsets = [8, 0], sizes = [8, 32], strides = [1, 1]} : vector<32x32xf32> to vector<8x32xf32>
    %cst_94 = arith.constant dense<0.000000e+00> : vector<2x32xf32>
    %222 = tpu.matmul %220, %221, %cst_94 {dimension_numbers = #tpu.dot_dimension_numbers<[1], [0], [0], [1], [0, 0, 1, 1], [], []>} : vector<2x8xf32>, vector<8x32xf32>, vector<2x32xf32> -> vector<2x32xf32>
    %223 = arith.addf %152, %222 : vector<2x32xf32>
    %224 = vector.extract_strided_slice %42 {offsets = [0, 16], sizes = [1, 8], strides = [1, 1]} : vector<1x32xf32> to vector<1x8xf32>
    %225 = vector.extract_strided_slice %58 {offsets = [0, 0, 16], sizes = [2, 8, 8], strides = [1, 1, 1]} : vector<2x8x32xf32> to vector<2x8x8xf32>
    %226 = vector.shape_cast %224 : vector<1x8xf32> to vector<1x1x8xf32>
    %227 = vector.broadcast %226 : vector<1x1x8xf32> to vector<2x8x8xf32>
    %228 = arith.mulf %225, %227 : vector<2x8x8xf32>
    %cst_95 = arith.constant dense<0.000000e+00> : vector<2x8xf32>
    %229 = vector.multi_reduction <add>, %228, %cst_95 [2] : vector<2x8x8xf32> to vector<2x8xf32>
    %cst_96 = arith.constant 0.353553385 : f32
    %230 = vector.broadcast %cst_96 : f32 to vector<2x8xf32>
    %231 = arith.mulf %229, %230 : vector<2x8xf32>
    %232 = arith.addf %231, %72 : vector<2x8xf32>
    %233 = vector.extract_strided_slice %62 {offsets = [0, 0, 16], sizes = [2, 8, 8], strides = [1, 1, 1]} : vector<2x8x32xf32> to vector<2x8x8xf32>
    %234 = vector.shape_cast %224 : vector<1x8xf32> to vector<1x1x8xf32>
    %235 = vector.broadcast %234 : vector<1x1x8xf32> to vector<2x8x8xf32>
    %236 = arith.mulf %233, %235 : vector<2x8x8xf32>
    %cst_97 = arith.constant dense<0.000000e+00> : vector<2x8xf32>
    %237 = vector.multi_reduction <add>, %236, %cst_97 [2] : vector<2x8x8xf32> to vector<2x8xf32>
    %cst_98 = arith.constant 0.353553385 : f32
    %238 = vector.broadcast %cst_98 : f32 to vector<2x8xf32>
    %239 = arith.mulf %237, %238 : vector<2x8xf32>
    %240 = arith.addf %239, %78 : vector<2x8xf32>
    %241 = vector.extract_strided_slice %65 {offsets = [0, 16], sizes = [1, 8], strides = [1, 1]} : vector<1x32xf32> to vector<1x8xf32>
    %242 = arith.mulf %241, %224 : vector<1x8xf32>
    %cst_99 = arith.constant dense<0.000000e+00> : vector<1xf32>
    %243 = vector.multi_reduction <add>, %242, %cst_99 [1] : vector<1x8xf32> to vector<1xf32>
    %244 = vector.shape_cast %243 : vector<1xf32> to vector<1x1xf32>
    %cst_100 = arith.constant 0.353553385 : f32
    %245 = vector.broadcast %cst_100 : f32 to vector<1x1xf32>
    %246 = arith.mulf %244, %245 : vector<1x1xf32>
    %cst_101 = arith.constant dense<0xFF800000> : vector<2xf32>
    %247 = vector.multi_reduction <maximumf>, %232, %cst_101 [1] : vector<2x8xf32> to vector<2xf32>
    %248 = vector.shape_cast %247 : vector<2xf32> to vector<2x1xf32>
    %cst_102 = arith.constant dense<0xFF800000> : vector<2xf32>
    %249 = vector.multi_reduction <maximumf>, %240, %cst_102 [1] : vector<2x8xf32> to vector<2xf32>
    %250 = vector.shape_cast %249 : vector<2xf32> to vector<2x1xf32>
    %251 = arith.maximumf %248, %250 : vector<2x1xf32>
    %252 = vector.broadcast %246 : vector<1x1xf32> to vector<2x1xf32>
    %253 = arith.maximumf %251, %252 : vector<2x1xf32>
    %254 = vector.broadcast %253 : vector<2x1xf32> to vector<2x8xf32>
    %255 = arith.subf %232, %254 : vector<2x8xf32>
    %256 = math.exp %255 : vector<2x8xf32>
    %257 = vector.broadcast %253 : vector<2x1xf32> to vector<2x8xf32>
    %258 = arith.subf %240, %257 : vector<2x8xf32>
    %259 = math.exp %258 : vector<2x8xf32>
    %260 = vector.broadcast %246 : vector<1x1xf32> to vector<2x1xf32>
    %261 = arith.subf %260, %253 : vector<2x1xf32>
    %262 = math.exp %261 : vector<2x1xf32>
    %cst_103 = arith.constant dense<0.000000e+00> : vector<2xf32>
    %263 = vector.multi_reduction <add>, %256, %cst_103 [1] : vector<2x8xf32> to vector<2xf32>
    %264 = vector.shape_cast %263 : vector<2xf32> to vector<2x1xf32>
    %cst_104 = arith.constant dense<0.000000e+00> : vector<2xf32>
    %265 = vector.multi_reduction <add>, %259, %cst_104 [1] : vector<2x8xf32> to vector<2xf32>
    %266 = vector.shape_cast %265 : vector<2xf32> to vector<2x1xf32>
    %267 = arith.addf %264, %266 : vector<2x1xf32>
    %268 = arith.addf %267, %262 : vector<2x1xf32>
    %cst_105 = arith.constant 1.000000e+00 : f32
    %269 = vector.broadcast %cst_105 : f32 to vector<2x1xf32>
    %270 = arith.divf %269, %268 : vector<2x1xf32>
    %271 = vector.broadcast %270 : vector<2x1xf32> to vector<2x8xf32>
    %272 = arith.mulf %256, %271 : vector<2x8xf32>
    %273 = vector.shape_cast %272 : vector<2x8xf32> to vector<2x8x1xf32>
    %274 = vector.extract_strided_slice %60 {offsets = [0, 0, 16], sizes = [2, 8, 8], strides = [1, 1, 1]} : vector<2x8x32xf32> to vector<2x8x8xf32>
    %275 = vector.broadcast %273 : vector<2x8x1xf32> to vector<2x8x8xf32>
    %276 = arith.mulf %275, %274 : vector<2x8x8xf32>
    %cst_106 = arith.constant dense<0.000000e+00> : vector<2x8xf32>
    %277 = vector.multi_reduction <add>, %276, %cst_106 [1] : vector<2x8x8xf32> to vector<2x8xf32>
    %278 = arith.mulf %262, %270 : vector<2x1xf32>
    %279 = vector.extract_strided_slice %66 {offsets = [0, 16], sizes = [1, 8], strides = [1, 1]} : vector<1x32xf32> to vector<1x8xf32>
    %280 = vector.broadcast %278 : vector<2x1xf32> to vector<2x8xf32>
    %281 = vector.broadcast %279 : vector<1x8xf32> to vector<2x8xf32>
    %282 = arith.mulf %280, %281 : vector<2x8xf32>
    %283 = arith.addf %277, %282 : vector<2x8xf32>
    %284 = vector.broadcast %270 : vector<2x1xf32> to vector<2x8xf32>
    %285 = arith.mulf %259, %284 : vector<2x8xf32>
    %286 = vector.shape_cast %285 : vector<2x8xf32> to vector<2x8x1xf32>
    %287 = vector.extract_strided_slice %64 {offsets = [0, 0, 16], sizes = [2, 8, 8], strides = [1, 1, 1]} : vector<2x8x32xf32> to vector<2x8x8xf32>
    %288 = vector.broadcast %286 : vector<2x8x1xf32> to vector<2x8x8xf32>
    %289 = arith.mulf %288, %287 : vector<2x8x8xf32>
    %cst_107 = arith.constant dense<0.000000e+00> : vector<2x8xf32>
    %290 = vector.multi_reduction <add>, %289, %cst_107 [1] : vector<2x8x8xf32> to vector<2x8xf32>
    %291 = arith.addf %283, %290 : vector<2x8xf32>
    %292 = vector.extract_strided_slice %79 {offsets = [16, 0], sizes = [8, 32], strides = [1, 1]} : vector<32x32xf32> to vector<8x32xf32>
    %cst_108 = arith.constant dense<0.000000e+00> : vector<2x32xf32>
    %293 = tpu.matmul %291, %292, %cst_108 {dimension_numbers = #tpu.dot_dimension_numbers<[1], [0], [0], [1], [0, 0, 1, 1], [], []>} : vector<2x8xf32>, vector<8x32xf32>, vector<2x32xf32> -> vector<2x32xf32>
    %294 = arith.addf %223, %293 : vector<2x32xf32>
    %295 = vector.extract_strided_slice %42 {offsets = [0, 24], sizes = [1, 8], strides = [1, 1]} : vector<1x32xf32> to vector<1x8xf32>
    %296 = vector.extract_strided_slice %58 {offsets = [0, 0, 24], sizes = [2, 8, 8], strides = [1, 1, 1]} : vector<2x8x32xf32> to vector<2x8x8xf32>
    %297 = vector.shape_cast %295 : vector<1x8xf32> to vector<1x1x8xf32>
    %298 = vector.broadcast %297 : vector<1x1x8xf32> to vector<2x8x8xf32>
    %299 = arith.mulf %296, %298 : vector<2x8x8xf32>
    %cst_109 = arith.constant dense<0.000000e+00> : vector<2x8xf32>
    %300 = vector.multi_reduction <add>, %299, %cst_109 [2] : vector<2x8x8xf32> to vector<2x8xf32>
    %cst_110 = arith.constant 0.353553385 : f32
    %301 = vector.broadcast %cst_110 : f32 to vector<2x8xf32>
    %302 = arith.mulf %300, %301 : vector<2x8xf32>
    %303 = arith.addf %302, %72 : vector<2x8xf32>
    %304 = vector.extract_strided_slice %62 {offsets = [0, 0, 24], sizes = [2, 8, 8], strides = [1, 1, 1]} : vector<2x8x32xf32> to vector<2x8x8xf32>
    %305 = vector.shape_cast %295 : vector<1x8xf32> to vector<1x1x8xf32>
    %306 = vector.broadcast %305 : vector<1x1x8xf32> to vector<2x8x8xf32>
    %307 = arith.mulf %304, %306 : vector<2x8x8xf32>
    %cst_111 = arith.constant dense<0.000000e+00> : vector<2x8xf32>
    %308 = vector.multi_reduction <add>, %307, %cst_111 [2] : vector<2x8x8xf32> to vector<2x8xf32>
    %cst_112 = arith.constant 0.353553385 : f32
    %309 = vector.broadcast %cst_112 : f32 to vector<2x8xf32>
    %310 = arith.mulf %308, %309 : vector<2x8xf32>
    %311 = arith.addf %310, %78 : vector<2x8xf32>
    %312 = vector.extract_strided_slice %65 {offsets = [0, 24], sizes = [1, 8], strides = [1, 1]} : vector<1x32xf32> to vector<1x8xf32>
    %313 = arith.mulf %312, %295 : vector<1x8xf32>
    %cst_113 = arith.constant dense<0.000000e+00> : vector<1xf32>
    %314 = vector.multi_reduction <add>, %313, %cst_113 [1] : vector<1x8xf32> to vector<1xf32>
    %315 = vector.shape_cast %314 : vector<1xf32> to vector<1x1xf32>
    %cst_114 = arith.constant 0.353553385 : f32
    %316 = vector.broadcast %cst_114 : f32 to vector<1x1xf32>
    %317 = arith.mulf %315, %316 : vector<1x1xf32>
    %cst_115 = arith.constant dense<0xFF800000> : vector<2xf32>
    %318 = vector.multi_reduction <maximumf>, %303, %cst_115 [1] : vector<2x8xf32> to vector<2xf32>
    %319 = vector.shape_cast %318 : vector<2xf32> to vector<2x1xf32>
    %cst_116 = arith.constant dense<0xFF800000> : vector<2xf32>
    %320 = vector.multi_reduction <maximumf>, %311, %cst_116 [1] : vector<2x8xf32> to vector<2xf32>
    %321 = vector.shape_cast %320 : vector<2xf32> to vector<2x1xf32>
    %322 = arith.maximumf %319, %321 : vector<2x1xf32>
    %323 = vector.broadcast %317 : vector<1x1xf32> to vector<2x1xf32>
    %324 = arith.maximumf %322, %323 : vector<2x1xf32>
    %325 = vector.broadcast %324 : vector<2x1xf32> to vector<2x8xf32>
    %326 = arith.subf %303, %325 : vector<2x8xf32>
    %327 = math.exp %326 : vector<2x8xf32>
    %328 = vector.broadcast %324 : vector<2x1xf32> to vector<2x8xf32>
    %329 = arith.subf %311, %328 : vector<2x8xf32>
    %330 = math.exp %329 : vector<2x8xf32>
    %331 = vector.broadcast %317 : vector<1x1xf32> to vector<2x1xf32>
    %332 = arith.subf %331, %324 : vector<2x1xf32>
    %333 = math.exp %332 : vector<2x1xf32>
    %cst_117 = arith.constant dense<0.000000e+00> : vector<2xf32>
    %334 = vector.multi_reduction <add>, %327, %cst_117 [1] : vector<2x8xf32> to vector<2xf32>
    %335 = vector.shape_cast %334 : vector<2xf32> to vector<2x1xf32>
    %cst_118 = arith.constant dense<0.000000e+00> : vector<2xf32>
    %336 = vector.multi_reduction <add>, %330, %cst_118 [1] : vector<2x8xf32> to vector<2xf32>
    %337 = vector.shape_cast %336 : vector<2xf32> to vector<2x1xf32>
    %338 = arith.addf %335, %337 : vector<2x1xf32>
    %339 = arith.addf %338, %333 : vector<2x1xf32>
    %cst_119 = arith.constant 1.000000e+00 : f32
    %340 = vector.broadcast %cst_119 : f32 to vector<2x1xf32>
    %341 = arith.divf %340, %339 : vector<2x1xf32>
    %342 = vector.broadcast %341 : vector<2x1xf32> to vector<2x8xf32>
    %343 = arith.mulf %327, %342 : vector<2x8xf32>
    %344 = vector.shape_cast %343 : vector<2x8xf32> to vector<2x8x1xf32>
    %345 = vector.extract_strided_slice %60 {offsets = [0, 0, 24], sizes = [2, 8, 8], strides = [1, 1, 1]} : vector<2x8x32xf32> to vector<2x8x8xf32>
    %346 = vector.broadcast %344 : vector<2x8x1xf32> to vector<2x8x8xf32>
    %347 = arith.mulf %346, %345 : vector<2x8x8xf32>
    %cst_120 = arith.constant dense<0.000000e+00> : vector<2x8xf32>
    %348 = vector.multi_reduction <add>, %347, %cst_120 [1] : vector<2x8x8xf32> to vector<2x8xf32>
    %349 = arith.mulf %333, %341 : vector<2x1xf32>
    %350 = vector.extract_strided_slice %66 {offsets = [0, 24], sizes = [1, 8], strides = [1, 1]} : vector<1x32xf32> to vector<1x8xf32>
    %351 = vector.broadcast %349 : vector<2x1xf32> to vector<2x8xf32>
    %352 = vector.broadcast %350 : vector<1x8xf32> to vector<2x8xf32>
    %353 = arith.mulf %351, %352 : vector<2x8xf32>
    %354 = arith.addf %348, %353 : vector<2x8xf32>
    %355 = vector.broadcast %341 : vector<2x1xf32> to vector<2x8xf32>
    %356 = arith.mulf %330, %355 : vector<2x8xf32>
    %357 = vector.shape_cast %356 : vector<2x8xf32> to vector<2x8x1xf32>
    %358 = vector.extract_strided_slice %64 {offsets = [0, 0, 24], sizes = [2, 8, 8], strides = [1, 1, 1]} : vector<2x8x32xf32> to vector<2x8x8xf32>
    %359 = vector.broadcast %357 : vector<2x8x1xf32> to vector<2x8x8xf32>
    %360 = arith.mulf %359, %358 : vector<2x8x8xf32>
    %cst_121 = arith.constant dense<0.000000e+00> : vector<2x8xf32>
    %361 = vector.multi_reduction <add>, %360, %cst_121 [1] : vector<2x8x8xf32> to vector<2x8xf32>
    %362 = arith.addf %354, %361 : vector<2x8xf32>
    %363 = vector.extract_strided_slice %79 {offsets = [24, 0], sizes = [8, 32], strides = [1, 1]} : vector<32x32xf32> to vector<8x32xf32>
    %cst_122 = arith.constant dense<0.000000e+00> : vector<2x32xf32>
    %364 = tpu.matmul %362, %363, %cst_122 {dimension_numbers = #tpu.dot_dimension_numbers<[1], [0], [0], [1], [0, 0, 1, 1], [], []>} : vector<2x8xf32>, vector<8x32xf32>, vector<2x32xf32> -> vector<2x32xf32>
    %365 = arith.addf %294, %364 : vector<2x32xf32>
    %c0_123 = arith.constant 0 : index
    %c0_124 = arith.constant 0 : index
    %366 = vector.load %arg19[%c0_123, %c0_124] : memref<32x32xf32, #tpu.memory_space<vmem>>, vector<32x32xf32>
    %cst_125 = arith.constant dense<0.000000e+00> : vector<2x32xf32>
    %367 = tpu.matmul %365, %366, %cst_125 {dimension_numbers = #tpu.dot_dimension_numbers<[1], [0], [0], [1], [0, 0, 1, 1], [], []>} : vector<2x32xf32>, vector<32x32xf32>, vector<2x32xf32> -> vector<2x32xf32>
    %c0_126 = arith.constant 0 : index
    %c0_127 = arith.constant 0 : index
    %368 = vector.load %arg20[%c0_126, %c0_127] : memref<1x32xf32, #tpu.memory_space<vmem>>, vector<1x32xf32>
    %369 = vector.broadcast %368 : vector<1x32xf32> to vector<2x32xf32>
    %370 = arith.addf %367, %369 : vector<2x32xf32>
    %c0_128 = arith.constant 0 : index
    %c0_129 = arith.constant 0 : index
    %371 = vector.load %arg21[%c0_128, %c0_129] : memref<16x32xf32, #tpu.memory_space<vmem>>, vector<16x32xf32>
    %cst_130 = arith.constant dense<0.000000e+00> : vector<16x32xf32>
    %372 = tpu.matmul %19, %371, %cst_130 {dimension_numbers = #tpu.dot_dimension_numbers<[1], [0], [0], [1], [0, 0, 1, 1], [], []>} : vector<16x16xf32>, vector<16x32xf32>, vector<16x32xf32> -> vector<16x32xf32>
    %c0_131 = arith.constant 0 : index
    %c0_132 = arith.constant 0 : index
    %373 = vector.load %arg22[%c0_131, %c0_132] : memref<1x32xf32, #tpu.memory_space<vmem>>, vector<1x32xf32>
    %374 = vector.broadcast %373 : vector<1x32xf32> to vector<16x32xf32>
    %375 = arith.addf %372, %374 : vector<16x32xf32>
    %376 = vector.shape_cast %375 : vector<16x32xf32> to vector<2x8x32xf32>
    %c0_133 = arith.constant 0 : index
    %c0_134 = arith.constant 0 : index
    %377 = vector.load %arg23[%c0_133, %c0_134] : memref<4x32xf32, #tpu.memory_space<vmem>>, vector<4x32xf32>
    %cst_135 = arith.constant 0.000000e+00 : f32
    %378 = vector.broadcast %cst_135 : f32 to vector<2x8x32xf32>
    %379 = vector.extract_strided_slice %376 {offsets = [0, 0, 0], sizes = [2, 8, 8], strides = [1, 1, 1]} : vector<2x8x32xf32> to vector<2x8x8xf32>
    %380 = vector.extract_strided_slice %370 {offsets = [0, 0], sizes = [2, 8], strides = [1, 1]} : vector<2x32xf32> to vector<2x8xf32>
    %381 = vector.shape_cast %380 : vector<2x8xf32> to vector<2x1x8xf32>
    %382 = vector.broadcast %381 : vector<2x1x8xf32> to vector<2x8x8xf32>
    %383 = arith.mulf %379, %382 : vector<2x8x8xf32>
    %cst_136 = arith.constant dense<0.000000e+00> : vector<2x8xf32>
    %384 = vector.multi_reduction <add>, %383, %cst_136 [2] : vector<2x8x8xf32> to vector<2x8xf32>
    %cst_137 = arith.constant 0.353553385 : f32
    %385 = vector.broadcast %cst_137 : f32 to vector<2x8xf32>
    %386 = arith.mulf %384, %385 : vector<2x8xf32>
    %cst_138 = arith.constant dense<0xFF800000> : vector<2xf32>
    %387 = vector.multi_reduction <maximumf>, %386, %cst_138 [1] : vector<2x8xf32> to vector<2xf32>
    %388 = vector.shape_cast %387 : vector<2xf32> to vector<2x1xf32>
    %389 = vector.broadcast %388 : vector<2x1xf32> to vector<2x8xf32>
    %390 = arith.subf %386, %389 : vector<2x8xf32>
    %391 = math.exp %390 : vector<2x8xf32>
    %cst_139 = arith.constant dense<0.000000e+00> : vector<2xf32>
    %392 = vector.multi_reduction <add>, %391, %cst_139 [1] : vector<2x8xf32> to vector<2xf32>
    %393 = vector.shape_cast %392 : vector<2xf32> to vector<2x1xf32>
    %394 = vector.broadcast %393 : vector<2x1xf32> to vector<2x8xf32>
    %395 = arith.divf %391, %394 : vector<2x8xf32>
    %396 = vector.shape_cast %395 : vector<2x8xf32> to vector<2x8x1xf32>
    %397 = vector.extract_strided_slice %377 {offsets = [0, 0], sizes = [1, 32], strides = [1, 1]} : vector<4x32xf32> to vector<1x32xf32>
    %398 = vector.shape_cast %397 : vector<1x32xf32> to vector<1x1x32xf32>
    %399 = vector.broadcast %396 : vector<2x8x1xf32> to vector<2x8x32xf32>
    %400 = vector.broadcast %398 : vector<1x1x32xf32> to vector<2x8x32xf32>
    %401 = arith.mulf %399, %400 : vector<2x8x32xf32>
    %402 = arith.addf %378, %401 : vector<2x8x32xf32>
    %403 = vector.extract_strided_slice %376 {offsets = [0, 0, 8], sizes = [2, 8, 8], strides = [1, 1, 1]} : vector<2x8x32xf32> to vector<2x8x8xf32>
    %404 = vector.extract_strided_slice %370 {offsets = [0, 8], sizes = [2, 8], strides = [1, 1]} : vector<2x32xf32> to vector<2x8xf32>
    %405 = vector.shape_cast %404 : vector<2x8xf32> to vector<2x1x8xf32>
    %406 = vector.broadcast %405 : vector<2x1x8xf32> to vector<2x8x8xf32>
    %407 = arith.mulf %403, %406 : vector<2x8x8xf32>
    %cst_140 = arith.constant dense<0.000000e+00> : vector<2x8xf32>
    %408 = vector.multi_reduction <add>, %407, %cst_140 [2] : vector<2x8x8xf32> to vector<2x8xf32>
    %cst_141 = arith.constant 0.353553385 : f32
    %409 = vector.broadcast %cst_141 : f32 to vector<2x8xf32>
    %410 = arith.mulf %408, %409 : vector<2x8xf32>
    %cst_142 = arith.constant dense<0xFF800000> : vector<2xf32>
    %411 = vector.multi_reduction <maximumf>, %410, %cst_142 [1] : vector<2x8xf32> to vector<2xf32>
    %412 = vector.shape_cast %411 : vector<2xf32> to vector<2x1xf32>
    %413 = vector.broadcast %412 : vector<2x1xf32> to vector<2x8xf32>
    %414 = arith.subf %410, %413 : vector<2x8xf32>
    %415 = math.exp %414 : vector<2x8xf32>
    %cst_143 = arith.constant dense<0.000000e+00> : vector<2xf32>
    %416 = vector.multi_reduction <add>, %415, %cst_143 [1] : vector<2x8xf32> to vector<2xf32>
    %417 = vector.shape_cast %416 : vector<2xf32> to vector<2x1xf32>
    %418 = vector.broadcast %417 : vector<2x1xf32> to vector<2x8xf32>
    %419 = arith.divf %415, %418 : vector<2x8xf32>
    %420 = vector.shape_cast %419 : vector<2x8xf32> to vector<2x8x1xf32>
    %421 = vector.extract_strided_slice %377 {offsets = [1, 0], sizes = [1, 32], strides = [1, 1]} : vector<4x32xf32> to vector<1x32xf32>
    %422 = vector.shape_cast %421 : vector<1x32xf32> to vector<1x1x32xf32>
    %423 = vector.broadcast %420 : vector<2x8x1xf32> to vector<2x8x32xf32>
    %424 = vector.broadcast %422 : vector<1x1x32xf32> to vector<2x8x32xf32>
    %425 = arith.mulf %423, %424 : vector<2x8x32xf32>
    %426 = arith.addf %402, %425 : vector<2x8x32xf32>
    %427 = vector.extract_strided_slice %376 {offsets = [0, 0, 16], sizes = [2, 8, 8], strides = [1, 1, 1]} : vector<2x8x32xf32> to vector<2x8x8xf32>
    %428 = vector.extract_strided_slice %370 {offsets = [0, 16], sizes = [2, 8], strides = [1, 1]} : vector<2x32xf32> to vector<2x8xf32>
    %429 = vector.shape_cast %428 : vector<2x8xf32> to vector<2x1x8xf32>
    %430 = vector.broadcast %429 : vector<2x1x8xf32> to vector<2x8x8xf32>
    %431 = arith.mulf %427, %430 : vector<2x8x8xf32>
    %cst_144 = arith.constant dense<0.000000e+00> : vector<2x8xf32>
    %432 = vector.multi_reduction <add>, %431, %cst_144 [2] : vector<2x8x8xf32> to vector<2x8xf32>
    %cst_145 = arith.constant 0.353553385 : f32
    %433 = vector.broadcast %cst_145 : f32 to vector<2x8xf32>
    %434 = arith.mulf %432, %433 : vector<2x8xf32>
    %cst_146 = arith.constant dense<0xFF800000> : vector<2xf32>
    %435 = vector.multi_reduction <maximumf>, %434, %cst_146 [1] : vector<2x8xf32> to vector<2xf32>
    %436 = vector.shape_cast %435 : vector<2xf32> to vector<2x1xf32>
    %437 = vector.broadcast %436 : vector<2x1xf32> to vector<2x8xf32>
    %438 = arith.subf %434, %437 : vector<2x8xf32>
    %439 = math.exp %438 : vector<2x8xf32>
    %cst_147 = arith.constant dense<0.000000e+00> : vector<2xf32>
    %440 = vector.multi_reduction <add>, %439, %cst_147 [1] : vector<2x8xf32> to vector<2xf32>
    %441 = vector.shape_cast %440 : vector<2xf32> to vector<2x1xf32>
    %442 = vector.broadcast %441 : vector<2x1xf32> to vector<2x8xf32>
    %443 = arith.divf %439, %442 : vector<2x8xf32>
    %444 = vector.shape_cast %443 : vector<2x8xf32> to vector<2x8x1xf32>
    %445 = vector.extract_strided_slice %377 {offsets = [2, 0], sizes = [1, 32], strides = [1, 1]} : vector<4x32xf32> to vector<1x32xf32>
    %446 = vector.shape_cast %445 : vector<1x32xf32> to vector<1x1x32xf32>
    %447 = vector.broadcast %444 : vector<2x8x1xf32> to vector<2x8x32xf32>
    %448 = vector.broadcast %446 : vector<1x1x32xf32> to vector<2x8x32xf32>
    %449 = arith.mulf %447, %448 : vector<2x8x32xf32>
    %450 = arith.addf %426, %449 : vector<2x8x32xf32>
    %451 = vector.extract_strided_slice %376 {offsets = [0, 0, 24], sizes = [2, 8, 8], strides = [1, 1, 1]} : vector<2x8x32xf32> to vector<2x8x8xf32>
    %452 = vector.extract_strided_slice %370 {offsets = [0, 24], sizes = [2, 8], strides = [1, 1]} : vector<2x32xf32> to vector<2x8xf32>
    %453 = vector.shape_cast %452 : vector<2x8xf32> to vector<2x1x8xf32>
    %454 = vector.broadcast %453 : vector<2x1x8xf32> to vector<2x8x8xf32>
    %455 = arith.mulf %451, %454 : vector<2x8x8xf32>
    %cst_148 = arith.constant dense<0.000000e+00> : vector<2x8xf32>
    %456 = vector.multi_reduction <add>, %455, %cst_148 [2] : vector<2x8x8xf32> to vector<2x8xf32>
    %cst_149 = arith.constant 0.353553385 : f32
    %457 = vector.broadcast %cst_149 : f32 to vector<2x8xf32>
    %458 = arith.mulf %456, %457 : vector<2x8xf32>
    %cst_150 = arith.constant dense<0xFF800000> : vector<2xf32>
    %459 = vector.multi_reduction <maximumf>, %458, %cst_150 [1] : vector<2x8xf32> to vector<2xf32>
    %460 = vector.shape_cast %459 : vector<2xf32> to vector<2x1xf32>
    %461 = vector.broadcast %460 : vector<2x1xf32> to vector<2x8xf32>
    %462 = arith.subf %458, %461 : vector<2x8xf32>
    %463 = math.exp %462 : vector<2x8xf32>
    %cst_151 = arith.constant dense<0.000000e+00> : vector<2xf32>
    %464 = vector.multi_reduction <add>, %463, %cst_151 [1] : vector<2x8xf32> to vector<2xf32>
    %465 = vector.shape_cast %464 : vector<2xf32> to vector<2x1xf32>
    %466 = vector.broadcast %465 : vector<2x1xf32> to vector<2x8xf32>
    %467 = arith.divf %463, %466 : vector<2x8xf32>
    %468 = vector.shape_cast %467 : vector<2x8xf32> to vector<2x8x1xf32>
    %469 = vector.extract_strided_slice %377 {offsets = [3, 0], sizes = [1, 32], strides = [1, 1]} : vector<4x32xf32> to vector<1x32xf32>
    %470 = vector.shape_cast %469 : vector<1x32xf32> to vector<1x1x32xf32>
    %471 = vector.broadcast %468 : vector<2x8x1xf32> to vector<2x8x32xf32>
    %472 = vector.broadcast %470 : vector<1x1x32xf32> to vector<2x8x32xf32>
    %473 = arith.mulf %471, %472 : vector<2x8x32xf32>
    %474 = arith.addf %450, %473 : vector<2x8x32xf32>
    %c0_152 = arith.constant 0 : index
    %c0_153 = arith.constant 0 : index
    %475 = vector.load %arg24[%c0_152, %c0_153] : memref<8x32xf32, #tpu.memory_space<vmem>>, vector<8x32xf32>
    %c0_154 = arith.constant 0 : index
    %c0_155 = arith.constant 0 : index
    %476 = vector.load %arg25[%c0_154, %c0_155] : memref<1x32xf32, #tpu.memory_space<vmem>>, vector<1x32xf32>
    %cst_156 = arith.constant 0.000000e+00 : f32
    %477 = vector.broadcast %cst_156 : f32 to vector<2x8xf32>
    %cst_157 = arith.constant 0.000000e+00 : f32
    %478 = vector.broadcast %cst_157 : f32 to vector<2x8xf32>
    %479 = vector.extract_strided_slice %474 {offsets = [0, 0, 0], sizes = [2, 1, 32], strides = [1, 1, 1]} : vector<2x8x32xf32> to vector<2x1x32xf32>
    %480 = vector.shape_cast %479 : vector<2x1x32xf32> to vector<2x32xf32>
    %cst_158 = arith.constant dense<0.000000e+00> : vector<2x32xf32>
    %481 = tpu.matmul %477, %475, %cst_158 {dimension_numbers = #tpu.dot_dimension_numbers<[1], [0], [0], [1], [0, 0, 1, 1], [], []>} : vector<2x8xf32>, vector<8x32xf32>, vector<2x32xf32> -> vector<2x32xf32>
    %482 = arith.addf %480, %481 : vector<2x32xf32>
    %483 = vector.broadcast %476 : vector<1x32xf32> to vector<2x32xf32>
    %484 = arith.addf %482, %483 : vector<2x32xf32>
    %485 = vector.extract_strided_slice %484 {offsets = [0, 0], sizes = [2, 8], strides = [1, 1]} : vector<2x32xf32> to vector<2x8xf32>
    %486 = arith.negf %485 : vector<2x8xf32>
    %487 = math.exp %486 : vector<2x8xf32>
    %cst_159 = arith.constant 1.000000e+00 : f32
    %488 = vector.broadcast %cst_159 : f32 to vector<2x8xf32>
    %489 = arith.addf %488, %487 : vector<2x8xf32>
    %490 = arith.divf %488, %489 : vector<2x8xf32>
    %491 = vector.extract_strided_slice %484 {offsets = [0, 8], sizes = [2, 8], strides = [1, 1]} : vector<2x32xf32> to vector<2x8xf32>
    %492 = arith.negf %491 : vector<2x8xf32>
    %493 = math.exp %492 : vector<2x8xf32>
    %cst_160 = arith.constant 1.000000e+00 : f32
    %494 = vector.broadcast %cst_160 : f32 to vector<2x8xf32>
    %495 = arith.addf %494, %493 : vector<2x8xf32>
    %496 = arith.divf %494, %495 : vector<2x8xf32>
    %497 = vector.extract_strided_slice %484 {offsets = [0, 16], sizes = [2, 8], strides = [1, 1]} : vector<2x32xf32> to vector<2x8xf32>
    %498 = math.tanh %497 : vector<2x8xf32>
    %499 = vector.extract_strided_slice %484 {offsets = [0, 24], sizes = [2, 8], strides = [1, 1]} : vector<2x32xf32> to vector<2x8xf32>
    %500 = arith.negf %499 : vector<2x8xf32>
    %501 = math.exp %500 : vector<2x8xf32>
    %cst_161 = arith.constant 1.000000e+00 : f32
    %502 = vector.broadcast %cst_161 : f32 to vector<2x8xf32>
    %503 = arith.addf %502, %501 : vector<2x8xf32>
    %504 = arith.divf %502, %503 : vector<2x8xf32>
    %505 = arith.mulf %496, %478 : vector<2x8xf32>
    %506 = arith.mulf %490, %498 : vector<2x8xf32>
    %507 = arith.addf %505, %506 : vector<2x8xf32>
    %508 = math.tanh %507 : vector<2x8xf32>
    %509 = arith.mulf %504, %508 : vector<2x8xf32>
    %510 = vector.extract_strided_slice %474 {offsets = [0, 1, 0], sizes = [2, 1, 32], strides = [1, 1, 1]} : vector<2x8x32xf32> to vector<2x1x32xf32>
    %511 = vector.shape_cast %510 : vector<2x1x32xf32> to vector<2x32xf32>
    %cst_162 = arith.constant dense<0.000000e+00> : vector<2x32xf32>
    %512 = tpu.matmul %509, %475, %cst_162 {dimension_numbers = #tpu.dot_dimension_numbers<[1], [0], [0], [1], [0, 0, 1, 1], [], []>} : vector<2x8xf32>, vector<8x32xf32>, vector<2x32xf32> -> vector<2x32xf32>
    %513 = arith.addf %511, %512 : vector<2x32xf32>
    %514 = vector.broadcast %476 : vector<1x32xf32> to vector<2x32xf32>
    %515 = arith.addf %513, %514 : vector<2x32xf32>
    %516 = vector.extract_strided_slice %515 {offsets = [0, 0], sizes = [2, 8], strides = [1, 1]} : vector<2x32xf32> to vector<2x8xf32>
    %517 = arith.negf %516 : vector<2x8xf32>
    %518 = math.exp %517 : vector<2x8xf32>
    %cst_163 = arith.constant 1.000000e+00 : f32
    %519 = vector.broadcast %cst_163 : f32 to vector<2x8xf32>
    %520 = arith.addf %519, %518 : vector<2x8xf32>
    %521 = arith.divf %519, %520 : vector<2x8xf32>
    %522 = vector.extract_strided_slice %515 {offsets = [0, 8], sizes = [2, 8], strides = [1, 1]} : vector<2x32xf32> to vector<2x8xf32>
    %523 = arith.negf %522 : vector<2x8xf32>
    %524 = math.exp %523 : vector<2x8xf32>
    %cst_164 = arith.constant 1.000000e+00 : f32
    %525 = vector.broadcast %cst_164 : f32 to vector<2x8xf32>
    %526 = arith.addf %525, %524 : vector<2x8xf32>
    %527 = arith.divf %525, %526 : vector<2x8xf32>
    %528 = vector.extract_strided_slice %515 {offsets = [0, 16], sizes = [2, 8], strides = [1, 1]} : vector<2x32xf32> to vector<2x8xf32>
    %529 = math.tanh %528 : vector<2x8xf32>
    %530 = vector.extract_strided_slice %515 {offsets = [0, 24], sizes = [2, 8], strides = [1, 1]} : vector<2x32xf32> to vector<2x8xf32>
    %531 = arith.negf %530 : vector<2x8xf32>
    %532 = math.exp %531 : vector<2x8xf32>
    %cst_165 = arith.constant 1.000000e+00 : f32
    %533 = vector.broadcast %cst_165 : f32 to vector<2x8xf32>
    %534 = arith.addf %533, %532 : vector<2x8xf32>
    %535 = arith.divf %533, %534 : vector<2x8xf32>
    %536 = arith.mulf %527, %507 : vector<2x8xf32>
    %537 = arith.mulf %521, %529 : vector<2x8xf32>
    %538 = arith.addf %536, %537 : vector<2x8xf32>
    %539 = math.tanh %538 : vector<2x8xf32>
    %540 = arith.mulf %535, %539 : vector<2x8xf32>
    %541 = vector.extract_strided_slice %474 {offsets = [0, 2, 0], sizes = [2, 1, 32], strides = [1, 1, 1]} : vector<2x8x32xf32> to vector<2x1x32xf32>
    %542 = vector.shape_cast %541 : vector<2x1x32xf32> to vector<2x32xf32>
    %cst_166 = arith.constant dense<0.000000e+00> : vector<2x32xf32>
    %543 = tpu.matmul %540, %475, %cst_166 {dimension_numbers = #tpu.dot_dimension_numbers<[1], [0], [0], [1], [0, 0, 1, 1], [], []>} : vector<2x8xf32>, vector<8x32xf32>, vector<2x32xf32> -> vector<2x32xf32>
    %544 = arith.addf %542, %543 : vector<2x32xf32>
    %545 = vector.broadcast %476 : vector<1x32xf32> to vector<2x32xf32>
    %546 = arith.addf %544, %545 : vector<2x32xf32>
    %547 = vector.extract_strided_slice %546 {offsets = [0, 0], sizes = [2, 8], strides = [1, 1]} : vector<2x32xf32> to vector<2x8xf32>
    %548 = arith.negf %547 : vector<2x8xf32>
    %549 = math.exp %548 : vector<2x8xf32>
    %cst_167 = arith.constant 1.000000e+00 : f32
    %550 = vector.broadcast %cst_167 : f32 to vector<2x8xf32>
    %551 = arith.addf %550, %549 : vector<2x8xf32>
    %552 = arith.divf %550, %551 : vector<2x8xf32>
    %553 = vector.extract_strided_slice %546 {offsets = [0, 8], sizes = [2, 8], strides = [1, 1]} : vector<2x32xf32> to vector<2x8xf32>
    %554 = arith.negf %553 : vector<2x8xf32>
    %555 = math.exp %554 : vector<2x8xf32>
    %cst_168 = arith.constant 1.000000e+00 : f32
    %556 = vector.broadcast %cst_168 : f32 to vector<2x8xf32>
    %557 = arith.addf %556, %555 : vector<2x8xf32>
    %558 = arith.divf %556, %557 : vector<2x8xf32>
    %559 = vector.extract_strided_slice %546 {offsets = [0, 16], sizes = [2, 8], strides = [1, 1]} : vector<2x32xf32> to vector<2x8xf32>
    %560 = math.tanh %559 : vector<2x8xf32>
    %561 = vector.extract_strided_slice %546 {offsets = [0, 24], sizes = [2, 8], strides = [1, 1]} : vector<2x32xf32> to vector<2x8xf32>
    %562 = arith.negf %561 : vector<2x8xf32>
    %563 = math.exp %562 : vector<2x8xf32>
    %cst_169 = arith.constant 1.000000e+00 : f32
    %564 = vector.broadcast %cst_169 : f32 to vector<2x8xf32>
    %565 = arith.addf %564, %563 : vector<2x8xf32>
    %566 = arith.divf %564, %565 : vector<2x8xf32>
    %567 = arith.mulf %558, %538 : vector<2x8xf32>
    %568 = arith.mulf %552, %560 : vector<2x8xf32>
    %569 = arith.addf %567, %568 : vector<2x8xf32>
    %570 = math.tanh %569 : vector<2x8xf32>
    %571 = arith.mulf %566, %570 : vector<2x8xf32>
    %572 = vector.extract_strided_slice %474 {offsets = [0, 3, 0], sizes = [2, 1, 32], strides = [1, 1, 1]} : vector<2x8x32xf32> to vector<2x1x32xf32>
    %573 = vector.shape_cast %572 : vector<2x1x32xf32> to vector<2x32xf32>
    %cst_170 = arith.constant dense<0.000000e+00> : vector<2x32xf32>
    %574 = tpu.matmul %571, %475, %cst_170 {dimension_numbers = #tpu.dot_dimension_numbers<[1], [0], [0], [1], [0, 0, 1, 1], [], []>} : vector<2x8xf32>, vector<8x32xf32>, vector<2x32xf32> -> vector<2x32xf32>
    %575 = arith.addf %573, %574 : vector<2x32xf32>
    %576 = vector.broadcast %476 : vector<1x32xf32> to vector<2x32xf32>
    %577 = arith.addf %575, %576 : vector<2x32xf32>
    %578 = vector.extract_strided_slice %577 {offsets = [0, 0], sizes = [2, 8], strides = [1, 1]} : vector<2x32xf32> to vector<2x8xf32>
    %579 = arith.negf %578 : vector<2x8xf32>
    %580 = math.exp %579 : vector<2x8xf32>
    %cst_171 = arith.constant 1.000000e+00 : f32
    %581 = vector.broadcast %cst_171 : f32 to vector<2x8xf32>
    %582 = arith.addf %581, %580 : vector<2x8xf32>
    %583 = arith.divf %581, %582 : vector<2x8xf32>
    %584 = vector.extract_strided_slice %577 {offsets = [0, 8], sizes = [2, 8], strides = [1, 1]} : vector<2x32xf32> to vector<2x8xf32>
    %585 = arith.negf %584 : vector<2x8xf32>
    %586 = math.exp %585 : vector<2x8xf32>
    %cst_172 = arith.constant 1.000000e+00 : f32
    %587 = vector.broadcast %cst_172 : f32 to vector<2x8xf32>
    %588 = arith.addf %587, %586 : vector<2x8xf32>
    %589 = arith.divf %587, %588 : vector<2x8xf32>
    %590 = vector.extract_strided_slice %577 {offsets = [0, 16], sizes = [2, 8], strides = [1, 1]} : vector<2x32xf32> to vector<2x8xf32>
    %591 = math.tanh %590 : vector<2x8xf32>
    %592 = vector.extract_strided_slice %577 {offsets = [0, 24], sizes = [2, 8], strides = [1, 1]} : vector<2x32xf32> to vector<2x8xf32>
    %593 = arith.negf %592 : vector<2x8xf32>
    %594 = math.exp %593 : vector<2x8xf32>
    %cst_173 = arith.constant 1.000000e+00 : f32
    %595 = vector.broadcast %cst_173 : f32 to vector<2x8xf32>
    %596 = arith.addf %595, %594 : vector<2x8xf32>
    %597 = arith.divf %595, %596 : vector<2x8xf32>
    %598 = arith.mulf %589, %569 : vector<2x8xf32>
    %599 = arith.mulf %583, %591 : vector<2x8xf32>
    %600 = arith.addf %598, %599 : vector<2x8xf32>
    %601 = math.tanh %600 : vector<2x8xf32>
    %602 = arith.mulf %597, %601 : vector<2x8xf32>
    %603 = vector.extract_strided_slice %474 {offsets = [0, 4, 0], sizes = [2, 1, 32], strides = [1, 1, 1]} : vector<2x8x32xf32> to vector<2x1x32xf32>
    %604 = vector.shape_cast %603 : vector<2x1x32xf32> to vector<2x32xf32>
    %cst_174 = arith.constant dense<0.000000e+00> : vector<2x32xf32>
    %605 = tpu.matmul %602, %475, %cst_174 {dimension_numbers = #tpu.dot_dimension_numbers<[1], [0], [0], [1], [0, 0, 1, 1], [], []>} : vector<2x8xf32>, vector<8x32xf32>, vector<2x32xf32> -> vector<2x32xf32>
    %606 = arith.addf %604, %605 : vector<2x32xf32>
    %607 = vector.broadcast %476 : vector<1x32xf32> to vector<2x32xf32>
    %608 = arith.addf %606, %607 : vector<2x32xf32>
    %609 = vector.extract_strided_slice %608 {offsets = [0, 0], sizes = [2, 8], strides = [1, 1]} : vector<2x32xf32> to vector<2x8xf32>
    %610 = arith.negf %609 : vector<2x8xf32>
    %611 = math.exp %610 : vector<2x8xf32>
    %cst_175 = arith.constant 1.000000e+00 : f32
    %612 = vector.broadcast %cst_175 : f32 to vector<2x8xf32>
    %613 = arith.addf %612, %611 : vector<2x8xf32>
    %614 = arith.divf %612, %613 : vector<2x8xf32>
    %615 = vector.extract_strided_slice %608 {offsets = [0, 8], sizes = [2, 8], strides = [1, 1]} : vector<2x32xf32> to vector<2x8xf32>
    %616 = arith.negf %615 : vector<2x8xf32>
    %617 = math.exp %616 : vector<2x8xf32>
    %cst_176 = arith.constant 1.000000e+00 : f32
    %618 = vector.broadcast %cst_176 : f32 to vector<2x8xf32>
    %619 = arith.addf %618, %617 : vector<2x8xf32>
    %620 = arith.divf %618, %619 : vector<2x8xf32>
    %621 = vector.extract_strided_slice %608 {offsets = [0, 16], sizes = [2, 8], strides = [1, 1]} : vector<2x32xf32> to vector<2x8xf32>
    %622 = math.tanh %621 : vector<2x8xf32>
    %623 = vector.extract_strided_slice %608 {offsets = [0, 24], sizes = [2, 8], strides = [1, 1]} : vector<2x32xf32> to vector<2x8xf32>
    %624 = arith.negf %623 : vector<2x8xf32>
    %625 = math.exp %624 : vector<2x8xf32>
    %cst_177 = arith.constant 1.000000e+00 : f32
    %626 = vector.broadcast %cst_177 : f32 to vector<2x8xf32>
    %627 = arith.addf %626, %625 : vector<2x8xf32>
    %628 = arith.divf %626, %627 : vector<2x8xf32>
    %629 = arith.mulf %620, %600 : vector<2x8xf32>
    %630 = arith.mulf %614, %622 : vector<2x8xf32>
    %631 = arith.addf %629, %630 : vector<2x8xf32>
    %632 = math.tanh %631 : vector<2x8xf32>
    %633 = arith.mulf %628, %632 : vector<2x8xf32>
    %634 = vector.extract_strided_slice %474 {offsets = [0, 5, 0], sizes = [2, 1, 32], strides = [1, 1, 1]} : vector<2x8x32xf32> to vector<2x1x32xf32>
    %635 = vector.shape_cast %634 : vector<2x1x32xf32> to vector<2x32xf32>
    %cst_178 = arith.constant dense<0.000000e+00> : vector<2x32xf32>
    %636 = tpu.matmul %633, %475, %cst_178 {dimension_numbers = #tpu.dot_dimension_numbers<[1], [0], [0], [1], [0, 0, 1, 1], [], []>} : vector<2x8xf32>, vector<8x32xf32>, vector<2x32xf32> -> vector<2x32xf32>
    %637 = arith.addf %635, %636 : vector<2x32xf32>
    %638 = vector.broadcast %476 : vector<1x32xf32> to vector<2x32xf32>
    %639 = arith.addf %637, %638 : vector<2x32xf32>
    %640 = vector.extract_strided_slice %639 {offsets = [0, 0], sizes = [2, 8], strides = [1, 1]} : vector<2x32xf32> to vector<2x8xf32>
    %641 = arith.negf %640 : vector<2x8xf32>
    %642 = math.exp %641 : vector<2x8xf32>
    %cst_179 = arith.constant 1.000000e+00 : f32
    %643 = vector.broadcast %cst_179 : f32 to vector<2x8xf32>
    %644 = arith.addf %643, %642 : vector<2x8xf32>
    %645 = arith.divf %643, %644 : vector<2x8xf32>
    %646 = vector.extract_strided_slice %639 {offsets = [0, 8], sizes = [2, 8], strides = [1, 1]} : vector<2x32xf32> to vector<2x8xf32>
    %647 = arith.negf %646 : vector<2x8xf32>
    %648 = math.exp %647 : vector<2x8xf32>
    %cst_180 = arith.constant 1.000000e+00 : f32
    %649 = vector.broadcast %cst_180 : f32 to vector<2x8xf32>
    %650 = arith.addf %649, %648 : vector<2x8xf32>
    %651 = arith.divf %649, %650 : vector<2x8xf32>
    %652 = vector.extract_strided_slice %639 {offsets = [0, 16], sizes = [2, 8], strides = [1, 1]} : vector<2x32xf32> to vector<2x8xf32>
    %653 = math.tanh %652 : vector<2x8xf32>
    %654 = vector.extract_strided_slice %639 {offsets = [0, 24], sizes = [2, 8], strides = [1, 1]} : vector<2x32xf32> to vector<2x8xf32>
    %655 = arith.negf %654 : vector<2x8xf32>
    %656 = math.exp %655 : vector<2x8xf32>
    %cst_181 = arith.constant 1.000000e+00 : f32
    %657 = vector.broadcast %cst_181 : f32 to vector<2x8xf32>
    %658 = arith.addf %657, %656 : vector<2x8xf32>
    %659 = arith.divf %657, %658 : vector<2x8xf32>
    %660 = arith.mulf %651, %631 : vector<2x8xf32>
    %661 = arith.mulf %645, %653 : vector<2x8xf32>
    %662 = arith.addf %660, %661 : vector<2x8xf32>
    %663 = math.tanh %662 : vector<2x8xf32>
    %664 = arith.mulf %659, %663 : vector<2x8xf32>
    %665 = vector.extract_strided_slice %474 {offsets = [0, 6, 0], sizes = [2, 1, 32], strides = [1, 1, 1]} : vector<2x8x32xf32> to vector<2x1x32xf32>
    %666 = vector.shape_cast %665 : vector<2x1x32xf32> to vector<2x32xf32>
    %cst_182 = arith.constant dense<0.000000e+00> : vector<2x32xf32>
    %667 = tpu.matmul %664, %475, %cst_182 {dimension_numbers = #tpu.dot_dimension_numbers<[1], [0], [0], [1], [0, 0, 1, 1], [], []>} : vector<2x8xf32>, vector<8x32xf32>, vector<2x32xf32> -> vector<2x32xf32>
    %668 = arith.addf %666, %667 : vector<2x32xf32>
    %669 = vector.broadcast %476 : vector<1x32xf32> to vector<2x32xf32>
    %670 = arith.addf %668, %669 : vector<2x32xf32>
    %671 = vector.extract_strided_slice %670 {offsets = [0, 0], sizes = [2, 8], strides = [1, 1]} : vector<2x32xf32> to vector<2x8xf32>
    %672 = arith.negf %671 : vector<2x8xf32>
    %673 = math.exp %672 : vector<2x8xf32>
    %cst_183 = arith.constant 1.000000e+00 : f32
    %674 = vector.broadcast %cst_183 : f32 to vector<2x8xf32>
    %675 = arith.addf %674, %673 : vector<2x8xf32>
    %676 = arith.divf %674, %675 : vector<2x8xf32>
    %677 = vector.extract_strided_slice %670 {offsets = [0, 8], sizes = [2, 8], strides = [1, 1]} : vector<2x32xf32> to vector<2x8xf32>
    %678 = arith.negf %677 : vector<2x8xf32>
    %679 = math.exp %678 : vector<2x8xf32>
    %cst_184 = arith.constant 1.000000e+00 : f32
    %680 = vector.broadcast %cst_184 : f32 to vector<2x8xf32>
    %681 = arith.addf %680, %679 : vector<2x8xf32>
    %682 = arith.divf %680, %681 : vector<2x8xf32>
    %683 = vector.extract_strided_slice %670 {offsets = [0, 16], sizes = [2, 8], strides = [1, 1]} : vector<2x32xf32> to vector<2x8xf32>
    %684 = math.tanh %683 : vector<2x8xf32>
    %685 = vector.extract_strided_slice %670 {offsets = [0, 24], sizes = [2, 8], strides = [1, 1]} : vector<2x32xf32> to vector<2x8xf32>
    %686 = arith.negf %685 : vector<2x8xf32>
    %687 = math.exp %686 : vector<2x8xf32>
    %cst_185 = arith.constant 1.000000e+00 : f32
    %688 = vector.broadcast %cst_185 : f32 to vector<2x8xf32>
    %689 = arith.addf %688, %687 : vector<2x8xf32>
    %690 = arith.divf %688, %689 : vector<2x8xf32>
    %691 = arith.mulf %682, %662 : vector<2x8xf32>
    %692 = arith.mulf %676, %684 : vector<2x8xf32>
    %693 = arith.addf %691, %692 : vector<2x8xf32>
    %694 = math.tanh %693 : vector<2x8xf32>
    %695 = arith.mulf %690, %694 : vector<2x8xf32>
    %696 = vector.extract_strided_slice %474 {offsets = [0, 7, 0], sizes = [2, 1, 32], strides = [1, 1, 1]} : vector<2x8x32xf32> to vector<2x1x32xf32>
    %697 = vector.shape_cast %696 : vector<2x1x32xf32> to vector<2x32xf32>
    %cst_186 = arith.constant dense<0.000000e+00> : vector<2x32xf32>
    %698 = tpu.matmul %695, %475, %cst_186 {dimension_numbers = #tpu.dot_dimension_numbers<[1], [0], [0], [1], [0, 0, 1, 1], [], []>} : vector<2x8xf32>, vector<8x32xf32>, vector<2x32xf32> -> vector<2x32xf32>
    %699 = arith.addf %697, %698 : vector<2x32xf32>
    %700 = vector.broadcast %476 : vector<1x32xf32> to vector<2x32xf32>
    %701 = arith.addf %699, %700 : vector<2x32xf32>
    %702 = vector.extract_strided_slice %701 {offsets = [0, 0], sizes = [2, 8], strides = [1, 1]} : vector<2x32xf32> to vector<2x8xf32>
    %703 = arith.negf %702 : vector<2x8xf32>
    %704 = math.exp %703 : vector<2x8xf32>
    %cst_187 = arith.constant 1.000000e+00 : f32
    %705 = vector.broadcast %cst_187 : f32 to vector<2x8xf32>
    %706 = arith.addf %705, %704 : vector<2x8xf32>
    %707 = arith.divf %705, %706 : vector<2x8xf32>
    %708 = vector.extract_strided_slice %701 {offsets = [0, 8], sizes = [2, 8], strides = [1, 1]} : vector<2x32xf32> to vector<2x8xf32>
    %709 = arith.negf %708 : vector<2x8xf32>
    %710 = math.exp %709 : vector<2x8xf32>
    %cst_188 = arith.constant 1.000000e+00 : f32
    %711 = vector.broadcast %cst_188 : f32 to vector<2x8xf32>
    %712 = arith.addf %711, %710 : vector<2x8xf32>
    %713 = arith.divf %711, %712 : vector<2x8xf32>
    %714 = vector.extract_strided_slice %701 {offsets = [0, 16], sizes = [2, 8], strides = [1, 1]} : vector<2x32xf32> to vector<2x8xf32>
    %715 = math.tanh %714 : vector<2x8xf32>
    %716 = arith.mulf %713, %693 : vector<2x8xf32>
    %717 = arith.mulf %707, %715 : vector<2x8xf32>
    %718 = arith.addf %716, %717 : vector<2x8xf32>
    %cst_189 = arith.constant 0.000000e+00 : f32
    %719 = vector.broadcast %cst_189 : f32 to vector<2x8xf32>
    %720 = arith.maximumf %718, %719 : vector<2x8xf32>
    %721 = vector.shape_cast %720 : vector<2x8xf32> to vector<2x8x1xf32>
    %722 = vector.broadcast %721 : vector<2x8x1xf32> to vector<2x8x16xf32>
    %723 = arith.mulf %722, %20 : vector<2x8x16xf32>
    %cst_190 = arith.constant dense<0.000000e+00> : vector<2x16xf32>
    %724 = vector.multi_reduction <add>, %723, %cst_190 [1] : vector<2x8x16xf32> to vector<2x16xf32>
    %c0_191 = arith.constant 0 : index
    %c0_192 = arith.constant 0 : index
    %725 = vector.load %arg27[%c0_191, %c0_192] : memref<2x16xf32, #tpu.memory_space<vmem>>, vector<2x16xf32>
    tpu.vector_store %arg27[%c0_191, %c0_192], %724 {strides = array<i32>} : memref<2x16xf32, #tpu.memory_space<vmem>>, vector<2x16xf32>,
    return
  }
}

module attributes {stable_mosaic.version = 11 : i64} {
  func.func @_final_head_kernel(%arg0: memref<2x8x32xf32, #tpu.memory_space<vmem>>, %arg1: memref<2x8xf32, #tpu.memory_space<vmem>>, %arg2: memref<2x16xf32, #tpu.memory_space<vmem>>, %arg3: memref<2x16xf32, #tpu.memory_space<vmem>>, %arg4: memref<32x16xf32, #tpu.memory_space<vmem>>, %arg5: memref<1x16xf32, #tpu.memory_space<vmem>>, %arg6: memref<16x16xf32, #tpu.memory_space<vmem>>, %arg7: memref<1x16xf32, #tpu.memory_space<vmem>>, %arg8: memref<48x32xf32, #tpu.memory_space<vmem>>, %arg9: memref<1x32xf32, #tpu.memory_space<vmem>>, %arg10: memref<32x96xf32, #tpu.memory_space<vmem>>, %arg11: memref<1x96xf32, #tpu.memory_space<vmem>>, %arg12: memref<32x32xf32, #tpu.memory_space<vmem>>, %arg13: memref<1x32xf32, #tpu.memory_space<vmem>>, %arg14: memref<32x7xf32, #tpu.memory_space<vmem>>, %arg15: memref<1x7xf32, #tpu.memory_space<vmem>>, %arg16: memref<2x3xf32, #tpu.memory_space<vmem>>, %arg17: memref<2x4xf32, #tpu.memory_space<vmem>>) attributes {dimension_semantics = [], scalar_prefetch = 0 : i64, scratch_operands = 0 : i64, tpu.core_type = #tpu.core_type<tc>} {
    %c0 = arith.constant 0 : index
    %c0_0 = arith.constant 0 : index
    %c0_1 = arith.constant 0 : index
    %0 = vector.load %arg0[%c0, %c0_0, %c0_1] : memref<2x8x32xf32, #tpu.memory_space<vmem>>, vector<2x8x32xf32>
    %1 = vector.shape_cast %0 : vector<2x8x32xf32> to vector<16x32xf32>
    %c0_2 = arith.constant 0 : index
    %c0_3 = arith.constant 0 : index
    %2 = vector.load %arg1[%c0_2, %c0_3] : memref<2x8xf32, #tpu.memory_space<vmem>>, vector<2x8xf32>
    %c0_4 = arith.constant 0 : index
    %c0_5 = arith.constant 0 : index
    %3 = vector.load %arg4[%c0_4, %c0_5] : memref<32x16xf32, #tpu.memory_space<vmem>>, vector<32x16xf32>
    %cst = arith.constant dense<0.000000e+00> : vector<16x16xf32>
    %4 = tpu.matmul %1, %3, %cst {dimension_numbers = #tpu.dot_dimension_numbers<[1], [0], [0], [1], [0, 0, 1, 1], [], []>} : vector<16x32xf32>, vector<32x16xf32>, vector<16x16xf32> -> vector<16x16xf32>
    %c0_6 = arith.constant 0 : index
    %c0_7 = arith.constant 0 : index
    %5 = vector.load %arg5[%c0_6, %c0_7] : memref<1x16xf32, #tpu.memory_space<vmem>>, vector<1x16xf32>
    %6 = vector.broadcast %5 : vector<1x16xf32> to vector<16x16xf32>
    %7 = arith.addf %4, %6 : vector<16x16xf32>
    %8 = vector.shape_cast %7 : vector<16x16xf32> to vector<2x8x16xf32>
    %c0_8 = arith.constant 0 : index
    %c0_9 = arith.constant 0 : index
    %9 = vector.load %arg2[%c0_8, %c0_9] : memref<2x16xf32, #tpu.memory_space<vmem>>, vector<2x16xf32>
    %c0_10 = arith.constant 0 : index
    %c0_11 = arith.constant 0 : index
    %10 = vector.load %arg6[%c0_10, %c0_11] : memref<16x16xf32, #tpu.memory_space<vmem>>, vector<16x16xf32>
    %cst_12 = arith.constant dense<0.000000e+00> : vector<2x16xf32>
    %11 = tpu.matmul %9, %10, %cst_12 {dimension_numbers = #tpu.dot_dimension_numbers<[1], [0], [0], [1], [0, 0, 1, 1], [], []>} : vector<2x16xf32>, vector<16x16xf32>, vector<2x16xf32> -> vector<2x16xf32>
    %c0_13 = arith.constant 0 : index
    %c0_14 = arith.constant 0 : index
    %12 = vector.load %arg7[%c0_13, %c0_14] : memref<1x16xf32, #tpu.memory_space<vmem>>, vector<1x16xf32>
    %13 = vector.broadcast %12 : vector<1x16xf32> to vector<2x16xf32>
    %14 = arith.addf %11, %13 : vector<2x16xf32>
    %15 = vector.shape_cast %14 : vector<2x16xf32> to vector<2x1x16xf32>
    %16 = vector.broadcast %15 : vector<2x1x16xf32> to vector<2x8x16xf32>
    %17 = arith.mulf %8, %16 : vector<2x8x16xf32>
    %cst_15 = arith.constant dense<0.000000e+00> : vector<2x8xf32>
    %18 = vector.multi_reduction <add>, %17, %cst_15 [2] : vector<2x8x16xf32> to vector<2x8xf32>
    %19 = vector.shape_cast %18 : vector<2x8xf32> to vector<2x8x1xf32>
    %c0_16 = arith.constant 0 : index
    %c0_17 = arith.constant 0 : index
    %20 = vector.load %arg3[%c0_16, %c0_17] : memref<2x16xf32, #tpu.memory_space<vmem>>, vector<2x16xf32>
    %c0_18 = arith.constant 0 : index
    %c0_19 = arith.constant 0 : index
    %21 = vector.load %arg6[%c0_18, %c0_19] : memref<16x16xf32, #tpu.memory_space<vmem>>, vector<16x16xf32>
    %cst_20 = arith.constant dense<0.000000e+00> : vector<2x16xf32>
    %22 = tpu.matmul %20, %21, %cst_20 {dimension_numbers = #tpu.dot_dimension_numbers<[1], [0], [0], [1], [0, 0, 1, 1], [], []>} : vector<2x16xf32>, vector<16x16xf32>, vector<2x16xf32> -> vector<2x16xf32>
    %c0_21 = arith.constant 0 : index
    %c0_22 = arith.constant 0 : index
    %23 = vector.load %arg7[%c0_21, %c0_22] : memref<1x16xf32, #tpu.memory_space<vmem>>, vector<1x16xf32>
    %24 = vector.broadcast %23 : vector<1x16xf32> to vector<2x16xf32>
    %25 = arith.addf %22, %24 : vector<2x16xf32>
    %26 = vector.shape_cast %25 : vector<2x16xf32> to vector<2x1x16xf32>
    %27 = vector.broadcast %26 : vector<2x1x16xf32> to vector<2x8x16xf32>
    %28 = arith.mulf %8, %27 : vector<2x8x16xf32>
    %cst_23 = arith.constant dense<0.000000e+00> : vector<2x8xf32>
    %29 = vector.multi_reduction <add>, %28, %cst_23 [2] : vector<2x8x16xf32> to vector<2x8xf32>
    %30 = vector.shape_cast %29 : vector<2x8xf32> to vector<2x8x1xf32>
    %31 = arith.maximumf %19, %30 : vector<2x8x1xf32>
    %32 = arith.subf %19, %31 : vector<2x8x1xf32>
    %33 = math.exp %32 : vector<2x8x1xf32>
    %34 = arith.subf %30, %31 : vector<2x8x1xf32>
    %35 = math.exp %34 : vector<2x8x1xf32>
    %36 = arith.addf %33, %35 : vector<2x8x1xf32>
    %cst_24 = arith.constant 1.000000e+00 : f32
    %37 = vector.broadcast %cst_24 : f32 to vector<2x8x1xf32>
    %38 = arith.divf %37, %36 : vector<2x8x1xf32>
    %39 = arith.mulf %33, %38 : vector<2x8x1xf32>
    %40 = vector.shape_cast %9 : vector<2x16xf32> to vector<2x1x16xf32>
    %41 = vector.broadcast %39 : vector<2x8x1xf32> to vector<2x8x16xf32>
    %42 = vector.broadcast %40 : vector<2x1x16xf32> to vector<2x8x16xf32>
    %43 = arith.mulf %41, %42 : vector<2x8x16xf32>
    %44 = arith.mulf %35, %38 : vector<2x8x1xf32>
    %45 = vector.shape_cast %20 : vector<2x16xf32> to vector<2x1x16xf32>
    %46 = vector.broadcast %44 : vector<2x8x1xf32> to vector<2x8x16xf32>
    %47 = vector.broadcast %45 : vector<2x1x16xf32> to vector<2x8x16xf32>
    %48 = arith.mulf %46, %47 : vector<2x8x16xf32>
    %49 = arith.addf %43, %48 : vector<2x8x16xf32>
    %50 = vector.shape_cast %2 : vector<2x8xf32> to vector<2x8x1xf32>
    %51 = vector.broadcast %50 : vector<2x8x1xf32> to vector<2x8x16xf32>
    %52 = arith.mulf %49, %51 : vector<2x8x16xf32>
    %c0_25 = arith.constant 0 : index
    %c0_26 = arith.constant 0 : index
    %53 = vector.load %arg8[%c0_25, %c0_26] : memref<48x32xf32, #tpu.memory_space<vmem>>, vector<48x32xf32>
    %54 = vector.extract_strided_slice %53 {offsets = [0, 0], sizes = [32, 32], strides = [1, 1]} : vector<48x32xf32> to vector<32x32xf32>
    %cst_27 = arith.constant dense<0.000000e+00> : vector<16x32xf32>
    %55 = tpu.matmul %1, %54, %cst_27 {dimension_numbers = #tpu.dot_dimension_numbers<[1], [0], [0], [1], [0, 0, 1, 1], [], []>} : vector<16x32xf32>, vector<32x32xf32>, vector<16x32xf32> -> vector<16x32xf32>
    %56 = vector.shape_cast %52 : vector<2x8x16xf32> to vector<16x16xf32>
    %57 = vector.extract_strided_slice %53 {offsets = [32, 0], sizes = [16, 32], strides = [1, 1]} : vector<48x32xf32> to vector<16x32xf32>
    %cst_28 = arith.constant dense<0.000000e+00> : vector<16x32xf32>
    %58 = tpu.matmul %56, %57, %cst_28 {dimension_numbers = #tpu.dot_dimension_numbers<[1], [0], [0], [1], [0, 0, 1, 1], [], []>} : vector<16x16xf32>, vector<16x32xf32>, vector<16x32xf32> -> vector<16x32xf32>
    %59 = arith.addf %55, %58 : vector<16x32xf32>
    %c0_29 = arith.constant 0 : index
    %c0_30 = arith.constant 0 : index
    %60 = vector.load %arg9[%c0_29, %c0_30] : memref<1x32xf32, #tpu.memory_space<vmem>>, vector<1x32xf32>
    %61 = vector.broadcast %60 : vector<1x32xf32> to vector<16x32xf32>
    %62 = arith.addf %59, %61 : vector<16x32xf32>
    %cst_31 = arith.constant 0.000000e+00 : f32
    %63 = vector.broadcast %cst_31 : f32 to vector<16x32xf32>
    %64 = arith.maximumf %62, %63 : vector<16x32xf32>
    %c0_32 = arith.constant 0 : index
    %c0_33 = arith.constant 0 : index
    %65 = vector.load %arg10[%c0_32, %c0_33] : memref<32x96xf32, #tpu.memory_space<vmem>>, vector<32x96xf32>
    %cst_34 = arith.constant dense<0.000000e+00> : vector<16x96xf32>
    %66 = tpu.matmul %64, %65, %cst_34 {dimension_numbers = #tpu.dot_dimension_numbers<[1], [0], [0], [1], [0, 0, 1, 1], [], []>} : vector<16x32xf32>, vector<32x96xf32>, vector<16x96xf32> -> vector<16x96xf32>
    %c0_35 = arith.constant 0 : index
    %c0_36 = arith.constant 0 : index
    %67 = vector.load %arg11[%c0_35, %c0_36] : memref<1x96xf32, #tpu.memory_space<vmem>>, vector<1x96xf32>
    %68 = vector.broadcast %67 : vector<1x96xf32> to vector<16x96xf32>
    %69 = arith.addf %66, %68 : vector<16x96xf32>
    %70 = vector.extract_strided_slice %69 {offsets = [0, 0], sizes = [16, 32], strides = [1, 1]} : vector<16x96xf32> to vector<16x32xf32>
    %71 = vector.shape_cast %70 : vector<16x32xf32> to vector<2x8x32xf32>
    %72 = vector.extract_strided_slice %69 {offsets = [0, 32], sizes = [16, 32], strides = [1, 1]} : vector<16x96xf32> to vector<16x32xf32>
    %73 = vector.shape_cast %72 : vector<16x32xf32> to vector<2x8x32xf32>
    %74 = vector.extract_strided_slice %69 {offsets = [0, 64], sizes = [16, 32], strides = [1, 1]} : vector<16x96xf32> to vector<16x32xf32>
    %75 = vector.shape_cast %74 : vector<16x32xf32> to vector<2x8x32xf32>
    %cst_37 = arith.constant 5.000000e-01 : f32
    %76 = vector.broadcast %cst_37 : f32 to vector<2x8xf32>
    %77 = arith.cmpf ogt, %2, %76 : vector<2x8xf32>
    %cst_38 = arith.constant 0.000000e+00 : f32
    %cst_39 = arith.constant -1.000000e+30 : f32
    %78 = vector.broadcast %cst_38 : f32 to vector<2x8xf32>
    %79 = vector.broadcast %cst_39 : f32 to vector<2x8xf32>
    %80 = arith.select %77, %78, %79 : vector<2x8xi1>, vector<2x8xf32>
    %81 = vector.shape_cast %80 : vector<2x8xf32> to vector<2x1x8xf32>
    %c0_40 = arith.constant 0 : index
    %c0_41 = arith.constant 0 : index
    %82 = vector.load %arg12[%c0_40, %c0_41] : memref<32x32xf32, #tpu.memory_space<vmem>>, vector<32x32xf32>
    %c0_42 = arith.constant 0 : index
    %c0_43 = arith.constant 0 : index
    %83 = vector.load %arg13[%c0_42, %c0_43] : memref<1x32xf32, #tpu.memory_space<vmem>>, vector<1x32xf32>
    %84 = vector.extract_strided_slice %71 {offsets = [0, 0, 0], sizes = [2, 8, 8], strides = [1, 1, 1]} : vector<2x8x32xf32> to vector<2x8x8xf32>
    %85 = vector.extract_strided_slice %73 {offsets = [0, 0, 0], sizes = [2, 8, 8], strides = [1, 1, 1]} : vector<2x8x32xf32> to vector<2x8x8xf32>
    "tpu.trace_start"() <{level = 10 : i32, message = "bqd,bkd->bqk"}> : () -> ()
    %cst_44 = arith.constant dense<0.000000e+00> : vector<2x8x8xf32>
    %86 = tpu.matmul %84, %85, %cst_44 {dimension_numbers = #tpu.dot_dimension_numbers<[2], [2], [1], [1], [0, 0, 0, 1, 1, 1], [0], [0]>} : vector<2x8x8xf32>, vector<2x8x8xf32>, vector<2x8x8xf32> -> vector<2x8x8xf32>
    "tpu.trace_stop"() : () -> ()
    %cst_45 = arith.constant 0.353553385 : f32
    %87 = vector.broadcast %cst_45 : f32 to vector<2x8x8xf32>
    %88 = arith.mulf %86, %87 : vector<2x8x8xf32>
    %89 = vector.broadcast %81 : vector<2x1x8xf32> to vector<2x8x8xf32>
    %90 = arith.addf %88, %89 : vector<2x8x8xf32>
    %cst_46 = arith.constant dense<0xFF800000> : vector<2x8xf32>
    %91 = vector.multi_reduction <maximumf>, %90, %cst_46 [2] : vector<2x8x8xf32> to vector<2x8xf32>
    %92 = vector.shape_cast %91 : vector<2x8xf32> to vector<2x8x1xf32>
    %93 = vector.broadcast %92 : vector<2x8x1xf32> to vector<2x8x8xf32>
    %94 = arith.subf %90, %93 : vector<2x8x8xf32>
    %95 = math.exp %94 : vector<2x8x8xf32>
    %cst_47 = arith.constant dense<0.000000e+00> : vector<2x8xf32>
    %96 = vector.multi_reduction <add>, %95, %cst_47 [2] : vector<2x8x8xf32> to vector<2x8xf32>
    %97 = vector.shape_cast %96 : vector<2x8xf32> to vector<2x8x1xf32>
    %98 = vector.broadcast %97 : vector<2x8x1xf32> to vector<2x8x8xf32>
    %99 = arith.divf %95, %98 : vector<2x8x8xf32>
    %100 = vector.extract_strided_slice %75 {offsets = [0, 0, 0], sizes = [2, 8, 8], strides = [1, 1, 1]} : vector<2x8x32xf32> to vector<2x8x8xf32>
    "tpu.trace_start"() <{level = 10 : i32, message = "bqk,bkd->bqd"}> : () -> ()
    %cst_48 = arith.constant dense<0.000000e+00> : vector<2x8x8xf32>
    %101 = tpu.matmul %99, %100, %cst_48 {dimension_numbers = #tpu.dot_dimension_numbers<[2], [1], [1], [2], [0, 0, 0, 1, 1, 2], [0], [0]>} : vector<2x8x8xf32>, vector<2x8x8xf32>, vector<2x8x8xf32> -> vector<2x8x8xf32>
    "tpu.trace_stop"() : () -> ()
    %102 = vector.shape_cast %101 : vector<2x8x8xf32> to vector<16x8xf32>
    %103 = vector.extract_strided_slice %82 {offsets = [0, 0], sizes = [8, 32], strides = [1, 1]} : vector<32x32xf32> to vector<8x32xf32>
    %cst_49 = arith.constant dense<0.000000e+00> : vector<16x32xf32>
    %104 = tpu.matmul %102, %103, %cst_49 {dimension_numbers = #tpu.dot_dimension_numbers<[1], [0], [0], [1], [0, 0, 1, 1], [], []>} : vector<16x8xf32>, vector<8x32xf32>, vector<16x32xf32> -> vector<16x32xf32>
    %105 = vector.broadcast %83 : vector<1x32xf32> to vector<16x32xf32>
    %106 = arith.addf %105, %104 : vector<16x32xf32>
    %107 = vector.extract_strided_slice %71 {offsets = [0, 0, 8], sizes = [2, 8, 8], strides = [1, 1, 1]} : vector<2x8x32xf32> to vector<2x8x8xf32>
    %108 = vector.extract_strided_slice %73 {offsets = [0, 0, 8], sizes = [2, 8, 8], strides = [1, 1, 1]} : vector<2x8x32xf32> to vector<2x8x8xf32>
    "tpu.trace_start"() <{level = 10 : i32, message = "bqd,bkd->bqk"}> : () -> ()
    %cst_50 = arith.constant dense<0.000000e+00> : vector<2x8x8xf32>
    %109 = tpu.matmul %107, %108, %cst_50 {dimension_numbers = #tpu.dot_dimension_numbers<[2], [2], [1], [1], [0, 0, 0, 1, 1, 1], [0], [0]>} : vector<2x8x8xf32>, vector<2x8x8xf32>, vector<2x8x8xf32> -> vector<2x8x8xf32>
    "tpu.trace_stop"() : () -> ()
    %cst_51 = arith.constant 0.353553385 : f32
    %110 = vector.broadcast %cst_51 : f32 to vector<2x8x8xf32>
    %111 = arith.mulf %109, %110 : vector<2x8x8xf32>
    %112 = vector.broadcast %81 : vector<2x1x8xf32> to vector<2x8x8xf32>
    %113 = arith.addf %111, %112 : vector<2x8x8xf32>
    %cst_52 = arith.constant dense<0xFF800000> : vector<2x8xf32>
    %114 = vector.multi_reduction <maximumf>, %113, %cst_52 [2] : vector<2x8x8xf32> to vector<2x8xf32>
    %115 = vector.shape_cast %114 : vector<2x8xf32> to vector<2x8x1xf32>
    %116 = vector.broadcast %115 : vector<2x8x1xf32> to vector<2x8x8xf32>
    %117 = arith.subf %113, %116 : vector<2x8x8xf32>
    %118 = math.exp %117 : vector<2x8x8xf32>
    %cst_53 = arith.constant dense<0.000000e+00> : vector<2x8xf32>
    %119 = vector.multi_reduction <add>, %118, %cst_53 [2] : vector<2x8x8xf32> to vector<2x8xf32>
    %120 = vector.shape_cast %119 : vector<2x8xf32> to vector<2x8x1xf32>
    %121 = vector.broadcast %120 : vector<2x8x1xf32> to vector<2x8x8xf32>
    %122 = arith.divf %118, %121 : vector<2x8x8xf32>
    %123 = vector.extract_strided_slice %75 {offsets = [0, 0, 8], sizes = [2, 8, 8], strides = [1, 1, 1]} : vector<2x8x32xf32> to vector<2x8x8xf32>
    "tpu.trace_start"() <{level = 10 : i32, message = "bqk,bkd->bqd"}> : () -> ()
    %cst_54 = arith.constant dense<0.000000e+00> : vector<2x8x8xf32>
    %124 = tpu.matmul %122, %123, %cst_54 {dimension_numbers = #tpu.dot_dimension_numbers<[2], [1], [1], [2], [0, 0, 0, 1, 1, 2], [0], [0]>} : vector<2x8x8xf32>, vector<2x8x8xf32>, vector<2x8x8xf32> -> vector<2x8x8xf32>
    "tpu.trace_stop"() : () -> ()
    %125 = vector.shape_cast %124 : vector<2x8x8xf32> to vector<16x8xf32>
    %126 = vector.extract_strided_slice %82 {offsets = [8, 0], sizes = [8, 32], strides = [1, 1]} : vector<32x32xf32> to vector<8x32xf32>
    %cst_55 = arith.constant dense<0.000000e+00> : vector<16x32xf32>
    %127 = tpu.matmul %125, %126, %cst_55 {dimension_numbers = #tpu.dot_dimension_numbers<[1], [0], [0], [1], [0, 0, 1, 1], [], []>} : vector<16x8xf32>, vector<8x32xf32>, vector<16x32xf32> -> vector<16x32xf32>
    %128 = arith.addf %106, %127 : vector<16x32xf32>
    %129 = vector.extract_strided_slice %71 {offsets = [0, 0, 16], sizes = [2, 8, 8], strides = [1, 1, 1]} : vector<2x8x32xf32> to vector<2x8x8xf32>
    %130 = vector.extract_strided_slice %73 {offsets = [0, 0, 16], sizes = [2, 8, 8], strides = [1, 1, 1]} : vector<2x8x32xf32> to vector<2x8x8xf32>
    "tpu.trace_start"() <{level = 10 : i32, message = "bqd,bkd->bqk"}> : () -> ()
    %cst_56 = arith.constant dense<0.000000e+00> : vector<2x8x8xf32>
    %131 = tpu.matmul %129, %130, %cst_56 {dimension_numbers = #tpu.dot_dimension_numbers<[2], [2], [1], [1], [0, 0, 0, 1, 1, 1], [0], [0]>} : vector<2x8x8xf32>, vector<2x8x8xf32>, vector<2x8x8xf32> -> vector<2x8x8xf32>
    "tpu.trace_stop"() : () -> ()
    %cst_57 = arith.constant 0.353553385 : f32
    %132 = vector.broadcast %cst_57 : f32 to vector<2x8x8xf32>
    %133 = arith.mulf %131, %132 : vector<2x8x8xf32>
    %134 = vector.broadcast %81 : vector<2x1x8xf32> to vector<2x8x8xf32>
    %135 = arith.addf %133, %134 : vector<2x8x8xf32>
    %cst_58 = arith.constant dense<0xFF800000> : vector<2x8xf32>
    %136 = vector.multi_reduction <maximumf>, %135, %cst_58 [2] : vector<2x8x8xf32> to vector<2x8xf32>
    %137 = vector.shape_cast %136 : vector<2x8xf32> to vector<2x8x1xf32>
    %138 = vector.broadcast %137 : vector<2x8x1xf32> to vector<2x8x8xf32>
    %139 = arith.subf %135, %138 : vector<2x8x8xf32>
    %140 = math.exp %139 : vector<2x8x8xf32>
    %cst_59 = arith.constant dense<0.000000e+00> : vector<2x8xf32>
    %141 = vector.multi_reduction <add>, %140, %cst_59 [2] : vector<2x8x8xf32> to vector<2x8xf32>
    %142 = vector.shape_cast %141 : vector<2x8xf32> to vector<2x8x1xf32>
    %143 = vector.broadcast %142 : vector<2x8x1xf32> to vector<2x8x8xf32>
    %144 = arith.divf %140, %143 : vector<2x8x8xf32>
    %145 = vector.extract_strided_slice %75 {offsets = [0, 0, 16], sizes = [2, 8, 8], strides = [1, 1, 1]} : vector<2x8x32xf32> to vector<2x8x8xf32>
    "tpu.trace_start"() <{level = 10 : i32, message = "bqk,bkd->bqd"}> : () -> ()
    %cst_60 = arith.constant dense<0.000000e+00> : vector<2x8x8xf32>
    %146 = tpu.matmul %144, %145, %cst_60 {dimension_numbers = #tpu.dot_dimension_numbers<[2], [1], [1], [2], [0, 0, 0, 1, 1, 2], [0], [0]>} : vector<2x8x8xf32>, vector<2x8x8xf32>, vector<2x8x8xf32> -> vector<2x8x8xf32>
    "tpu.trace_stop"() : () -> ()
    %147 = vector.shape_cast %146 : vector<2x8x8xf32> to vector<16x8xf32>
    %148 = vector.extract_strided_slice %82 {offsets = [16, 0], sizes = [8, 32], strides = [1, 1]} : vector<32x32xf32> to vector<8x32xf32>
    %cst_61 = arith.constant dense<0.000000e+00> : vector<16x32xf32>
    %149 = tpu.matmul %147, %148, %cst_61 {dimension_numbers = #tpu.dot_dimension_numbers<[1], [0], [0], [1], [0, 0, 1, 1], [], []>} : vector<16x8xf32>, vector<8x32xf32>, vector<16x32xf32> -> vector<16x32xf32>
    %150 = arith.addf %128, %149 : vector<16x32xf32>
    %151 = vector.extract_strided_slice %71 {offsets = [0, 0, 24], sizes = [2, 8, 8], strides = [1, 1, 1]} : vector<2x8x32xf32> to vector<2x8x8xf32>
    %152 = vector.extract_strided_slice %73 {offsets = [0, 0, 24], sizes = [2, 8, 8], strides = [1, 1, 1]} : vector<2x8x32xf32> to vector<2x8x8xf32>
    "tpu.trace_start"() <{level = 10 : i32, message = "bqd,bkd->bqk"}> : () -> ()
    %cst_62 = arith.constant dense<0.000000e+00> : vector<2x8x8xf32>
    %153 = tpu.matmul %151, %152, %cst_62 {dimension_numbers = #tpu.dot_dimension_numbers<[2], [2], [1], [1], [0, 0, 0, 1, 1, 1], [0], [0]>} : vector<2x8x8xf32>, vector<2x8x8xf32>, vector<2x8x8xf32> -> vector<2x8x8xf32>
    "tpu.trace_stop"() : () -> ()
    %cst_63 = arith.constant 0.353553385 : f32
    %154 = vector.broadcast %cst_63 : f32 to vector<2x8x8xf32>
    %155 = arith.mulf %153, %154 : vector<2x8x8xf32>
    %156 = vector.broadcast %81 : vector<2x1x8xf32> to vector<2x8x8xf32>
    %157 = arith.addf %155, %156 : vector<2x8x8xf32>
    %cst_64 = arith.constant dense<0xFF800000> : vector<2x8xf32>
    %158 = vector.multi_reduction <maximumf>, %157, %cst_64 [2] : vector<2x8x8xf32> to vector<2x8xf32>
    %159 = vector.shape_cast %158 : vector<2x8xf32> to vector<2x8x1xf32>
    %160 = vector.broadcast %159 : vector<2x8x1xf32> to vector<2x8x8xf32>
    %161 = arith.subf %157, %160 : vector<2x8x8xf32>
    %162 = math.exp %161 : vector<2x8x8xf32>
    %cst_65 = arith.constant dense<0.000000e+00> : vector<2x8xf32>
    %163 = vector.multi_reduction <add>, %162, %cst_65 [2] : vector<2x8x8xf32> to vector<2x8xf32>
    %164 = vector.shape_cast %163 : vector<2x8xf32> to vector<2x8x1xf32>
    %165 = vector.broadcast %164 : vector<2x8x1xf32> to vector<2x8x8xf32>
    %166 = arith.divf %162, %165 : vector<2x8x8xf32>
    %167 = vector.extract_strided_slice %75 {offsets = [0, 0, 24], sizes = [2, 8, 8], strides = [1, 1, 1]} : vector<2x8x32xf32> to vector<2x8x8xf32>
    "tpu.trace_start"() <{level = 10 : i32, message = "bqk,bkd->bqd"}> : () -> ()
    %cst_66 = arith.constant dense<0.000000e+00> : vector<2x8x8xf32>
    %168 = tpu.matmul %166, %167, %cst_66 {dimension_numbers = #tpu.dot_dimension_numbers<[2], [1], [1], [2], [0, 0, 0, 1, 1, 2], [0], [0]>} : vector<2x8x8xf32>, vector<2x8x8xf32>, vector<2x8x8xf32> -> vector<2x8x8xf32>
    "tpu.trace_stop"() : () -> ()
    %169 = vector.shape_cast %168 : vector<2x8x8xf32> to vector<16x8xf32>
    %170 = vector.extract_strided_slice %82 {offsets = [24, 0], sizes = [8, 32], strides = [1, 1]} : vector<32x32xf32> to vector<8x32xf32>
    %cst_67 = arith.constant dense<0.000000e+00> : vector<16x32xf32>
    %171 = tpu.matmul %169, %170, %cst_67 {dimension_numbers = #tpu.dot_dimension_numbers<[1], [0], [0], [1], [0, 0, 1, 1], [], []>} : vector<16x8xf32>, vector<8x32xf32>, vector<16x32xf32> -> vector<16x32xf32>
    %172 = arith.addf %150, %171 : vector<16x32xf32>
    %173 = vector.shape_cast %172 : vector<16x32xf32> to vector<2x8x32xf32>
    %cst_68 = arith.constant dense<0xFF800000> : vector<2x32xf32>
    %174 = vector.multi_reduction <maximumf>, %173, %cst_68 [1] : vector<2x8x32xf32> to vector<2x32xf32>
    %c0_69 = arith.constant 0 : index
    %c0_70 = arith.constant 0 : index
    %175 = vector.load %arg14[%c0_69, %c0_70] : memref<32x7xf32, #tpu.memory_space<vmem>>, vector<32x7xf32>
    %cst_71 = arith.constant dense<0.000000e+00> : vector<2x7xf32>
    %176 = tpu.matmul %174, %175, %cst_71 {dimension_numbers = #tpu.dot_dimension_numbers<[1], [0], [0], [1], [0, 0, 1, 1], [], []>} : vector<2x32xf32>, vector<32x7xf32>, vector<2x7xf32> -> vector<2x7xf32>
    %c0_72 = arith.constant 0 : index
    %c0_73 = arith.constant 0 : index
    %177 = vector.load %arg15[%c0_72, %c0_73] : memref<1x7xf32, #tpu.memory_space<vmem>>, vector<1x7xf32>
    %178 = vector.broadcast %177 : vector<1x7xf32> to vector<2x7xf32>
    %179 = arith.addf %176, %178 : vector<2x7xf32>
    %180 = vector.extract_strided_slice %179 {offsets = [0, 0], sizes = [2, 3], strides = [1, 1]} : vector<2x7xf32> to vector<2x3xf32>
    %cst_74 = arith.constant dense<0xFF800000> : vector<2xf32>
    %181 = vector.multi_reduction <maximumf>, %180, %cst_74 [1] : vector<2x3xf32> to vector<2xf32>
    %182 = vector.shape_cast %181 : vector<2xf32> to vector<2x1xf32>
    %183 = vector.broadcast %182 : vector<2x1xf32> to vector<2x3xf32>
    %184 = arith.subf %180, %183 : vector<2x3xf32>
    %185 = math.exp %184 : vector<2x3xf32>
    %cst_75 = arith.constant dense<0.000000e+00> : vector<2xf32>
    %186 = vector.multi_reduction <add>, %185, %cst_75 [1] : vector<2x3xf32> to vector<2xf32>
    %187 = vector.shape_cast %186 : vector<2xf32> to vector<2x1xf32>
    %188 = vector.broadcast %187 : vector<2x1xf32> to vector<2x3xf32>
    %189 = arith.divf %185, %188 : vector<2x3xf32>
    %c0_76 = arith.constant 0 : index
    %c0_77 = arith.constant 0 : index
    %190 = vector.load %arg16[%c0_76, %c0_77] : memref<2x3xf32, #tpu.memory_space<vmem>>, vector<2x3xf32>
    tpu.vector_store %arg16[%c0_76, %c0_77], %189 {strides = array<i32>} : memref<2x3xf32, #tpu.memory_space<vmem>>, vector<2x3xf32>,
    %191 = vector.extract_strided_slice %179 {offsets = [0, 3], sizes = [2, 4], strides = [1, 1]} : vector<2x7xf32> to vector<2x4xf32>
    %cst_78 = arith.constant dense<0xFF800000> : vector<2xf32>
    %192 = vector.multi_reduction <maximumf>, %191, %cst_78 [1] : vector<2x4xf32> to vector<2xf32>
    %193 = vector.shape_cast %192 : vector<2xf32> to vector<2x1xf32>
    %194 = vector.broadcast %193 : vector<2x1xf32> to vector<2x4xf32>
    %195 = arith.subf %191, %194 : vector<2x4xf32>
    %196 = math.exp %195 : vector<2x4xf32>
    %cst_79 = arith.constant dense<0.000000e+00> : vector<2xf32>
    %197 = vector.multi_reduction <add>, %196, %cst_79 [1] : vector<2x4xf32> to vector<2xf32>
    %198 = vector.shape_cast %197 : vector<2xf32> to vector<2x1xf32>
    %199 = vector.broadcast %198 : vector<2x1xf32> to vector<2x4xf32>
    %200 = arith.divf %196, %199 : vector<2x4xf32>
    %c0_80 = arith.constant 0 : index
    %c0_81 = arith.constant 0 : index
    %201 = vector.load %arg17[%c0_80, %c0_81] : memref<2x4xf32, #tpu.memory_space<vmem>>, vector<2x4xf32>
    tpu.vector_store %arg17[%c0_80, %c0_81], %200 {strides = array<i32>} : memref<2x4xf32, #tpu.memory_space<vmem>>, vector<2x4xf32>,
    return
  }
}

</mosaic_0001>

<bundles_post_ra>
// kernel: _lambda_.4
= control target key start
LH: loop header
LB: loop body
LE: loop exit
PB: predicated region body
PF: predicated region fallthrough
CT: control target
= control target key end

     0   :  { %vm24_vm0 = vcmask 261120   ;;  %vm54_vm1 = vcmask 130048   ;;  %s115_s1 = inlined_call_operand.vmem [shape: f32[32,16], index: 1, kind: input, shape index: {}]   ;;  %s116_s2 = inlined_call_operand.vmem [shape: f32[1,16], index: 2, kind: input, shape index: {}]   ;;  %s117_s0 = inlined_call_operand.vmem [shape: f32[16,32], index: 0, kind: input, shape index: {}]   ;;  %s118_s3 = inlined_call_operand.vmem [shape: f32[16,16], index: 3, kind: output, shape index: {}]  }
   0x1   :  { %v19_v0 = vld [vmem:[%s115_s1 + $0x18] sm:$0xff]  ;;  %v18_v1 = vld [vmem:[%s115_s1 + $0x10] sm:$0xff]  ;;  %v17_v2 = vld [vmem:[%s115_s1 + $0x8] sm:$0xff] }
   0x2   :  { %43 = vmatpush.msra.mxu0 %v19_v0  ;;  %63 = vmatpush.msra.mxu1 %v19_v0  ;;  %v16_v3 = vld [vmem:[%s115_s1] sm:$0xff]  ;;  %v15_v5 = vld [vmem:[%s117_s0 + $0x8] sm:$0xff] }
   0x3   :  { %v14_v4 = vld [vmem:[%s117_s0] sm:$0xff] }
   0x4   :  { %44 = vmatpush.msra.mxu0 %v18_v1  ;;  %64 = vmatpush.msra.mxu1 %v18_v1  ;;  %v67_v6 = vld [vmem:[%s116_s2] ss:$0 sm:$0xff] }
   0x6   :  { %45 = vmatpush.msra.mxu0 %v17_v2  ;;  %65 = vmatpush.msra.mxu1 %v17_v2 }
   0x8   :  { %46 = vmatpush.msra.mxu0 %v16_v3  ;;  %66 = vmatpush.msra.mxu1 %v16_v3 }
   0x9   :  { %61 = vmatmul.msk.f32.vlgmr.msra.gmra.mxu0 %vm24_vm0, %v14_v4  ;;  %62 = vmatmul.msk.f32.vlgmr.msra.gmra.mxu1 %vm24_vm0, %v15_v5 }
  0x86   :  { %v48_v7 = vpop.f32.mrf.mxu0  ;;  %v51_v8 = vpop.f32.mrf.mxu1 }
  0x87   :  { %v49_v9 = vadd.f32 %v67_v6, %v48_v7  ;;  %v52_v10 = vadd.f32 %v67_v6, %v51_v8 }
  0x89   :  { %55 = vst.msk [vmem:[%s118_s3] sm:$0xff] %vm54_vm1, %v49_v9 }
  0x8a   :  { %56 = vst.msk [vmem:[%s118_s3 + $0x8] sm:$0xff] %vm54_vm1, %v52_v10 }

// kernel: _lambda_.7
= control target key start
LH: loop header
LB: loop body
LE: loop exit
PB: predicated region body
PF: predicated region fallthrough
CT: control target
= control target key end

     0   :  { %s1839_s0 = inlined_call_operand.vmem [shape: f32[2,8,32], index: 0, kind: input, shape index: {}]   ;;  %s1840_s1 = inlined_call_operand.vmem [shape: f32[2,8], index: 1, kind: input, shape index: {}]   ;;  %s1841_s2 = inlined_call_operand.vmem [shape: f32[2,16], index: 2, kind: input, shape index: {}]   ;;  %s1842_s3 = inlined_call_operand.vmem [shape: f32[2,16], index: 3, kind: input, shape index: {}]   ;;  %s1843_s4 = inlined_call_operand.vmem [shape: f32[32,16], index: 4, kind: input, shape index: {}]   ;;  %s1844_s5 = inlined_call_operand.vmem [shape: f32[1,16], index: 5, kind: input, shape index: {}]   ;;  %s1845_s6 = inlined_call_operand.vmem [shape: f32[16,16], index: 6, kind: input, shape index: {}]   ;;  %s1846_s7 = inlined_call_operand.vmem [shape: f32[1,16], index: 7, kind: input, shape index: {}]   ;;  %s1847_s8 = inlined_call_operand.vmem [shape: f32[48,32], index: 8, kind: input, shape index: {}]   ;;  %s1848_s9 = inlined_call_operand.vmem [shape: f32[1,32], index: 9, kind: input, shape index: {}]   ;;  %s1849_s10 = inlined_call_operand.vmem [shape: f32[32,96], index: 10, kind: input, shape index: {}]   ;;  %s1850_s11 = inlined_call_operand.vmem [shape: f32[1,96], index: 11, kind: input, shape index: {}]   ;;  %s1851_s12 = inlined_call_operand.vmem [shape: f32[32,32], index: 12, kind: input, shape index: {}]   ;;  %s1852_s13 = inlined_call_operand.vmem [shape: f32[1,32], index: 13, kind: input, shape index: {}]   ;;  %s1853_s14 = inlined_call_operand.vmem [shape: f32[32,7], index: 14, kind: input, shape index: {}]   ;;  %s1854_s15 = inlined_call_operand.vmem [shape: f32[1,7], index: 15, kind: input, shape index: {}]   ;;  %s1855_s16 = inlined_call_operand.hbm [shape: f32[2,3], index: 16, kind: output, shape index: {0}]   ;;  %s1856_s17 = inlined_call_operand.hbm [shape: f32[2,4], index: 17, kind: output, shape index: {1}]  }
   0x1   :  { %1858 = sst [smem:[#allocation8_spill]] %s1839_s0 }
   0x2   :  { %1859 = sst [smem:[#allocation9_spill]] %s1840_s1 }
   0x3   :  { %23 = vsyncpa [#allocation3], 0  ;;  %v63_v0 = vld [vmem:[%s1843_s4 + $0x18] sm:$0xff]  ;;  %v100_v1 = vld [vmem:[%s1845_s6 + $0x8] sm:$0xff]  ;;  %v248_v3 = vlaneseq  ;;  %vm105_vm0 = vcmask 130048   ;;  %s1860_s25 = sld [smem:[#allocation8_spill]] }
   0x4   :  { %v62_v2 = vld [vmem:[%s1843_s4 + $0x10] sm:$0xff]  ;;  %87 = vmatpush.msra.mxu0 %v63_v0  ;;  %161 = vmatpush.msra.mxu2 %v100_v1  ;;  %v99_v4 = vld [vmem:[%s1845_s6] sm:$0xff]  ;;  %v61_v6 = vld [vmem:[%s1843_s4 + $0x8] sm:$0xff]  ;;  %vm68_vm1 = vcmask 261120   ;;  %s1861_s27 = sld [smem:[#allocation9_spill]] }
   0x5   :  { %v1581_v5 = vld [vmem:[%s1842_s3] sm:$0x3]  ;;  %123 = vmatpush.msra.mxu1 %v100_v1  ;;  %v249_v8 = vshrl.u32 %v248_v3, 7 }
   0x6   :  { %v1589_v7 = vld [vmem:[%s1841_s2] sm:$0x3]  ;;  %88 = vmatpush.msra.mxu0 %v62_v2  ;;  %162 = vmatpush.msra.mxu2 %v99_v4 }
   0x7   :  { %1289 = vmatmul.msk.f32.vlgmr.msra.gmra.mxu2 %vm105_vm0, %v1581_v5  ;;  %124 = vmatpush.msra.mxu1 %v99_v4  ;;  %v60_v9 = vld [vmem:[%s1843_s4] sm:$0xff] }
   0x8   :  { %89 = vmatpush.msra.mxu0 %v61_v6  ;;  %1288 = vmatmul.msk.f32.vlgmr.msra.gmra.mxu1 %vm105_vm0, %v1589_v7 }
   0x9   :  { %v1601_v10 = vld [vmem:[%s1860_s25] sm:$0xff]  ;;  %1348 = vset.pattern.permute.xlu1 %v249_v8  ;;  %1349 = vset.pattern.permute.xlu2 %v249_v8 }
   0xa   :  { %v1606_v11 = vld [vmem:[%s1861_s27] sm:$0x3]  ;;  %90 = vmatpush.msra.mxu0 %v60_v9  ;;  %1350 = vset.pattern.permute.xlu0 %v249_v8 }
   0xb   :  { %24 = vsyncpa [#allocation5], 0  ;;  %1286 = vmatmul.msk.f32.vlgmr.msra.gmra.mxu0 %vm68_vm1, %v1601_v10  ;;  %v247_v12 = vperm.slane %v1606_v11, 0  ;;  %v1614_v13 = vld [vmem:[%s1860_s25 + $0x8] sm:$0xff]  ;;  %v1351_v14 = vld [vmem:[%s1846_s7] ss:$0 sm:$0xff] }
   0xc   :  { %v1352_v16 = vld [vmem:[%s1844_s5] ss:$0 sm:$0xff]  ;;  %v254_v38 = vperm.slane %v1606_v11, 1  ;;  %v268_v50 = vld [vmem:[%s1847_s8 + $0x28] sm:$0xff]  ;;  %v266_v56 = vld [vmem:[%s1847_s8 + $0x18] sm:$0xff]  ;;  %v238_v9 = vrot.slane %v1581_v5, 1 }
   0xd   :  { %289 = vmatpush.msra.mxu3 %v268_v50  ;;  %v267_v55 = vld [vmem:[%s1847_s8 + $0x20] sm:$0xff]  ;;  %310 = vmatpush.msrb.mxu1 %v266_v56  ;;  %v265_v57 = vld [vmem:[%s1847_s8 + $0x10] sm:$0xff]  ;;  %v264_v58 = vld [vmem:[%s1847_s8 + $0x8] sm:$0xff]  ;;  %s1462_s7 = smov 96   ;;  %s1463_s19 = smov 88   ;;  %vm378_vm10 = vcmask 64512  }
   0xe   :  { %v263_v61 = vld [vmem:[%s1847_s8] sm:$0xff]  ;;  %vm366_vm11 = vcmp.gt.f32.partialorder %v1606_v11, 0.5  ;;  %s1466_s1 = smov 56   ;;  %s1467_s20 = smov 80  }
   0xf   :  { %290 = vmatpush.msra.mxu3 %v267_v55  ;;  %311 = vmatpush.msrb.mxu1 %v265_v57  ;;  %s1468_s21 = smov 112   ;;  %s1469_s24 = smov 48  }
  0x10   :  { %s1470_s25 = smov 72   ;;  %s1471_s8 = smov 104  }
  0x11   :  { %252 = vperm.xlu1 %1348, %v247_v12   ;;  %1329 = vmatpush.msrb.mxu3 %v266_v56  ;;  %v229_v12 = vrot.slane %v1589_v7, 1  ;;  %s1472_s27 = smov 40   ;;  %s1261_s22 = sshll.u32 %s1855_s16, 4  ;;  %s1262_s22 = int_to_ptr.hbm [resolvable:$true] %s1261_s22 }
  0x12   :  { %312 = vmatpush.msrb.mxu1 %v264_v58  ;;  %s1475_s16 = smov [#allocation4]  }
  0x13   :  { %1287 = vmatmul.msk.f32.gmra.mxu0 %vm68_vm1, %v1614_v13  ;;  %1330 = vmatpush.msrb.mxu3 %v265_v57  ;;  %v1354_v57 = vld [vmem:[%s1850_s11] ss:$0 sm:$0xff]  ;;  %s1464_s11 = smov 120   ;;  %s1270_s6 = sshll.u32 %s1475_s16, 4  ;;  %s1271_s6 = int_to_ptr.vmem [resolvable:$true] %s1270_s6 }
  0x14   :  { %313 = vmatpush.msrb.mxu1 %v263_v61 }
  0x15   :  { %1331 = vmatpush.msrb.mxu3 %v264_v58  ;;  %1292 = vmatmul.msk.f32.vlgmr.msrb.gmra.mxu1 %vm68_vm1, %v1601_v10 }
  0x17   :  { %1332 = vmatpush.msrb.mxu3 %v263_v61 }
  0x83   :  { %v1629_v39 = vpop.permute.xlu1 %252 }
  0x85   :  { %v126_v15 = vpop.f32.mrf.mxu1 }
  0x86   :  { %v127_v17 = vadd.f32 %v1351_v14, %v126_v15 }
  0x88   :  { %v131_v18 = vperm.slane %v127_v17, 0  ;;  %v92_v19 = vpop.f32.mrf.mxu0  ;;  %v130_v24 = vrot.slane %v127_v17, 1 }
  0x89   :  { %v93_v20 = vadd.f32 %v1352_v16, %v92_v19 }
  0x8a   :  { %v164_v21 = vpop.f32.mrf.mxu2  ;;  %v132_v30 = vperm.slane %v130_v24, 0 }
  0x8b   :  { %v165_v22 = vadd.f32 %v1351_v14, %v164_v21  ;;  %v135_v23 = vmul.f32 %v131_v18, %v93_v20  ;;  %v240_v21 = vperm.slane %v238_v9, 0 }
  0x8d   :  { %v168_v25 = vrot.slane %v165_v22, 1  ;;  %v137_v26 = vsel %vm105_vm0, %v135_v23, 0.0  ;;  %v169_v27 = vperm.slane %v165_v22, 0  ;;  %v231_v22 = vperm.slane %v229_v12, 0 }
  0x8e   :  { %138 = vadd.xlane.f32.xlu0 %v137_v26  ;;  %v239_v26 = vperm.slane %v1581_v5, 0 }
  0x8f   :  { %v170_v28 = vperm.slane %v168_v25, 0  ;;  %v173_v32 = vmul.f32 %v169_v27, %v93_v20  ;;  %v230_v27 = vperm.slane %v1589_v7, 0 }
  0x90   :  { %v95_v29 = vpop.f32.mrf.mxu0 }
  0x91   :  { %v96_v31 = vadd.f32 %v1352_v16, %v95_v29  ;;  %v175_v37 = vsel %vm105_vm0, %v173_v32, 0.0 }
  0x93   :  { %v174_v33 = vmul.f32 %v170_v28, %v96_v31  ;;  %v136_v34 = vmul.f32 %v132_v30, %v96_v31 }
  0x95   :  { %v178_v35 = vsel %vm105_vm0, %v174_v33, 0.0  ;;  %v140_v36 = vsel %vm105_vm0, %v136_v34, 0.0 }
  0x96   :  { %179 = vadd.xlane.f32.xlu2 %v178_v35  ;;  %141 = vadd.xlane.f32.xlu1 %v140_v36 }
  0x97   :  { %176 = vadd.xlane.f32.xlu0 %v175_v37 }
  0xae   :  { %259 = vperm.xlu2 %1349, %v254_v38  }
 0x101   :  { %v139_v40 = vpop.xlane.xlu0 %138 }
 0x109   :  { %v180_v41 = vpop.xlane.xlu2 %179  ;;  %v142_v42 = vpop.xlane.xlu1 %141 }
 0x10a   :  { %v182_v43 = vmax.f32 %v142_v42, %v180_v41  ;;  %v177_v44 = vpop.xlane.xlu0 %176 }
 0x10b   :  { %v181_v45 = vmax.f32 %v139_v40, %v177_v44 }
 0x10c   :  { %v184_v46 = vsub.f32 %v142_v42, %v182_v43  ;;  %v190_v47 = vsub.f32 %v180_v41, %v182_v43 }
 0x10d   :  { %v183_v48 = vsub.f32 %v139_v40, %v181_v45  ;;  %v189_v49 = vsub.f32 %v177_v44, %v181_v45  ;;  %v332_v44 = vld [vmem:[%s1849_s10 + $0x18] sm:$0xff]  ;;  %v331_v45 = vld [vmem:[%s1849_s10 + $0x10] sm:$0xff] }
 0x10e   :  { %v187_v51 = vmul.f32 1.442695, %v184_v46  ;;  %v193_v52 = vmul.f32 1.442695, %v190_v47  ;;  %355 = vmatpush.msrb.mxu2 %v332_v44  ;;  %v329_v46 = vld [vmem:[%s1849_s10] sm:$0xff] }
 0x10f   :  { %v185_v53 = vmul.f32 1.442695, %v183_v48  ;;  %v191_v54 = vmul.f32 1.442695, %v189_v49  ;;  %v1353_v47 = vld [vmem:[%s1848_s9] ss:$0 sm:$0xff] }
 0x110   :  { %1357 = vpow2.f32 %v187_v51  ;;  %356 = vmatpush.msrb.mxu2 %v331_v45  ;;  %s1461_s9 = smov 64  }
 0x111   :  { %1359 = vpow2.f32 %v193_v52  ;;  %v260_v7 = vpop.permute.xlu2 %259 }
 0x112   :  { %1361 = vpow2.f32 %v185_v53 }
 0x113   :  { %1363 = vpow2.f32 %v191_v54 }
 0x116   :  { %v1358_v59 = vpop.eup %1357 }
 0x117   :  { %v1360_v60 = vpop.eup %1359 }
 0x118   :  { %v1362_v62 = vpop.eup %1361  ;;  %v196_v63 = vadd.f32 %v1360_v60, %v1358_v59 }
 0x119   :  { %v1364_v0 = vpop.eup %1363 }
 0x11a   :  { %1365 = vrcp.f32 %v196_v63  ;;  %v195_v1 = vadd.f32 %v1364_v0, %v1362_v62  ;;  %v223_v14 = vand.u32 2147483648, %v196_v63  ;;  %v221_v17 = vand.u32 2147483647, %v196_v63 }
 0x11b   :  { %vm217_vm3 = vweird.f32 %v196_v63 }
 0x11c   :  { %1367 = vrcp.f32 %v195_v1  ;;  %v208_v18 = vand.u32 2147483648, %v195_v1  ;;  %v206_v10 = vand.u32 2147483647, %v195_v1  ;;  %v224_v23 = vor.u32 1.1754944e-38, %v223_v14 }
 0x11d   :  { %vm202_vm6 = vweird.f32 %v195_v1  ;;  %vm222_vm7 = vcmp.eq.f32.partialorder %v221_v17, 8.507059e+37 }
 0x11e   :  { %v209_v28 = vor.u32 1.1754944e-38, %v208_v18  ;;  %vm207_vm9 = vcmp.eq.f32.partialorder %v206_v10, 8.507059e+37 }
 0x120   :  { %v1366_v2 = vpop.eup %1365 }
 0x121   :  { %v213_v3 = vmul.f32 %v1366_v2, %v196_v63  ;;  %vm218_vm2 = vweird.f32 %v1366_v2 }
 0x122   :  { %v1368_v4 = vpop.eup %1367  ;;  %vm219_vm5 = vmor %vm217_vm3, %vm218_vm2 }
 0x123   :  { %v198_v6 = vmul.f32 %v1368_v4, %v195_v1  ;;  %v214_v8 = vsub.f32 1.0, %v213_v3  ;;  %vm203_vm4 = vweird.f32 %v1368_v4 }
 0x124   :  { %vm204_vm8 = vmor %vm202_vm6, %vm203_vm4 }
 0x125   :  { %v199_v15 = vsub.f32 1.0, %v198_v6  ;;  %v215_v16 = vmul.f32 %v1366_v2, %v214_v8 }
 0x127   :  { %v200_v19 = vmul.f32 %v1368_v4, %v199_v15  ;;  %v216_v20 = vadd.f32 %v1366_v2, %v215_v16 }
 0x129   :  { %v201_v24 = vadd.f32 %v1368_v4, %v200_v19  ;;  %v220_v25 = vsel %vm219_vm5, %v1366_v2, %v216_v20 }
 0x12a   :  { %v225_v29 = vsel %vm222_vm7, %v224_v23, %v220_v25 }
 0x12b   :  { %v205_v30 = vsel %vm204_vm8, %v1368_v4, %v201_v24  ;;  %v228_v31 = vmul.f32 %v1358_v59, %v225_v29  ;;  %v237_v32 = vmul.f32 %v1360_v60, %v225_v29  ;;  %v1465_v4 = vmov -1e+30  }
 0x12c   :  { %v210_v33 = vsel %vm207_vm9, %v209_v28, %v205_v30  ;;  %v367_v6 = vsel %vm366_vm11, 0.0, %v1465_v4 }
 0x12d   :  { %v236_v34 = vmul.f32 %v1364_v0, %v210_v33  ;;  %v235_v35 = vmul.f32 %v231_v22, %v228_v31  ;;  %v244_v36 = vmul.f32 %v240_v21, %v237_v32  ;;  %v227_v37 = vmul.f32 %v1362_v62, %v210_v33 }
 0x12e   :  { %v1702_v8 = vperm.slane %v367_v6, 0  ;;  %v369_v12 = vrot.slane %v367_v6, 1 }
 0x12f   :  { %v246_v38 = vadd.f32 %v244_v36, %v235_v35  ;;  %v234_v40 = vmul.f32 %v230_v27, %v227_v37  ;;  %v243_v41 = vmul.f32 %v239_v26, %v236_v34 }
 0x130   :  { %v1705_v17 = vperm.slane %v369_v12, 0 }
 0x131   :  { %v245_v42 = vadd.f32 %v243_v41, %v234_v40  ;;  %v262_v43 = vmul.f32 %v260_v7, %v246_v38 }
 0x133   :  { %v261_v5 = vmul.f32 %v1629_v39, %v245_v42  ;;  %v330_v39 = vld [vmem:[%s1849_s10 + $0x8] sm:$0xff] }
 0x134   :  { %357 = vmatpush.msrb.mxu2 %v330_v39 }
 0x135   :  { %1290 = vmatmul.msk.f32.vlgmr.msra.gmra.mxu3 %vm105_vm0, %v261_v5 }
 0x136   :  { %358 = vmatpush.msrb.mxu2 %v329_v46 }
 0x13d   :  { %1291 = vmatmul.msk.f32.gmra.mxu3 %vm105_vm0, %v262_v43 }
 0x145   :  { %1293 = vmatmul.msk.f32.vlgmr.msrb.gmra.mxu3 %vm68_vm1, %v1614_v13  ;;  %v315_v13 = vpop.f32.mrf.mxu1 }
 0x1b8   :  { %v292_v48 = vpop.f32.mrf.mxu3 }
 0x1b9   :  { %v316_v49 = vadd.f32 %v315_v13, %v292_v48 }
 0x1bb   :  { %v325_v50 = vadd.f32 %v1353_v47, %v316_v49 }
 0x1bd   :  { %v327_v51 = vmax.f32 %v325_v50, 0.0 }
 0x1bf   :  { %1294 = vmatmul.msk.f32.vlgmr.msrb.gmra.mxu2 %vm68_vm1, %v327_v51 }
 0x1c0   :  { %v295_v52 = vpop.f32.mrf.mxu3 }
 0x1c8   :  { %v318_v53 = vpop.f32.mrf.mxu3 }
 0x1c9   :  { %v319_v54 = vadd.f32 %v318_v53, %v295_v52 }
 0x1cb   :  { %v326_v55 = vadd.f32 %v1353_v47, %v319_v54 }
 0x1cd   :  { %v328_v56 = vmax.f32 %v326_v55, 0.0 }
 0x1cf   :  { %1295 = vmatmul.msk.f32.gmra.mxu2 %vm68_vm1, %v328_v56 }
 0x242   :  { %v360_v58 = vpop.f32.mrf.mxu2 }
 0x243   :  { %v1680_v59 = vadd.f32 %v1354_v57, %v360_v58 }
 0x245   :  { %486 = vrot.lane.b32.xlu1 %v1680_v59, %s1461_s9  ;;  %376 = vrot.lane.b32.xlu0 %v1680_v59, %s1462_s7 }
 0x24d   :  { %574 = vrot.lane.b32.xlu0 %v1680_v59, %s1463_s19 }
 0x252   :  { %v363_v60 = vpop.f32.mrf.mxu2 }
 0x253   :  { %v1686_v61 = vadd.f32 %v1354_v57, %v363_v60 }
 0x255   :  { %602 = vrot.lane.b32.xlu1 %v1686_v61, %s1463_s19  ;;  %404 = vrot.lane.b32.xlu2 %v1686_v61, %s1462_s7 }
 0x25d   :  { %600 = vrot.lane.b32.xlu1 %v1686_v61, %s1464_s11  ;;  %572 = vrot.lane.b32.xlu2 %v1680_v59, %s1464_s11  ;;  %s1474_s11 = smov [#allocation2]  }
 0x2af   :  { %v405_v62 = vpop.permute.xlu2 %404 }
 0x2b0   :  { %1298 = vmatpush.xpose.msk.msrb.mxu0 %vm378_vm10, %v405_v62 }
 0x2b3   :  { %1299 = vmatmul.msk.f32.vlgmr.msrb.gmra.mxu0 %vm378_vm10, %v1686_v61 }
 0x2b7   :  { %v487_v63 = vpop.permute.xlu1 %486  ;;  %v377_v0 = vpop.permute.xlu0 %376 }
 0x2b8   :  { %1296 = vmatpush.xpose.msk.msra.mxu3 %vm378_vm10, %v377_v0  ;;  %507 = vmatpush.msra.mxu1 %v487_v63  ;;  %v573_v2 = vpop.permute.xlu2 %572 }
 0x2bb   :  { %1297 = vmatmul.msk.f32.vlgmr.msra.gmra.mxu3 %vm378_vm10, %v1680_v59 }
 0x2bf   :  { %v575_v1 = vpop.permute.xlu0 %574 }
 0x2c0   :  { %1304 = vmatpush.xpose.msk.msra.mxu0 %vm378_vm10, %v575_v1 }
 0x2c3   :  { %1305 = vmatmul.msk.f32.vlgmr.msra.gmra.mxu0 %vm378_vm10, %v573_v2 }
 0x2c7   :  { %v603_v3 = vpop.permute.xlu1 %602 }
 0x2c8   :  { %1306 = vmatpush.xpose.msk.msrb.mxu1 %vm378_vm10, %v603_v3  ;;  %v370_v3 = vld [vmem:[%s1851_s12] sm:$0xff] }
 0x2c9   :  { %559 = vmatpush.msrb.mxu3 %v370_v3 }
 0x2cf   :  { %v601_v34 = vpop.permute.xlu1 %600 }
 0x330   :  { %v427_v15 = vpop.f32.mrf.mxu0 }
 0x331   :  { %v431_v18 = vmul.f32 0.35355338, %v427_v15 }
 0x333   :  { %v437_v10 = vadd.f32 %v1705_v17, %v431_v18 }
 0x335   :  { %v441_v11 = vsel %vm378_vm10, %v437_v10, -inf }
 0x33e   :  { %v400_v9 = vpop.f32.mrf.mxu3 }
 0x33f   :  { %v430_v14 = vmul.f32 0.35355338, %v400_v9 }
 0x340   :  { %v597_v24 = vpop.f32.mrf.mxu0 }
 0x341   :  { %v436_v16 = vadd.f32 %v1702_v8, %v430_v14  ;;  %v628_v28 = vmul.f32 0.35355338, %v597_v24 }
 0x343   :  { %v438_v19 = vsel %vm378_vm10, %v436_v16, -inf  ;;  %v630_v30 = vadd.f32 %v628_v28, %v1702_v8  ;;  %v371_v28 = vld [vmem:[%s1851_s12 + $0x8] sm:$0xff] }
 0x344   :  { %439 = vmax.xlane.f32.xlu0 %v438_v19 }
 0x345   :  { %v632_v33 = vsel %vm378_vm10, %v630_v30, -inf }
 0x34c   :  { %442 = vmax.xlane.f32.xlu0 %v441_v11 }
 0x360   :  { %680 = vrot.lane.b32.xlu0 %v1680_v59, %s1466_s1 }
 0x3b7   :  { %v440_v20 = vpop.xlane.xlu0 %439 }
 0x3b8   :  { %v444_v21 = vsub.f32 %v436_v16, %v440_v20 }
 0x3ba   :  { %v446_v22 = vmul.f32 1.442695, %v444_v21 }
 0x3bc   :  { %1369 = vpow2.f32 %v446_v22 }
 0x3bf   :  { %v443_v23 = vpop.xlane.xlu0 %442 }
 0x3c0   :  { %v445_v25 = vsub.f32 %v437_v10, %v443_v23 }
 0x3c2   :  { %v1370_v26 = vpop.eup %1369  ;;  %v448_v27 = vmul.f32 1.442695, %v445_v25 }
 0x3c3   :  { %v450_v29 = vsel %vm378_vm10, %v1370_v26, 0.0 }
 0x3c4   :  { %1371 = vpow2.f32 %v448_v27  ;;  %451 = vadd.xlane.f32.xlu2 %v450_v29 }
 0x3ca   :  { %v1372_v31 = vpop.eup %1371 }
 0x3cb   :  { %v453_v32 = vsel %vm378_vm10, %v1372_v31, 0.0 }
 0x3cc   :  { %454 = vadd.xlane.f32.xlu1 %v453_v32  ;;  %633 = vmax.xlane.f32.xlu2 %v632_v33 }
 0x3d2   :  { %v681_v49 = vpop.permute.xlu0 %680 }
 0x3e4   :  { %512 = vrot.lane.b32.xlu2 %v1686_v61, %s1461_s9 }
 0x3e5   :  { %706 = vrot.lane.b32.xlu1 %v1686_v61, %s1466_s1  ;;  %s1259_s1 = sshll.u32 %s1474_s11, 4  ;;  %s1260_s1 = int_to_ptr.vmem [resolvable:$true] %s1259_s1 }
 0x3ec   :  { %765 = vrot.lane.b32.xlu2 %v1680_v59, %s1467_s20 }
 0x437   :  { %v452_v35 = vpop.xlane.xlu2 %451 }
 0x438   :  { %1373 = vrcp.f32 %v452_v35  ;;  %v467_v5 = vand.u32 2147483648, %v452_v35  ;;  %v465_v43 = vand.u32 2147483647, %v452_v35  ;;  %vm461_vm13 = vweird.f32 %v452_v35 }
 0x43a   :  { %v468_v46 = vor.u32 1.1754944e-38, %v467_v5  ;;  %vm466_vm15 = vcmp.eq.f32.partialorder %v465_v43, 8.507059e+37 }
 0x43e   :  { %v1374_v36 = vpop.eup %1373 }
 0x43f   :  { %v457_v37 = vmul.f32 %v1374_v36, %v452_v35  ;;  %v455_v38 = vpop.xlane.xlu1 %454  ;;  %v634_v40 = vpop.xlane.xlu2 %633  ;;  %vm462_vm12 = vweird.f32 %v1374_v36 }
 0x440   :  { %1375 = vrcp.f32 %v455_v38  ;;  %v638_v42 = vsub.f32 %v630_v30, %v634_v40  ;;  %vm463_vm14 = vmor %vm461_vm13, %vm462_vm12  ;;  %v482_v53 = vand.u32 2147483648, %v455_v38  ;;  %v480_v56 = vand.u32 2147483647, %v455_v38 }
 0x441   :  { %v458_v41 = vsub.f32 1.0, %v457_v37  ;;  %vm476_vm2 = vweird.f32 %v455_v38 }
 0x442   :  { %v640_v44 = vmul.f32 1.442695, %v638_v42  ;;  %v483_v60 = vor.u32 1.1754944e-38, %v482_v53  ;;  %vm481_vm4 = vcmp.eq.f32.partialorder %v480_v56, 8.507059e+37 }
 0x443   :  { %v459_v7 = vmul.f32 %v1374_v36, %v458_v41 }
 0x444   :  { %1377 = vpow2.f32 %v640_v44 }
 0x445   :  { %v460_v45 = vadd.f32 %v1374_v36, %v459_v7 }
 0x446   :  { %v1376_v39 = vpop.eup %1375 }
 0x447   :  { %v464_v13 = vsel %vm463_vm14, %v1374_v36, %v460_v45  ;;  %v472_v47 = vmul.f32 %v1376_v39, %v455_v38  ;;  %v513_v48 = vpop.permute.xlu2 %512  ;;  %vm477_vm0 = vweird.f32 %v1376_v39 }
 0x448   :  { %v469_v50 = vsel %vm466_vm15, %v468_v46, %v464_v13  ;;  %533 = vmatpush.msra.mxu2 %v513_v48  ;;  %vm478_vm3 = vmor %vm476_vm2, %vm477_vm0 }
 0x449   :  { %v473_v51 = vsub.f32 1.0, %v472_v47  ;;  %v470_v52 = vmul.f32 %v1370_v26, %v469_v50 }
 0x44a   :  { %701 = vmatpush.msrb.mxu2 %v681_v49  ;;  %v1378_v54 = vpop.eup %1377 }
 0x44b   :  { %v474_v55 = vmul.f32 %v1376_v39, %v473_v51  ;;  %1300 = vmatmul.msk.f32.vlgmr.msra.gmra.mxu1 %vm378_vm10, %v470_v52  ;;  %v644_v57 = vsel %vm378_vm10, %v1378_v54, 0.0 }
 0x44c   :  { %645 = vadd.xlane.f32.xlu0 %v644_v57  ;;  %753 = vmatpush.msra.mxu1 %v371_v28 }
 0x44d   :  { %v475_v58 = vadd.f32 %v1376_v39, %v474_v55 }
 0x44f   :  { %v479_v62 = vsel %vm478_vm3, %v1376_v39, %v475_v58  ;;  %v766_v1 = vpop.permute.xlu2 %765 }
 0x450   :  { %v484_v63 = vsel %vm481_vm4, %v483_v60, %v479_v62 }
 0x451   :  { %v485_v0 = vmul.f32 %v1372_v31, %v484_v63 }
 0x453   :  { %1301 = vmatmul.msk.f32.vlgmr.msra.gmra.mxu2 %vm378_vm10, %v485_v0  ;;  %1307 = vmatmul.msk.f32.vlgmr.msrb.gmra.mxu1 %vm378_vm10, %v601_v34 }
 0x454   :  { %1312 = vmatpush.xpose.msk.msra.mxu2 %vm378_vm10, %v766_v1 }
 0x457   :  { %v707_v2 = vpop.permute.xlu1 %706 }
 0x458   :  { %727 = vmatpush.msrb.mxu0 %v707_v2 }
 0x460   :  { %763 = vrot.lane.b32.xlu0 %v1680_v59, %s1468_s21 }
 0x4bf   :  { %v646_v4 = vpop.xlane.xlu0 %645 }
 0x4c0   :  { %1379 = vrcp.f32 %v646_v4  ;;  %v661_v15 = vand.u32 2147483648, %v646_v4  ;;  %v659_v18 = vand.u32 2147483647, %v646_v4  ;;  %vm655_vm6 = vweird.f32 %v646_v4 }
 0x4c2   :  { %v662_v10 = vor.u32 1.1754944e-38, %v661_v15  ;;  %vm660_vm8 = vcmp.eq.f32.partialorder %v659_v18, 8.507059e+37 }
 0x4c6   :  { %v1380_v6 = vpop.eup %1379 }
 0x4c7   :  { %v651_v9 = vmul.f32 %v1380_v6, %v646_v4  ;;  %vm656_vm5 = vweird.f32 %v1380_v6 }
 0x4c8   :  { %v509_v12 = vpop.f32.mrf.mxu1  ;;  %vm657_vm7 = vmor %vm655_vm6, %vm656_vm5 }
 0x4c9   :  { %1302 = vmatmul.msk.f32.vlgmr.msrb.gmra.mxu3 %vm378_vm10, %v509_v12  ;;  %v652_v14 = vsub.f32 1.0, %v651_v9 }
 0x4cb   :  { %v653_v16 = vmul.f32 %v1380_v6, %v652_v14 }
 0x4cd   :  { %v654_v19 = vadd.f32 %v1380_v6, %v653_v16 }
 0x4cf   :  { %v658_v11 = vsel %vm657_vm7, %v1380_v6, %v654_v19 }
 0x4d0   :  { %v625_v20 = vpop.f32.mrf.mxu1  ;;  %v663_v21 = vsel %vm660_vm8, %v662_v10, %v658_v11 }
 0x4d1   :  { %v629_v22 = vmul.f32 0.35355338, %v625_v20  ;;  %v664_v23 = vmul.f32 %v1378_v54, %v663_v21 }
 0x4d2   :  { %v764_v27 = vpop.permute.xlu0 %763 }
 0x4d3   :  { %v631_v24 = vadd.f32 %v629_v22, %v1705_v17  ;;  %1308 = vmatmul.msk.f32.vlgmr.msrb.gmra.mxu2 %vm378_vm10, %v664_v23  ;;  %v372_v22 = vld [vmem:[%s1851_s12 + $0x10] sm:$0xff] }
 0x4d5   :  { %v635_v25 = vsel %vm378_vm10, %v631_v24, -inf }
 0x4d6   :  { %636 = vmax.xlane.f32.xlu2 %v635_v25  ;;  %v535_v26 = vpop.f32.mrf.mxu2 }
 0x4d7   :  { %1303 = vmatmul.msk.f32.gmra.mxu3 %vm378_vm10, %v535_v26 }
 0x4db   :  { %1313 = vmatmul.msk.f32.vlgmr.msra.gmra.mxu2 %vm378_vm10, %v764_v27 }
 0x4ee   :  { %791 = vrot.lane.b32.xlu2 %v1686_v61, %s1468_s21 }
 0x549   :  { %v637_v29 = vpop.xlane.xlu2 %636 }
 0x54a   :  { %v639_v30 = vsub.f32 %v631_v24, %v637_v29 }
 0x54c   :  { %v642_v31 = vmul.f32 1.442695, %v639_v30  ;;  %v1760_v57 = vpop.f32.mrf.mxu3 }
 0x54e   :  { %1381 = vpow2.f32 %v642_v31 }
 0x551   :  { %v792_v52 = vpop.permute.xlu2 %791 }
 0x554   :  { %v1382_v32 = vpop.eup %1381 }
 0x555   :  { %v647_v33 = vsel %vm378_vm10, %v1382_v32, 0.0 }
 0x556   :  { %648 = vadd.xlane.f32.xlu0 %v647_v33  ;;  %v703_v34 = vpop.f32.mrf.mxu2 }
 0x557   :  { %1310 = vmatmul.msk.f32.vlgmr.msra.gmra.mxu1 %vm378_vm10, %v703_v34 }
 0x55a   :  { %v1762_v62 = vpop.f32.mrf.mxu3 }
 0x55e   :  { %v788_v35 = vpop.f32.mrf.mxu2 }
 0x55f   :  { %v819_v36 = vmul.f32 0.35355338, %v788_v35 }
 0x561   :  { %v821_v37 = vadd.f32 %v819_v36, %v1702_v8 }
 0x563   :  { %v823_v38 = vsel %vm378_vm10, %v821_v37, -inf }
 0x564   :  { %824 = vmax.xlane.f32.xlu1 %v823_v38 }
 0x56a   :  { %793 = vrot.lane.b32.xlu0 %v1686_v61, %s1467_s20 }
 0x572   :  { %871 = vrot.lane.b32.xlu0 %v1680_v59, %s1469_s24 }
 0x57a   :  { %956 = vrot.lane.b32.xlu0 %v1680_v59, %s1470_s25 }
 0x57d   :  { %954 = vrot.lane.b32.xlu1 %v1680_v59, %s1471_s8 }
 0x582   :  { %982 = vrot.lane.b32.xlu0 %v1686_v61, %s1471_s8 }
 0x5c9   :  { %v649_v40 = vpop.xlane.xlu0 %648 }
 0x5ca   :  { %1383 = vrcp.f32 %v649_v40  ;;  %v676_v7 = vand.u32 2147483648, %v649_v40  ;;  %v674_v44 = vand.u32 2147483647, %v649_v40  ;;  %vm670_vm11 = vweird.f32 %v649_v40 }
 0x5cc   :  { %v677_v39 = vor.u32 1.1754944e-38, %v676_v7  ;;  %vm675_vm13 = vcmp.eq.f32.partialorder %v674_v44, 8.507059e+37 }
 0x5d0   :  { %v1384_v41 = vpop.eup %1383 }
 0x5d1   :  { %v666_v42 = vmul.f32 %v1384_v41, %v649_v40  ;;  %vm671_vm9 = vweird.f32 %v1384_v41 }
 0x5d2   :  { %vm672_vm12 = vmor %vm670_vm11, %vm671_vm9 }
 0x5d3   :  { %v667_v5 = vsub.f32 1.0, %v666_v42 }
 0x5d4   :  { %v1774_v23 = vpop.f32.mrf.mxu1 }
 0x5d5   :  { %v668_v43 = vmul.f32 %v1384_v41, %v667_v5 }
 0x5d7   :  { %v669_v45 = vadd.f32 %v1384_v41, %v668_v43  ;;  %v825_v46 = vpop.xlane.xlu1 %824 }
 0x5d8   :  { %v829_v47 = vsub.f32 %v821_v37, %v825_v46 }
 0x5d9   :  { %v673_v13 = vsel %vm672_vm12, %v1384_v41, %v669_v45 }
 0x5da   :  { %v678_v48 = vsel %vm675_vm13, %v677_v39, %v673_v13  ;;  %v831_v49 = vmul.f32 1.442695, %v829_v47 }
 0x5db   :  { %v679_v50 = vmul.f32 %v1382_v32, %v678_v48 }
 0x5dc   :  { %v794_v51 = vpop.permute.xlu0 %793  ;;  %1385 = vpow2.f32 %v831_v49 }
 0x5dd   :  { %1309 = vmatmul.msk.f32.vlgmr.msrb.gmra.mxu0 %vm378_vm10, %v679_v50  ;;  %1314 = vmatpush.xpose.msk.msra.mxu3 %vm378_vm10, %v794_v51 }
 0x5e0   :  { %1315 = vmatmul.msk.f32.vlgmr.msra.gmra.mxu3 %vm378_vm10, %v792_v52 }
 0x5e1   :  { %944 = vmatpush.msrb.mxu3 %v372_v22 }
 0x5e2   :  { %v1386_v53 = vpop.eup %1385 }
 0x5e3   :  { %v835_v54 = vsel %vm378_vm10, %v1386_v53, 0.0 }
 0x5e4   :  { %v872_v55 = vpop.permute.xlu0 %871  ;;  %836 = vadd.xlane.f32.xlu2 %v835_v54 }
 0x5e5   :  { %892 = vmatpush.msra.mxu0 %v872_v55 }
 0x5ec   :  { %v957_v56 = vpop.permute.xlu0 %956 }
 0x5ed   :  { %1320 = vmatpush.xpose.msk.msrb.mxu0 %vm378_vm10, %v957_v56 }
 0x5ef   :  { %v955_v21 = vpop.permute.xlu1 %954 }
 0x5f4   :  { %v983_v3 = vpop.permute.xlu0 %982 }
 0x5fc   :  { %984 = vrot.lane.b32.xlu2 %v1686_v61, %s1470_s25 }
 0x657   :  { %v837_v58 = vpop.xlane.xlu2 %836 }
 0x658   :  { %1387 = vrcp.f32 %v837_v58  ;;  %v852_v4 = vand.u32 2147483648, %v837_v58  ;;  %v850_v12 = vand.u32 2147483647, %v837_v58  ;;  %vm846_vm15 = vweird.f32 %v837_v58 }
 0x65a   :  { %v729_v60 = vpop.f32.mrf.mxu0  ;;  %v853_v18 = vor.u32 1.1754944e-38, %v852_v4  ;;  %vm851_vm2 = vcmp.eq.f32.partialorder %v850_v12, 8.507059e+37 }
 0x65b   :  { %1311 = vmatmul.msk.f32.gmra.mxu1 %vm378_vm10, %v729_v60 }
 0x65e   :  { %v1388_v63 = vpop.eup %1387 }
 0x65f   :  { %v842_v0 = vmul.f32 %v1388_v63, %v837_v58  ;;  %v985_v1 = vpop.permute.xlu2 %984  ;;  %vm847_vm14 = vweird.f32 %v1388_v63 }
 0x660   :  { %1322 = vmatpush.xpose.msk.msrb.mxu1 %vm378_vm10, %v985_v1  ;;  %vm848_vm0 = vmor %vm846_vm15, %vm847_vm14 }
 0x661   :  { %v843_v2 = vsub.f32 1.0, %v842_v0 }
 0x663   :  { %v816_v6 = vpop.f32.mrf.mxu3  ;;  %v844_v9 = vmul.f32 %v1388_v63, %v843_v2  ;;  %1323 = vmatmul.msk.f32.vlgmr.msrb.gmra.mxu1 %vm378_vm10, %v983_v3 }
 0x664   :  { %v820_v14 = vmul.f32 0.35355338, %v816_v6 }
 0x665   :  { %v845_v15 = vadd.f32 %v1388_v63, %v844_v9 }
 0x666   :  { %v822_v16 = vadd.f32 %v820_v14, %v1705_v17 }
 0x667   :  { %v849_v19 = vsel %vm848_vm0, %v1388_v63, %v845_v15  ;;  %vm1219_vm0 = vcmask 50200  }
 0x668   :  { %v826_v10 = vsel %vm378_vm10, %v822_v16, -inf  ;;  %v854_v11 = vsel %vm851_vm2, %v853_v18, %v849_v19  ;;  %vm1193_vm2 = vcmask 17408  }
 0x669   :  { %827 = vmax.xlane.f32.xlu2 %v826_v10  ;;  %v855_v20 = vmul.f32 %v1386_v53, %v854_v11 }
 0x66b   :  { %1316 = vmatmul.msk.f32.vlgmr.msra.gmra.mxu0 %vm378_vm10, %v855_v20 }
 0x673   :  { %1321 = vmatmul.msk.f32.vlgmr.msrb.gmra.mxu0 %vm378_vm10, %v955_v21 }
 0x6d8   :  { %v1776_v24 = vpop.f32.mrf.mxu1 }
 0x6dc   :  { %v828_v25 = vpop.xlane.xlu2 %827 }
 0x6dd   :  { %v830_v26 = vsub.f32 %v822_v16, %v828_v25 }
 0x6df   :  { %v833_v27 = vmul.f32 1.442695, %v830_v26 }
 0x6e0   :  { %v1007_v28 = vpop.f32.mrf.mxu1 }
 0x6e1   :  { %1389 = vpow2.f32 %v833_v27  ;;  %v1011_v29 = vmul.f32 0.35355338, %v1007_v28 }
 0x6e3   :  { %v1013_v30 = vadd.f32 %v1011_v29, %v1705_v17  ;;  %v373_v29 = vld [vmem:[%s1851_s12 + $0x18] sm:$0xff] }
 0x6e4   :  { %1135 = vmatpush.msra.mxu1 %v373_v29 }
 0x6e5   :  { %v1017_v31 = vsel %vm378_vm10, %v1013_v30, -inf }
 0x6e6   :  { %1018 = vmax.xlane.f32.xlu1 %v1017_v31 }
 0x6e7   :  { %v1390_v32 = vpop.eup %1389 }
 0x6e8   :  { %v838_v33 = vsel %vm378_vm10, %v1390_v32, 0.0  ;;  %v894_v34 = vpop.f32.mrf.mxu0 }
 0x6e9   :  { %839 = vadd.xlane.f32.xlu2 %v838_v33  ;;  %1318 = vmatmul.msk.f32.vlgmr.msrb.gmra.mxu3 %vm378_vm10, %v894_v34  ;;  %v1161_v33 = vld [vmem:[%s1853_s14 + $0x10] sm:$0xff]  ;;  %v1160_v34 = vld [vmem:[%s1853_s14 + $0x8] sm:$0xff] }
 0x6f0   :  { %v979_v35 = vpop.f32.mrf.mxu0 }
 0x6f1   :  { %v1010_v36 = vmul.f32 0.35355338, %v979_v35  ;;  %v1159_v35 = vld [vmem:[%s1853_s14] sm:$0xff] }
 0x6f3   :  { %v1012_v37 = vadd.f32 %v1010_v36, %v1702_v8  ;;  %v1355_v36 = vld [vmem:[%s1852_s13] ss:$0 sm:$0xff] }
 0x6f5   :  { %v1014_v38 = vsel %vm378_vm10, %v1012_v37, -inf }
 0x6f6   :  { %1015 = vmax.xlane.f32.xlu0 %v1014_v38 }
 0x6ff   :  { %1062 = vrot.lane.b32.xlu1 %v1680_v59, %s1472_s27 }
 0x701   :  { %897 = vrot.lane.b32.xlu2 %v1686_v61, %s1469_s24  ;;  %s1272_s24 = sshll.u32 %s1856_s17, 4  ;;  %s1273_s24 = int_to_ptr.hbm [resolvable:$true] %s1272_s24 }
 0x759   :  { %v1019_v44 = vpop.xlane.xlu1 %1018 }
 0x75a   :  { %v1021_v47 = vsub.f32 %v1013_v30, %v1019_v44 }
 0x75c   :  { %v840_v17 = vpop.xlane.xlu2 %839  ;;  %v1024_v51 = vmul.f32 1.442695, %v1021_v47 }
 0x75d   :  { %1391 = vrcp.f32 %v840_v17  ;;  %v867_v7 = vand.u32 2147483648, %v840_v17  ;;  %v865_v8 = vand.u32 2147483647, %v840_v17  ;;  %vm861_vm4 = vweird.f32 %v840_v17 }
 0x75f   :  { %v868_v59 = vor.u32 1.1754944e-38, %v867_v7  ;;  %vm866_vm6 = vcmp.eq.f32.partialorder %v865_v8, 8.507059e+37 }
 0x763   :  { %v1392_v40 = vpop.eup %1391 }
 0x764   :  { %v857_v41 = vmul.f32 %v1392_v40, %v840_v17  ;;  %v898_v42 = vpop.permute.xlu2 %897  ;;  %vm862_vm3 = vweird.f32 %v1392_v40 }
 0x765   :  { %918 = vmatpush.msrb.mxu2 %v898_v42  ;;  %vm863_vm5 = vmor %vm861_vm4, %vm862_vm3 }
 0x766   :  { %v858_v5 = vsub.f32 1.0, %v857_v41 }
 0x768   :  { %v859_v43 = vmul.f32 %v1392_v40, %v858_v5  ;;  %v571_v5 = vadd.f32 %v1355_v36, %v1762_v62 }
 0x769   :  { %v1016_v39 = vpop.xlane.xlu0 %1015 }
 0x76a   :  { %v860_v45 = vadd.f32 %v1392_v40, %v859_v43  ;;  %v1020_v46 = vsub.f32 %v1012_v37, %v1016_v39  ;;  %v570_v37 = vadd.f32 %v1355_v36, %v1760_v57  ;;  %v762_v44 = vadd.f32 %v1776_v24, %v571_v5  ;;  %v1356_v24 = vld [vmem:[%s1854_s15] ss:$0 sm:$0xff]  ;;  %s1473_s15 = smov 125  }
 0x76c   :  { %v864_v13 = vsel %vm863_vm5, %v1392_v40, %v860_v45  ;;  %v1022_v49 = vmul.f32 1.442695, %v1020_v46  ;;  %v946_v38 = vpop.f32.mrf.mxu3  ;;  %v761_v17 = vadd.f32 %v1774_v23, %v570_v37 }
 0x76d   :  { %v869_v48 = vsel %vm866_vm6, %v868_v59, %v864_v13 }
 0x76e   :  { %v870_v50 = vmul.f32 %v1390_v32, %v869_v48  ;;  %1393 = vpow2.f32 %v1022_v49  ;;  %v1162_v32 = vld [vmem:[%s1853_s14 + $0x18] sm:$0xff]  ;;  %v952_v40 = vadd.f32 %v946_v38, %v761_v17 }
 0x76f   :  { %1395 = vpow2.f32 %v1024_v51 }
 0x770   :  { %1317 = vmatmul.msk.f32.vlgmr.msrb.gmra.mxu2 %vm378_vm10, %v870_v50 }
 0x771   :  { %v1063_v52 = vpop.permute.xlu1 %1062 }
 0x772   :  { %1083 = vmatpush.msra.mxu2 %v1063_v52 }
 0x774   :  { %v1394_v53 = vpop.eup %1393  ;;  %1185 = vmatpush.msrb.mxu2 %v1162_v32 }
 0x775   :  { %v1026_v54 = vsel %vm378_vm10, %v1394_v53, 0.0  ;;  %v1396_v55 = vpop.eup %1395 }
 0x776   :  { %1027 = vadd.xlane.f32.xlu0 %v1026_v54  ;;  %v1029_v56 = vsel %vm378_vm10, %v1396_v55, 0.0  ;;  %1186 = vmatpush.msrb.mxu2 %v1161_v33 }
 0x778   :  { %1187 = vmatpush.msrb.mxu2 %v1160_v34 }
 0x77a   :  { %1188 = vmatpush.msrb.mxu2 %v1159_v35 }
 0x77e   :  { %1030 = vadd.xlane.f32.xlu0 %v1029_v56 }
 0x792   :  { %1088 = vrot.lane.b32.xlu0 %v1686_v61, %s1472_s27 }
 0x7e9   :  { %v1028_v58 = vpop.xlane.xlu0 %1027 }
 0x7ea   :  { %1397 = vrcp.f32 %v1028_v58  ;;  %v1043_v3 = vand.u32 2147483648, %v1028_v58  ;;  %v1041_v6 = vand.u32 2147483647, %v1028_v58  ;;  %vm1037_vm8 = vweird.f32 %v1028_v58 }
 0x7ec   :  { %v1044_v14 = vor.u32 1.1754944e-38, %v1043_v3  ;;  %vm1042_vm11 = vcmp.eq.f32.partialorder %v1041_v6, 8.507059e+37 }
 0x7f0   :  { %v1398_v60 = vpop.eup %1397 }
 0x7f1   :  { %v1033_v63 = vmul.f32 %v1398_v60, %v1028_v58  ;;  %v1031_v0 = vpop.xlane.xlu0 %1030  ;;  %vm1038_vm7 = vweird.f32 %v1398_v60 }
 0x7f2   :  { %1399 = vrcp.f32 %v1031_v0  ;;  %vm1039_vm9 = vmor %vm1037_vm8, %vm1038_vm7  ;;  %v1058_v10 = vand.u32 2147483648, %v1031_v0  ;;  %v1056_v20 = vand.u32 2147483647, %v1031_v0  ;;  %vm1052_vm13 = vweird.f32 %v1031_v0 }
 0x7f3   :  { %v920_v1 = vpop.f32.mrf.mxu2  ;;  %v1034_v2 = vsub.f32 1.0, %v1033_v63 }
 0x7f4   :  { %1319 = vmatmul.msk.f32.gmra.mxu3 %vm378_vm10, %v920_v1  ;;  %v1059_v22 = vor.u32 1.1754944e-38, %v1058_v10  ;;  %vm1057_vm15 = vcmp.eq.f32.partialorder %v1056_v20, 8.507059e+37 }
 0x7f5   :  { %v1035_v4 = vmul.f32 %v1398_v60, %v1034_v2 }
 0x7f7   :  { %v1036_v9 = vadd.f32 %v1398_v60, %v1035_v4 }
 0x7f8   :  { %v1400_v12 = vpop.eup %1399 }
 0x7f9   :  { %v1040_v61 = vsel %vm1039_vm9, %v1398_v60, %v1036_v9  ;;  %v1048_v15 = vmul.f32 %v1400_v12, %v1031_v0  ;;  %vm1053_vm12 = vweird.f32 %v1400_v12 }
 0x7fa   :  { %v1045_v16 = vsel %vm1042_vm11, %v1044_v14, %v1040_v61  ;;  %vm1054_vm14 = vmor %vm1052_vm13, %vm1053_vm12 }
 0x7fb   :  { %v1049_v18 = vsub.f32 1.0, %v1048_v15  ;;  %v1046_v19 = vmul.f32 %v1394_v53, %v1045_v16 }
 0x7fd   :  { %v1050_v11 = vmul.f32 %v1400_v12, %v1049_v18  ;;  %1324 = vmatmul.msk.f32.vlgmr.msra.gmra.mxu2 %vm378_vm10, %v1046_v19 }
 0x7ff   :  { %v1051_v21 = vadd.f32 %v1400_v12, %v1050_v11 }
 0x801   :  { %v1055_v25 = vsel %vm1054_vm14, %v1400_v12, %v1051_v21 }
 0x802   :  { %v1060_v26 = vsel %vm1057_vm15, %v1059_v22, %v1055_v25 }
 0x803   :  { %v1061_v27 = vmul.f32 %v1396_v55, %v1060_v26 }
 0x804   :  { %v1089_v28 = vpop.permute.xlu0 %1088 }
 0x805   :  { %1109 = vmatpush.msra.mxu0 %v1089_v28 }
 0x806   :  { %1325 = vmatmul.msk.f32.vlgmr.msra.gmra.mxu0 %vm378_vm10, %v1061_v27 }
 0x877   :  { %v949_v43 = vpop.f32.mrf.mxu3 }
 0x878   :  { %v953_v39 = vadd.f32 %v949_v43, %v762_v44 }
 0x880   :  { %v1085_v30 = vpop.f32.mrf.mxu2 }
 0x881   :  { %1326 = vmatmul.msk.f32.vlgmr.msra.gmra.mxu1 %vm378_vm10, %v1085_v30 }
 0x883   :  { %v1111_v31 = vpop.f32.mrf.mxu0 }
 0x889   :  { %1327 = vmatmul.msk.f32.gmra.mxu1 %vm378_vm10, %v1111_v31  ;;  %vm1169_vm10 = vcmask 1041409  }
 0x8fe   :  { %v1137_v41 = vpop.f32.mrf.mxu1 }
 0x8ff   :  { %v1143_v42 = vadd.f32 %v1137_v41, %v952_v40 }
 0x901   :  { %v1145_v7 = vsel %vm68_vm1, %v1143_v42, -inf }
 0x902   :  { %v1146_v8 = vrot.slane %v1145_v7, 4 }
 0x904   :  { %v1147_v45 = vmax.f32 %v1145_v7, %v1146_v8 }
 0x906   :  { %v1140_v59 = vpop.f32.mrf.mxu1  ;;  %v1148_v13 = vrot.slane %v1147_v45, 2 }
 0x907   :  { %v1144_v46 = vadd.f32 %v1140_v59, %v953_v39 }
 0x908   :  { %v1149_v23 = vmax.f32 %v1147_v45, %v1148_v13 }
 0x909   :  { %v1152_v57 = vsel %vm68_vm1, %v1144_v46, -inf }
 0x90a   :  { %v1153_v47 = vrot.slane %v1152_v57, 4  ;;  %v1150_v50 = vrot.slane %v1149_v23, 1 }
 0x90c   :  { %v1154_v48 = vmax.f32 %v1152_v57, %v1153_v47  ;;  %v1151_v52 = vmax.f32 %v1149_v23, %v1150_v50 }
 0x90e   :  { %v1155_v49 = vrot.slane %v1154_v48, 2 }
 0x910   :  { %v1156_v51 = vmax.f32 %v1154_v48, %v1155_v49 }
 0x912   :  { %v1157_v62 = vrot.slane %v1156_v51, 1 }
 0x914   :  { %v1158_v53 = vmax.f32 %v1156_v51, %v1157_v62 }
 0x916   :  { %v1170_v54 = vsel %vm1169_vm10, %v1158_v53, %v1151_v52 }
 0x917   :  { %1328 = vmatmul.msk.f32.vlgmr.msrb.gmra.mxu2 %vm68_vm1, %v1170_v54  ;;  %vm1230_vm1 = vcmask 25600  }
 0x99a   :  { %v1190_v55 = vpop.f32.mrf.mxu2 }
 0x99b   :  { %v1191_v56 = vadd.f32 %v1356_v24, %v1190_v55 }
 0x99d   :  { %v1220_v58 = vsel %vm1219_vm0, %v1191_v56, -inf  ;;  %v1194_v60 = vsel %vm1193_vm2, %v1191_v56, -inf }
 0x99e   :  { %1221 = vmax.xlane.f32.xlu2 %v1220_v58  ;;  %1195 = vmax.xlane.f32.xlu0 %v1194_v60 }
 0xa11   :  { %v1222_v63 = vpop.xlane.xlu2 %1221  ;;  %v1196_v0 = vpop.xlane.xlu0 %1195 }
 0xa12   :  { %v1223_v1 = vsub.f32 %v1191_v56, %v1222_v63  ;;  %v1197_v2 = vsub.f32 %v1191_v56, %v1196_v0 }
 0xa14   :  { %v1224_v3 = vmul.f32 1.442695, %v1223_v1  ;;  %v1198_v4 = vmul.f32 1.442695, %v1197_v2 }
 0xa16   :  { %1401 = vpow2.f32 %v1224_v3 }
 0xa17   :  { %1403 = vpow2.f32 %v1198_v4 }
 0xa1c   :  { %v1402_v6 = vpop.eup %1401 }
 0xa1d   :  { %v1404_v9 = vpop.eup %1403  ;;  %1227 = vrot.lane.b32.xlu1 %v1402_v6, %s1473_s15 }
 0xa1e   :  { %v1200_v12 = vsel %vm1193_vm2, %v1404_v9, 0.0 }
 0xa1f   :  { %1201 = vadd.xlane.f32.xlu2 %v1200_v12 }
 0xa8f   :  { %v1228_v14 = vpop.permute.xlu1 %1227 }
 0xa90   :  { %v1231_v61 = vsel %vm1230_vm1, %v1228_v14, 0.0 }
 0xa91   :  { %1232 = vadd.xlane.f32.xlu1 %v1231_v61 }
 0xa92   :  { %v1202_v15 = vpop.xlane.xlu2 %1201 }
 0xa93   :  { %1405 = vrcp.f32 %v1202_v15  ;;  %v1214_v10 = vand.u32 2147483648, %v1202_v15  ;;  %v1212_v20 = vand.u32 2147483647, %v1202_v15  ;;  %vm1208_vm4 = vweird.f32 %v1202_v15 }
 0xa95   :  { %v1215_v22 = vor.u32 1.1754944e-38, %v1214_v10  ;;  %vm1213_vm6 = vcmp.eq.f32.partialorder %v1212_v20, 8.507059e+37 }
 0xa99   :  { %v1406_v16 = vpop.eup %1405 }
 0xa9a   :  { %v1204_v18 = vmul.f32 %v1406_v16, %v1202_v15  ;;  %vm1209_vm3 = vweird.f32 %v1406_v16 }
 0xa9b   :  { %vm1210_vm5 = vmor %vm1208_vm4, %vm1209_vm3 }
 0xa9c   :  { %v1205_v19 = vsub.f32 1.0, %v1204_v18 }
 0xa9e   :  { %v1206_v11 = vmul.f32 %v1406_v16, %v1205_v19 }
 0xaa0   :  { %v1207_v21 = vadd.f32 %v1406_v16, %v1206_v11 }
 0xaa2   :  { %v1211_v25 = vsel %vm1210_vm5, %v1406_v16, %v1207_v21 }
 0xaa3   :  { %v1216_v26 = vsel %vm1213_vm6, %v1215_v22, %v1211_v25 }
 0xaa4   :  { %v1217_v27 = vmul.f32 %v1404_v9, %v1216_v26 }
 0xaa6   :  { %1218 = vst.msk [vmem:[#allocation2] sm:$0x3] %vm1193_vm2, %v1217_v27 }
 0xaa7   :  { %1264 = dma.vmem_to_hbm [thread:$0]  %s1260_s1, 32, %s1262_s22, [#allocation3]  }
 0xb04   :  { %v1233_v28 = vpop.xlane.xlu1 %1232 }
 0xb05   :  { %1407 = vrcp.f32 %v1233_v28  ;;  %v1245_v32 = vand.u32 2147483648, %v1233_v28  ;;  %v1243_v34 = vand.u32 2147483647, %v1233_v28  ;;  %vm1239_vm8 = vweird.f32 %v1233_v28 }
 0xb07   :  { %v1246_v36 = vor.u32 1.1754944e-38, %v1245_v32  ;;  %vm1244_vm11 = vcmp.eq.f32.partialorder %v1243_v34, 8.507059e+37 }
 0xb0b   :  { %v1408_v29 = vpop.eup %1407 }
 0xb0c   :  { %v1235_v30 = vmul.f32 %v1408_v29, %v1233_v28  ;;  %vm1240_vm7 = vweird.f32 %v1408_v29 }
 0xb0d   :  { %vm1241_vm9 = vmor %vm1239_vm8, %vm1240_vm7 }
 0xb0e   :  { %v1236_v31 = vsub.f32 1.0, %v1235_v30 }
 0xb10   :  { %v1237_v33 = vmul.f32 %v1408_v29, %v1236_v31 }
 0xb12   :  { %v1238_v35 = vadd.f32 %v1408_v29, %v1237_v33 }
 0xb14   :  { %v1242_v37 = vsel %vm1241_vm9, %v1408_v29, %v1238_v35 }
 0xb15   :  { %v1247_v38 = vsel %vm1244_vm11, %v1246_v36, %v1242_v37 }
 0xb16   :  { %v1248_v17 = vmul.f32 %v1402_v6, %v1247_v38 }
 0xb18   :  { %1250 = vrot.lane.b32.xlu2 %v1248_v17, %s1473_s15 }
 0xb72   :  { %v1251_v40 = vpop.permute.xlu2 %1250 }
 0xb73   :  { %1253 = vst.msk [vmem:[#allocation4] sm:$0x3] %vm1230_vm1, %v1251_v40 }
 0xb74   :  { %1275 = dma.vmem_to_hbm [thread:$0]  %s1271_s6, 32, %s1273_s24, [#allocation5]  }
 0xb75   :  { %1457 = dma.done.wait [#allocation3], 32  }
 0xb76   :  { %1458 = vsyncadd [#allocation3], 4294967264 }
 0xb77   :  { %1459 = dma.done.wait [#allocation5], 32  }
 0xb78   :  { %1460 = vsyncadd [#allocation5], 4294967264 }
 0xb79   :  { %1284 = vsyncpa [#allocation3], 1 }
 0xb7a   :  { %1285 = vsyncpa [#allocation5], 1 }

// kernel: _lambda_.6
= control target key start
LH: loop header
LB: loop body
LE: loop exit
PB: predicated region body
PF: predicated region fallthrough
CT: control target
= control target key end

     0   :  { %s4279_s0 = inlined_call_operand.vmem [shape: f32[2,10,16], index: 0, kind: input, shape index: {}]   ;;  %s4280_s1 = inlined_call_operand.vmem [shape: f32[2,8,32], index: 1, kind: input, shape index: {}]   ;;  %s4281_s2 = inlined_call_operand.vmem [shape: f32[2,8], index: 2, kind: input, shape index: {}]   ;;  %s4282_s3 = inlined_call_operand.vmem [shape: f32[2,8], index: 3, kind: input, shape index: {}]   ;;  %s4283_s4 = inlined_call_operand.vmem [shape: f32[16,16], index: 4, kind: input, shape index: {}]   ;;  %s4284_s5 = inlined_call_operand.vmem [shape: f32[16,16], index: 5, kind: input, shape index: {}]   ;;  %s4285_s6 = inlined_call_operand.vmem [shape: f32[16,16], index: 6, kind: input, shape index: {}]   ;;  %s4286_s7 = inlined_call_operand.vmem [shape: f32[1,16], index: 7, kind: input, shape index: {}]   ;;  %s4287_s8 = inlined_call_operand.vmem [shape: f32[16,32], index: 8, kind: input, shape index: {}]   ;;  %s4288_s9 = inlined_call_operand.vmem [shape: f32[1,32], index: 9, kind: input, shape index: {}]   ;;  %s4289_s10 = inlined_call_operand.vmem [shape: f32[32,32], index: 10, kind: input, shape index: {}]   ;;  %s4290_s11 = inlined_call_operand.hbm [shape: f32[1,32], index: 11, kind: input, shape index: {}]   ;;  %s4291_s12 = inlined_call_operand.vmem [shape: f32[1,32], index: 12, kind: input, shape index: {}]   ;;  %s4292_s13 = inlined_call_operand.vmem [shape: f32[32,32], index: 13, kind: input, shape index: {}]   ;;  %s4293_s14 = inlined_call_operand.hbm [shape: f32[1,32], index: 14, kind: input, shape index: {}]   ;;  %s4294_s15 = inlined_call_operand.vmem [shape: f32[32,64], index: 15, kind: input, shape index: {}]   ;;  %s4295_s16 = inlined_call_operand.vmem [shape: f32[1,64], index: 16, kind: input, shape index: {}]   ;;  %s4296_s17 = inlined_call_operand.vmem [shape: f32[32,32], index: 17, kind: input, shape index: {}]   ;;  %s4297_s18 = inlined_call_operand.hbm [shape: f32[1,32], index: 18, kind: input, shape index: {}]   ;;  %s4298_s19 = inlined_call_operand.vmem [shape: f32[32,32], index: 19, kind: input, shape index: {}]   ;;  %s4299_s20 = inlined_call_operand.vmem [shape: f32[1,32], index: 20, kind: input, shape index: {}]   ;;  %s4300_s21 = inlined_call_operand.vmem [shape: f32[16,32], index: 21, kind: input, shape index: {}]   ;;  %s4301_s22 = inlined_call_operand.vmem [shape: f32[1,32], index: 22, kind: input, shape index: {}]   ;;  %s4302_s23 = inlined_call_operand.vmem [shape: f32[4,32], index: 23, kind: input, shape index: {}]   ;;  %s4303_s24 = inlined_call_operand.vmem [shape: f32[8,32], index: 24, kind: input, shape index: {}]   ;;  %s4304_s25 = inlined_call_operand.vmem [shape: f32[1,32], index: 25, kind: input, shape index: {}]   ;;  %s4305_s26 = inlined_call_operand.hbm [shape: f32[2,8,16], index: 26, kind: output, shape index: {0}]   ;;  %s4306_s27 = inlined_call_operand.vmem [shape: f32[2,16], index: 27, kind: output, shape index: {1}]  }
   0x1   :  { %4314 = sst [smem:[#allocation12_spill]] %s4279_s0 }
   0x2   :  { %4315 = sst [smem:[#allocation13_spill]] %s4280_s1 }
   0x3   :  { %4316 = sst [smem:[#allocation14_spill]] %s4281_s2 }
   0x4   :  { %4317 = sst [smem:[#allocation15_spill]] %s4282_s3 }
   0x5   :  { %4318 = sst [smem:[#allocation16_spill]] %s4283_s4 }
   0x6   :  { %4319 = sst [smem:[#allocation17_spill]] %s4284_s5 }
   0x7   :  { %4320 = sst [smem:[#allocation18_spill]] %s4285_s6 }
   0x8   :  { %4321 = sst [smem:[#allocation19_spill]] %s4286_s7 }
   0x9   :  { %4322 = sst [smem:[#allocation20_spill]] %s4287_s8 }
   0xa   :  { %4323 = sst [smem:[#allocation21_spill]] %s4288_s9 }
   0xb   :  { %4324 = sst [smem:[#allocation22_spill]] %s4289_s10 }
   0xc   :  { %4325 = sst [smem:[#allocation23_spill]] %s4290_s11 }
   0xd   :  { %33 = vsyncpa [#allocation3], 0 }
   0xe   :  { %34 = vsyncpa [#allocation6], 0  ;;  %s78_s8 = sshll.u32 %s4293_s14, 4  ;;  %s79_s8 = int_to_ptr.hbm [resolvable:$true] %s78_s8 }
   0xf   :  { %35 = vsyncpa [#allocation4], 0  ;;  %s3285_s30 = smov [#allocation5]   ;;  %s4326_s0 = sld [smem:[#allocation23_spill]] }
  0x10   :  { %s80_s9 = sshll.u32 %s3285_s30, 4  ;;  %s3286_s29 = smov [#allocation2]   ;;  %s81_s9 = int_to_ptr.vmem [resolvable:$true] %s80_s9 }
  0x11   :  { %83 = dma.hbm_to_vmem [thread:$0]  %s79_s8, 16, %s81_s9, [#allocation6]  }
  0x12   :  { %s65_s1 = sshll.u32 %s3286_s29, 4  ;;  %s95_s2 = sshll.u32 %s4297_s18, 4  ;;  %s66_s1 = int_to_ptr.vmem [resolvable:$true] %s65_s1  ;;  %s96_s2 = int_to_ptr.hbm [resolvable:$true] %s95_s2 }
  0x13   :  { %s3287_s14 = smov [#allocation7]  }
  0x14   :  { %s97_s3 = sshll.u32 %s3287_s14, 4  ;;  %s98_s3 = int_to_ptr.vmem [resolvable:$true] %s97_s3 }
  0x15   :  { %s63_s10 = sshll.u32 %s4326_s0, 4  ;;  %s64_s10 = int_to_ptr.hbm [resolvable:$true] %s63_s10 }
  0x16   :  { %68 = dma.hbm_to_vmem [thread:$0]  %s64_s10, 16, %s66_s1, [#allocation3]  }
  0x17   :  { %100 = dma.hbm_to_vmem [thread:$0]  %s96_s2, 16, %s98_s3, [#allocation6]  }
  0x18   :  { %3279 = dma.done.wait [#allocation3], 16  }
  0x19   :  { %3280 = vsyncadd [#allocation3], 4294967280 }
  0x1a   :  { %3281 = dma.done.wait [#allocation6], 32  }
  0x1b   :  { %3282 = vsyncadd [#allocation6], 4294967264  ;;  %s4327_s8 = sld [smem:[#allocation17_spill]]  ;;  %vm153_vm0 = vcmask 130048   ;;  %vm135_vm1 = vcmask 1046528   ;;  %vm142_vm2 = vcmask 1045504   ;;  %v468_v37 = vlaneseq }
  0x1c   :  { %s4328_s5 = sld [smem:[#allocation16_spill]]  ;;  %v332_v8 = vld [vmem:[%s4292_s13 + $0x18] sm:$0xff]  ;;  %v331_v14 = vld [vmem:[%s4292_s13 + $0x10] sm:$0xff]  ;;  %v330_v20 = vld [vmem:[%s4292_s13 + $0x8] sm:$0xff]  ;;  %vm296_vm3 = vcmask 261120   ;;  %s3291_s30 = smov 112  }
  0x1d   :  { %s4329_s0 = sld [smem:[#allocation18_spill]]  ;;  %v329_v25 = vld [vmem:[%s4292_s13] sm:$0xff]  ;;  %v360_v26 = vld [vmem:[%s4294_s15 + $0x18] sm:$0xff]  ;;  %v359_v27 = vld [vmem:[%s4294_s15 + $0x10] sm:$0xff]  ;;  %v3541_v38 = vshrl.u32 %v468_v37, 7  ;;  %vm515_vm6 = vcmask 57344  }
  0x1e   :  { %s4330_s7 = sld [smem:[#allocation12_spill]]  ;;  %v358_v32 = vld [vmem:[%s4294_s15 + $0x8] sm:$0xff]  ;;  %v357_v33 = vld [vmem:[%s4294_s15] sm:$0xff]  ;;  %v3288_v41 = vmov -1e+30   ;;  %vm457_vm7 = vcmask 64512  }
  0x1f   :  { %s4331_s11 = sld [smem:[#allocation22_spill]]  ;;  %v328_v34 = vld [vmem:[%s4291_s12] sm:$0x1]  ;;  %2961 = vset.pattern.permute.xlu2 %v3541_v38  ;;  %2963 = vset.pattern.permute.xlu1 %v3541_v38  ;;  %vm532_vm8 = vcmask 1041409   ;;  %vm535_vm9 = vcmask 58368   ;;  %s3294_s18 = smov 80  }
  0x20   :  { %s4332_s4 = sld [smem:[#allocation13_spill]]  ;;  %2962 = vset.pattern.permute.xlu0 %v3541_v38  ;;  %s3295_s10 = smov 72  }
  0x21   :  { %v152_v0 = vld [vmem:[%s4327_s8 + $0x8] sm:$0xff]  ;;  %v151_v3 = vld [vmem:[%s4327_s8] sm:$0xff]  ;;  %s4333_s9 = sld [smem:[#allocation14_spill]]  ;;  %s3296_s29 = smov 88  }
  0x22   :  { %v150_v1 = vld [vmem:[%s4328_s5 + $0x8] sm:$0xff]  ;;  %172 = vmatpush.msra.mxu0 %v152_v0  ;;  %v149_v4 = vld [vmem:[%s4328_s5] sm:$0xff]  ;;  %s4334_s28 = sld [smem:[#allocation20_spill]]  ;;  %s3298_s6 = smov 8  }
  0x23   :  { %v209_v2 = vld [vmem:[%s4329_s0 + $0x8] sm:$0xff]  ;;  %199 = vmatpush.msra.mxu1 %v150_v1  ;;  %v208_v5 = vld [vmem:[%s4329_s0] sm:$0xff]  ;;  %s4335_s1 = sld [smem:[#allocation15_spill]]  ;;  %s2880_s8 = sshll.u32 %s4305_s26, 4  ;;  %s2881_s8 = int_to_ptr.hbm [resolvable:$true] %s2880_s8 }
  0x24   :  { %228 = vmatpush.msra.mxu2 %v209_v2  ;;  %v127_v6 = vld [vmem:[%s4330_s7] sm:$0xff]  ;;  %v128_v7 = vld [vmem:[%s4330_s7 + $0x8] sm:$0x3]  ;;  %173 = vmatpush.msra.mxu0 %v151_v3  ;;  %v129_v13 = vld [vmem:[%s4330_s7 + $0x10] sm:$0xff]  ;;  %s4336_s2 = sld [smem:[#allocation19_spill]]  ;;  %s3301_s12 = smov 128  }
  0x25   :  { %200 = vmatpush.msra.mxu1 %v149_v4  ;;  %v136_v9 = vrot.slane %v127_v6, 1  ;;  %v137_v10 = vrot.slane %v128_v7, 1  ;;  %v143_v11 = vrot.slane %v127_v6, 2  ;;  %v144_v12 = vrot.slane %v128_v7, 2  ;;  %v130_v15 = vld [vmem:[%s4330_s7 + $0x18] sm:$0x3] }
  0x26   :  { %229 = vmatpush.msra.mxu2 %v208_v5  ;;  %2900 = vmatmul.msk.f32.vlgmr.msra.gmra.mxu1 %vm153_vm0, %v127_v6  ;;  %v291_v18 = vld [vmem:[%s4331_s11 + $0x18] sm:$0xff]  ;;  %v139_v19 = vrot.slane %v129_v13, 1  ;;  %v290_v21 = vld [vmem:[%s4331_s11 + $0x10] sm:$0xff]  ;;  %v140_v22 = vrot.slane %v130_v15, 1  ;;  %v146_v23 = vrot.slane %v129_v13, 2  ;;  %v147_v24 = vrot.slane %v130_v15, 2 }
  0x27   :  { %v138_v16 = vsel %vm135_vm1, %v136_v9, %v137_v10  ;;  %v145_v17 = vsel %vm142_vm2, %v143_v11, %v144_v12  ;;  %349 = vmatpush.msrb.mxu1 %v332_v8  ;;  %315 = vmatpush.msrb.mxu0 %v291_v18  ;;  %v289_v28 = vld [vmem:[%s4331_s11 + $0x8] sm:$0xff]  ;;  %v288_v29 = vld [vmem:[%s4331_s11] sm:$0xff]  ;;  %s3289_s7 = smov 120   ;;  %s4337_s15 = sld [smem:[#allocation21_spill]] }
  0x28   :  { %2898 = vmatmul.msk.f32.vlgmr.msra.gmra.mxu0 %vm153_vm0, %v138_v16  ;;  %2902 = vmatmul.msk.f32.vlgmr.msra.gmra.mxu2 %vm153_vm0, %v145_v17  ;;  %v141_v30 = vsel %vm135_vm1, %v139_v19, %v140_v22  ;;  %v148_v31 = vsel %vm142_vm2, %v146_v23, %v147_v24  ;;  %v286_v35 = vld [vmem:[%s4332_s4] sm:$0xff]  ;;  %v287_v36 = vld [vmem:[%s4332_s4 + $0x8] sm:$0xff]  ;;  %s3290_s4 = smov 104   ;;  %s3299_s11 = smov 16  }
  0x29   :  { %350 = vmatpush.msrb.mxu1 %v331_v14  ;;  %383 = vmatpush.msrb.mxu2 %v360_v26  ;;  %v443_v39 = vld [vmem:[%s4333_s9] sm:$0x3]  ;;  %v250_v40 = vld [vmem:[%s4334_s28 + $0x8] sm:$0xff]  ;;  %v333_v4 = vld [vmem:[#allocation5] sm:$0x1] }
  0x2a   :  { %316 = vmatpush.msrb.mxu0 %v290_v21  ;;  %vm444_vm4 = vcmp.gt.f32.partialorder %v443_v39, 0.5  ;;  %275 = vmatpush.msra.mxu3 %v250_v40  ;;  %v249_v43 = vld [vmem:[%s4334_s28] sm:$0xff] }
  0x2b   :  { %351 = vmatpush.msrb.mxu1 %v330_v20  ;;  %384 = vmatpush.msrb.mxu2 %v359_v27  ;;  %v445_v42 = vsel %vm444_vm4, 0.0, %v3288_v41  ;;  %v446_v45 = vld [vmem:[%s4335_s1] sm:$0x3] }
  0x2c   :  { %317 = vmatpush.msrb.mxu0 %v289_v28  ;;  %v467_v44 = vperm.slane %v445_v42, 0  ;;  %276 = vmatpush.msra.mxu3 %v249_v43  ;;  %vm447_vm5 = vcmp.gt.f32.partialorder %v446_v45, 0.5  ;;  %v474_v49 = vperm.slane %v445_v42, 1  ;;  %v2970_v53 = vld [vmem:[%s4336_s2] ss:$0 sm:$0xff] }
  0x2d   :  { %352 = vmatpush.msrb.mxu1 %v329_v25  ;;  %385 = vmatpush.msrb.mxu2 %v358_v32  ;;  %v448_v46 = vsel %vm447_vm5, 0.0, %v3288_v41  ;;  %v2971_v2 = vld [vmem:[#allocation2] ss:$0 sm:$0xff] }
  0x2e   :  { %2901 = vmatmul.msk.f32.gmra.mxu1 %vm153_vm0, %v129_v13  ;;  %318 = vmatpush.msrb.mxu0 %v288_v29  ;;  %v496_v47 = vperm.slane %v448_v46, 0  ;;  %v503_v48 = vperm.slane %v448_v46, 1  ;;  %v361_v5 = vld [vmem:[%s4295_s16] sm:$0x1] }
  0x2f   :  { %435 = vmatpush.msra.mxu1 %v360_v26  ;;  %386 = vmatpush.msrb.mxu2 %v357_v33  ;;  %v2973_v21 = vld [vmem:[%s4337_s15] ss:$0 sm:$0xff] }
  0x30   :  { %2899 = vmatmul.msk.f32.gmra.mxu0 %vm153_vm0, %v141_v30  ;;  %2903 = vmatmul.msk.f32.gmra.mxu2 %vm153_vm0, %v148_v31 }
  0x31   :  { %436 = vmatpush.msra.mxu1 %v359_v27  ;;  %472 = vperm.xlu2 %2961, %v467_v44  }
  0x32   :  { %412 = vmatpush.msrb.mxu3 %v360_v26  ;;  %501 = vperm.xlu1 %2963, %v496_v47  }
  0x33   :  { %437 = vmatpush.msra.mxu1 %v358_v32  ;;  %479 = vperm.xlu0 %2962, %v474_v49  }
  0x34   :  { %413 = vmatpush.msrb.mxu3 %v359_v27 }
  0x35   :  { %438 = vmatpush.msra.mxu1 %v357_v33 }
  0x36   :  { %2908 = vmatmul.msk.f32.vlgmr.msrb.gmra.mxu1 %vm296_vm3, %v328_v34  ;;  %414 = vmatpush.msrb.mxu3 %v358_v32 }
  0x38   :  { %2906 = vmatmul.msk.f32.vlgmr.msrb.gmra.mxu0 %vm296_vm3, %v286_v35  ;;  %415 = vmatpush.msrb.mxu3 %v357_v33  ;;  %v2972_v33 = vld [vmem:[%s4295_s16] ss:$0 sm:$0xff]  ;;  %s3293_s16 = smov 96  }
  0x39   :  { %508 = vperm.xlu2 %2961, %v503_v48  }
  0x3e   :  { %2913 = vmatmul.msk.f32.vlgmr.msra.gmra.mxu1 %vm296_vm3, %v328_v34 }
  0x40   :  { %2907 = vmatmul.msk.f32.gmra.mxu0 %vm296_vm3, %v287_v36 }
  0x8b   :  { %v3585_v16 = vpop.permute.xlu2 %472 }
  0x93   :  { %v3591_v19 = vpop.permute.xlu2 %508 }
  0xa3   :  { %v202_v50 = vpop.f32.mrf.mxu1 }
  0xa4   :  { %v3589_v18 = vpop.permute.xlu1 %501 }
  0xa5   :  { %v175_v51 = vpop.f32.mrf.mxu0  ;;  %v3587_v17 = vpop.permute.xlu0 %479 }
  0xa6   :  { %v203_v52 = vadd.f32 %v202_v50, %v175_v51 }
  0xab   :  { %v231_v54 = vpop.f32.mrf.mxu2  ;;  %v205_v55 = vpop.f32.mrf.mxu1 }
  0xac   :  { %v237_v56 = vadd.f32 %v231_v54, %v203_v52 }
  0xad   :  { %v178_v57 = vpop.f32.mrf.mxu0 }
  0xae   :  { %v243_v58 = vadd.f32 %v2970_v53, %v237_v56  ;;  %v206_v60 = vadd.f32 %v205_v55, %v178_v57 }
  0xb0   :  { %v3561_v59 = vmax.f32 %v243_v58, 0.0 }
  0xb2   :  { %247 = vst.msk [vmem:[#allocation8] sm:$0xff] %vm153_vm0, %v3561_v59  ;;  %2904 = vmatmul.msk.f32.vlgmr.msra.gmra.mxu3 %vm153_vm0, %v3561_v59 }
  0xb3   :  { %v234_v61 = vpop.f32.mrf.mxu2  ;;  %v354_v62 = vpop.f32.mrf.mxu1 }
  0xb4   :  { %v238_v63 = vadd.f32 %v234_v61, %v206_v60  ;;  %v355_v8 = vadd.f32 %v354_v62, %v333_v4 }
  0xb5   :  { %v320_v0 = vpop.f32.mrf.mxu0 }
  0xb6   :  { %v244_v1 = vadd.f32 %v2970_v53, %v238_v63  ;;  %v321_v6 = vadd.f32 %v2971_v2, %v320_v0  ;;  %v454_v35 = vperm.slane %v355_v8, 0  ;;  %v3292_v53 = vmov 0  }
  0xb7   :  { %2964 = vset.pattern.permute.xlu2 %v3292_v53  ;;  %2965 = vset.pattern.permute.xlu1 %v3292_v53 }
  0xb8   :  { %v3567_v3 = vmax.f32 %v244_v1, 0.0  ;;  %v326_v10 = vmax.f32 %v321_v6, 0.0  ;;  %2966 = vset.pattern.permute.xlu0 %v3292_v53 }
  0xba   :  { %248 = vst.msk [vmem:[#allocation8 + $0x8] sm:$0xff] %vm153_vm0, %v3567_v3  ;;  %2905 = vmatmul.msk.f32.gmra.mxu3 %vm153_vm0, %v3567_v3 }
  0xbb   :  { %v440_v7 = vpop.f32.mrf.mxu1 }
  0xbc   :  { %v3576_v9 = vadd.f32 %v440_v7, %v361_v5 }
  0xbd   :  { %v323_v12 = vpop.f32.mrf.mxu0 }
  0xbe   :  { %v514_v11 = vmul.f32 %v3576_v9, %v355_v8  ;;  %v324_v13 = vadd.f32 %v2971_v2, %v323_v12 }
  0xc0   :  { %766 = vrot.lane.b32.xlu2 %v514_v11, %s3289_s7  ;;  %1246 = vrot.lane.b32.xlu0 %v514_v11, %s3290_s4  ;;  %v327_v14 = vmax.f32 %v324_v13, 0.0  ;;  %v516_v15 = vsel %vm515_vm6, %v514_v11, 0.0 }
  0xc1   :  { %1006 = vrot.lane.b32.xlu1 %v514_v11, %s3291_s30 }
  0xc2   :  { %2911 = vmatmul.msk.f32.vlgmr.msrb.gmra.mxu3 %vm296_vm3, %v326_v10 }
  0xca   :  { %2912 = vmatmul.msk.f32.gmra.mxu3 %vm296_vm3, %v327_v14 }
  0xeb   :  { %517 = vadd.xlane.f32.xlu1 %v516_v15 }
 0x11a   :  { %v767_v27 = vpop.permute.xlu2 %766 }
 0x11b   :  { %v769_v29 = vsel %vm515_vm6, %v767_v27, 0.0 }
 0x132   :  { %v1247_v20 = vpop.permute.xlu0 %1246 }
 0x133   :  { %v1007_v22 = vpop.permute.xlu1 %1006  ;;  %v1249_v23 = vsel %vm515_vm6, %v1247_v20, 0.0 }
 0x134   :  { %v1009_v24 = vsel %vm515_vm6, %v1007_v22, 0.0  ;;  %1250 = vadd.xlane.f32.xlu1 %v1249_v23 }
 0x135   :  { %v278_v25 = vpop.f32.mrf.mxu3  ;;  %1010 = vadd.xlane.f32.xlu0 %v1009_v24 }
 0x136   :  { %v279_v26 = vadd.f32 %v2973_v21, %v278_v25 }
 0x138   :  { %v284_v28 = vmax.f32 %v279_v26, 0.0 }
 0x13a   :  { %2909 = vmatmul.msk.f32.vlgmr.msrb.gmra.mxu2 %vm296_vm3, %v284_v28 }
 0x13c   :  { %770 = vadd.xlane.f32.xlu1 %v769_v29 }
 0x13d   :  { %v281_v30 = vpop.f32.mrf.mxu3 }
 0x13e   :  { %v282_v31 = vadd.f32 %v2973_v21, %v281_v30 }
 0x140   :  { %v285_v32 = vmax.f32 %v282_v31, 0.0 }
 0x142   :  { %2910 = vmatmul.msk.f32.gmra.mxu2 %vm296_vm3, %v285_v32 }
 0x145   :  { %v417_v34 = vpop.f32.mrf.mxu3 }
 0x146   :  { %v3604_v36 = vadd.f32 %v2972_v33, %v417_v34 }
 0x148   :  { %v485_v39 = vmul.f32 %v454_v35, %v3604_v36 }
 0x14a   :  { %1230 = vrot.lane.b32.xlu0 %v485_v39, %s3290_s4  ;;  %v487_v40 = vsel %vm457_vm7, %v485_v39, 0.0 }
 0x14b   :  { %488 = vadd.xlane.f32.xlu2 %v487_v40 }
 0x14d   :  { %v420_v41 = vpop.f32.mrf.mxu3 }
 0x14e   :  { %v3610_v42 = vadd.f32 %v2972_v33, %v420_v41 }
 0x150   :  { %v486_v43 = vmul.f32 %v454_v35, %v3610_v42 }
 0x152   :  { %v490_v44 = vsel %vm457_vm7, %v486_v43, 0.0 }
 0x155   :  { %990 = vrot.lane.b32.xlu1 %v485_v39, %s3291_s30 }
 0x15d   :  { %749 = vrot.lane.b32.xlu1 %v485_v39, %s3289_s7 }
 0x15e   :  { %v3618_v45 = vpop.xlane.xlu1 %517 }
 0x163   :  { %751 = vrot.lane.b32.xlu2 %v486_v43, %s3289_s7 }
 0x165   :  { %992 = vrot.lane.b32.xlu1 %v486_v43, %s3291_s30 }
 0x16d   :  { %1232 = vrot.lane.b32.xlu1 %v486_v43, %s3290_s4 }
 0x174   :  { %491 = vadd.xlane.f32.xlu0 %v490_v44 }
 0x1a7   :  { %v3622_v47 = vpop.xlane.xlu1 %1250 }
 0x1a8   :  { %v3620_v46 = vpop.xlane.xlu0 %1010 }
 0x1af   :  { %v3625_v50 = vpop.xlane.xlu1 %770 }
 0x1bc   :  { %v1231_v48 = vpop.permute.xlu0 %1230 }
 0x1bd   :  { %v1236_v49 = vsel %vm457_vm7, %v1231_v48, 0.0  ;;  %v388_v57 = vpop.f32.mrf.mxu2  ;;  %v3674_v48 = vand.u32 127, %v468_v37 }
 0x1be   :  { %1237 = vadd.xlane.f32.xlu0 %v1236_v49  ;;  %v3629_v58 = vadd.f32 %v2972_v33, %v388_v57  ;;  %v489_v60 = vpop.xlane.xlu2 %488 }
 0x1bf   :  { %v493_v5 = vmul.f32 0.35355338, %v489_v60 }
 0x1c0   :  { %v455_v62 = vmul.f32 %v454_v35, %v3629_v58 }
 0x1c1   :  { %v3641_v7 = vadd.f32 %v3589_v18, %v493_v5 }
 0x1c2   :  { %v458_v13 = vsel %vm457_vm7, %v455_v62, 0.0 }
 0x1c5   :  { %v391_v0 = vpop.f32.mrf.mxu2 }
 0x1c6   :  { %v752_v1 = vpop.permute.xlu2 %751  ;;  %v3635_v2 = vadd.f32 %v2972_v33, %v391_v0 }
 0x1c7   :  { %v991_v51 = vpop.permute.xlu1 %990  ;;  %v758_v4 = vsel %vm457_vm7, %v752_v1, 0.0 }
 0x1c8   :  { %v996_v52 = vsel %vm457_vm7, %v991_v51, 0.0  ;;  %v456_v6 = vmul.f32 %v454_v35, %v3635_v2 }
 0x1c9   :  { %997 = vadd.xlane.f32.xlu2 %v996_v52 }
 0x1ca   :  { %v461_v8 = vsel %vm457_vm7, %v456_v6, 0.0 }
 0x1cf   :  { %v750_v54 = vpop.permute.xlu1 %749 }
 0x1d0   :  { %v755_v55 = vsel %vm457_vm7, %v750_v54, 0.0 }
 0x1d1   :  { %756 = vadd.xlane.f32.xlu0 %v755_v55 }
 0x1d7   :  { %v993_v56 = vpop.permute.xlu1 %992 }
 0x1d8   :  { %v999_v14 = vsel %vm457_vm7, %v993_v56, 0.0 }
 0x1df   :  { %v1233_v61 = vpop.permute.xlu1 %1232 }
 0x1e0   :  { %v1239_v63 = vsel %vm457_vm7, %v1233_v61, 0.0 }
 0x1e1   :  { %1240 = vadd.xlane.f32.xlu1 %v1239_v63  ;;  %1214 = vrot.lane.b32.xlu2 %v455_v62, %s3290_s4 }
 0x1e5   :  { %974 = vrot.lane.b32.xlu0 %v455_v62, %s3291_s30 }
 0x1e7   :  { %v492_v10 = vpop.xlane.xlu0 %491 }
 0x1e8   :  { %v494_v11 = vmul.f32 0.35355338, %v492_v10 }
 0x1e9   :  { %731 = vrot.lane.b32.xlu2 %v455_v62, %s3289_s7  ;;  %759 = vadd.xlane.f32.xlu1 %v758_v4 }
 0x1ea   :  { %v3646_v12 = vadd.f32 %v3591_v19, %v494_v11 }
 0x1f1   :  { %542 = vperm.xlu2 %2964, %v3641_v7   ;;  %462 = vadd.xlane.f32.xlu1 %v461_v8 }
 0x20a   :  { %545 = vperm.xlu1 %2965, %v3646_v12  }
 0x20f   :  { %459 = vadd.xlane.f32.xlu0 %v458_v13 }
 0x21a   :  { %1000 = vadd.xlane.f32.xlu2 %v999_v14 }
 0x223   :  { %976 = vrot.lane.b32.xlu0 %v456_v6, %s3291_s30 }
 0x22b   :  { %733 = vrot.lane.b32.xlu0 %v456_v6, %s3289_s7 }
 0x231   :  { %v1238_v22 = vpop.xlane.xlu0 %1237 }
 0x232   :  { %1216 = vrot.lane.b32.xlu2 %v456_v6, %s3290_s4  ;;  %v1242_v28 = vmul.f32 0.35355338, %v1238_v22 }
 0x234   :  { %v3658_v29 = vadd.f32 %v1242_v28, %v3589_v18 }
 0x23c   :  { %v998_v15 = vpop.xlane.xlu2 %997 }
 0x23d   :  { %v1002_v30 = vmul.f32 0.35355338, %v998_v15 }
 0x23f   :  { %v3662_v31 = vadd.f32 %v1002_v30, %v3589_v18 }
 0x244   :  { %v1215_v20 = vpop.permute.xlu2 %1214  ;;  %v757_v25 = vpop.xlane.xlu0 %756 }
 0x245   :  { %v1220_v21 = vsel %vm457_vm7, %v1215_v20, 0.0  ;;  %v761_v32 = vmul.f32 0.35355338, %v757_v25 }
 0x246   :  { %1221 = vadd.xlane.f32.xlu1 %v1220_v21 }
 0x247   :  { %v3666_v33 = vadd.f32 %v761_v32, %v3589_v18 }
 0x24c   :  { %v732_v23 = vpop.permute.xlu2 %731 }
 0x24d   :  { %v737_v24 = vsel %vm457_vm7, %v732_v23, 0.0 }
 0x24e   :  { %738 = vadd.xlane.f32.xlu1 %v737_v24 }
 0x254   :  { %v1241_v34 = vpop.xlane.xlu1 %1240  ;;  %v543_v51 = vpop.permute.xlu2 %542 }
 0x255   :  { %v547_v53 = vperm.slane %v543_v51, %v3674_v48  ;;  %v1243_v13 = vmul.f32 0.35355338, %v1241_v34 }
 0x257   :  { %v975_v26 = vpop.permute.xlu0 %974  ;;  %v3700_v14 = vadd.f32 %v1243_v13, %v3591_v19 }
 0x258   :  { %v980_v27 = vsel %vm457_vm7, %v975_v26, 0.0 }
 0x259   :  { %981 = vadd.xlane.f32.xlu0 %v980_v27 }
 0x25c   :  { %v760_v35 = vpop.xlane.xlu1 %759 }
 0x25d   :  { %v762_v57 = vmul.f32 0.35355338, %v760_v35 }
 0x25f   :  { %v3682_v60 = vadd.f32 %v762_v57, %v3591_v19 }
 0x264   :  { %v463_v43 = vpop.xlane.xlu1 %462 }
 0x265   :  { %v465_v62 = vmul.f32 0.35355338, %v463_v43 }
 0x267   :  { %1271 = vperm.xlu1 %2965, %v3658_v29   ;;  %v3687_v0 = vadd.f32 %v3587_v17, %v465_v62 }
 0x26d   :  { %1031 = vperm.xlu0 %2966, %v3662_v31  }
 0x275   :  { %791 = vperm.xlu0 %2966, %v3666_v33  }
 0x27c   :  { %v546_v44 = vpop.permute.xlu1 %545 }
 0x27d   :  { %v548_v52 = vperm.slane %v546_v44, %v3674_v48 }
 0x27f   :  { %v549_v54 = vsel %vm532_vm8, %v548_v52, %v547_v53 }
 0x280   :  { %v551_v55 = vsel %vm535_vm9, %v549_v54, -inf }
 0x282   :  { %v460_v39 = vpop.xlane.xlu0 %459 }
 0x283   :  { %v464_v40 = vmul.f32 0.35355338, %v460_v39 }
 0x285   :  { %v3670_v41 = vadd.f32 %v3585_v16, %v464_v40 }
 0x287   :  { %523 = vperm.xlu2 %2964, %v3670_v41  }
 0x28d   :  { %v1001_v56 = vpop.xlane.xlu2 %1000 }
 0x28e   :  { %v1003_v10 = vmul.f32 0.35355338, %v1001_v56 }
 0x290   :  { %v3696_v11 = vadd.f32 %v1003_v10, %v3591_v19 }
 0x295   :  { %v977_v49 = vpop.permute.xlu0 %976  ;;  %v1217_v37 = vpop.permute.xlu2 %1216 }
 0x296   :  { %v983_v18 = vsel %vm457_vm7, %v977_v49, 0.0  ;;  %v1223_v61 = vsel %vm457_vm7, %v1217_v37, 0.0 }
 0x297   :  { %984 = vadd.xlane.f32.xlu1 %v983_v18 }
 0x29d   :  { %v734_v63 = vpop.permute.xlu0 %733 }
 0x29e   :  { %v740_v1 = vsel %vm457_vm7, %v734_v63, 0.0 }
 0x29f   :  { %552 = vmax.xlane.f32.xlu0 %v551_v55 }
 0x2b0   :  { %1224 = vadd.xlane.f32.xlu2 %v1223_v61  ;;  %794 = vperm.xlu1 %2965, %v3682_v60  }
 0x2b8   :  { %741 = vadd.xlane.f32.xlu2 %v740_v1  ;;  %526 = vperm.xlu1 %2965, %v3687_v0  }
 0x2b9   :  { %v1222_v4 = vpop.xlane.xlu1 %1221 }
 0x2ba   :  { %v1226_v22 = vmul.f32 0.35355338, %v1222_v4 }
 0x2bc   :  { %v3708_v23 = vadd.f32 %v1226_v22, %v3585_v16 }
 0x2c1   :  { %v739_v5 = vpop.xlane.xlu1 %738 }
 0x2c2   :  { %v743_v6 = vmul.f32 0.35355338, %v739_v5 }
 0x2c4   :  { %v3692_v8 = vadd.f32 %v743_v6, %v3585_v16 }
 0x2c6   :  { %776 = vperm.xlu1 %2965, %v3692_v8  }
 0x2cc   :  { %v982_v15 = vpop.xlane.xlu0 %981 }
 0x2cd   :  { %v986_v20 = vmul.f32 0.35355338, %v982_v15 }
 0x2cf   :  { %v3704_v21 = vadd.f32 %v986_v20, %v3585_v16 }
 0x2d0   :  { %1034 = vperm.xlu2 %2964, %v3696_v11  }
 0x2d8   :  { %1274 = vperm.xlu2 %2964, %v3700_v14  }
 0x2d9   :  { %v1272_v24 = vpop.permute.xlu1 %1271 }
 0x2da   :  { %v1276_v5 = vperm.slane %v1272_v24, %v3674_v48 }
 0x2df   :  { %v1032_v27 = vpop.permute.xlu0 %1031 }
 0x2e0   :  { %1016 = vperm.xlu2 %2964, %v3704_v21   ;;  %v1036_v49 = vperm.slane %v1032_v27, %v3674_v48 }
 0x2e1   :  { %v524_v28 = vpop.permute.xlu2 %523 }
 0x2e2   :  { %v530_v61 = vperm.slane %v524_v28, %v3674_v48 }
 0x2e7   :  { %v792_v30 = vpop.permute.xlu0 %791 }
 0x2e8   :  { %1256 = vperm.xlu2 %2964, %v3708_v23   ;;  %v796_v34 = vperm.slane %v792_v30, %v3674_v48 }
 0x30a   :  { %v985_v25 = vpop.xlane.xlu1 %984 }
 0x30b   :  { %v987_v26 = vmul.f32 0.35355338, %v985_v25 }
 0x30d   :  { %v3712_v19 = vadd.f32 %v987_v26, %v3587_v17 }
 0x30f   :  { %1019 = vperm.xlu1 %2965, %v3712_v19  }
 0x322   :  { %v795_v32 = vpop.permute.xlu1 %794 }
 0x323   :  { %v797_v35 = vperm.slane %v795_v32, %v3674_v48  ;;  %v1225_v16 = vpop.xlane.xlu2 %1224 }
 0x324   :  { %v1227_v55 = vmul.f32 0.35355338, %v1225_v16  ;;  %v553_v16 = vpop.xlane.xlu0 %552 }
 0x325   :  { %v798_v39 = vsel %vm532_vm8, %v797_v35, %v796_v34 }
 0x326   :  { %v800_v40 = vsel %vm535_vm9, %v798_v39, -inf  ;;  %v3728_v56 = vadd.f32 %v1227_v55, %v3587_v17 }
 0x327   :  { %801 = vmax.xlane.f32.xlu2 %v800_v40 }
 0x32a   :  { %v527_v57 = vpop.permute.xlu1 %526 }
 0x32b   :  { %v742_v43 = vpop.xlane.xlu2 %741  ;;  %v531_v37 = vperm.slane %v527_v57, %v3674_v48 }
 0x32c   :  { %v744_v53 = vmul.f32 0.35355338, %v742_v43 }
 0x32d   :  { %v533_v62 = vsel %vm532_vm8, %v531_v37, %v530_v61 }
 0x32e   :  { %v3724_v54 = vadd.f32 %v744_v53, %v3587_v17  ;;  %v536_v63 = vsel %vm535_vm9, %v533_v62, -inf }
 0x333   :  { %v1035_v44 = vpop.permute.xlu2 %1034 }
 0x334   :  { %v1037_v51 = vperm.slane %v1035_v44, %v3674_v48 }
 0x336   :  { %v1038_v18 = vsel %vm532_vm8, %v1037_v51, %v1036_v49 }
 0x337   :  { %v1040_v52 = vsel %vm535_vm9, %v1038_v18, -inf  ;;  %v519_v18 = vmul.f32 0.35355338, %v3618_v45 }
 0x338   :  { %1041 = vmax.xlane.f32.xlu0 %v1040_v52  ;;  %v777_v10 = vpop.permute.xlu1 %776 }
 0x339   :  { %v781_v30 = vperm.slane %v777_v10, %v3674_v48  ;;  %v555_v53 = vperm.slane %v519_v18, 0 }
 0x33b   :  { %v1275_v1 = vpop.permute.xlu2 %1274 }
 0x33c   :  { %v1277_v4 = vperm.slane %v1275_v1, %v3674_v48 }
 0x33e   :  { %v1278_v17 = vsel %vm532_vm8, %v1277_v4, %v1276_v5 }
 0x33f   :  { %779 = vperm.xlu2 %2964, %v3724_v54   ;;  %v1280_v6 = vsel %vm535_vm9, %v1278_v17, -inf }
 0x343   :  { %v1017_v13 = vpop.permute.xlu2 %1016 }
 0x344   :  { %v1021_v20 = vperm.slane %v1017_v13, %v3674_v48 }
 0x34b   :  { %v1257_v27 = vpop.permute.xlu2 %1256 }
 0x34c   :  { %1259 = vperm.xlu0 %2966, %v3728_v56   ;;  %v1261_v43 = vperm.slane %v1257_v27, %v3674_v48 }
 0x368   :  { %537 = vmax.xlane.f32.xlu2 %v536_v63 }
 0x376   :  { %1281 = vmax.xlane.f32.xlu0 %v1280_v6 }
 0x381   :  { %v1020_v15 = vpop.permute.xlu1 %1019 }
 0x382   :  { %v1022_v22 = vperm.slane %v1020_v15, %v3674_v48 }
 0x384   :  { %v1023_v25 = vsel %vm532_vm8, %v1022_v22, %v1021_v20 }
 0x385   :  { %v1025_v26 = vsel %vm535_vm9, %v1023_v25, -inf }
 0x386   :  { %1026 = vmax.xlane.f32.xlu2 %v1025_v26 }
 0x39a   :  { %v3743_v28 = vpop.xlane.xlu2 %801 }
 0x3a2   :  { %v780_v24 = vpop.permute.xlu2 %779 }
 0x3a3   :  { %v782_v32 = vperm.slane %v780_v24, %v3674_v48 }
 0x3a5   :  { %v783_v34 = vsel %vm532_vm8, %v782_v32, %v781_v30 }
 0x3a6   :  { %v785_v35 = vsel %vm535_vm9, %v783_v34, -inf }
 0x3a7   :  { %786 = vmax.xlane.f32.xlu1 %v785_v35 }
 0x3ab   :  { %v1042_v39 = vpop.xlane.xlu0 %1041 }
 0x3be   :  { %v1260_v40 = vpop.permute.xlu0 %1259 }
 0x3bf   :  { %v1262_v44 = vperm.slane %v1260_v40, %v3674_v48 }
 0x3c1   :  { %v1263_v49 = vsel %vm532_vm8, %v1262_v44, %v1261_v43 }
 0x3c2   :  { %v1265_v51 = vsel %vm535_vm9, %v1263_v49, -inf }
 0x3c3   :  { %1266 = vmax.xlane.f32.xlu2 %v1265_v51 }
 0x3db   :  { %v538_v52 = vpop.xlane.xlu2 %537 }
 0x3dc   :  { %v554_v55 = vmax.f32 %v538_v52, %v553_v16 }
 0x3de   :  { %v556_v57 = vmax.f32 %v554_v55, %v555_v53 }
 0x3e0   :  { %v558_v37 = vperm.slane %v556_v57, 0  ;;  %v559_v61 = vperm.slane %v556_v57, 1  ;;  %v3754_v62 = vsub.f32 %v555_v53, %v556_v57  ;;  %v1252_v53 = vmul.f32 0.35355338, %v3622_v47 }
 0x3e2   :  { %v562_v63 = vsub.f32 %v3670_v41, %v558_v37  ;;  %v563_v1 = vsub.f32 %v3687_v0, %v559_v61  ;;  %v568_v4 = vsub.f32 %v3641_v7, %v558_v37  ;;  %v569_v45 = vsub.f32 %v3646_v12, %v559_v61 }
 0x3e3   :  { %v1012_v12 = vmul.f32 0.35355338, %v3620_v46  ;;  %v1284_v37 = vperm.slane %v1252_v53, 0 }
 0x3e4   :  { %v564_v5 = vmul.f32 1.442695, %v562_v63  ;;  %v566_v17 = vmul.f32 1.442695, %v563_v1  ;;  %v570_v6 = vmul.f32 1.442695, %v568_v4 }
 0x3e5   :  { %v572_v10 = vmul.f32 1.442695, %v569_v45  ;;  %v1044_v20 = vperm.slane %v1012_v12, 0 }
 0x3e6   :  { %2978 = vpow2.f32 %v564_v5 }
 0x3e7   :  { %2980 = vpow2.f32 %v566_v17 }
 0x3e8   :  { %2982 = vpow2.f32 %v570_v6 }
 0x3e9   :  { %2984 = vpow2.f32 %v572_v10  ;;  %v1282_v55 = vpop.xlane.xlu0 %1281 }
 0x3ec   :  { %v3760_v13 = vpop.eup %2978 }
 0x3ed   :  { %v3762_v15 = vpop.eup %2980  ;;  %580 = vperm.xlu1 %2965, %v3760_v13  }
 0x3ee   :  { %v3765_v41 = vpop.eup %2982  ;;  %583 = vperm.xlu0 %2966, %v3762_v15  }
 0x3ef   :  { %595 = vperm.xlu2 %2964, %v3765_v41   ;;  %v3769_v7 = vpop.eup %2984 }
 0x3f5   :  { %598 = vperm.xlu1 %2965, %v3769_v7  }
 0x3f9   :  { %v1027_v0 = vpop.xlane.xlu2 %1026 }
 0x3fa   :  { %v1043_v22 = vmax.f32 %v1027_v0, %v1042_v39 }
 0x3fc   :  { %v1045_v25 = vmax.f32 %v1043_v22, %v1044_v20 }
 0x3fe   :  { %v1047_v26 = vperm.slane %v1045_v25, 0  ;;  %v1048_v27 = vperm.slane %v1045_v25, 1  ;;  %v3773_v24 = vsub.f32 %v1044_v20, %v1045_v25 }
 0x400   :  { %v1051_v30 = vsub.f32 %v3704_v21, %v1047_v26  ;;  %v1052_v32 = vsub.f32 %v3712_v19, %v1048_v27  ;;  %v1057_v34 = vsub.f32 %v3662_v31, %v1047_v26  ;;  %v1058_v46 = vsub.f32 %v3696_v11, %v1048_v27 }
 0x401   :  { %v772_v11 = vmul.f32 0.35355338, %v3625_v50 }
 0x402   :  { %v1053_v35 = vmul.f32 1.442695, %v1051_v30  ;;  %v1055_v16 = vmul.f32 1.442695, %v1052_v32  ;;  %v1059_v40 = vmul.f32 1.442695, %v1057_v34 }
 0x403   :  { %v1061_v39 = vmul.f32 1.442695, %v1058_v46  ;;  %v804_v49 = vperm.slane %v772_v11, 0 }
 0x404   :  { %2986 = vpow2.f32 %v1053_v35 }
 0x405   :  { %2988 = vpow2.f32 %v1055_v16 }
 0x406   :  { %2990 = vpow2.f32 %v1059_v40 }
 0x407   :  { %2992 = vpow2.f32 %v1061_v39 }
 0x40a   :  { %v3779_v43 = vpop.eup %2986 }
 0x40b   :  { %v3781_v44 = vpop.eup %2988  ;;  %1069 = vperm.xlu0 %2966, %v3779_v43  }
 0x40c   :  { %v3784_v21 = vpop.eup %2990  ;;  %1072 = vperm.xlu1 %2965, %v3781_v44  }
 0x40d   :  { %1084 = vperm.xlu2 %2964, %v3784_v21   ;;  %v3788_v31 = vpop.eup %2992 }
 0x413   :  { %1087 = vperm.xlu0 %2966, %v3788_v31  }
 0x41a   :  { %v787_v19 = vpop.xlane.xlu1 %786 }
 0x41b   :  { %v803_v51 = vmax.f32 %v787_v19, %v3743_v28 }
 0x41d   :  { %v805_v18 = vmax.f32 %v803_v51, %v804_v49 }
 0x41f   :  { %v3793_v52 = vsub.f32 %v804_v49, %v805_v18  ;;  %v807_v6 = vperm.slane %v805_v18, 0  ;;  %v808_v45 = vperm.slane %v805_v18, 1 }
 0x421   :  { %v811_v20 = vsub.f32 %v3692_v8, %v807_v6  ;;  %v812_v22 = vsub.f32 %v3724_v54, %v808_v45  ;;  %v817_v30 = vsub.f32 %v3666_v33, %v807_v6  ;;  %v818_v8 = vsub.f32 %v3682_v60, %v808_v45 }
 0x423   :  { %v821_v54 = vmul.f32 1.442695, %v818_v8 }
 0x436   :  { %v1267_v57 = vpop.xlane.xlu2 %1266 }
 0x437   :  { %v1283_v61 = vmax.f32 %v1267_v57, %v1282_v55 }
 0x439   :  { %v1285_v63 = vmax.f32 %v1283_v61, %v1284_v37 }
 0x43b   :  { %v1287_v1 = vperm.slane %v1285_v63, 0  ;;  %v1288_v4 = vperm.slane %v1285_v63, 1  ;;  %v3796_v5 = vsub.f32 %v1284_v37, %v1285_v63 }
 0x43d   :  { %v1291_v50 = vsub.f32 %v3708_v23, %v1287_v1  ;;  %v1292_v17 = vsub.f32 %v3728_v56, %v1288_v4  ;;  %v1297_v28 = vsub.f32 %v3658_v29, %v1287_v1  ;;  %v1298_v0 = vsub.f32 %v3700_v14, %v1288_v4 }
 0x43e   :  { %v813_v23 = vmul.f32 1.442695, %v811_v20  ;;  %v815_v56 = vmul.f32 1.442695, %v812_v22  ;;  %v819_v14 = vmul.f32 1.442695, %v817_v30 }
 0x43f   :  { %v1293_v10 = vmul.f32 1.442695, %v1291_v50  ;;  %v1295_v12 = vmul.f32 1.442695, %v1292_v17  ;;  %v1299_v47 = vmul.f32 1.442695, %v1297_v28 }
 0x440   :  { %v1301_v25 = vmul.f32 1.442695, %v1298_v0 }
 0x441   :  { %2994 = vpow2.f32 %v1293_v10 }
 0x442   :  { %2996 = vpow2.f32 %v1295_v12 }
 0x443   :  { %2998 = vpow2.f32 %v1299_v47 }
 0x444   :  { %3000 = vpow2.f32 %v1301_v25 }
 0x445   :  { %3002 = vpow2.f32 %v813_v23 }
 0x446   :  { %3004 = vpow2.f32 %v815_v56 }
 0x447   :  { %v3804_v26 = vpop.eup %2994  ;;  %3006 = vpow2.f32 %v819_v14 }
 0x448   :  { %v3806_v29 = vpop.eup %2996  ;;  %1309 = vperm.xlu0 %2966, %v3804_v26   ;;  %3008 = vpow2.f32 %v821_v54 }
 0x449   :  { %v3809_v27 = vpop.eup %2998  ;;  %1312 = vperm.xlu2 %2964, %v3806_v29   ;;  %v596_v46 = vpop.permute.xlu2 %595 }
 0x44a   :  { %1324 = vperm.xlu1 %2965, %v3809_v27   ;;  %v3815_v32 = vpop.eup %3000  ;;  %v600_v19 = vperm.slane %v596_v46, %v3674_v48 }
 0x44b   :  { %v3817_v34 = vpop.eup %3002 }
 0x44c   :  { %v3820_v35 = vpop.eup %3004 }
 0x44d   :  { %v3824_v33 = vpop.eup %3006 }
 0x44e   :  { %v3826_v60 = vpop.eup %3008 }
 0x450   :  { %1327 = vperm.xlu0 %2966, %v3815_v32  }
 0x451   :  { %829 = vperm.xlu2 %2964, %v3817_v34  }
 0x452   :  { %832 = vperm.xlu1 %2965, %v3820_v35  }
 0x458   :  { %844 = vperm.xlu0 %2966, %v3824_v33  }
 0x459   :  { %847 = vperm.xlu2 %2964, %v3826_v60  }
 0x45f   :  { %v581_v16 = vpop.permute.xlu1 %580 }
 0x460   :  { %v584_v11 = vpop.permute.xlu0 %583  ;;  %v585_v18 = vperm.slane %v581_v16, %v3674_v48 }
 0x461   :  { %v586_v51 = vperm.slane %v584_v11, %v3674_v48 }
 0x463   :  { %v587_v61 = vsel %vm532_vm8, %v586_v51, %v585_v18 }
 0x464   :  { %v589_v1 = vsel %vm535_vm9, %v587_v61, 0.0  ;;  %v575_v61 = vmul.f32 1.442695, %v3754_v62 }
 0x466   :  { %3010 = vpow2.f32 %v575_v61 }
 0x467   :  { %v599_v40 = vpop.permute.xlu1 %598  ;;  %v1085_v17 = vpop.permute.xlu2 %1084 }
 0x468   :  { %v601_v39 = vperm.slane %v599_v40, %v3674_v48  ;;  %v1089_v6 = vperm.slane %v1085_v17, %v3674_v48 }
 0x46a   :  { %v602_v49 = vsel %vm532_vm8, %v601_v39, %v600_v19 }
 0x46b   :  { %v604_v53 = vsel %vm535_vm9, %v602_v49, 0.0 }
 0x46c   :  { %v3011_v17 = vpop.eup %3010 }
 0x47c   :  { %605 = vadd.xlane.f32.xlu1 %v604_v53 }
 0x47d   :  { %v1070_v55 = vpop.permute.xlu0 %1069 }
 0x47e   :  { %v1074_v57 = vperm.slane %v1070_v55, %v3674_v48  ;;  %v1073_v37 = vpop.permute.xlu1 %1072 }
 0x47f   :  { %v1075_v63 = vperm.slane %v1073_v37, %v3674_v48 }
 0x481   :  { %v1076_v4 = vsel %vm532_vm8, %v1075_v63, %v1074_v57 }
 0x482   :  { %590 = vadd.xlane.f32.xlu2 %v589_v1  ;;  %v1078_v50 = vsel %vm535_vm9, %v1076_v4, 0.0  ;;  %v1064_v1 = vmul.f32 1.442695, %v3773_v24 }
 0x484   :  { %1079 = vadd.xlane.f32.xlu1 %v1078_v50  ;;  %3012 = vpow2.f32 %v1064_v1 }
 0x485   :  { %v1088_v28 = vpop.permute.xlu0 %1087 }
 0x486   :  { %v1090_v45 = vperm.slane %v1088_v28, %v3674_v48 }
 0x488   :  { %v1091_v10 = vsel %vm532_vm8, %v1090_v45, %v1089_v6 }
 0x489   :  { %v1093_v12 = vsel %vm535_vm9, %v1091_v10, 0.0 }
 0x48a   :  { %1094 = vadd.xlane.f32.xlu0 %v1093_v12  ;;  %v3013_v12 = vpop.eup %3012 }
 0x4a3   :  { %v1313_v47 = vpop.permute.xlu2 %1312 }
 0x4a4   :  { %v1315_v20 = vperm.slane %v1313_v47, %v3674_v48 }
 0x4ab   :  { %v830_v56 = vpop.permute.xlu2 %829 }
 0x4ac   :  { %v834_v40 = vperm.slane %v830_v56, %v3674_v48 }
 0x4b3   :  { %v848_v49 = vpop.permute.xlu2 %847 }
 0x4b4   :  { %v850_v53 = vperm.slane %v848_v49, %v3674_v48 }
 0x4ba   :  { %v1310_v0 = vpop.permute.xlu0 %1309 }
 0x4bb   :  { %v1314_v22 = vperm.slane %v1310_v0, %v3674_v48 }
 0x4bc   :  { %v1325_v25 = vpop.permute.xlu1 %1324 }
 0x4bd   :  { %v1316_v23 = vsel %vm532_vm8, %v1315_v20, %v1314_v22  ;;  %v1329_v14 = vperm.slane %v1325_v25, %v3674_v48 }
 0x4be   :  { %v1318_v30 = vsel %vm535_vm9, %v1316_v23, 0.0 }
 0x4bf   :  { %1319 = vadd.xlane.f32.xlu0 %v1318_v30 }
 0x4c2   :  { %v1328_v8 = vpop.permute.xlu0 %1327 }
 0x4c3   :  { %v1330_v54 = vperm.slane %v1328_v8, %v3674_v48 }
 0x4c4   :  { %v833_v16 = vpop.permute.xlu1 %832 }
 0x4c5   :  { %v835_v46 = vperm.slane %v833_v16, %v3674_v48  ;;  %v1331_v39 = vsel %vm532_vm8, %v1330_v54, %v1329_v14 }
 0x4c6   :  { %v1333_v11 = vsel %vm535_vm9, %v1331_v39, 0.0 }
 0x4c7   :  { %1334 = vadd.xlane.f32.xlu2 %v1333_v11  ;;  %v836_v19 = vsel %vm532_vm8, %v835_v46, %v834_v40 }
 0x4c8   :  { %v838_v51 = vsel %vm535_vm9, %v836_v19, 0.0 }
 0x4c9   :  { %839 = vadd.xlane.f32.xlu1 %v838_v51 }
 0x4ca   :  { %v845_v18 = vpop.permute.xlu0 %844 }
 0x4cb   :  { %v849_v55 = vperm.slane %v845_v18, %v3674_v48 }
 0x4cd   :  { %v851_v57 = vsel %vm532_vm8, %v850_v53, %v849_v55 }
 0x4ce   :  { %v853_v37 = vsel %vm535_vm9, %v851_v57, 0.0 }
 0x4cf   :  { %854 = vadd.xlane.f32.xlu0 %v853_v37 }
 0x4ef   :  { %v606_v63 = vpop.xlane.xlu1 %605 }
 0x4f5   :  { %v591_v4 = vpop.xlane.xlu2 %590 }
 0x4f6   :  { %v607_v50 = vadd.f32 %v606_v63, %v591_v4 }
 0x4f7   :  { %v1080_v6 = vpop.xlane.xlu1 %1079 }
 0x4f8   :  { %v608_v28 = vadd.f32 %v3011_v17, %v607_v50 }
 0x4fa   :  { %3014 = vrcp.f32 %v608_v28  ;;  %v620_v62 = vand.u32 2147483648, %v608_v28  ;;  %v618_v23 = vand.u32 2147483647, %v608_v28  ;;  %vm614_vm11 = vweird.f32 %v608_v28 }
 0x4fc   :  { %v621_v30 = vor.u32 1.1754944e-38, %v620_v62  ;;  %vm619_vm13 = vcmp.eq.f32.partialorder %v618_v23, 8.507059e+37 }
 0x4fd   :  { %v1095_v45 = vpop.xlane.xlu0 %1094 }
 0x4fe   :  { %v1096_v10 = vadd.f32 %v1095_v45, %v1080_v6  ;;  %v1304_v6 = vmul.f32 1.442695, %v3796_v5 }
 0x500   :  { %v3015_v47 = vpop.eup %3014  ;;  %v1097_v0 = vadd.f32 %v3013_v12, %v1096_v10 }
 0x501   :  { %v610_v20 = vmul.f32 %v3015_v47, %v608_v28  ;;  %vm615_vm10 = vweird.f32 %v3015_v47 }
 0x502   :  { %3016 = vrcp.f32 %v1097_v0  ;;  %vm616_vm12 = vmor %vm614_vm11, %vm615_vm10  ;;  %v1107_v39 = vand.u32 2147483647, %v1097_v0  ;;  %v1109_v11 = vand.u32 2147483648, %v1097_v0  ;;  %vm1103_vm15 = vweird.f32 %v1097_v0 }
 0x503   :  { %v611_v22 = vsub.f32 1.0, %v610_v20  ;;  %3018 = vpow2.f32 %v1304_v6 }
 0x504   :  { %v1110_v53 = vor.u32 1.1754944e-38, %v1109_v11  ;;  %vm1108_vm2 = vcmp.eq.f32.partialorder %v1107_v39, 8.507059e+37 }
 0x505   :  { %v612_v25 = vmul.f32 %v3015_v47, %v611_v22 }
 0x507   :  { %v613_v24 = vadd.f32 %v3015_v47, %v612_v25 }
 0x508   :  { %v3017_v56 = vpop.eup %3016 }
 0x509   :  { %v1099_v8 = vmul.f32 %v3017_v56, %v1097_v0  ;;  %v617_v14 = vsel %vm616_vm12, %v3015_v47, %v613_v24  ;;  %vm1104_vm14 = vweird.f32 %v3017_v56  ;;  %v3019_v10 = vpop.eup %3018 }
 0x50a   :  { %v622_v54 = vsel %vm619_vm13, %v621_v30, %v617_v14  ;;  %vm1105_vm1 = vmor %vm1103_vm15, %vm1104_vm14  ;;  %vm643_vm15 = vcmask 326912  }
 0x50b   :  { %v1100_v16 = vsub.f32 1.0, %v1099_v8  ;;  %v626_v40 = vperm.slane %v622_v54, 1  ;;  %v3864_v46 = vmul.f32 %v3011_v17, %v622_v54  ;;  %v625_v55 = vperm.slane %v622_v54, 0 }
 0x50d   :  { %v668_v19 = vmul.f32 %v3769_v7, %v626_v40  ;;  %v630_v49 = vmul.f32 %v3762_v15, %v626_v40  ;;  %v1101_v51 = vmul.f32 %v3017_v56, %v1100_v16  ;;  %v629_v7 = vmul.f32 %v3760_v13, %v625_v55 }
 0x50e   :  { %v667_v50 = vmul.f32 %v3765_v41, %v625_v55  ;;  %v824_v13 = vmul.f32 1.442695, %v3793_v52 }
 0x50f   :  { %676 = vperm.xlu2 %2964, %v668_v19   ;;  %638 = vperm.xlu1 %2965, %v630_v49   ;;  %v1102_v18 = vadd.f32 %v3017_v56, %v1101_v51 }
 0x510   :  { %3020 = vpow2.f32 %v824_v13 }
 0x511   :  { %v1106_v57 = vsel %vm1105_vm1, %v3017_v56, %v1102_v18  ;;  %vm1132_vm1 = vcmask 458112  }
 0x512   :  { %v1111_v37 = vsel %vm1108_vm2, %v1110_v53, %v1106_v57  ;;  %vm1372_vm2 = vcmask 523712  }
 0x513   :  { %v1115_v61 = vperm.slane %v1111_v37, 1  ;;  %v3868_v63 = vmul.f32 %v3013_v12, %v1111_v37  ;;  %v1114_v1 = vperm.slane %v1111_v37, 0 }
 0x515   :  { %v1119_v15 = vmul.f32 %v3781_v44, %v1115_v61  ;;  %v1118_v4 = vmul.f32 %v3779_v43, %v1114_v1  ;;  %v1156_v17 = vmul.f32 %v3788_v31, %v1115_v61  ;;  %v1155_v28 = vmul.f32 %v3784_v21, %v1114_v1 }
 0x516   :  { %v3021_v0 = vpop.eup %3020 }
 0x517   :  { %633 = vperm.xlu1 %2965, %v629_v7   ;;  %1127 = vperm.xlu2 %2964, %v1119_v15  }
 0x518   :  { %1122 = vperm.xlu0 %2966, %v1118_v4  }
 0x51f   :  { %671 = vperm.xlu1 %2965, %v667_v50   ;;  %1164 = vperm.xlu2 %2964, %v1156_v17  }
 0x527   :  { %1159 = vperm.xlu1 %2965, %v1155_v28  }
 0x532   :  { %v1320_v44 = vpop.xlane.xlu0 %1319 }
 0x53a   :  { %v1335_v45 = vpop.xlane.xlu2 %1334 }
 0x53b   :  { %v1336_v43 = vadd.f32 %v1335_v45, %v1320_v44 }
 0x53c   :  { %v840_v41 = vpop.xlane.xlu1 %839 }
 0x53d   :  { %v1337_v12 = vadd.f32 %v3019_v10, %v1336_v43 }
 0x53f   :  { %3022 = vrcp.f32 %v1337_v12  ;;  %v1349_v5 = vand.u32 2147483648, %v1337_v12  ;;  %v1347_v52 = vand.u32 2147483647, %v1337_v12  ;;  %vm1343_vm5 = vweird.f32 %v1337_v12 }
 0x541   :  { %v1350_v56 = vor.u32 1.1754944e-38, %v1349_v5  ;;  %vm1348_vm10 = vcmp.eq.f32.partialorder %v1347_v52, 8.507059e+37 }
 0x542   :  { %v855_v47 = vpop.xlane.xlu0 %854 }
 0x543   :  { %v856_v31 = vadd.f32 %v855_v47, %v840_v41 }
 0x545   :  { %v3023_v20 = vpop.eup %3022  ;;  %v857_v22 = vadd.f32 %v3021_v0, %v856_v31 }
 0x546   :  { %v1339_v21 = vmul.f32 %v3023_v20, %v1337_v12  ;;  %vm1344_vm4 = vweird.f32 %v3023_v20 }
 0x547   :  { %3024 = vrcp.f32 %v857_v22  ;;  %vm1345_vm6 = vmor %vm1343_vm5, %vm1344_vm4  ;;  %v867_v11 = vand.u32 2147483647, %v857_v22  ;;  %v869_v19 = vand.u32 2147483648, %v857_v22  ;;  %vm863_vm12 = vweird.f32 %v857_v22 }
 0x548   :  { %v1340_v62 = vsub.f32 1.0, %v1339_v21  ;;  %vm892_vm4 = vcmask 392512  }
 0x549   :  { %v870_v57 = vor.u32 1.1754944e-38, %v869_v19  ;;  %vm868_vm14 = vcmp.eq.f32.partialorder %v867_v11, 8.507059e+37 }
 0x54a   :  { %v1341_v25 = vmul.f32 %v3023_v20, %v1340_v62 }
 0x54c   :  { %v1342_v23 = vadd.f32 %v3023_v20, %v1341_v25 }
 0x54d   :  { %v3025_v24 = vpop.eup %3024 }
 0x54e   :  { %v859_v30 = vmul.f32 %v3025_v24, %v857_v22  ;;  %v1346_v8 = vsel %vm1345_vm6, %v3023_v20, %v1342_v23  ;;  %vm864_vm11 = vweird.f32 %v3025_v24 }
 0x54f   :  { %v1351_v14 = vsel %vm1348_vm10, %v1350_v56, %v1346_v8  ;;  %vm865_vm13 = vmor %vm863_vm12, %vm864_vm11 }
 0x550   :  { %v860_v54 = vsub.f32 1.0, %v859_v30  ;;  %v1354_v16 = vperm.slane %v1351_v14, 0  ;;  %v3878_v40 = vmul.f32 %v3019_v10, %v1351_v14  ;;  %v1355_v39 = vperm.slane %v1351_v14, 1 }
 0x552   :  { %v1358_v49 = vmul.f32 %v3804_v26, %v1354_v16  ;;  %v1395_v51 = vmul.f32 %v3809_v27, %v1354_v16  ;;  %v1359_v18 = vmul.f32 %v3806_v29, %v1355_v39  ;;  %v861_v53 = vmul.f32 %v3025_v24, %v860_v54 }
 0x553   :  { %v1396_v4 = vmul.f32 %v3815_v32, %v1355_v39  ;;  %v3903_v54 = vperm.slane %v3576_v9, 0 }
 0x554   :  { %1362 = vperm.xlu2 %2964, %v1358_v49   ;;  %1399 = vperm.xlu1 %2965, %v1395_v51   ;;  %v862_v55 = vadd.f32 %v3025_v24, %v861_v53 }
 0x555   :  { %1367 = vperm.xlu0 %2966, %v1359_v18   ;;  %v660_v18 = vmul.f32 %v3903_v54, %v3864_v46 }
 0x556   :  { %v866_v37 = vsel %vm865_vm13, %v3025_v24, %v862_v55 }
 0x557   :  { %v871_v61 = vsel %vm868_vm14, %v870_v57, %v866_v37 }
 0x558   :  { %v875_v1 = vperm.slane %v871_v61, 1  ;;  %v3883_v7 = vmul.f32 %v3021_v0, %v871_v61  ;;  %v874_v15 = vperm.slane %v871_v61, 0 }
 0x55a   :  { %v879_v26 = vmul.f32 %v3820_v35, %v875_v1  ;;  %v878_v27 = vmul.f32 %v3817_v34, %v874_v15  ;;  %v915_v29 = vmul.f32 %v3824_v33, %v874_v15  ;;  %v916_v50 = vmul.f32 %v3826_v60, %v875_v1 }
 0x55c   :  { %882 = vperm.xlu2 %2964, %v878_v27  }
 0x55d   :  { %887 = vperm.xlu0 %2966, %v879_v26   ;;  %v662_v26 = vrot.slane %v660_v18, 1 }
 0x564   :  { %919 = vperm.xlu2 %2964, %v915_v29  }
 0x565   :  { %1404 = vperm.xlu0 %2966, %v1396_v4  }
 0x569   :  { %v677_v17 = vpop.permute.xlu2 %676 }
 0x56a   :  { %v680_v6 = vmul.f32 %v677_v17, %v3610_v42 }
 0x56c   :  { %v688_v33 = vsel %vm643_vm15, %v680_v6, 0.0 }
 0x56d   :  { %924 = vperm.xlu0 %2966, %v916_v50   ;;  %v689_v43 = vrot.slane %v688_v33, 4 }
 0x56f   :  { %v690_v21 = vadd.f32 %v689_v43, %v688_v33 }
 0x571   :  { %v1128_v28 = vpop.permute.xlu2 %1127  ;;  %v691_v30 = vrot.slane %v690_v21, 2 }
 0x572   :  { %v1131_v34 = vmul.f32 %v1128_v28, %v3635_v2 }
 0x573   :  { %v692_v53 = vadd.f32 %v691_v30, %v690_v21 }
 0x574   :  { %v1140_v10 = vsel %vm1132_vm1, %v1131_v34, 0.0 }
 0x575   :  { %v1141_v31 = vrot.slane %v1140_v10, 4  ;;  %v693_v27 = vrot.slane %v692_v53, 1 }
 0x577   :  { %v1142_v56 = vadd.f32 %v1141_v31, %v1140_v10  ;;  %v694_v34 = vadd.f32 %v693_v27, %v692_v53 }
 0x579   :  { %v1165_v44 = vpop.permute.xlu2 %1164  ;;  %v1143_v49 = vrot.slane %v1142_v56, 2 }
 0x57a   :  { %v1168_v60 = vmul.f32 %v1165_v44, %v3610_v42 }
 0x57b   :  { %v1144_v9 = vadd.f32 %v1143_v49, %v1142_v56 }
 0x57c   :  { %v1176_v0 = vsel %vm1132_vm1, %v1168_v60, 0.0  ;;  %v1148_v60 = vmul.f32 %v3868_v63, %v3903_v54 }
 0x57d   :  { %v1177_v25 = vrot.slane %v1176_v0, 4 }
 0x57e   :  { %v1150_v21 = vrot.slane %v1148_v60, 1 }
 0x57f   :  { %v1178_v16 = vadd.f32 %v1177_v25, %v1176_v0 }
 0x581   :  { %v639_v13 = vpop.permute.xlu1 %638  ;;  %v1179_v61 = vrot.slane %v1178_v16, 2 }
 0x582   :  { %v642_v35 = vmul.f32 %v639_v13, %v3635_v2 }
 0x583   :  { %v1180_v17 = vadd.f32 %v1179_v61, %v1178_v16 }
 0x584   :  { %v651_v32 = vsel %vm643_vm15, %v642_v35, 0.0  ;;  %v1145_v35 = vrot.slane %v1144_v9, 1 }
 0x585   :  { %v652_v45 = vrot.slane %v651_v32, 4  ;;  %v1181_v43 = vrot.slane %v1180_v17, 1 }
 0x587   :  { %v653_v12 = vadd.f32 %v652_v45, %v651_v32 }
 0x589   :  { %v654_v41 = vrot.slane %v653_v12, 2  ;;  %v634_v47 = vpop.permute.xlu1 %633 }
 0x58a   :  { %v641_v20 = vmul.f32 %v634_v47, %v3629_v58  ;;  %v1123_v22 = vpop.permute.xlu0 %1122  ;;  %v1146_v47 = vadd.f32 %v1145_v35, %v1144_v9 }
 0x58b   :  { %v1130_v62 = vmul.f32 %v1123_v22, %v3629_v58  ;;  %v655_v52 = vadd.f32 %v654_v41, %v653_v12 }
 0x58c   :  { %v644_v5 = vsel %vm643_vm15, %v641_v20, 0.0  ;;  %v1154_v30 = vadd.f32 %v1150_v21, %v1146_v47 }
 0x58d   :  { %v645_v23 = vrot.slane %v644_v5, 4  ;;  %v1133_v24 = vsel %vm1132_vm1, %v1130_v62, 0.0  ;;  %v656_v39 = vrot.slane %v655_v52, 1  ;;  %v1182_v62 = vadd.f32 %v1181_v43, %v1180_v17 }
 0x58e   :  { %v1134_v14 = vrot.slane %v1133_v24, 4 }
 0x58f   :  { %v646_v8 = vadd.f32 %v645_v23, %v644_v5  ;;  %v657_v1 = vadd.f32 %v656_v39, %v655_v52 }
 0x590   :  { %v1135_v57 = vadd.f32 %v1134_v14, %v1133_v24 }
 0x591   :  { %v647_v11 = vrot.slane %v646_v8, 2  ;;  %v672_v19 = vpop.permute.xlu1 %671  ;;  %v666_v13 = vadd.f32 %v662_v26, %v657_v1 }
 0x592   :  { %v679_v51 = vmul.f32 %v672_v19, %v3604_v36  ;;  %v1136_v4 = vrot.slane %v1135_v57, 2 }
 0x593   :  { %v648_v55 = vadd.f32 %v647_v11, %v646_v8  ;;  %v696_v41 = vadd.f32 %v694_v34, %v666_v13  ;;  %v1184_v8 = vadd.f32 %v1182_v62, %v1154_v30 }
 0x594   :  { %v681_v37 = vsel %vm643_vm15, %v679_v51, 0.0  ;;  %v1137_v33 = vadd.f32 %v1136_v4, %v1135_v57 }
 0x595   :  { %v682_v15 = vrot.slane %v681_v37, 4  ;;  %v649_v29 = vrot.slane %v648_v55, 1  ;;  %v699_v52 = vrot.slane %v696_v41, 7  ;;  %v1187_v11 = vrot.slane %v1184_v8, 7 }
 0x596   :  { %v1138_v31 = vrot.slane %v1137_v33, 1 }
 0x597   :  { %v683_v50 = vadd.f32 %v682_v15, %v681_v37  ;;  %v650_v44 = vadd.f32 %v649_v29, %v648_v55 }
 0x598   :  { %v1139_v23 = vadd.f32 %v1138_v31, %v1137_v33 }
 0x599   :  { %v684_v28 = vrot.slane %v683_v50, 2  ;;  %v1160_v6 = vpop.permute.xlu1 %1159  ;;  %v665_v22 = vadd.f32 %v660_v18, %v650_v44  ;;  %v449_v44 = vld [vmem:[%s4296_s17] sm:$0xff] }
 0x59a   :  { %v1167_v46 = vmul.f32 %v1160_v6, %v3604_v36  ;;  %v1153_v16 = vadd.f32 %v1148_v60, %v1139_v23  ;;  %720 = vmatpush.msra.mxu0 %v449_v44 }
 0x59b   :  { %v685_v32 = vadd.f32 %v684_v28, %v683_v50 }
 0x59c   :  { %v1169_v45 = vsel %vm1132_vm1, %v1167_v46, 0.0 }
 0x59d   :  { %v686_v10 = vrot.slane %v685_v32, 1  ;;  %v1170_v12 = vrot.slane %v1169_v45, 4 }
 0x59f   :  { %v687_v0 = vadd.f32 %v686_v10, %v685_v32  ;;  %v1171_v20 = vadd.f32 %v1170_v12, %v1169_v45 }
 0x5a1   :  { %v1172_v5 = vrot.slane %v1171_v20, 2  ;;  %v695_v25 = vadd.f32 %v687_v0, %v665_v22 }
 0x5a3   :  { %v1173_v24 = vadd.f32 %v1172_v5, %v1171_v20  ;;  %v700_v56 = vsel %vm532_vm8, %v699_v52, %v695_v25  ;;  %v1388_v52 = vmul.f32 %v3878_v40, %v3903_v54 }
 0x5a4   :  { %701 = vrot.lane.b32.xlu1 %v700_v56, %s3293_s16 }
 0x5a5   :  { %v1174_v63 = vrot.slane %v1173_v24, 1 }
 0x5a7   :  { %v1175_v14 = vadd.f32 %v1174_v63, %v1173_v24 }
 0x5a9   :  { %v1183_v39 = vadd.f32 %v1175_v14, %v1153_v16 }
 0x5ab   :  { %v1188_v19 = vsel %vm532_vm8, %v1187_v11, %v1183_v39 }
 0x5ac   :  { %1189 = vrot.lane.b32.xlu0 %v1188_v19, %s3294_s18 }
 0x5ae   :  { %v1363_v49 = vpop.permute.xlu2 %1362 }
 0x5af   :  { %v1370_v55 = vmul.f32 %v1363_v49, %v3629_v58  ;;  %v1390_v49 = vrot.slane %v1388_v52, 1 }
 0x5b1   :  { %v1373_v1 = vsel %vm1372_vm2, %v1370_v55, 0.0 }
 0x5b2   :  { %v1374_v27 = vrot.slane %v1373_v1, 4 }
 0x5b4   :  { %v1375_v35 = vadd.f32 %v1374_v27, %v1373_v1 }
 0x5b6   :  { %v883_v51 = vpop.permute.xlu2 %882 }
 0x5b7   :  { %v890_v4 = vmul.f32 %v883_v51, %v3629_v58 }
 0x5b9   :  { %v893_v46 = vsel %vm892_vm4, %v890_v4, 0.0 }
 0x5ba   :  { %v894_v45 = vrot.slane %v893_v46, 4 }
 0x5bc   :  { %v895_v0 = vadd.f32 %v894_v45, %v893_v46 }
 0x5be   :  { %v920_v26 = vpop.permute.xlu2 %919  ;;  %v896_v24 = vrot.slane %v895_v0, 2 }
 0x5bf   :  { %v927_v28 = vmul.f32 %v920_v26, %v3604_v36 }
 0x5c1   :  { %v929_v33 = vsel %vm892_vm4, %v927_v28, 0.0 }
 0x5c6   :  { %v1400_v18 = vpop.permute.xlu1 %1399 }
 0x5c7   :  { %v1368_v53 = vpop.permute.xlu0 %1367  ;;  %v1407_v37 = vmul.f32 %v1400_v18, %v3604_v36  ;;  %v930_v36 = vrot.slane %v929_v33, 4  ;;  %v897_v18 = vadd.f32 %v896_v24, %v895_v0 }
 0x5c8   :  { %v1371_v57 = vmul.f32 %v1368_v53, %v3635_v2 }
 0x5c9   :  { %v1409_v9 = vsel %vm1372_vm2, %v1407_v37, 0.0  ;;  %v931_v22 = vadd.f32 %v930_v36, %v929_v33  ;;  %v452_v36 = vld [vmem:[%s4296_s17 + $0x18] sm:$0xff] }
 0x5ca   :  { %v1380_v61 = vsel %vm1372_vm2, %v1371_v57, 0.0  ;;  %v1410_v50 = vrot.slane %v1409_v9, 4  ;;  %1448 = vmatpush.msra.mxu3 %v452_v36 }
 0x5cb   :  { %v1381_v15 = vrot.slane %v1380_v61, 4  ;;  %v932_v63 = vrot.slane %v931_v22, 2 }
 0x5cc   :  { %v1411_v34 = vadd.f32 %v1410_v50, %v1409_v9  ;;  %v908_v9 = vmul.f32 %v3883_v7, %v3903_v54 }
 0x5cd   :  { %v1382_v6 = vadd.f32 %v1381_v15, %v1380_v61  ;;  %v933_v57 = vadd.f32 %v932_v63, %v931_v22  ;;  %v1456_v22 = vld [vmem:[%s4298_s19 + $0x10] sm:$0xff] }
 0x5ce   :  { %v1412_v43 = vrot.slane %v1411_v34, 2 }
 0x5cf   :  { %v888_v29 = vpop.permute.xlu0 %887  ;;  %v1383_v58 = vrot.slane %v1382_v6, 2  ;;  %v934_v4 = vrot.slane %v933_v57, 1 }
 0x5d0   :  { %v891_v17 = vmul.f32 %v888_v29, %v3635_v2  ;;  %v1376_v2 = vrot.slane %v1375_v35, 2  ;;  %v1413_v21 = vadd.f32 %v1412_v43, %v1411_v34  ;;  %v910_v34 = vrot.slane %v908_v9, 1 }
 0x5d1   :  { %v1384_v12 = vadd.f32 %v1383_v58, %v1382_v6  ;;  %v935_v44 = vadd.f32 %v934_v4, %v933_v57 }
 0x5d2   :  { %v900_v13 = vsel %vm892_vm4, %v891_v17, 0.0  ;;  %v1377_v31 = vadd.f32 %v1376_v2, %v1375_v35  ;;  %v1414_v8 = vrot.slane %v1413_v21, 1 }
 0x5d3   :  { %v901_v32 = vrot.slane %v900_v13, 4  ;;  %v1385_v62 = vrot.slane %v1384_v12, 1 }
 0x5d4   :  { %v1378_v23 = vrot.slane %v1377_v31, 1  ;;  %v1415_v40 = vadd.f32 %v1414_v8, %v1413_v21  ;;  %v1455_v21 = vld [vmem:[%s4298_s19 + $0x8] sm:$0xff] }
 0x5d5   :  { %v902_v41 = vadd.f32 %v901_v32, %v900_v13  ;;  %v1386_v16 = vadd.f32 %v1385_v62, %v1384_v12  ;;  %v450_v12 = vld [vmem:[%s4296_s17 + $0x8] sm:$0xff]  ;;  %v1454_v62 = vld [vmem:[%s4298_s19] sm:$0xff] }
 0x5d6   :  { %v1379_v51 = vadd.f32 %v1378_v23, %v1377_v31  ;;  %968 = vmatpush.msrb.mxu1 %v450_v12  ;;  %v1485_v31 = vld [vmem:[%s4300_s21] sm:$0xff] }
 0x5d7   :  { %v1405_v60 = vpop.permute.xlu0 %1404  ;;  %v903_v5 = vrot.slane %v902_v41, 2  ;;  %v1394_v15 = vadd.f32 %v1390_v49, %v1386_v16  ;;  %v2976_v16 = vld [vmem:[%s4299_s20] ss:$0 sm:$0xff] }
 0x5d8   :  { %v1408_v10 = vmul.f32 %v1405_v60, %v3610_v42  ;;  %v1393_v27 = vadd.f32 %v1388_v52, %v1379_v51  ;;  %v451_v60 = vld [vmem:[%s4296_s17 + $0x10] sm:$0xff] }
 0x5d9   :  { %v904_v39 = vadd.f32 %v903_v5, %v902_v41  ;;  %1208 = vmatpush.msra.mxu2 %v451_v60  ;;  %v2974_v5 = vld [vmem:[#allocation7] ss:$0 sm:$0xff] }
 0x5da   :  { %v1416_v47 = vsel %vm1372_vm2, %v1408_v10, 0.0  ;;  %v1423_v28 = vadd.f32 %v1415_v40, %v1393_v27 }
 0x5db   :  { %v1417_v20 = vrot.slane %v1416_v47, 4  ;;  %v905_v37 = vrot.slane %v904_v39, 1 }
 0x5dd   :  { %v1418_v25 = vadd.f32 %v1417_v20, %v1416_v47  ;;  %v906_v50 = vadd.f32 %v905_v37, %v904_v39  ;;  %v1486_v47 = vld [vmem:[%s4300_s21 + $0x8] sm:$0xff]  ;;  %v1457_v20 = vld [vmem:[%s4298_s19 + $0x18] sm:$0xff]  ;;  %v2975_v39 = vld [vmem:[%s4301_s22] ss:$0 sm:$0xff] }
 0x5de   :  { %1505 = vmatpush.msra.mxu1 %v1486_v47  ;;  %1477 = vmatpush.msrb.mxu0 %v1457_v20 }
 0x5df   :  { %v1419_v56 = vrot.slane %v1418_v25, 2  ;;  %v925_v30 = vpop.permute.xlu0 %924  ;;  %v914_v58 = vadd.f32 %v910_v34, %v906_v50 }
 0x5e0   :  { %v928_v14 = vmul.f32 %v925_v30, %v3610_v42  ;;  %v898_v42 = vrot.slane %v897_v18, 1  ;;  %1506 = vmatpush.msra.mxu1 %v1485_v31  ;;  %1478 = vmatpush.msrb.mxu0 %v1456_v22 }
 0x5e1   :  { %v1420_v11 = vadd.f32 %v1419_v56, %v1418_v25 }
 0x5e2   :  { %v936_v19 = vsel %vm892_vm4, %v928_v14, 0.0  ;;  %v899_v13 = vadd.f32 %v898_v42, %v897_v18  ;;  %1479 = vmatpush.msrb.mxu0 %v1455_v21 }
 0x5e3   :  { %v1421_v53 = vrot.slane %v1420_v11, 1  ;;  %v937_v55 = vrot.slane %v936_v19, 4 }
 0x5e4   :  { %v913_v7 = vadd.f32 %v908_v9, %v899_v13  ;;  %1480 = vmatpush.msrb.mxu0 %v1454_v62 }
 0x5e5   :  { %v1422_v61 = vadd.f32 %v1421_v53, %v1420_v11  ;;  %v938_v1 = vadd.f32 %v937_v55, %v936_v19 }
 0x5e6   :  { %v943_v32 = vadd.f32 %v935_v44, %v913_v7 }
 0x5e7   :  { %v939_v26 = vrot.slane %v938_v1, 2  ;;  %v1424_v29 = vadd.f32 %v1422_v61, %v1394_v15 }
 0x5e9   :  { %v940_v17 = vadd.f32 %v939_v26, %v938_v1  ;;  %v1427_v6 = vrot.slane %v1424_v29, 7 }
 0x5eb   :  { %v941_v35 = vrot.slane %v940_v17, 1  ;;  %v1428_v46 = vsel %vm532_vm8, %v1427_v6, %v1423_v28 }
 0x5ec   :  { %1429 = vrot.lane.b32.xlu2 %v1428_v46, %s3295_s10 }
 0x5ed   :  { %v942_v33 = vadd.f32 %v941_v35, %v940_v17 }
 0x5ef   :  { %v944_v54 = vadd.f32 %v942_v33, %v914_v58 }
 0x5f1   :  { %v947_v2 = vrot.slane %v944_v54, 7 }
 0x5f3   :  { %v948_v45 = vsel %vm532_vm8, %v947_v2, %v943_v32 }
 0x5f4   :  { %949 = vrot.lane.b32.xlu0 %v948_v45, %s3296_s29 }
 0x616   :  { %v702_v43 = vpop.permute.xlu1 %701 }
 0x617   :  { %2914 = vmatmul.msk.f32.vlgmr.msra.gmra.mxu0 %vm457_vm7, %v702_v43 }
 0x61e   :  { %v1190_v10 = vpop.permute.xlu0 %1189 }
 0x61f   :  { %2916 = vmatmul.msk.f32.vlgmr.msra.gmra.mxu2 %vm457_vm7, %v1190_v10 }
 0x646   :  { %v1430_v41 = vpop.permute.xlu2 %1429 }
 0x647   :  { %2917 = vmatmul.msk.f32.vlgmr.msra.gmra.mxu3 %vm457_vm7, %v1430_v41 }
 0x666   :  { %v950_v0 = vpop.permute.xlu0 %949 }
 0x667   :  { %2915 = vmatmul.msk.f32.vlgmr.msrb.gmra.mxu1 %vm457_vm7, %v950_v0 }
 0x66f   :  { %2919 = vmatmul.msk.f32.vlgmr.msra.gmra.mxu1 %vm153_vm0, %v3561_v59 }
 0x677   :  { %2920 = vmatmul.msk.f32.gmra.mxu1 %vm153_vm0, %v3567_v3 }
 0x694   :  { %v722_v25 = vpop.f32.mrf.mxu0 }
 0x695   :  { %v728_v52 = vadd.f32 %v2974_v5, %v722_v25 }
 0x6a2   :  { %v1210_v56 = vpop.f32.mrf.mxu2 }
 0x6ca   :  { %v1450_v63 = vpop.f32.mrf.mxu3 }
 0x6e4   :  { %v970_v23 = vpop.f32.mrf.mxu1 }
 0x6e5   :  { %v973_v24 = vadd.f32 %v970_v23, %v728_v52 }
 0x6e7   :  { %v1213_v30 = vadd.f32 %v1210_v56, %v973_v24 }
 0x6e9   :  { %v1453_v8 = vadd.f32 %v1450_v63, %v1213_v30 }
 0x6eb   :  { %2918 = vmatmul.msk.f32.vlgmr.msrb.gmra.mxu0 %vm296_vm3, %v1453_v8 }
 0x6ec   :  { %v1508_v14 = vpop.f32.mrf.mxu1 }
 0x6ed   :  { %v1509_v51 = vadd.f32 %v2975_v39, %v1508_v14 }
 0x6f4   :  { %v1511_v49 = vpop.f32.mrf.mxu1 }
 0x6f5   :  { %v1512_v55 = vadd.f32 %v2975_v39, %v1511_v49 }
 0x768   :  { %v1482_v11 = vpop.f32.mrf.mxu0 }
 0x769   :  { %v1483_v19 = vadd.f32 %v2976_v16, %v1482_v11 }
 0x76b   :  { %v1516_v18 = vrot.slane %v1483_v19, 1  ;;  %v1517_v53 = vperm.slane %v1483_v19, 0 }
 0x76d   :  { %v1518_v57 = vperm.slane %v1516_v18, 0  ;;  %v1521_v40 = vmul.f32 %v1517_v53, %v1509_v51 }
 0x76f   :  { %v1522_v37 = vmul.f32 %v1518_v57, %v1512_v55  ;;  %1717 = vrot.lane.b32.xlu0 %v1521_v40, %s3291_s30  ;;  %1618 = vrot.lane.b32.xlu1 %v1521_v40, %s3289_s7  ;;  %v1523_v61 = vsel %vm457_vm7, %v1521_v40, 0.0 }
 0x771   :  { %1620 = vrot.lane.b32.xlu2 %v1522_v37, %s3289_s7  ;;  %v1526_v1 = vsel %vm457_vm7, %v1522_v37, 0.0 }
 0x777   :  { %1818 = vrot.lane.b32.xlu0 %v1522_v37, %s3290_s4  ;;  %1719 = vrot.lane.b32.xlu1 %v1522_v37, %s3291_s30 }
 0x779   :  { %1816 = vrot.lane.b32.xlu2 %v1521_v40, %s3290_s4 }
 0x7a1   :  { %1524 = vadd.xlane.f32.xlu1 %v1523_v61 }
 0x7a2   :  { %1527 = vadd.xlane.f32.xlu2 %v1526_v1 }
 0x7cb   :  { %v1621_v15 = vpop.permute.xlu2 %1620 }
 0x7cc   :  { %v1627_v9 = vsel %vm457_vm7, %v1621_v15, 0.0 }
 0x7cd   :  { %1628 = vadd.xlane.f32.xlu2 %v1627_v9 }
 0x7d3   :  { %v1817_v42 = vpop.permute.xlu2 %1816 }
 0x7d4   :  { %v1822_v26 = vsel %vm457_vm7, %v1817_v42, 0.0 }
 0x7d5   :  { %1823 = vadd.xlane.f32.xlu2 %v1822_v26 }
 0x7e1   :  { %v1718_v27 = vpop.permute.xlu0 %1717  ;;  %v1619_v29 = vpop.permute.xlu1 %1618 }
 0x7e2   :  { %v1624_v4 = vsel %vm457_vm7, %v1619_v29, 0.0  ;;  %v1723_v50 = vsel %vm457_vm7, %v1718_v27, 0.0 }
 0x7e3   :  { %1625 = vadd.xlane.f32.xlu0 %v1624_v4  ;;  %1724 = vadd.xlane.f32.xlu1 %v1723_v50 }
 0x7e9   :  { %v1819_v17 = vpop.permute.xlu0 %1818  ;;  %v1720_v28 = vpop.permute.xlu1 %1719 }
 0x7ea   :  { %v1825_v6 = vsel %vm457_vm7, %v1819_v17, 0.0  ;;  %v1726_v13 = vsel %vm457_vm7, %v1720_v28, 0.0 }
 0x7eb   :  { %1826 = vadd.xlane.f32.xlu1 %v1825_v6  ;;  %1727 = vadd.xlane.f32.xlu0 %v1726_v13 }
 0x814   :  { %v1525_v35 = vpop.xlane.xlu1 %1524 }
 0x815   :  { %v1529_v46 = vmul.f32 0.35355338, %v1525_v35  ;;  %v1528_v34 = vpop.xlane.xlu2 %1527 }
 0x816   :  { %v1530_v44 = vmul.f32 0.35355338, %v1528_v34 }
 0x817   :  { %v1533_v33 = vperm.slane %v1529_v46, %v3674_v48 }
 0x818   :  { %v1534_v58 = vperm.slane %v1530_v44, %v3674_v48 }
 0x81a   :  { %v1535_v7 = vsel %vm532_vm8, %v1534_v58, %v1533_v33 }
 0x81b   :  { %v1537_v54 = vsel %vm535_vm9, %v1535_v7, -inf }
 0x81c   :  { %1538 = vmax.xlane.f32.xlu0 %v1537_v54 }
 0x840   :  { %v1629_v32 = vpop.xlane.xlu2 %1628 }
 0x841   :  { %v1631_v2 = vmul.f32 0.35355338, %v1629_v32 }
 0x843   :  { %v1635_v43 = vperm.slane %v1631_v2, %v3674_v48 }
 0x848   :  { %v1824_v12 = vpop.xlane.xlu2 %1823 }
 0x849   :  { %v1828_v31 = vmul.f32 0.35355338, %v1824_v12 }
 0x84b   :  { %v1832_v5 = vperm.slane %v1828_v31, %v3674_v48 }
 0x856   :  { %v1626_v45 = vpop.xlane.xlu0 %1625  ;;  %v1725_v60 = vpop.xlane.xlu1 %1724 }
 0x857   :  { %v1630_v36 = vmul.f32 0.35355338, %v1626_v45  ;;  %v1729_v0 = vmul.f32 0.35355338, %v1725_v60 }
 0x859   :  { %v1634_v10 = vperm.slane %v1630_v36, %v3674_v48  ;;  %v1733_v25 = vperm.slane %v1729_v0, %v3674_v48 }
 0x85b   :  { %v1636_v41 = vsel %vm532_vm8, %v1635_v43, %v1634_v10 }
 0x85c   :  { %v1638_v47 = vsel %vm535_vm9, %v1636_v41, -inf }
 0x85d   :  { %1639 = vmax.xlane.f32.xlu2 %v1638_v47 }
 0x85e   :  { %v1728_v20 = vpop.xlane.xlu0 %1727  ;;  %v1827_v22 = vpop.xlane.xlu1 %1826 }
 0x85f   :  { %v1730_v21 = vmul.f32 0.35355338, %v1728_v20  ;;  %v1829_v62 = vmul.f32 0.35355338, %v1827_v22 }
 0x861   :  { %v1734_v52 = vperm.slane %v1730_v21, %v3674_v48  ;;  %v1833_v23 = vperm.slane %v1829_v62, %v3674_v48 }
 0x863   :  { %v1735_v24 = vsel %vm532_vm8, %v1734_v52, %v1733_v25  ;;  %v1834_v56 = vsel %vm532_vm8, %v1833_v23, %v1832_v5 }
 0x864   :  { %v1737_v30 = vsel %vm535_vm9, %v1735_v24, -inf  ;;  %v1836_v63 = vsel %vm535_vm9, %v1834_v56, -inf }
 0x865   :  { %1738 = vmax.xlane.f32.xlu1 %v1737_v30  ;;  %1837 = vmax.xlane.f32.xlu0 %v1836_v63 }
 0x88f   :  { %v1539_v8 = vpop.xlane.xlu0 %1538 }
 0x890   :  { %v1541_v14 = vperm.slane %v1539_v8, 0  ;;  %v1542_v16 = vperm.slane %v1539_v8, 1 }
 0x892   :  { %v1545_v39 = vsub.f32 %v1529_v46, %v1541_v14  ;;  %v1546_v11 = vsub.f32 %v1530_v44, %v1542_v16 }
 0x894   :  { %v1547_v19 = vmul.f32 1.442695, %v1545_v39  ;;  %v1549_v49 = vmul.f32 1.442695, %v1546_v11 }
 0x896   :  { %3026 = vpow2.f32 %v1547_v19 }
 0x897   :  { %3028 = vpow2.f32 %v1549_v49 }
 0x89c   :  { %v4012_v51 = vpop.eup %3026 }
 0x89d   :  { %v4014_v18 = vpop.eup %3028  ;;  %1554 = vperm.xlu2 %2964, %v4012_v51  }
 0x89e   :  { %1557 = vperm.xlu1 %2965, %v4014_v18  }
 0x8d0   :  { %v1640_v53 = vpop.xlane.xlu2 %1639 }
 0x8d1   :  { %v1642_v55 = vperm.slane %v1640_v53, 0  ;;  %v1643_v57 = vperm.slane %v1640_v53, 1 }
 0x8d3   :  { %v1646_v40 = vsub.f32 %v1630_v36, %v1642_v55  ;;  %v1647_v37 = vsub.f32 %v1631_v2, %v1643_v57 }
 0x8d5   :  { %v1648_v61 = vmul.f32 1.442695, %v1646_v40  ;;  %v1650_v1 = vmul.f32 1.442695, %v1647_v37 }
 0x8d7   :  { %3030 = vpow2.f32 %v1648_v61 }
 0x8d8   :  { %3032 = vpow2.f32 %v1650_v1  ;;  %v1739_v15 = vpop.xlane.xlu1 %1738  ;;  %v1838_v9 = vpop.xlane.xlu0 %1837 }
 0x8d9   :  { %v1741_v42 = vperm.slane %v1739_v15, 0  ;;  %v1742_v26 = vperm.slane %v1739_v15, 1  ;;  %v1840_v27 = vperm.slane %v1838_v9, 0  ;;  %v1841_v50 = vperm.slane %v1838_v9, 1 }
 0x8db   :  { %v1745_v29 = vsub.f32 %v1729_v0, %v1741_v42  ;;  %v1746_v4 = vsub.f32 %v1730_v21, %v1742_v26  ;;  %v1844_v17 = vsub.f32 %v1828_v31, %v1840_v27  ;;  %v1845_v34 = vsub.f32 %v1829_v62, %v1841_v50 }
 0x8dd   :  { %v4018_v28 = vpop.eup %3030  ;;  %v1747_v6 = vmul.f32 1.442695, %v1745_v29  ;;  %v1749_v13 = vmul.f32 1.442695, %v1746_v4  ;;  %v1846_v35 = vmul.f32 1.442695, %v1844_v17 }
 0x8de   :  { %v4020_v46 = vpop.eup %3032  ;;  %1655 = vperm.xlu0 %2966, %v4018_v28   ;;  %v1848_v44 = vmul.f32 1.442695, %v1845_v34 }
 0x8df   :  { %3034 = vpow2.f32 %v1747_v6  ;;  %1658 = vperm.xlu2 %2964, %v4020_v46  }
 0x8e0   :  { %3036 = vpow2.f32 %v1749_v13  ;;  %v1915_v13 = vld [vmem:[%s4303_s24] sm:$0xff] }
 0x8e1   :  { %3038 = vpow2.f32 %v1846_v35  ;;  %1935 = vmatpush.msrb.mxu2 %v1915_v13  ;;  %2048 = vmatpush.msrb.mxu3 %v1915_v13  ;;  %v3297_v35 = vmov 0.0  }
 0x8e2   :  { %3040 = vpow2.f32 %v1848_v44  ;;  %1936 = vmatmul.f32.vlgmr.msrb.gmra.mxu2 %v3297_v35  ;;  %2164 = vmatpush.msra.mxu0 %v1915_v13 }
 0x8e3   :  { %2282 = vmatpush.msra.mxu2 %v1915_v13  ;;  %2400 = vmatpush.msra.mxu3 %v1915_v13 }
 0x8e4   :  { %2518 = vmatpush.msrb.mxu0 %v1915_v13  ;;  %2636 = vmatpush.msrb.mxu1 %v1915_v13 }
 0x8e5   :  { %v4024_v33 = vpop.eup %3034  ;;  %2754 = vmatpush.msrb.mxu2 %v1915_v13 }
 0x8e6   :  { %v4026_v58 = vpop.eup %3036  ;;  %1754 = vperm.xlu0 %2966, %v4024_v33  }
 0x8e7   :  { %v4029_v7 = vpop.eup %3038  ;;  %1757 = vperm.xlu1 %2965, %v4026_v58  }
 0x8e8   :  { %1853 = vperm.xlu2 %2964, %v4029_v7   ;;  %v4033_v54 = vpop.eup %3040 }
 0x8ee   :  { %1856 = vperm.xlu0 %2966, %v4033_v54  }
 0x8f7   :  { %v1555_v32 = vpop.permute.xlu2 %1554 }
 0x8f8   :  { %v1559_v45 = vperm.slane %v1555_v32, %v3674_v48 }
 0x910   :  { %v1558_v2 = vpop.permute.xlu1 %1557 }
 0x911   :  { %v1560_v60 = vperm.slane %v1558_v2, %v3674_v48 }
 0x913   :  { %v1561_v36 = vsel %vm532_vm8, %v1560_v60, %v1559_v45 }
 0x914   :  { %v1563_v43 = vsel %vm535_vm9, %v1561_v36, 0.0 }
 0x915   :  { %1564 = vadd.xlane.f32.xlu1 %v1563_v43 }
 0x939   :  { %v1659_v10 = vpop.permute.xlu2 %1658 }
 0x93a   :  { %v1661_v41 = vperm.slane %v1659_v10, %v3674_v48 }
 0x942   :  { %v1854_v52 = vpop.permute.xlu2 %1853 }
 0x943   :  { %v1858_v24 = vperm.slane %v1854_v52, %v3674_v48 }
 0x950   :  { %v1656_v12 = vpop.permute.xlu0 %1655 }
 0x951   :  { %v1660_v47 = vperm.slane %v1656_v12, %v3674_v48 }
 0x953   :  { %v1662_v31 = vsel %vm532_vm8, %v1661_v41, %v1660_v47 }
 0x954   :  { %v1664_v0 = vsel %vm535_vm9, %v1662_v31, 0.0 }
 0x955   :  { %1665 = vadd.xlane.f32.xlu2 %v1664_v0 }
 0x958   :  { %v1755_v20 = vpop.permute.xlu0 %1754 }
 0x959   :  { %v1758_v22 = vpop.permute.xlu1 %1757  ;;  %v1759_v21 = vperm.slane %v1755_v20, %v3674_v48 }
 0x95a   :  { %v1760_v62 = vperm.slane %v1758_v22, %v3674_v48 }
 0x95c   :  { %v1761_v5 = vsel %vm532_vm8, %v1760_v62, %v1759_v21 }
 0x95d   :  { %v1763_v25 = vsel %vm535_vm9, %v1761_v5, 0.0 }
 0x95e   :  { %1764 = vadd.xlane.f32.xlu0 %v1763_v25 }
 0x960   :  { %v1857_v23 = vpop.permute.xlu0 %1856 }
 0x961   :  { %v1859_v56 = vperm.slane %v1857_v23, %v3674_v48 }
 0x963   :  { %v1860_v30 = vsel %vm532_vm8, %v1859_v56, %v1858_v24 }
 0x964   :  { %v1862_v63 = vsel %vm535_vm9, %v1860_v30, 0.0 }
 0x965   :  { %1863 = vadd.xlane.f32.xlu1 %v1862_v63 }
 0x988   :  { %v1565_v8 = vpop.xlane.xlu1 %1564 }
 0x989   :  { %v1567_v14 = vperm.slane %v1565_v8, 0  ;;  %v1568_v16 = vperm.slane %v1565_v8, 1 }
 0x98b   :  { %3042 = vrcp.f32 %v1567_v14  ;;  %v1582_v57 = vand.u32 2147483648, %v1567_v14  ;;  %v1597_v40 = vand.u32 2147483648, %v1568_v16  ;;  %v1580_v48 = vand.u32 2147483647, %v1567_v14 }
 0x98c   :  { %3044 = vrcp.f32 %v1568_v16  ;;  %v1595_v1 = vand.u32 2147483647, %v1568_v16  ;;  %vm1576_vm9 = vweird.f32 %v1567_v14  ;;  %vm1591_vm6 = vweird.f32 %v1568_v16 }
 0x98d   :  { %v1583_v42 = vor.u32 1.1754944e-38, %v1582_v57  ;;  %v1598_v26 = vor.u32 1.1754944e-38, %v1597_v40  ;;  %vm1581_vm12 = vcmp.eq.f32.partialorder %v1580_v48, 8.507059e+37 }
 0x98e   :  { %vm1596_vm13 = vcmp.eq.f32.partialorder %v1595_v1, 8.507059e+37 }
 0x991   :  { %v3043_v39 = vpop.eup %3042 }
 0x992   :  { %v3045_v11 = vpop.eup %3044  ;;  %v1572_v19 = vmul.f32 %v3043_v39, %v1567_v14  ;;  %vm1577_vm3 = vweird.f32 %v3043_v39 }
 0x993   :  { %v1587_v49 = vmul.f32 %v3045_v11, %v1568_v16  ;;  %vm1592_vm5 = vweird.f32 %v3045_v11  ;;  %vm1578_vm10 = vmor %vm1576_vm9, %vm1577_vm3 }
 0x994   :  { %v1573_v53 = vsub.f32 1.0, %v1572_v19  ;;  %vm1593_vm11 = vmor %vm1591_vm6, %vm1592_vm5 }
 0x995   :  { %v1588_v55 = vsub.f32 1.0, %v1587_v49 }
 0x996   :  { %v1574_v37 = vmul.f32 %v3043_v39, %v1573_v53 }
 0x997   :  { %v1589_v61 = vmul.f32 %v3045_v11, %v1588_v55 }
 0x998   :  { %v1575_v15 = vadd.f32 %v3043_v39, %v1574_v37 }
 0x999   :  { %v1590_v9 = vadd.f32 %v3045_v11, %v1589_v61 }
 0x99a   :  { %v1579_v27 = vsel %vm1578_vm10, %v3043_v39, %v1575_v15 }
 0x99b   :  { %v1594_v29 = vsel %vm1593_vm11, %v3045_v11, %v1590_v9  ;;  %v1584_v4 = vsel %vm1581_vm12, %v1583_v42, %v1579_v27 }
 0x99c   :  { %v1599_v50 = vsel %vm1596_vm13, %v1598_v26, %v1594_v29  ;;  %v1585_v17 = vmul.f32 %v4012_v51, %v1584_v4 }
 0x99d   :  { %v1600_v6 = vmul.f32 %v4014_v18, %v1599_v50 }
 0x99e   :  { %1603 = vperm.xlu1 %2965, %v1585_v17  }
 0x99f   :  { %1608 = vperm.xlu2 %2964, %v1600_v6  }
 0x9c8   :  { %v1666_v34 = vpop.xlane.xlu2 %1665 }
 0x9c9   :  { %v1668_v51 = vperm.slane %v1666_v34, 0  ;;  %v1669_v44 = vperm.slane %v1666_v34, 1 }
 0x9cb   :  { %3046 = vrcp.f32 %v1668_v51  ;;  %v1698_v41 = vand.u32 2147483648, %v1669_v44  ;;  %v1696_v0 = vand.u32 2147483647, %v1669_v44  ;;  %vm1692_vm15 = vweird.f32 %v1669_v44 }
 0x9cc   :  { %3048 = vrcp.f32 %v1669_v44  ;;  %vm1677_vm4 = vweird.f32 %v1668_v51  ;;  %v1681_v23 = vand.u32 2147483647, %v1668_v51  ;;  %v1683_v24 = vand.u32 2147483648, %v1668_v51 }
 0x9cd   :  { %v1699_v52 = vor.u32 1.1754944e-38, %v1698_v41  ;;  %vm1697_vm3 = vcmp.eq.f32.partialorder %v1696_v0, 8.507059e+37 }
 0x9ce   :  { %v1684_v40 = vor.u32 1.1754944e-38, %v1683_v24  ;;  %vm1682_vm6 = vcmp.eq.f32.partialorder %v1681_v23, 8.507059e+37 }
 0x9d1   :  { %v3047_v18 = vpop.eup %3046  ;;  %v1765_v32 = vpop.xlane.xlu0 %1764 }
 0x9d2   :  { %v3049_v2 = vpop.eup %3048  ;;  %v1673_v45 = vmul.f32 %v3047_v18, %v1668_v51  ;;  %v4057_v60 = vperm.slane %v1765_v32, 0  ;;  %v1768_v36 = vperm.slane %v1765_v32, 1  ;;  %vm1678_vm1 = vweird.f32 %v3047_v18 }
 0x9d3   :  { %v1688_v43 = vmul.f32 %v3049_v2, %v1669_v44  ;;  %vm1693_vm14 = vweird.f32 %v3049_v2  ;;  %vm4068_vm5 = vmor %vm1677_vm4, %vm1678_vm1 }
 0x9d4   :  { %v1674_v10 = vsub.f32 1.0, %v1673_v45  ;;  %3050 = vrcp.f32 %v4057_v60  ;;  %vm1694_vm2 = vmor %vm1692_vm15, %vm1693_vm14  ;;  %v1795_v19 = vand.u32 2147483647, %v1768_v36  ;;  %v1797_v55 = vand.u32 2147483648, %v1768_v36 }
 0x9d5   :  { %v1689_v12 = vsub.f32 1.0, %v1688_v43  ;;  %3052 = vrcp.f32 %v1768_v36  ;;  %v1782_v57 = vand.u32 2147483648, %v4057_v60  ;;  %v1780_v48 = vand.u32 2147483647, %v4057_v60 }
 0x9d6   :  { %v1675_v47 = vmul.f32 %v3047_v18, %v1674_v10  ;;  %vm1791_vm11 = vweird.f32 %v1768_v36  ;;  %vm4077_vm12 = vcmp.eq.f32.partialorder %v1795_v19, 8.507059e+37  ;;  %vm1776_vm13 = vweird.f32 %v4057_v60 }
 0x9d7   :  { %v1690_v31 = vmul.f32 %v3049_v2, %v1689_v12  ;;  %v1798_v29 = vor.u32 1.1754944e-38, %v1797_v55  ;;  %v1783_v4 = vor.u32 1.1754944e-38, %v1782_v57  ;;  %vm1781_vm1 = vcmp.eq.f32.partialorder %v1780_v48, 8.507059e+37  ;;  %v1937_v57 = vpop.f32.mrf.mxu2  ;;  %v4107_v48 = vld [vmem:[%s4304_s25] ss:$0 sm:$0xff] }
 0x9d8   :  { %v1864_v20 = vpop.xlane.xlu1 %1863  ;;  %v1676_v5 = vadd.f32 %v3047_v18, %v1675_v47  ;;  %v2841_v47 = vadd.s32 8, %v3541_v38  ;;  %v1514_v38 = vld [vmem:[%s4302_s23] sm:$0xf] }
 0x9d9   :  { %v4060_v22 = vperm.slane %v1864_v20, 0  ;;  %v4062_v21 = vperm.slane %v1864_v20, 1  ;;  %v1691_v62 = vadd.f32 %v3049_v2, %v1690_v31  ;;  %v1712_v23 = vperm.slane %v1514_v38, 1 }
 0x9da   :  { %v3051_v25 = vpop.eup %3050  ;;  %v1680_v49 = vsel %vm4068_vm5, %v3047_v18, %v1676_v5  ;;  %v1611_v24 = vperm.slane %v1514_v38, 0 }
 0x9db   :  { %v3053_v56 = vpop.eup %3052  ;;  %v1772_v30 = vmul.f32 %v3051_v25, %v4057_v60  ;;  %3054 = vrcp.f32 %v4060_v22  ;;  %v1695_v63 = vsel %vm1694_vm2, %v3049_v2, %v1691_v62  ;;  %vm1777_vm9 = vweird.f32 %v3051_v25 }
 0x9dc   :  { %v1787_v8 = vmul.f32 %v3053_v56, %v1768_v36  ;;  %3056 = vrcp.f32 %v4062_v21  ;;  %v1700_v14 = vsel %vm1697_vm3, %v1699_v52, %v1695_v63  ;;  %vm1792_vm10 = vweird.f32 %v3053_v56  ;;  %vm1778_vm14 = vmor %vm1776_vm13, %vm1777_vm9 }
 0x9dd   :  { %v1773_v39 = vsub.f32 1.0, %v1772_v30  ;;  %v1701_v11 = vmul.f32 %v4020_v46, %v1700_v14  ;;  %v1685_v1 = vsel %vm1682_vm6, %v1684_v40, %v1680_v49  ;;  %vm1793_vm15 = vmor %vm1791_vm11, %vm1792_vm10  ;;  %v1879_v51 = vand.u32 2147483647, %v4060_v22 }
 0x9de   :  { %v1788_v53 = vsub.f32 1.0, %v1787_v8  ;;  %v1686_v6 = vmul.f32 %v4018_v28, %v1685_v1  ;;  %v1881_v2 = vand.u32 2147483648, %v4060_v22  ;;  %v1896_v36 = vand.u32 2147483648, %v4062_v21 }
 0x9df   :  { %1709 = vperm.xlu0 %2966, %v1701_v11   ;;  %v1774_v37 = vmul.f32 %v3051_v25, %v1773_v39  ;;  %v1894_v43 = vand.u32 2147483647, %v4062_v21  ;;  %vm1875_vm3 = vweird.f32 %v4060_v22  ;;  %vm1890_vm9 = vweird.f32 %v4062_v21 }
 0x9e0   :  { %v1789_v61 = vmul.f32 %v3053_v56, %v1788_v53  ;;  %vm1880_vm6 = vcmp.eq.f32.partialorder %v1879_v51, 8.507059e+37  ;;  %v1941_v1 = vrot.slane %v1937_v57, 1 }
 0x9e1   :  { %v3055_v15 = vpop.eup %3054  ;;  %v1775_v9 = vadd.f32 %v3051_v25, %v1774_v37  ;;  %vm1895_vm11 = vcmp.eq.f32.partialorder %v1894_v43, 8.507059e+37 }
 0x9e2   :  { %v3057_v42 = vpop.eup %3056  ;;  %v1871_v26 = vmul.f32 %v3055_v15, %v4060_v22  ;;  %v1790_v27 = vadd.f32 %v3053_v56, %v1789_v61  ;;  %vm1876_vm2 = vweird.f32 %v3055_v15 }
 0x9e3   :  { %v1886_v50 = vmul.f32 %v3057_v42, %v4062_v21  ;;  %v1779_v17 = vsel %vm1778_vm14, %v3051_v25, %v1775_v9  ;;  %vm1891_vm4 = vweird.f32 %v3057_v42  ;;  %vm1877_vm5 = vmor %vm1875_vm3, %vm1876_vm2 }
 0x9e4   :  { %v1872_v13 = vsub.f32 1.0, %v1871_v26  ;;  %v1794_v35 = vsel %vm1793_vm15, %v3053_v56, %v1790_v27  ;;  %v1784_v34 = vsel %vm1781_vm1, %v1783_v4, %v1779_v17  ;;  %vm1892_vm10 = vmor %vm1890_vm9, %vm1891_vm4  ;;  %v1811_v56 = vperm.slane %v1514_v38, 2 }
 0x9e5   :  { %v1887_v44 = vsub.f32 1.0, %v1886_v50  ;;  %v1799_v18 = vsel %vm4077_vm12, %v1798_v29, %v1794_v35  ;;  %v1785_v32 = vmul.f32 %v4024_v33, %v1784_v34  ;;  %v1882_v33 = vor.u32 1.1754944e-38, %v1881_v2 }
 0x9e6   :  { %v1873_v45 = vmul.f32 %v3055_v15, %v1872_v13  ;;  %v1800_v60 = vmul.f32 %v4026_v58, %v1799_v18  ;;  %v1897_v58 = vor.u32 1.1754944e-38, %v1896_v36 }
 0x9e7   :  { %1803 = vperm.xlu1 %2965, %v1785_v32   ;;  %1704 = vperm.xlu0 %2966, %v1686_v6   ;;  %v1888_v28 = vmul.f32 %v3057_v42, %v1887_v44 }
 0x9e8   :  { %1808 = vperm.xlu2 %2964, %v1800_v60   ;;  %v1874_v10 = vadd.f32 %v3055_v15, %v1873_v45 }
 0x9e9   :  { %v1889_v12 = vadd.f32 %v3057_v42, %v1888_v28 }
 0x9ea   :  { %v1878_v41 = vsel %vm1877_vm5, %v3055_v15, %v1874_v10 }
 0x9eb   :  { %v1883_v31 = vsel %vm1880_vm6, %v1882_v33, %v1878_v41  ;;  %v1893_v0 = vsel %vm1892_vm10, %v3057_v42, %v1889_v12 }
 0x9ec   :  { %v1884_v20 = vmul.f32 %v4029_v7, %v1883_v31  ;;  %v1898_v62 = vsel %vm1895_vm11, %v1897_v58, %v1893_v0 }
 0x9ed   :  { %v1899_v5 = vmul.f32 %v4033_v54, %v1898_v62  ;;  %v1910_v54 = vperm.slane %v1514_v38, 3 }
 0x9ef   :  { %1907 = vperm.xlu0 %2966, %v1899_v5   ;;  %2968 = vset.pattern.permute.xlu1 %v2841_v47 }
 0x9f0   :  { %1902 = vperm.xlu2 %2964, %v1884_v20  }
 0x9f7   :  { %2969 = vset.pattern.permute.xlu0 %v2841_v47 }
 0x9f8   :  { %2967 = vset.pattern.permute.xlu2 %v2841_v47 }
 0x9f9   :  { %v1609_v22 = vpop.permute.xlu2 %1608 }
 0x9fa   :  { %v1613_v39 = vmul.f32 %v1611_v24, %v1609_v22 }
 0xa10   :  { %v1604_v21 = vpop.permute.xlu1 %1603 }
 0xa11   :  { %v1612_v63 = vmul.f32 %v1611_v24, %v1604_v21 }
 0xa42   :  { %v1809_v25 = vpop.permute.xlu2 %1808 }
 0xa43   :  { %v1813_v40 = vmul.f32 %v1811_v56, %v1809_v25 }
 0xa4a   :  { %v1903_v16 = vpop.permute.xlu2 %1902 }
 0xa4b   :  { %v1911_v49 = vmul.f32 %v1910_v54, %v1903_v16 }
 0xa51   :  { %v1710_v52 = vpop.permute.xlu0 %1709 }
 0xa52   :  { %v1714_v8 = vmul.f32 %v1712_v23, %v1710_v52 }
 0xa54   :  { %v1716_v53 = vadd.f32 %v1714_v8, %v1613_v39 }
 0xa56   :  { %v1815_v46 = vadd.f32 %v1813_v40, %v1716_v53 }
 0xa59   :  { %v1804_v7 = vpop.permute.xlu1 %1803  ;;  %v1705_v30 = vpop.permute.xlu0 %1704 }
 0xa5a   :  { %v1713_v14 = vmul.f32 %v1712_v23, %v1705_v30  ;;  %v1812_v11 = vmul.f32 %v1811_v56, %v1804_v7 }
 0xa5c   :  { %v1715_v19 = vadd.f32 %v1713_v14, %v1612_v63 }
 0xa5e   :  { %v1814_v55 = vadd.f32 %v1812_v11, %v1715_v19 }
 0xa60   :  { %v4102_v37 = vadd.f32 %v1911_v49, %v1814_v55 }
 0xa61   :  { %v1908_v61 = vpop.permute.xlu0 %1907 }
 0xa62   :  { %v1944_v15 = vadd.f32 %v1937_v57, %v4102_v37  ;;  %v1912_v9 = vmul.f32 %v1910_v54, %v1908_v61 }
 0xa64   :  { %v1949_v42 = vadd.f32 %v4107_v48, %v1944_v15  ;;  %v4111_v26 = vadd.f32 %v1912_v9, %v1815_v46 }
 0xa66   :  { %3058 = vtanh.f32 %v1949_v42  ;;  %v1945_v27 = vadd.f32 %v1941_v1, %v4111_v26  ;;  %v2921_v17 = vmul.f32 -1.442695, %v1949_v42 }
 0xa68   :  { %v1950_v29 = vadd.f32 %v4107_v48, %v1945_v27 }
 0xa6a   :  { %3060 = vtanh.f32 %v1950_v29  ;;  %v2922_v6 = vmul.f32 -1.442695, %v1950_v29 }
 0xa6b   :  { %3062 = vpow2.f32 %v2921_v17 }
 0xa6c   :  { %v3059_v4 = vpop.eup %3058  ;;  %3064 = vpow2.f32 %v2922_v6 }
 0xa6d   :  { %1995 = vrot.lane.b32.xlu0 %v3059_v4, %s3291_s30 }
 0xa70   :  { %v3061_v50 = vpop.eup %3060 }
 0xa71   :  { %1997 = vrot.lane.b32.xlu1 %v3061_v50, %s3291_s30  ;;  %v3063_v13 = vpop.eup %3062 }
 0xa72   :  { %v1957_v35 = vadd.f32 1.0, %v3063_v13  ;;  %v3065_v34 = vpop.eup %3064 }
 0xa73   :  { %v1958_v51 = vadd.f32 1.0, %v3065_v34 }
 0xa74   :  { %3066 = vrcp.f32 %v1957_v35  ;;  %v1970_v10 = vand.u32 2147483648, %v1957_v35  ;;  %vm1964_vm13 = vweird.f32 %v1957_v35  ;;  %v1968_v33 = vand.u32 2147483647, %v1957_v35 }
 0xa75   :  { %3068 = vrcp.f32 %v1958_v51  ;;  %v1985_v47 = vand.u32 2147483648, %v1958_v51  ;;  %vm1979_vm2 = vweird.f32 %v1958_v51  ;;  %v1983_v31 = vand.u32 2147483647, %v1958_v51 }
 0xa76   :  { %v1971_v58 = vor.u32 1.1754944e-38, %v1970_v10  ;;  %vm1969_vm1 = vcmp.eq.f32.partialorder %v1968_v33, 8.507059e+37 }
 0xa77   :  { %v1986_v22 = vor.u32 1.1754944e-38, %v1985_v47  ;;  %vm1984_vm3 = vcmp.eq.f32.partialorder %v1983_v31, 8.507059e+37 }
 0xa7a   :  { %v3067_v44 = vpop.eup %3066 }
 0xa7b   :  { %v1960_v18 = vmul.f32 %v3067_v44, %v1957_v35  ;;  %v3069_v32 = vpop.eup %3068  ;;  %vm1965_vm12 = vweird.f32 %v3067_v44 }
 0xa7c   :  { %v1975_v45 = vmul.f32 %v3069_v32, %v1958_v51  ;;  %vm1966_vm14 = vmor %vm1964_vm13, %vm1965_vm12  ;;  %vm1980_vm15 = vweird.f32 %v3069_v32 }
 0xa7d   :  { %v1961_v2 = vsub.f32 1.0, %v1960_v18  ;;  %vm1981_vm4 = vmor %vm1979_vm2, %vm1980_vm15 }
 0xa7e   :  { %v1976_v36 = vsub.f32 1.0, %v1975_v45 }
 0xa7f   :  { %v1962_v60 = vmul.f32 %v3067_v44, %v1961_v2 }
 0xa80   :  { %v1977_v43 = vmul.f32 %v3069_v32, %v1976_v36 }
 0xa81   :  { %v1963_v28 = vadd.f32 %v3067_v44, %v1962_v60 }
 0xa82   :  { %v1978_v41 = vadd.f32 %v3069_v32, %v1977_v43 }
 0xa83   :  { %v1967_v12 = vsel %vm1966_vm14, %v3067_v44, %v1963_v28 }
 0xa84   :  { %v1972_v20 = vsel %vm1969_vm1, %v1971_v58, %v1967_v12  ;;  %v1982_v5 = vsel %vm1981_vm4, %v3069_v32, %v1978_v41 }
 0xa85   :  { %v1987_v25 = vsel %vm1984_vm3, %v1986_v22, %v1982_v5  ;;  %v1991_v7 = vmul.f32 0.0, %v1972_v20 }
 0xa86   :  { %v1992_v38 = vmul.f32 0.0, %v1987_v25 }
 0xadf   :  { %v1996_v0 = vpop.permute.xlu0 %1995 }
 0xae0   :  { %v2001_v62 = vmul.f32 %v1996_v0, %v1972_v20 }
 0xae2   :  { %2005 = vrot.lane.b32.xlu1 %v2001_v62, %s3298_s6 }
 0xae3   :  { %v1998_v21 = vpop.permute.xlu1 %1997 }
 0xae4   :  { %v2002_v52 = vmul.f32 %v1998_v21, %v1987_v25 }
 0xae6   :  { %2007 = vrot.lane.b32.xlu2 %v2002_v52, %s3298_s6 }
 0xb40   :  { %v2008_v23 = vpop.permute.xlu2 %2007 }
 0xb41   :  { %v4119_v24 = vadd.f32 %v2008_v23, %v1992_v38 }
 0xb43   :  { %3070 = vtanh.f32 %v4119_v24  ;;  %v2104_v62 = vrot.slane %v4119_v24, 7 }
 0xb49   :  { %v3071_v56 = vpop.eup %3070 }
 0xb4a   :  { %2019 = vrot.lane.b32.xlu0 %v3071_v56, %s3299_s11 }
 0xb54   :  { %v2006_v30 = vpop.permute.xlu1 %2005 }
 0xb55   :  { %v4123_v63 = vadd.f32 %v2006_v30, %v1991_v7 }
 0xb57   :  { %3072 = vtanh.f32 %v4123_v63  ;;  %v2103_v52 = vrot.slane %v4123_v63, 7 }
 0xb5d   :  { %v3073_v54 = vpop.eup %3072 }
 0xb5e   :  { %2017 = vrot.lane.b32.xlu2 %v3073_v54, %s3299_s11 }
 0xbb8   :  { %v2018_v8 = vpop.permute.xlu2 %2017 }
 0xbb9   :  { %v2023_v39 = vmul.f32 %v2018_v8, %v1972_v20 }
 0xbbc   :  { %v2020_v14 = vpop.permute.xlu0 %2019 }
 0xbbd   :  { %v2024_v16 = vmul.f32 %v2020_v14, %v1987_v25 }
 0xbbf   :  { %v2027_v11 = vrot.slane %v2024_v16, 7 }
 0xbc1   :  { %v2028_v19 = vsel %vm532_vm8, %v2027_v11, %v2023_v39 }
 0xbc2   :  { %2029 = vrot.lane.b32.xlu1 %v2028_v19, %s3290_s4 }
 0xc34   :  { %v2030_v49 = vpop.permute.xlu1 %2029 }
 0xc35   :  { %2923 = vmatmul.msk.f32.vlgmr.msrb.gmra.mxu3 %vm457_vm7, %v2030_v49 }
 0xcb8   :  { %v2050_v53 = vpop.f32.mrf.mxu3 }
 0xcb9   :  { %v2054_v55 = vrot.slane %v2050_v53, 7  ;;  %v2058_v57 = vadd.f32 %v2050_v53, %v4111_v26 }
 0xcbb   :  { %v2057_v40 = vadd.f32 %v2054_v55, %v4102_v37  ;;  %v2060_v61 = vadd.f32 %v4107_v48, %v2058_v57 }
 0xcbd   :  { %v2059_v1 = vadd.f32 %v4107_v48, %v2057_v40  ;;  %3074 = vtanh.f32 %v2060_v61  ;;  %v2925_v9 = vmul.f32 -1.442695, %v2060_v61 }
 0xcbf   :  { %3076 = vtanh.f32 %v2059_v1  ;;  %v2924_v50 = vmul.f32 -1.442695, %v2059_v1 }
 0xcc0   :  { %3078 = vpow2.f32 %v2925_v9 }
 0xcc3   :  { %v3075_v15 = vpop.eup %3074 }
 0xcc4   :  { %2113 = vrot.lane.b32.xlu2 %v3075_v15, %s3291_s30 }
 0xcc5   :  { %v3077_v46 = vpop.eup %3076 }
 0xcc6   :  { %2111 = vrot.lane.b32.xlu0 %v3077_v46, %s3291_s30  ;;  %v3079_v42 = vpop.eup %3078 }
 0xcc7   :  { %v2068_v27 = vadd.f32 1.0, %v3079_v42 }
 0xcc9   :  { %3080 = vrcp.f32 %v2068_v27  ;;  %v2095_v34 = vand.u32 2147483648, %v2068_v27  ;;  %vm2089_vm9 = vweird.f32 %v2068_v27  ;;  %v2093_v44 = vand.u32 2147483647, %v2068_v27 }
 0xcca   :  { %3082 = vpow2.f32 %v2924_v50 }
 0xccb   :  { %v2096_v32 = vor.u32 1.1754944e-38, %v2095_v34  ;;  %vm2094_vm10 = vcmp.eq.f32.partialorder %v2093_v44, 8.507059e+37 }
 0xccf   :  { %v3081_v29 = vpop.eup %3080 }
 0xcd0   :  { %v2085_v4 = vmul.f32 %v3081_v29, %v2068_v27  ;;  %v3083_v13 = vpop.eup %3082  ;;  %vm2090_vm5 = vweird.f32 %v3081_v29 }
 0xcd1   :  { %v2067_v51 = vadd.f32 1.0, %v3083_v13  ;;  %vm2091_vm6 = vmor %vm2089_vm9, %vm2090_vm5 }
 0xcd2   :  { %v2086_v17 = vsub.f32 1.0, %v2085_v4 }
 0xcd3   :  { %3084 = vrcp.f32 %v2067_v51  ;;  %v2080_v12 = vand.u32 2147483648, %v2067_v51  ;;  %vm2074_vm12 = vweird.f32 %v2067_v51  ;;  %v2078_v41 = vand.u32 2147483647, %v2067_v51 }
 0xcd4   :  { %v2087_v6 = vmul.f32 %v3081_v29, %v2086_v17 }
 0xcd5   :  { %v2081_v47 = vor.u32 1.1754944e-38, %v2080_v12  ;;  %vm2079_vm14 = vcmp.eq.f32.partialorder %v2078_v41, 8.507059e+37 }
 0xcd6   :  { %v2088_v35 = vadd.f32 %v3081_v29, %v2087_v6 }
 0xcd8   :  { %v2092_v18 = vsel %vm2091_vm6, %v3081_v29, %v2088_v35 }
 0xcd9   :  { %v2097_v45 = vsel %vm2094_vm10, %v2096_v32, %v2092_v18  ;;  %v3085_v36 = vpop.eup %3084 }
 0xcda   :  { %v2070_v28 = vmul.f32 %v3085_v36, %v2067_v51  ;;  %vm2075_vm11 = vweird.f32 %v3085_v36  ;;  %v2108_v5 = vmul.f32 %v2104_v62, %v2097_v45 }
 0xcdb   :  { %vm2076_vm13 = vmor %vm2074_vm12, %vm2075_vm11 }
 0xcdc   :  { %v2071_v43 = vsub.f32 1.0, %v2070_v28 }
 0xcde   :  { %v2072_v10 = vmul.f32 %v3085_v36, %v2071_v43 }
 0xce0   :  { %v2073_v33 = vadd.f32 %v3085_v36, %v2072_v10 }
 0xce2   :  { %v2077_v58 = vsel %vm2076_vm13, %v3085_v36, %v2073_v33 }
 0xce3   :  { %v2082_v0 = vsel %vm2079_vm14, %v2081_v47, %v2077_v58 }
 0xce4   :  { %v2107_v38 = vmul.f32 %v2103_v52, %v2082_v0 }
 0xd1e   :  { %v2114_v2 = vpop.permute.xlu2 %2113 }
 0xd1f   :  { %v2118_v60 = vmul.f32 %v2114_v2, %v2097_v45 }
 0xd21   :  { %2123 = vrot.lane.b32.xlu0 %v2118_v60, %s3298_s6 }
 0xd38   :  { %v2112_v31 = vpop.permute.xlu0 %2111 }
 0xd39   :  { %v2117_v20 = vmul.f32 %v2112_v31, %v2082_v0 }
 0xd3b   :  { %2121 = vrot.lane.b32.xlu1 %v2117_v20, %s3298_s6 }
 0xd93   :  { %v2124_v22 = vpop.permute.xlu0 %2123 }
 0xd94   :  { %v4139_v21 = vadd.f32 %v2124_v22, %v2108_v5 }
 0xd96   :  { %3086 = vtanh.f32 %v4139_v21 }
 0xd9c   :  { %v3087_v25 = vpop.eup %3086 }
 0xd9d   :  { %2135 = vrot.lane.b32.xlu1 %v3087_v25, %s3299_s11 }
 0xdad   :  { %v2122_v23 = vpop.permute.xlu1 %2121 }
 0xdae   :  { %v4144_v56 = vadd.f32 %v2122_v23, %v2107_v38 }
 0xdb0   :  { %3088 = vtanh.f32 %v4144_v56  ;;  %v2220_v31 = vrot.slane %v4144_v56, 7 }
 0xdb6   :  { %v3089_v7 = vpop.eup %3088 }
 0xdb7   :  { %2133 = vrot.lane.b32.xlu2 %v3089_v7, %s3299_s11 }
 0xe0f   :  { %v2136_v24 = vpop.permute.xlu1 %2135 }
 0xe10   :  { %v2140_v8 = vmul.f32 %v2136_v24, %v2097_v45 }
 0xe11   :  { %v2134_v30 = vpop.permute.xlu2 %2133 }
 0xe12   :  { %v2139_v54 = vmul.f32 %v2134_v30, %v2082_v0  ;;  %v2221_v0 = vrot.slane %v4139_v21, 7 }
 0xe14   :  { %v2143_v14 = vrot.slane %v2139_v54, 1 }
 0xe16   :  { %v2144_v16 = vsel %vm532_vm8, %v2140_v8, %v2143_v14 }
 0xe17   :  { %2145 = vrot.lane.b32.xlu0 %v2144_v16, %s3290_s4 }
 0xe89   :  { %v2146_v39 = vpop.permute.xlu0 %2145 }
 0xe8a   :  { %2926 = vmatmul.msk.f32.vlgmr.msra.gmra.mxu0 %vm457_vm7, %v2146_v39 }
 0xf07   :  { %v2166_v63 = vpop.f32.mrf.mxu0 }
 0xf08   :  { %v2170_v11 = vrot.slane %v2166_v63, 6  ;;  %v2171_v19 = vrot.slane %v2166_v63, 7 }
 0xf0a   :  { %v2174_v49 = vadd.f32 %v2170_v11, %v4102_v37  ;;  %v2175_v53 = vadd.f32 %v2171_v19, %v4111_v26 }
 0xf0c   :  { %v2176_v55 = vadd.f32 %v4107_v48, %v2174_v49  ;;  %v2177_v57 = vadd.f32 %v4107_v48, %v2175_v53 }
 0xf0e   :  { %3090 = vtanh.f32 %v2176_v55  ;;  %v2927_v1 = vmul.f32 -1.442695, %v2176_v55  ;;  %v2928_v42 = vmul.f32 -1.442695, %v2177_v57 }
 0xf0f   :  { %3092 = vtanh.f32 %v2177_v57 }
 0xf10   :  { %3094 = vpow2.f32 %v2927_v1 }
 0xf14   :  { %v3091_v40 = vpop.eup %3090 }
 0xf15   :  { %v3093_v61 = vpop.eup %3092  ;;  %2228 = vrot.lane.b32.xlu2 %v3091_v40, %s3291_s30 }
 0xf16   :  { %2230 = vrot.lane.b32.xlu1 %v3093_v61, %s3291_s30  ;;  %v3095_v15 = vpop.eup %3094 }
 0xf17   :  { %v2184_v46 = vadd.f32 1.0, %v3095_v15 }
 0xf19   :  { %3096 = vrcp.f32 %v2184_v46  ;;  %v2197_v13 = vand.u32 2147483648, %v2184_v46  ;;  %vm2191_vm1 = vweird.f32 %v2184_v46  ;;  %v2195_v35 = vand.u32 2147483647, %v2184_v46 }
 0xf1a   :  { %3098 = vpow2.f32 %v2928_v42 }
 0xf1b   :  { %v2198_v51 = vor.u32 1.1754944e-38, %v2197_v13  ;;  %vm2196_vm4 = vcmp.eq.f32.partialorder %v2195_v35, 8.507059e+37 }
 0xf1f   :  { %v3097_v9 = vpop.eup %3096 }
 0xf20   :  { %v2187_v27 = vmul.f32 %v3097_v9, %v2184_v46  ;;  %v3099_v50 = vpop.eup %3098  ;;  %vm2192_vm15 = vweird.f32 %v3097_v9 }
 0xf21   :  { %v2185_v17 = vadd.f32 1.0, %v3099_v50  ;;  %vm2193_vm2 = vmor %vm2191_vm1, %vm2192_vm15 }
 0xf22   :  { %v2188_v29 = vsub.f32 1.0, %v2187_v27 }
 0xf23   :  { %3100 = vrcp.f32 %v2185_v17  ;;  %v2212_v43 = vand.u32 2147483648, %v2185_v17  ;;  %vm2206_vm5 = vweird.f32 %v2185_v17  ;;  %v2210_v10 = vand.u32 2147483647, %v2185_v17 }
 0xf24   :  { %v2189_v4 = vmul.f32 %v3097_v9, %v2188_v29 }
 0xf25   :  { %v2213_v12 = vor.u32 1.1754944e-38, %v2212_v43  ;;  %vm2211_vm6 = vcmp.eq.f32.partialorder %v2210_v10, 8.507059e+37 }
 0xf26   :  { %v2190_v6 = vadd.f32 %v3097_v9, %v2189_v4 }
 0xf28   :  { %v2194_v34 = vsel %vm2193_vm2, %v3097_v9, %v2190_v6 }
 0xf29   :  { %v2199_v18 = vsel %vm2196_vm4, %v2198_v51, %v2194_v34  ;;  %v3101_v2 = vpop.eup %3100 }
 0xf2a   :  { %v2202_v45 = vmul.f32 %v3101_v2, %v2185_v17  ;;  %vm2207_vm3 = vweird.f32 %v3101_v2  ;;  %v2224_v20 = vmul.f32 %v2220_v31, %v2199_v18 }
 0xf2b   :  { %vm2208_vm9 = vmor %vm2206_vm5, %vm2207_vm3 }
 0xf2c   :  { %v2203_v60 = vsub.f32 1.0, %v2202_v45 }
 0xf2e   :  { %v2204_v36 = vmul.f32 %v3101_v2, %v2203_v60 }
 0xf30   :  { %v2205_v28 = vadd.f32 %v3101_v2, %v2204_v36 }
 0xf32   :  { %v2209_v33 = vsel %vm2208_vm9, %v3101_v2, %v2205_v28 }
 0xf33   :  { %v2214_v58 = vsel %vm2211_vm6, %v2213_v12, %v2209_v33 }
 0xf34   :  { %v2225_v62 = vmul.f32 %v2221_v0, %v2214_v58 }
 0xf6f   :  { %v2229_v44 = vpop.permute.xlu2 %2228 }
 0xf70   :  { %v2234_v32 = vmul.f32 %v2229_v44, %v2199_v18 }
 0xf72   :  { %2238 = vrot.lane.b32.xlu0 %v2234_v32, %s3298_s6 }
 0xf88   :  { %v2231_v41 = vpop.permute.xlu1 %2230 }
 0xf89   :  { %v2235_v47 = vmul.f32 %v2231_v41, %v2214_v58 }
 0xf8b   :  { %2240 = vrot.lane.b32.xlu2 %v2235_v47, %s3298_s6 }
 0xfe4   :  { %v2239_v5 = vpop.permute.xlu0 %2238 }
 0xfe5   :  { %v2241_v22 = vpop.permute.xlu2 %2240  ;;  %v4161_v25 = vadd.f32 %v2239_v5, %v2224_v20 }
 0xfe6   :  { %v4163_v52 = vadd.f32 %v2241_v22, %v2225_v62 }
 0xfe7   :  { %3102 = vtanh.f32 %v4161_v25 }
 0xfe8   :  { %3104 = vtanh.f32 %v4163_v52  ;;  %v2339_v62 = vrot.slane %v4163_v52, 7 }
 0xfed   :  { %v3103_v38 = vpop.eup %3102 }
 0xfee   :  { %v3105_v23 = vpop.eup %3104  ;;  %2250 = vrot.lane.b32.xlu1 %v3103_v38, %s3299_s11 }
 0xfef   :  { %2252 = vrot.lane.b32.xlu0 %v3105_v23, %s3299_s11 }
0x1060   :  { %v2251_v56 = vpop.permute.xlu1 %2250 }
0x1061   :  { %v2253_v21 = vpop.permute.xlu0 %2252  ;;  %v2256_v7 = vmul.f32 %v2251_v56, %v2199_v18 }
0x1062   :  { %v2257_v24 = vmul.f32 %v2253_v21, %v2214_v58  ;;  %v2338_v58 = vrot.slane %v4161_v25, 7 }
0x1063   :  { %v2260_v30 = vrot.slane %v2256_v7, 2 }
0x1064   :  { %v2261_v54 = vrot.slane %v2257_v24, 1 }
0x1066   :  { %v2262_v8 = vsel %vm532_vm8, %v2261_v54, %v2260_v30 }
0x1067   :  { %2263 = vrot.lane.b32.xlu2 %v2262_v8, %s3290_s4 }
0x10c1   :  { %v2264_v14 = vpop.permute.xlu2 %2263 }
0x10c2   :  { %2929 = vmatmul.msk.f32.vlgmr.msra.gmra.mxu2 %vm457_vm7, %v2264_v14 }
0x1145   :  { %v2284_v16 = vpop.f32.mrf.mxu2 }
0x1146   :  { %v2288_v39 = vrot.slane %v2284_v16, 5  ;;  %v2289_v63 = vrot.slane %v2284_v16, 6 }
0x1148   :  { %v2292_v11 = vadd.f32 %v2288_v39, %v4102_v37  ;;  %v2293_v19 = vadd.f32 %v2289_v63, %v4111_v26 }
0x114a   :  { %v2294_v49 = vadd.f32 %v4107_v48, %v2292_v11  ;;  %v2295_v53 = vadd.f32 %v4107_v48, %v2293_v19 }
0x114c   :  { %3106 = vtanh.f32 %v2294_v49  ;;  %v2930_v40 = vmul.f32 -1.442695, %v2294_v49  ;;  %v2931_v61 = vmul.f32 -1.442695, %v2295_v53 }
0x114d   :  { %3108 = vtanh.f32 %v2295_v53 }
0x114e   :  { %3110 = vpow2.f32 %v2930_v40 }
0x114f   :  { %3112 = vpow2.f32 %v2931_v61 }
0x1152   :  { %v3107_v55 = vpop.eup %3106 }
0x1153   :  { %v3109_v57 = vpop.eup %3108  ;;  %2346 = vrot.lane.b32.xlu1 %v3107_v55, %s3291_s30 }
0x1154   :  { %2348 = vrot.lane.b32.xlu0 %v3109_v57, %s3291_s30  ;;  %v3111_v1 = vpop.eup %3110 }
0x1155   :  { %v3113_v15 = vpop.eup %3112  ;;  %v2302_v46 = vadd.f32 1.0, %v3111_v1 }
0x1156   :  { %v2303_v9 = vadd.f32 1.0, %v3113_v15 }
0x1157   :  { %3114 = vrcp.f32 %v2302_v46  ;;  %v2315_v51 = vand.u32 2147483648, %v2302_v46  ;;  %vm2309_vm12 = vweird.f32 %v2302_v46  ;;  %v2313_v18 = vand.u32 2147483647, %v2302_v46 }
0x1158   :  { %3116 = vrcp.f32 %v2303_v9  ;;  %v2330_v44 = vand.u32 2147483648, %v2303_v9  ;;  %vm2324_vm13 = vweird.f32 %v2303_v9  ;;  %v2328_v32 = vand.u32 2147483647, %v2303_v9 }
0x1159   :  { %v2316_v60 = vor.u32 1.1754944e-38, %v2315_v51  ;;  %vm2314_vm1 = vcmp.eq.f32.partialorder %v2313_v18, 8.507059e+37 }
0x115a   :  { %v2331_v36 = vor.u32 1.1754944e-38, %v2330_v44  ;;  %vm2329_vm2 = vcmp.eq.f32.partialorder %v2328_v32, 8.507059e+37 }
0x115d   :  { %v3115_v42 = vpop.eup %3114 }
0x115e   :  { %v3117_v27 = vpop.eup %3116  ;;  %v2305_v29 = vmul.f32 %v3115_v42, %v2302_v46  ;;  %vm2310_vm10 = vweird.f32 %v3115_v42 }
0x115f   :  { %v2320_v4 = vmul.f32 %v3117_v27, %v2303_v9  ;;  %vm2325_vm11 = vweird.f32 %v3117_v27  ;;  %vm2311_vm14 = vmor %vm2309_vm12, %vm2310_vm10 }
0x1160   :  { %v2306_v50 = vsub.f32 1.0, %v2305_v29  ;;  %vm2326_vm15 = vmor %vm2324_vm13, %vm2325_vm11 }
0x1161   :  { %v2321_v17 = vsub.f32 1.0, %v2320_v4 }
0x1162   :  { %v2307_v6 = vmul.f32 %v3115_v42, %v2306_v50 }
0x1163   :  { %v2322_v13 = vmul.f32 %v3117_v27, %v2321_v17 }
0x1164   :  { %v2308_v35 = vadd.f32 %v3115_v42, %v2307_v6 }
0x1165   :  { %v2323_v34 = vadd.f32 %v3117_v27, %v2322_v13 }
0x1166   :  { %v2312_v2 = vsel %vm2311_vm14, %v3115_v42, %v2308_v35 }
0x1167   :  { %v2327_v45 = vsel %vm2326_vm15, %v3117_v27, %v2323_v34  ;;  %v2317_v43 = vsel %vm2314_vm1, %v2316_v60, %v2312_v2 }
0x1168   :  { %v2332_v33 = vsel %vm2329_vm2, %v2331_v36, %v2327_v45  ;;  %v2342_v47 = vmul.f32 %v2338_v58, %v2317_v43 }
0x1169   :  { %v2343_v5 = vmul.f32 %v2339_v62, %v2332_v33 }
0x11c5   :  { %v2347_v28 = vpop.permute.xlu1 %2346 }
0x11c6   :  { %v2349_v10 = vpop.permute.xlu0 %2348  ;;  %v2352_v12 = vmul.f32 %v2347_v28, %v2317_v43 }
0x11c7   :  { %v2353_v41 = vmul.f32 %v2349_v10, %v2332_v33 }
0x11c8   :  { %2356 = vrot.lane.b32.xlu2 %v2352_v12, %s3298_s6 }
0x11c9   :  { %2358 = vrot.lane.b32.xlu1 %v2353_v41, %s3298_s6 }
0x1222   :  { %v2357_v31 = vpop.permute.xlu2 %2356 }
0x1223   :  { %v4181_v0 = vadd.f32 %v2357_v31, %v2342_v47 }
0x1225   :  { %3118 = vtanh.f32 %v4181_v0 }
0x122b   :  { %v3119_v20 = vpop.eup %3118 }
0x122c   :  { %2368 = vrot.lane.b32.xlu0 %v3119_v20, %s3299_s11  ;;  %v2456_v20 = vrot.slane %v4181_v0, 7 }
0x123b   :  { %v2359_v22 = vpop.permute.xlu1 %2358 }
0x123c   :  { %v4186_v38 = vadd.f32 %v2359_v22, %v2343_v5 }
0x123e   :  { %3120 = vtanh.f32 %v4186_v38  ;;  %v2457_v12 = vrot.slane %v4186_v38, 7 }
0x1244   :  { %v3121_v23 = vpop.eup %3120 }
0x1245   :  { %2370 = vrot.lane.b32.xlu2 %v3121_v23, %s3299_s11 }
0x129e   :  { %v2369_v25 = vpop.permute.xlu0 %2368 }
0x129f   :  { %v2371_v56 = vpop.permute.xlu2 %2370  ;;  %v2374_v21 = vmul.f32 %v2369_v25, %v2317_v43 }
0x12a0   :  { %v2375_v7 = vmul.f32 %v2371_v56, %v2332_v33 }
0x12a1   :  { %v2378_v24 = vrot.slane %v2374_v21, 3 }
0x12a2   :  { %v2379_v30 = vrot.slane %v2375_v7, 2 }
0x12a4   :  { %v2380_v54 = vsel %vm532_vm8, %v2379_v30, %v2378_v24 }
0x12a5   :  { %2381 = vrot.lane.b32.xlu1 %v2380_v54, %s3290_s4 }
0x1317   :  { %v2382_v52 = vpop.permute.xlu1 %2381 }
0x1318   :  { %2932 = vmatmul.msk.f32.vlgmr.msra.gmra.mxu3 %vm457_vm7, %v2382_v52 }
0x139b   :  { %v2402_v8 = vpop.f32.mrf.mxu3 }
0x139c   :  { %v2406_v14 = vrot.slane %v2402_v8, 4  ;;  %v2407_v16 = vrot.slane %v2402_v8, 5 }
0x139e   :  { %v2410_v39 = vadd.f32 %v2406_v14, %v4102_v37  ;;  %v2411_v63 = vadd.f32 %v2407_v16, %v4111_v26 }
0x13a0   :  { %v2412_v11 = vadd.f32 %v4107_v48, %v2410_v39  ;;  %v2413_v19 = vadd.f32 %v4107_v48, %v2411_v63 }
0x13a2   :  { %3122 = vtanh.f32 %v2412_v11  ;;  %v2934_v55 = vmul.f32 -1.442695, %v2413_v19  ;;  %v2933_v1 = vmul.f32 -1.442695, %v2412_v11 }
0x13a3   :  { %3124 = vtanh.f32 %v2413_v19 }
0x13a4   :  { %3126 = vpow2.f32 %v2934_v55 }
0x13a8   :  { %v3123_v49 = vpop.eup %3122 }
0x13a9   :  { %v3125_v53 = vpop.eup %3124  ;;  %2464 = vrot.lane.b32.xlu0 %v3123_v49, %s3291_s30 }
0x13aa   :  { %2466 = vrot.lane.b32.xlu2 %v3125_v53, %s3291_s30  ;;  %v3127_v57 = vpop.eup %3126 }
0x13ab   :  { %v2421_v40 = vadd.f32 1.0, %v3127_v57 }
0x13ad   :  { %3128 = vrcp.f32 %v2421_v40  ;;  %v2448_v4 = vand.u32 2147483648, %v2421_v40  ;;  %vm2442_vm3 = vweird.f32 %v2421_v40  ;;  %v2446_v50 = vand.u32 2147483647, %v2421_v40 }
0x13ae   :  { %3130 = vpow2.f32 %v2933_v1 }
0x13af   :  { %v2449_v6 = vor.u32 1.1754944e-38, %v2448_v4  ;;  %vm2447_vm9 = vcmp.eq.f32.partialorder %v2446_v50, 8.507059e+37 }
0x13b3   :  { %v3129_v61 = vpop.eup %3128 }
0x13b4   :  { %v2438_v15 = vmul.f32 %v3129_v61, %v2421_v40  ;;  %v3131_v9 = vpop.eup %3130  ;;  %vm2443_vm4 = vweird.f32 %v3129_v61 }
0x13b5   :  { %v2420_v27 = vadd.f32 1.0, %v3131_v9  ;;  %vm2444_vm5 = vmor %vm2442_vm3, %vm2443_vm4 }
0x13b6   :  { %v2439_v46 = vsub.f32 1.0, %v2438_v15 }
0x13b7   :  { %3132 = vrcp.f32 %v2420_v27  ;;  %v2433_v45 = vand.u32 2147483648, %v2420_v27  ;;  %vm2427_vm10 = vweird.f32 %v2420_v27  ;;  %v2431_v60 = vand.u32 2147483647, %v2420_v27 }
0x13b8   :  { %v2440_v42 = vmul.f32 %v3129_v61, %v2439_v46 }
0x13b9   :  { %v2434_v28 = vor.u32 1.1754944e-38, %v2433_v45  ;;  %vm2432_vm12 = vcmp.eq.f32.partialorder %v2431_v60, 8.507059e+37 }
0x13ba   :  { %v2441_v29 = vadd.f32 %v3129_v61, %v2440_v42 }
0x13bc   :  { %v2445_v17 = vsel %vm2444_vm5, %v3129_v61, %v2441_v29 }
0x13bd   :  { %v2450_v35 = vsel %vm2447_vm9, %v2449_v6, %v2445_v17  ;;  %v3133_v34 = vpop.eup %3132 }
0x13be   :  { %v2423_v44 = vmul.f32 %v3133_v34, %v2420_v27  ;;  %vm2428_vm6 = vweird.f32 %v3133_v34  ;;  %v2461_v41 = vmul.f32 %v2457_v12, %v2450_v35 }
0x13bf   :  { %vm2429_vm11 = vmor %vm2427_vm10, %vm2428_vm6 }
0x13c0   :  { %v2424_v18 = vsub.f32 1.0, %v2423_v44 }
0x13c2   :  { %v2425_v32 = vmul.f32 %v3133_v34, %v2424_v18 }
0x13c4   :  { %v2426_v2 = vadd.f32 %v3133_v34, %v2425_v32 }
0x13c6   :  { %v2430_v36 = vsel %vm2429_vm11, %v3133_v34, %v2426_v2 }
0x13c7   :  { %v2435_v10 = vsel %vm2432_vm12, %v2434_v28, %v2430_v36 }
0x13c8   :  { %v2460_v62 = vmul.f32 %v2456_v20, %v2435_v10 }
0x1404   :  { %v2467_v13 = vpop.permute.xlu2 %2466 }
0x1405   :  { %v2471_v51 = vmul.f32 %v2467_v13, %v2450_v35 }
0x1407   :  { %2476 = vrot.lane.b32.xlu0 %v2471_v51, %s3298_s6 }
0x141b   :  { %v2465_v43 = vpop.permute.xlu0 %2464 }
0x141c   :  { %v2470_v33 = vmul.f32 %v2465_v43, %v2435_v10 }
0x141e   :  { %2474 = vrot.lane.b32.xlu1 %v2470_v33, %s3298_s6 }
0x1479   :  { %v2477_v58 = vpop.permute.xlu0 %2476 }
0x147a   :  { %v4202_v47 = vadd.f32 %v2477_v58, %v2461_v41 }
0x147c   :  { %3134 = vtanh.f32 %v4202_v47  ;;  %v2575_v33 = vrot.slane %v4202_v47, 7 }
0x1482   :  { %v3135_v31 = vpop.eup %3134 }
0x1483   :  { %2488 = vrot.lane.b32.xlu1 %v3135_v31, %s3299_s11 }
0x1490   :  { %v2475_v5 = vpop.permute.xlu1 %2474 }
0x1491   :  { %v4207_v22 = vadd.f32 %v2475_v5, %v2460_v62 }
0x1493   :  { %3136 = vtanh.f32 %v4207_v22 }
0x1499   :  { %v3137_v23 = vpop.eup %3136 }
0x149a   :  { %2486 = vrot.lane.b32.xlu2 %v3137_v23, %s3299_s11 }
0x14f4   :  { %v2487_v38 = vpop.permute.xlu2 %2486 }
0x14f5   :  { %v2489_v25 = vpop.permute.xlu1 %2488  ;;  %v2492_v56 = vmul.f32 %v2487_v38, %v2435_v10  ;;  %v2574_v10 = vrot.slane %v4207_v22, 7 }
0x14f6   :  { %v2493_v21 = vmul.f32 %v2489_v25, %v2450_v35 }
0x14f7   :  { %v2496_v7 = vrot.slane %v2492_v56, 4 }
0x14f8   :  { %v2497_v24 = vrot.slane %v2493_v21, 3 }
0x14fa   :  { %v2498_v30 = vsel %vm532_vm8, %v2497_v24, %v2496_v7 }
0x14fb   :  { %2499 = vrot.lane.b32.xlu0 %v2498_v30, %s3290_s4 }
0x156d   :  { %v2500_v0 = vpop.permute.xlu0 %2499 }
0x156e   :  { %2935 = vmatmul.msk.f32.vlgmr.msrb.gmra.mxu0 %vm457_vm7, %v2500_v0 }
0x15eb   :  { %v2520_v54 = vpop.f32.mrf.mxu0 }
0x15ec   :  { %v2524_v52 = vrot.slane %v2520_v54, 3  ;;  %v2525_v8 = vrot.slane %v2520_v54, 4 }
0x15ee   :  { %v2528_v14 = vadd.f32 %v2524_v52, %v4102_v37  ;;  %v2529_v16 = vadd.f32 %v2525_v8, %v4111_v26 }
0x15f0   :  { %v2530_v39 = vadd.f32 %v4107_v48, %v2528_v14  ;;  %v2531_v63 = vadd.f32 %v4107_v48, %v2529_v16 }
0x15f2   :  { %3138 = vtanh.f32 %v2530_v39  ;;  %v2936_v49 = vmul.f32 -1.442695, %v2530_v39  ;;  %v2937_v40 = vmul.f32 -1.442695, %v2531_v63 }
0x15f3   :  { %3140 = vtanh.f32 %v2531_v63 }
0x15f4   :  { %3142 = vpow2.f32 %v2936_v49 }
0x15f8   :  { %v3139_v11 = vpop.eup %3138 }
0x15f9   :  { %v3141_v19 = vpop.eup %3140  ;;  %2582 = vrot.lane.b32.xlu2 %v3139_v11, %s3291_s30 }
0x15fa   :  { %2584 = vrot.lane.b32.xlu1 %v3141_v19, %s3291_s30  ;;  %v3143_v53 = vpop.eup %3142 }
0x15fb   :  { %v2538_v55 = vadd.f32 1.0, %v3143_v53 }
0x15fd   :  { %3144 = vrcp.f32 %v2538_v55  ;;  %v2551_v27 = vand.u32 2147483648, %v2538_v55  ;;  %vm2545_vm14 = vweird.f32 %v2538_v55  ;;  %v2549_v29 = vand.u32 2147483647, %v2538_v55 }
0x15fe   :  { %3146 = vpow2.f32 %v2937_v40 }
0x15ff   :  { %v2552_v50 = vor.u32 1.1754944e-38, %v2551_v27  ;;  %vm2550_vm1 = vcmp.eq.f32.partialorder %v2549_v29, 8.507059e+37 }
0x1603   :  { %v3145_v57 = vpop.eup %3144 }
0x1604   :  { %v2541_v61 = vmul.f32 %v3145_v57, %v2538_v55  ;;  %v3147_v46 = vpop.eup %3146  ;;  %vm2546_vm13 = vweird.f32 %v3145_v57 }
0x1605   :  { %v2539_v9 = vadd.f32 1.0, %v3147_v46  ;;  %vm2547_vm15 = vmor %vm2545_vm14, %vm2546_vm13 }
0x1606   :  { %v2542_v1 = vsub.f32 1.0, %v2541_v61 }
0x1607   :  { %3148 = vrcp.f32 %v2539_v9  ;;  %v2566_v32 = vand.u32 2147483648, %v2539_v9  ;;  %vm2560_vm4 = vweird.f32 %v2539_v9  ;;  %v2564_v2 = vand.u32 2147483647, %v2539_v9 }
0x1608   :  { %v2543_v15 = vmul.f32 %v3145_v57, %v2542_v1 }
0x1609   :  { %v2567_v60 = vor.u32 1.1754944e-38, %v2566_v32  ;;  %vm2565_vm5 = vcmp.eq.f32.partialorder %v2564_v2, 8.507059e+37 }
0x160a   :  { %v2544_v42 = vadd.f32 %v3145_v57, %v2543_v15 }
0x160c   :  { %v2548_v4 = vsel %vm2547_vm15, %v3145_v57, %v2544_v42 }
0x160d   :  { %v2553_v6 = vsel %vm2550_vm1, %v2552_v50, %v2548_v4  ;;  %v3149_v35 = vpop.eup %3148 }
0x160e   :  { %v2556_v34 = vmul.f32 %v3149_v35, %v2539_v9  ;;  %vm2561_vm2 = vweird.f32 %v3149_v35  ;;  %v2578_v12 = vmul.f32 %v2574_v10, %v2553_v6 }
0x160f   :  { %vm2562_vm3 = vmor %vm2560_vm4, %vm2561_vm2 }
0x1610   :  { %v2557_v51 = vsub.f32 1.0, %v2556_v34 }
0x1612   :  { %v2558_v44 = vmul.f32 %v3149_v35, %v2557_v51 }
0x1614   :  { %v2559_v18 = vadd.f32 %v3149_v35, %v2558_v44 }
0x1616   :  { %v2563_v45 = vsel %vm2562_vm3, %v3149_v35, %v2559_v18 }
0x1617   :  { %v2568_v28 = vsel %vm2565_vm5, %v2567_v60, %v2563_v45 }
0x1618   :  { %v2579_v41 = vmul.f32 %v2575_v33, %v2568_v28 }
0x1653   :  { %v2583_v17 = vpop.permute.xlu2 %2582 }
0x1654   :  { %v2588_v13 = vmul.f32 %v2583_v17, %v2553_v6 }
0x1656   :  { %2592 = vrot.lane.b32.xlu0 %v2588_v13, %s3298_s6 }
0x166c   :  { %v2585_v36 = vpop.permute.xlu1 %2584 }
0x166d   :  { %v2589_v43 = vmul.f32 %v2585_v36, %v2568_v28 }
0x166f   :  { %2594 = vrot.lane.b32.xlu2 %v2589_v43, %s3298_s6 }
0x16c8   :  { %v2593_v58 = vpop.permute.xlu0 %2592 }
0x16c9   :  { %v2595_v31 = vpop.permute.xlu2 %2594  ;;  %v4224_v20 = vadd.f32 %v2593_v58, %v2578_v12 }
0x16ca   :  { %v4226_v62 = vadd.f32 %v2595_v31, %v2579_v41 }
0x16cb   :  { %3150 = vtanh.f32 %v4224_v20  ;;  %v2692_v36 = vrot.slane %v4224_v20, 7 }
0x16cc   :  { %3152 = vtanh.f32 %v4226_v62  ;;  %v2693_v12 = vrot.slane %v4226_v62, 7 }
0x16d1   :  { %v3151_v5 = vpop.eup %3150 }
0x16d2   :  { %v3153_v23 = vpop.eup %3152  ;;  %2604 = vrot.lane.b32.xlu1 %v3151_v5, %s3299_s11 }
0x16d3   :  { %2606 = vrot.lane.b32.xlu0 %v3153_v23, %s3299_s11 }
0x1744   :  { %v2605_v22 = vpop.permute.xlu1 %2604 }
0x1745   :  { %v2607_v47 = vpop.permute.xlu0 %2606  ;;  %v2610_v38 = vmul.f32 %v2605_v22, %v2553_v6 }
0x1746   :  { %v2611_v25 = vmul.f32 %v2607_v47, %v2568_v28 }
0x1747   :  { %v2614_v56 = vrot.slane %v2610_v38, 5 }
0x1748   :  { %v2615_v21 = vrot.slane %v2611_v25, 4 }
0x174a   :  { %v2616_v7 = vsel %vm532_vm8, %v2615_v21, %v2614_v56 }
0x174b   :  { %2617 = vrot.lane.b32.xlu2 %v2616_v7, %s3290_s4 }
0x17a5   :  { %v2618_v24 = vpop.permute.xlu2 %2617 }
0x17a6   :  { %2938 = vmatmul.msk.f32.vlgmr.msrb.gmra.mxu1 %vm457_vm7, %v2618_v24 }
0x1823   :  { %v2638_v30 = vpop.f32.mrf.mxu1 }
0x1824   :  { %v2642_v0 = vrot.slane %v2638_v30, 2  ;;  %v2643_v54 = vrot.slane %v2638_v30, 3 }
0x1826   :  { %v2646_v52 = vadd.f32 %v2642_v0, %v4102_v37  ;;  %v2647_v8 = vadd.f32 %v2643_v54, %v4111_v26  ;;  %v3182_v54 = vld [vmem:[%s4304_s25] ss:$0 sm:$0xff]  ;;  %s3300_s25 = smov [#allocation8]  }
0x1828   :  { %v2648_v14 = vadd.f32 %v4107_v48, %v2646_v52  ;;  %v2649_v16 = vadd.f32 %v4107_v48, %v2647_v8 }
0x182a   :  { %3154 = vtanh.f32 %v2648_v14  ;;  %v2939_v11 = vmul.f32 -1.442695, %v2648_v14  ;;  %v2940_v19 = vmul.f32 -1.442695, %v2649_v16 }
0x182b   :  { %3156 = vtanh.f32 %v2649_v16 }
0x182c   :  { %3158 = vpow2.f32 %v2939_v11 }
0x182d   :  { %3160 = vpow2.f32 %v2940_v19 }
0x1830   :  { %v3155_v39 = vpop.eup %3154 }
0x1831   :  { %v3157_v63 = vpop.eup %3156  ;;  %2700 = vrot.lane.b32.xlu1 %v3155_v39, %s3291_s30 }
0x1832   :  { %2702 = vrot.lane.b32.xlu0 %v3157_v63, %s3291_s30  ;;  %v3159_v49 = vpop.eup %3158 }
0x1833   :  { %v3161_v53 = vpop.eup %3160  ;;  %v2656_v55 = vadd.f32 1.0, %v3159_v49 }
0x1834   :  { %v2657_v57 = vadd.f32 1.0, %v3161_v53 }
0x1835   :  { %3162 = vrcp.f32 %v2656_v55  ;;  %v2669_v4 = vand.u32 2147483648, %v2656_v55  ;;  %vm2663_vm10 = vweird.f32 %v2656_v55  ;;  %v2667_v17 = vand.u32 2147483647, %v2656_v55 }
0x1836   :  { %3164 = vrcp.f32 %v2657_v57  ;;  %v2684_v50 = vand.u32 2147483648, %v2657_v57  ;;  %vm2678_vm11 = vweird.f32 %v2657_v57  ;;  %v2682_v6 = vand.u32 2147483647, %v2657_v57 }
0x1837   :  { %v2670_v34 = vor.u32 1.1754944e-38, %v2669_v4  ;;  %vm2668_vm14 = vcmp.eq.f32.partialorder %v2667_v17, 8.507059e+37 }
0x1838   :  { %v2685_v51 = vor.u32 1.1754944e-38, %v2684_v50  ;;  %vm2683_vm15 = vcmp.eq.f32.partialorder %v2682_v6, 8.507059e+37 }
0x183b   :  { %v3163_v40 = vpop.eup %3162 }
0x183c   :  { %v3165_v48 = vpop.eup %3164  ;;  %v2659_v61 = vmul.f32 %v3163_v40, %v2656_v55  ;;  %vm2664_vm9 = vweird.f32 %v3163_v40 }
0x183d   :  { %v2674_v1 = vmul.f32 %v3165_v48, %v2657_v57  ;;  %vm2679_vm6 = vweird.f32 %v3165_v48  ;;  %vm2665_vm12 = vmor %vm2663_vm10, %vm2664_vm9  ;;  %vm2872_vm10 = vcmask 123904  }
0x183e   :  { %v2660_v15 = vsub.f32 1.0, %v2659_v61  ;;  %vm2680_vm13 = vmor %vm2678_vm11, %vm2679_vm6 }
0x183f   :  { %v2675_v46 = vsub.f32 1.0, %v2674_v1 }
0x1840   :  { %v2661_v9 = vmul.f32 %v3163_v40, %v2660_v15 }
0x1841   :  { %v2676_v42 = vmul.f32 %v3165_v48, %v2675_v46 }
0x1842   :  { %v2662_v27 = vadd.f32 %v3163_v40, %v2661_v9 }
0x1843   :  { %v2677_v29 = vadd.f32 %v3165_v48, %v2676_v42 }
0x1844   :  { %v2666_v13 = vsel %vm2665_vm12, %v3163_v40, %v2662_v27 }
0x1845   :  { %v2681_v35 = vsel %vm2680_vm13, %v3165_v48, %v2677_v29  ;;  %v2671_v18 = vsel %vm2668_vm14, %v2670_v34, %v2666_v13 }
0x1846   :  { %v2686_v2 = vsel %vm2683_vm15, %v2685_v51, %v2681_v35  ;;  %v2696_v28 = vmul.f32 %v2692_v36, %v2671_v18 }
0x1847   :  { %v2697_v41 = vmul.f32 %v2693_v12, %v2686_v2 }
0x18a3   :  { %v2701_v44 = vpop.permute.xlu1 %2700 }
0x18a4   :  { %v2703_v32 = vpop.permute.xlu0 %2702  ;;  %v2706_v45 = vmul.f32 %v2701_v44, %v2671_v18 }
0x18a5   :  { %v2707_v60 = vmul.f32 %v2703_v32, %v2686_v2 }
0x18a6   :  { %2710 = vrot.lane.b32.xlu2 %v2706_v45, %s3298_s6 }
0x18a7   :  { %2712 = vrot.lane.b32.xlu1 %v2707_v60, %s3298_s6 }
0x1900   :  { %v2711_v43 = vpop.permute.xlu2 %2710 }
0x1901   :  { %v4244_v10 = vadd.f32 %v2711_v43, %v2696_v28 }
0x1903   :  { %3166 = vtanh.f32 %v4244_v10  ;;  %v2810_v43 = vrot.slane %v4244_v10, 7 }
0x1909   :  { %v3167_v33 = vpop.eup %3166 }
0x190a   :  { %2722 = vrot.lane.b32.xlu0 %v3167_v33, %s3299_s11 }
0x1919   :  { %v2713_v58 = vpop.permute.xlu1 %2712 }
0x191a   :  { %v4249_v31 = vadd.f32 %v2713_v58, %v2697_v41 }
0x191c   :  { %3168 = vtanh.f32 %v4249_v31  ;;  %v2811_v32 = vrot.slane %v4249_v31, 7 }
0x1922   :  { %v3169_v5 = vpop.eup %3168 }
0x1923   :  { %2724 = vrot.lane.b32.xlu2 %v3169_v5, %s3299_s11 }
0x197c   :  { %v2723_v20 = vpop.permute.xlu0 %2722 }
0x197d   :  { %v2725_v23 = vpop.permute.xlu2 %2724  ;;  %v2728_v22 = vmul.f32 %v2723_v20, %v2671_v18 }
0x197e   :  { %v2729_v47 = vmul.f32 %v2725_v23, %v2686_v2 }
0x197f   :  { %v2732_v38 = vrot.slane %v2728_v22, 6 }
0x1980   :  { %v2733_v25 = vrot.slane %v2729_v47, 5 }
0x1982   :  { %v2734_v56 = vsel %vm532_vm8, %v2733_v25, %v2732_v38 }
0x1983   :  { %2735 = vrot.lane.b32.xlu1 %v2734_v56, %s3290_s4  ;;  %s2878_s4 = sshll.u32 %s3300_s25, 4  ;;  %s2879_s4 = int_to_ptr.vmem [resolvable:$true] %s2878_s4 }
0x1984   :  { %2886 = dma.vmem_to_hbm [thread:$0]  %s2879_s4, 256, %s2881_s8, [#allocation4], %s3301_s12, %s3301_s12, %s3298_s6  }
0x19f5   :  { %v2736_v62 = vpop.permute.xlu1 %2735 }
0x19f6   :  { %2941 = vmatmul.msk.f32.vlgmr.msrb.gmra.mxu2 %vm457_vm7, %v2736_v62 }
0x1a79   :  { %v2756_v21 = vpop.f32.mrf.mxu2 }
0x1a7a   :  { %v2760_v7 = vrot.slane %v2756_v21, 1  ;;  %v2761_v24 = vrot.slane %v2756_v21, 2 }
0x1a7c   :  { %v2764_v30 = vadd.f32 %v2760_v7, %v4102_v37  ;;  %v2765_v0 = vadd.f32 %v2761_v24, %v4111_v26 }
0x1a7e   :  { %v2766_v52 = vadd.f32 %v3182_v54, %v2764_v30  ;;  %v2767_v8 = vadd.f32 %v3182_v54, %v2765_v0 }
0x1a80   :  { %3170 = vtanh.f32 %v2766_v52  ;;  %v2943_v39 = vmul.f32 -1.442695, %v2767_v8  ;;  %v2942_v11 = vmul.f32 -1.442695, %v2766_v52 }
0x1a81   :  { %3172 = vtanh.f32 %v2767_v8 }
0x1a82   :  { %3174 = vpow2.f32 %v2943_v39 }
0x1a86   :  { %v3171_v14 = vpop.eup %3170 }
0x1a87   :  { %v3173_v16 = vpop.eup %3172  ;;  %2818 = vrot.lane.b32.xlu0 %v3171_v14, %s3291_s30 }
0x1a88   :  { %2820 = vrot.lane.b32.xlu2 %v3173_v16, %s3291_s30  ;;  %v3175_v63 = vpop.eup %3174 }
0x1a89   :  { %v2775_v37 = vadd.f32 1.0, %v3175_v63 }
0x1a8b   :  { %3176 = vrcp.f32 %v2775_v37  ;;  %v2802_v48 = vand.u32 2147483648, %v2775_v37  ;;  %vm2796_vm1 = vweird.f32 %v2775_v37  ;;  %v2800_v61 = vand.u32 2147483647, %v2775_v37 }
0x1a8c   :  { %3178 = vpow2.f32 %v2942_v11 }
0x1a8d   :  { %v2803_v15 = vor.u32 1.1754944e-38, %v2802_v48  ;;  %vm2801_vm4 = vcmp.eq.f32.partialorder %v2800_v61, 8.507059e+37 }
0x1a91   :  { %v3177_v26 = vpop.eup %3176 }
0x1a92   :  { %v2792_v19 = vmul.f32 %v3177_v26, %v2775_v37  ;;  %v3179_v53 = vpop.eup %3178  ;;  %vm2797_vm7 = vweird.f32 %v3177_v26 }
0x1a93   :  { %v2774_v57 = vadd.f32 1.0, %v3179_v53  ;;  %vm2798_vm2 = vmor %vm2796_vm1, %vm2797_vm7 }
0x1a94   :  { %v2793_v49 = vsub.f32 1.0, %v2792_v19 }
0x1a95   :  { %3180 = vrcp.f32 %v2774_v57  ;;  %v2787_v6 = vand.u32 2147483648, %v2774_v57  ;;  %vm2781_vm5 = vweird.f32 %v2774_v57  ;;  %v2785_v13 = vand.u32 2147483647, %v2774_v57 }
0x1a96   :  { %v2794_v55 = vmul.f32 %v3177_v26, %v2793_v49 }
0x1a97   :  { %v2788_v34 = vor.u32 1.1754944e-38, %v2787_v6  ;;  %vm2786_vm6 = vcmp.eq.f32.partialorder %v2785_v13, 8.507059e+37 }
0x1a98   :  { %v2795_v40 = vadd.f32 %v3177_v26, %v2794_v55 }
0x1a9a   :  { %v2799_v1 = vsel %vm2798_vm2, %v3177_v26, %v2795_v40 }
0x1a9b   :  { %v2804_v9 = vsel %vm2801_vm4, %v2803_v15, %v2799_v1  ;;  %v3181_v42 = vpop.eup %3180 }
0x1a9c   :  { %v2777_v29 = vmul.f32 %v3181_v42, %v2774_v57  ;;  %vm2782_vm3 = vweird.f32 %v3181_v42  ;;  %v2815_v2 = vmul.f32 %v2811_v32, %v2804_v9 }
0x1a9d   :  { %vm2783_vm9 = vmor %vm2781_vm5, %vm2782_vm3 }
0x1a9e   :  { %v2778_v4 = vsub.f32 1.0, %v2777_v29 }
0x1aa0   :  { %v2779_v50 = vmul.f32 %v3181_v42, %v2778_v4 }
0x1aa2   :  { %v2780_v17 = vadd.f32 %v3181_v42, %v2779_v50 }
0x1aa4   :  { %v2784_v35 = vsel %vm2783_vm9, %v3181_v42, %v2780_v17 }
0x1aa5   :  { %v2789_v44 = vsel %vm2786_vm6, %v2788_v34, %v2784_v35 }
0x1aa6   :  { %v2814_v33 = vmul.f32 %v2810_v43, %v2789_v44 }
0x1ae2   :  { %v2821_v46 = vpop.permute.xlu2 %2820 }
0x1ae3   :  { %v2825_v27 = vmul.f32 %v2821_v46, %v2804_v9 }
0x1ae5   :  { %2830 = vrot.lane.b32.xlu0 %v2825_v27, %s3298_s6 }
0x1af9   :  { %v2819_v51 = vpop.permute.xlu0 %2818 }
0x1afa   :  { %v2824_v18 = vmul.f32 %v2819_v51, %v2789_v44 }
0x1afc   :  { %2828 = vrot.lane.b32.xlu1 %v2824_v18, %s3298_s6 }
0x1b57   :  { %v2831_v45 = vpop.permute.xlu0 %2830 }
0x1b58   :  { %v2835_v60 = vadd.f32 %v2831_v45, %v2815_v2 }
0x1b5a   :  { %v2837_v36 = vmax.f32 %v2835_v60, 0.0 }
0x1b5c   :  { %v2845_v28 = vperm.slane %v2837_v36, 7 }
0x1b5e   :  { %2850 = vperm.xlu1 %2968, %v2845_v28  }
0x1b6e   :  { %v2829_v12 = vpop.permute.xlu1 %2828 }
0x1b6f   :  { %v2834_v41 = vadd.f32 %v2829_v12, %v2814_v33 }
0x1b71   :  { %v2836_v58 = vmax.f32 %v2834_v41, 0.0 }
0x1b73   :  { %v2838_v31 = vperm.slane %v2836_v58, 7 }
0x1b75   :  { %2843 = vperm.xlu2 %2967, %v2838_v31  }
0x1bcf   :  { %v2844_v5 = vpop.permute.xlu2 %2843 }
0x1bd0   :  { %v2851_v20 = vpop.permute.xlu1 %2850  ;;  %v2852_v23 = vmul.f32 %v2844_v5, %v3561_v59 }
0x1bd1   :  { %v2853_v22 = vmul.f32 %v2851_v20, %v3567_v3 }
0x1bd2   :  { %v2854_v47 = vsel %vm153_vm0, %v2852_v23, 0.0 }
0x1bd3   :  { %v2861_v38 = vsel %vm153_vm0, %v2853_v22, 0.0  ;;  %v2855_v25 = vrot.slane %v2854_v47, 4 }
0x1bd4   :  { %v2862_v56 = vrot.slane %v2861_v38, 4 }
0x1bd5   :  { %v2856_v62 = vadd.f32 %v2855_v25, %v2854_v47 }
0x1bd6   :  { %v2863_v10 = vadd.f32 %v2862_v56, %v2861_v38 }
0x1bd7   :  { %v2857_v21 = vrot.slane %v2856_v62, 2 }
0x1bd8   :  { %v2864_v7 = vrot.slane %v2863_v10, 2 }
0x1bd9   :  { %v2858_v24 = vadd.f32 %v2857_v21, %v2856_v62 }
0x1bda   :  { %v2865_v30 = vadd.f32 %v2864_v7, %v2863_v10 }
0x1bdb   :  { %v2859_v0 = vrot.slane %v2858_v24, 1 }
0x1bdc   :  { %v2866_v54 = vrot.slane %v2865_v30, 1 }
0x1bdd   :  { %v2860_v52 = vadd.f32 %v2859_v0, %v2858_v24 }
0x1bde   :  { %v2867_v8 = vadd.f32 %v2866_v54, %v2865_v30 }
0x1be0   :  { %v2870_v59 = vsel %vm532_vm8, %v2867_v8, %v2860_v52 }
0x1be1   :  { %2873 = vst.msk [vmem:[%s4306_s27] sm:$0x3] %vm2872_vm10, %v2870_v59 }
0x1be2   :  { %3283 = dma.done.wait [#allocation4], 256  }
0x1be3   :  { %3284 = vsyncadd [#allocation4], 4294967040 }
0x1be4   :  { %2895 = vsyncpa [#allocation3], 1 }
0x1be5   :  { %2896 = vsyncpa [#allocation6], 1 }
0x1be6   :  { %2897 = vsyncpa [#allocation4], 1 }

// kernel: _lambda_.5
= control target key start
LH: loop header
LB: loop body
LE: loop exit
PB: predicated region body
PF: predicated region fallthrough
CT: control target
= control target key end

     0   :  { %vm111_vm0 = vcmask 130048   ;;  %vm93_vm1 = vcmask 1046528   ;;  %vm100_vm2 = vcmask 1045504   ;;  %vm254_vm3 = vcmask 261120   ;;  %s3122_s30 = smov 104   ;;  %s4112_s5 = inlined_call_operand.vmem [shape: f32[16,16], index: 5, kind: input, shape index: {}]   ;;  %s4113_s4 = inlined_call_operand.vmem [shape: f32[16,16], index: 4, kind: input, shape index: {}]   ;;  %s4114_s6 = inlined_call_operand.vmem [shape: f32[16,16], index: 6, kind: input, shape index: {}]   ;;  %s4115_s0 = inlined_call_operand.vmem [shape: f32[2,10,16], index: 0, kind: input, shape index: {}]   ;;  %s4116_s13 = inlined_call_operand.vmem [shape: f32[32,32], index: 13, kind: input, shape index: {}]   ;;  %s4117_s10 = inlined_call_operand.vmem [shape: f32[32,32], index: 10, kind: input, shape index: {}]   ;;  %s4118_s15 = inlined_call_operand.vmem [shape: f32[32,64], index: 15, kind: input, shape index: {}]   ;;  %s4119_s7 = inlined_call_operand.vmem [shape: f32[1,16], index: 7, kind: input, shape index: {}]   ;;  %s4120_s12 = inlined_call_operand.vmem [shape: f32[1,32], index: 12, kind: input, shape index: {}]   ;;  %s4121_s1 = inlined_call_operand.vmem [shape: f32[2,8,32], index: 1, kind: input, shape index: {}]   ;;  %s4122_s11 = inlined_call_operand.vmem [shape: f32[1,32], index: 11, kind: input, shape index: {}]   ;;  %s4123_s2 = inlined_call_operand.vmem [shape: f32[2,8], index: 2, kind: input, shape index: {}]   ;;  %s4124_s8 = inlined_call_operand.vmem [shape: f32[16,32], index: 8, kind: input, shape index: {}]   ;;  %s4125_s3 = inlined_call_operand.vmem [shape: f32[2,8], index: 3, kind: input, shape index: {}]   ;;  %s4126_s26 = inlined_call_operand.vmem [shape: f32[2,8,16], index: 26, kind: output, shape index: {0}]   ;;  %s4127_s9 = inlined_call_operand.vmem [shape: f32[1,32], index: 9, kind: input, shape index: {}]   ;;  %s4128_s14 = inlined_call_operand.vmem [shape: f32[1,32], index: 14, kind: input, shape index: {}]   ;;  %s4129_s16 = inlined_call_operand.vmem [shape: f32[1,64], index: 16, kind: input, shape index: {}]   ;;  %s4130_s17 = inlined_call_operand.vmem [shape: f32[32,32], index: 17, kind: input, shape index: {}]   ;;  %s4131_s18 = inlined_call_operand.vmem [shape: f32[1,32], index: 18, kind: input, shape index: {}]   ;;  %s4132_s21 = inlined_call_operand.vmem [shape: f32[16,32], index: 21, kind: input, shape index: {}]   ;;  %s4133_s22 = inlined_call_operand.vmem [shape: f32[1,32], index: 22, kind: input, shape index: {}]   ;;  %s4134_s20 = inlined_call_operand.vmem [shape: f32[1,32], index: 20, kind: input, shape index: {}]   ;;  %s4135_s19 = inlined_call_operand.vmem [shape: f32[32,32], index: 19, kind: input, shape index: {}]   ;;  %s4136_s24 = inlined_call_operand.vmem [shape: f32[8,32], index: 24, kind: input, shape index: {}]   ;;  %s4137_s25 = inlined_call_operand.vmem [shape: f32[1,32], index: 25, kind: input, shape index: {}]   ;;  %s4138_s23 = inlined_call_operand.vmem [shape: f32[4,32], index: 23, kind: input, shape index: {}]   ;;  %s4139_s27 = inlined_call_operand.vmem [shape: f32[2,16], index: 27, kind: output, shape index: {1}]  }
   0x1   :  { %4148 = sst [smem:[#allocation2_spill]] %s4112_s5  ;;  %v426_v37 = vlaneseq  ;;  %v208_v40 = vld [vmem:[%s4124_s8 + $0x8] sm:$0xff]  ;;  %v3120_v41 = vmov -1e+30   ;;  %v207_v43 = vld [vmem:[%s4124_s8] sm:$0xff]  ;;  %vm473_vm6 = vcmask 57344  }
   0x2   :  { %4149 = sst [smem:[#allocation3_spill]] %s4113_s4  ;;  %233 = vmatpush.msra.mxu3 %v208_v40  ;;  %v404_v45 = vld [vmem:[%s4125_s3] sm:$0x3]  ;;  %vm415_vm7 = vcmask 64512   ;;  %vm490_vm8 = vcmask 1041409   ;;  %vm493_vm9 = vcmask 58368  }
   0x3   :  { %4150 = sst [smem:[#allocation4_spill]] %s4114_s6  ;;  %v3362_v38 = vshrl.u32 %v426_v37, 7  ;;  %vm405_vm5 = vcmp.gt.f32.partialorder %v404_v45, 0.5  ;;  %s3126_s8 = smov 80  }
   0x4   :  { %4151 = sst [smem:[#allocation5_spill]] %s4115_s0  ;;  %234 = vmatpush.msra.mxu3 %v207_v43  ;;  %v406_v46 = vsel %vm405_vm5, 0.0, %v3120_v41  ;;  %s3127_s3 = smov 72  }
   0x5   :  { %4152 = sst [smem:[#allocation6_spill]] %s4116_s13  ;;  %2898 = vset.pattern.permute.xlu2 %v3362_v38  ;;  %2900 = vset.pattern.permute.xlu1 %v3362_v38  ;;  %v454_v47 = vperm.slane %v406_v46, 0  ;;  %v461_v48 = vperm.slane %v406_v46, 1  ;;  %s3131_s4 = smov 16  }
   0x6   :  { %4153 = sst [smem:[#allocation7_spill]] %s4117_s10  ;;  %2899 = vset.pattern.permute.xlu0 %v3362_v38 }
   0x7   :  { %4154 = sst [smem:[#allocation8_spill]] %s4118_s15 }
   0x8   :  { %4155 = sst [smem:[#allocation9_spill]] %s4119_s7 }
   0x9   :  { %4156 = sst [smem:[#allocation10_spill]] %s4120_s12 }
   0xa   :  { %4157 = sst [smem:[#allocation11_spill]] %s4121_s1 }
   0xb   :  { %4158 = sst [smem:[#allocation12_spill]] %s4122_s11 }
   0xc   :  { %4159 = sst [smem:[#allocation13_spill]] %s4123_s2 }
   0xd   :  { %4160 = sst [smem:[#allocation14_spill]] %s4133_s22  ;;  %459 = vperm.xlu1 %2900, %v454_v47  }
   0xe   :  { %s4161_s13 = sld [smem:[#allocation2_spill]] }
   0xf   :  { %s4162_s22 = sld [smem:[#allocation3_spill]] }
  0x10   :  { %s4163_s0 = sld [smem:[#allocation4_spill]] }
  0x11   :  { %s4164_s12 = sld [smem:[#allocation5_spill]] }
  0x12   :  { %s4165_s28 = sld [smem:[#allocation6_spill]] }
  0x13   :  { %s4166_s6 = sld [smem:[#allocation7_spill]] }
  0x14   :  { %v110_v0 = vld [vmem:[%s4161_s13 + $0x8] sm:$0xff]  ;;  %v109_v3 = vld [vmem:[%s4161_s13] sm:$0xff]  ;;  %s4168_s10 = sld [smem:[#allocation10_spill]] }
  0x15   :  { %v108_v1 = vld [vmem:[%s4162_s22 + $0x8] sm:$0xff]  ;;  %130 = vmatpush.msra.mxu0 %v110_v0  ;;  %v107_v4 = vld [vmem:[%s4162_s22] sm:$0xff]  ;;  %s4167_s22 = sld [smem:[#allocation8_spill]] }
  0x16   :  { %v167_v2 = vld [vmem:[%s4163_s0 + $0x8] sm:$0xff]  ;;  %157 = vmatpush.msra.mxu1 %v108_v1  ;;  %v166_v5 = vld [vmem:[%s4163_s0] sm:$0xff]  ;;  %s4169_s29 = sld [smem:[#allocation11_spill]]  ;;  %s3128_s0 = smov 88  }
  0x17   :  { %186 = vmatpush.msra.mxu2 %v167_v2  ;;  %v85_v6 = vld [vmem:[%s4164_s12] sm:$0xff]  ;;  %v86_v7 = vld [vmem:[%s4164_s12 + $0x8] sm:$0x3]  ;;  %131 = vmatpush.msra.mxu0 %v109_v3  ;;  %v87_v14 = vld [vmem:[%s4164_s12 + $0x10] sm:$0xff]  ;;  %s4170_s5 = sld [smem:[#allocation13_spill]] }
  0x18   :  { %v290_v8 = vld [vmem:[%s4165_s28 + $0x18] sm:$0xff]  ;;  %158 = vmatpush.msra.mxu1 %v107_v4  ;;  %v94_v9 = vrot.slane %v85_v6, 1  ;;  %v95_v10 = vrot.slane %v86_v7, 1  ;;  %v101_v11 = vrot.slane %v85_v6, 2  ;;  %v102_v12 = vrot.slane %v86_v7, 2  ;;  %v289_v13 = vld [vmem:[%s4165_s28 + $0x10] sm:$0xff] }
  0x19   :  { %187 = vmatpush.msra.mxu2 %v166_v5  ;;  %2842 = vmatmul.msk.f32.vlgmr.msra.gmra.mxu1 %vm111_vm0, %v85_v6  ;;  %v88_v15 = vld [vmem:[%s4164_s12 + $0x18] sm:$0x3]  ;;  %v288_v19 = vld [vmem:[%s4165_s28 + $0x8] sm:$0xff]  ;;  %v248_v20 = vld [vmem:[%s4166_s6 + $0x10] sm:$0xff]  ;;  %v97_v21 = vrot.slane %v87_v14, 1  ;;  %v104_v23 = vrot.slane %v87_v14, 2 }
  0x1a   :  { %v96_v16 = vsel %vm93_vm1, %v94_v9, %v95_v10  ;;  %v103_v17 = vsel %vm100_vm2, %v101_v11, %v102_v12  ;;  %307 = vmatpush.msrb.mxu1 %v290_v8  ;;  %v249_v18 = vld [vmem:[%s4166_s6 + $0x18] sm:$0xff]  ;;  %v98_v22 = vrot.slane %v88_v15, 1  ;;  %v105_v24 = vrot.slane %v88_v15, 2  ;;  %v287_v26 = vld [vmem:[%s4165_s28] sm:$0xff]  ;;  %v247_v27 = vld [vmem:[%s4166_s6 + $0x8] sm:$0xff]  ;;  %s4172_s2 = sld [smem:[#allocation12_spill]] }
  0x1b   :  { %2840 = vmatmul.msk.f32.vlgmr.msra.gmra.mxu0 %vm111_vm0, %v96_v16  ;;  %2844 = vmatmul.msk.f32.vlgmr.msra.gmra.mxu2 %vm111_vm0, %v103_v17  ;;  %v318_v25 = vld [vmem:[%s4167_s22 + $0x18] sm:$0xff]  ;;  %v317_v28 = vld [vmem:[%s4167_s22 + $0x10] sm:$0xff]  ;;  %v246_v29 = vld [vmem:[%s4166_s6] sm:$0xff]  ;;  %s3123_s6 = smov 112  }
  0x1c   :  { %308 = vmatpush.msrb.mxu1 %v289_v13  ;;  %273 = vmatpush.msrb.mxu0 %v249_v18  ;;  %v99_v30 = vsel %vm93_vm1, %v97_v21, %v98_v22  ;;  %v106_v31 = vsel %vm100_vm2, %v104_v23, %v105_v24  ;;  %v316_v32 = vld [vmem:[%s4167_s22 + $0x8] sm:$0xff]  ;;  %v315_v33 = vld [vmem:[%s4167_s22] sm:$0xff]  ;;  %s3130_s22 = smov 8  }
  0x1d   :  { %341 = vmatpush.msrb.mxu2 %v318_v25  ;;  %v286_v34 = vld [vmem:[%s4168_s10] sm:$0x1]  ;;  %v245_v36 = vld [vmem:[%s4169_s29 + $0x8] sm:$0xff]  ;;  %370 = vmatpush.msrb.mxu3 %v318_v25  ;;  %s4171_s10 = sld [smem:[#allocation9_spill]] }
  0x1e   :  { %309 = vmatpush.msrb.mxu1 %v288_v19  ;;  %274 = vmatpush.msrb.mxu0 %v248_v20  ;;  %v244_v35 = vld [vmem:[%s4169_s29] sm:$0xff] }
  0x1f   :  { %342 = vmatpush.msrb.mxu2 %v317_v28  ;;  %v401_v39 = vld [vmem:[%s4170_s5] sm:$0x3]  ;;  %371 = vmatpush.msrb.mxu3 %v317_v28 }
  0x20   :  { %310 = vmatpush.msrb.mxu1 %v287_v26  ;;  %275 = vmatpush.msrb.mxu0 %v247_v27  ;;  %vm402_vm4 = vcmp.gt.f32.partialorder %v401_v39, 0.5  ;;  %v2908_v2 = vld [vmem:[%s4172_s2] ss:$0 sm:$0xff]  ;;  %s4173_s2 = sld [smem:[#allocation14_spill]] }
  0x21   :  { %2843 = vmatmul.msk.f32.gmra.mxu1 %vm111_vm0, %v87_v14  ;;  %343 = vmatpush.msrb.mxu2 %v316_v32  ;;  %v403_v42 = vsel %vm402_vm4, 0.0, %v3120_v41  ;;  %v291_v4 = vld [vmem:[%s4128_s14] sm:$0x1]  ;;  %s3121_s14 = smov 120  }
  0x22   :  { %393 = vmatpush.msra.mxu1 %v318_v25  ;;  %276 = vmatpush.msrb.mxu0 %v246_v29  ;;  %v425_v44 = vperm.slane %v403_v42, 0  ;;  %v432_v49 = vperm.slane %v403_v42, 1  ;;  %v319_v5 = vld [vmem:[%s4129_s16] sm:$0x1] }
  0x23   :  { %2841 = vmatmul.msk.f32.gmra.mxu0 %vm111_vm0, %v99_v30  ;;  %2845 = vmatmul.msk.f32.gmra.mxu2 %vm111_vm0, %v106_v31  ;;  %v2907_v53 = vld [vmem:[%s4171_s10] ss:$0 sm:$0xff] }
  0x24   :  { %394 = vmatpush.msra.mxu1 %v317_v28  ;;  %344 = vmatpush.msrb.mxu2 %v315_v33  ;;  %v2910_v21 = vld [vmem:[%s4127_s9] ss:$0 sm:$0xff] }
  0x25   :  { %430 = vperm.xlu2 %2898, %v425_v44   ;;  %372 = vmatpush.msrb.mxu3 %v316_v32 }
  0x26   :  { %395 = vmatpush.msra.mxu1 %v316_v32  ;;  %437 = vperm.xlu0 %2899, %v432_v49  }
  0x27   :  { %373 = vmatpush.msrb.mxu3 %v315_v33 }
  0x28   :  { %396 = vmatpush.msra.mxu1 %v315_v33  ;;  %v2909_v33 = vld [vmem:[%s4129_s16] ss:$0 sm:$0xff]  ;;  %s3125_s16 = smov 96  }
  0x29   :  { %2850 = vmatmul.msk.f32.vlgmr.msrb.gmra.mxu1 %vm254_vm3, %v286_v34 }
  0x2b   :  { %2848 = vmatmul.msk.f32.vlgmr.msrb.gmra.mxu0 %vm254_vm3, %v244_v35 }
  0x2d   :  { %466 = vperm.xlu2 %2898, %v461_v48  }
  0x31   :  { %2855 = vmatmul.msk.f32.vlgmr.msra.gmra.mxu1 %vm254_vm3, %v286_v34 }
  0x33   :  { %2849 = vmatmul.msk.f32.gmra.mxu0 %vm254_vm3, %v245_v36 }
  0x7f   :  { %v3418_v16 = vpop.permute.xlu2 %430  ;;  %v3422_v18 = vpop.permute.xlu1 %459 }
  0x87   :  { %v3424_v19 = vpop.permute.xlu2 %466 }
  0x96   :  { %v160_v50 = vpop.f32.mrf.mxu1 }
  0x98   :  { %v133_v51 = vpop.f32.mrf.mxu0  ;;  %v3420_v17 = vpop.permute.xlu0 %437 }
  0x99   :  { %v161_v52 = vadd.f32 %v160_v50, %v133_v51 }
  0x9e   :  { %v189_v54 = vpop.f32.mrf.mxu2  ;;  %v163_v55 = vpop.f32.mrf.mxu1 }
  0x9f   :  { %v195_v56 = vadd.f32 %v189_v54, %v161_v52 }
  0xa0   :  { %v136_v57 = vpop.f32.mrf.mxu0 }
  0xa1   :  { %v201_v58 = vadd.f32 %v2907_v53, %v195_v56  ;;  %v164_v60 = vadd.f32 %v163_v55, %v136_v57 }
  0xa3   :  { %v3382_v59 = vmax.f32 %v201_v58, 0.0 }
  0xa5   :  { %205 = vst.msk [vmem:[%s4126_s26] sm:$0xff] %vm111_vm0, %v3382_v59  ;;  %2846 = vmatmul.msk.f32.vlgmr.msra.gmra.mxu3 %vm111_vm0, %v3382_v59 }
  0xa6   :  { %v192_v61 = vpop.f32.mrf.mxu2  ;;  %v312_v62 = vpop.f32.mrf.mxu1 }
  0xa7   :  { %v196_v63 = vadd.f32 %v192_v61, %v164_v60  ;;  %v313_v8 = vadd.f32 %v312_v62, %v291_v4 }
  0xa8   :  { %v278_v0 = vpop.f32.mrf.mxu0 }
  0xa9   :  { %v202_v1 = vadd.f32 %v2907_v53, %v196_v63  ;;  %v279_v6 = vadd.f32 %v2908_v2, %v278_v0  ;;  %v412_v35 = vperm.slane %v313_v8, 0  ;;  %v3124_v53 = vmov 0  }
  0xaa   :  { %2901 = vset.pattern.permute.xlu2 %v3124_v53  ;;  %2902 = vset.pattern.permute.xlu1 %v3124_v53 }
  0xab   :  { %v3394_v3 = vmax.f32 %v202_v1, 0.0  ;;  %v284_v10 = vmax.f32 %v279_v6, 0.0  ;;  %2903 = vset.pattern.permute.xlu0 %v3124_v53 }
  0xad   :  { %206 = vst.msk [vmem:[%s4126_s26 + $0x8] sm:$0xff] %vm111_vm0, %v3394_v3  ;;  %2847 = vmatmul.msk.f32.gmra.mxu3 %vm111_vm0, %v3394_v3 }
  0xae   :  { %v398_v7 = vpop.f32.mrf.mxu1 }
  0xaf   :  { %v3409_v9 = vadd.f32 %v398_v7, %v319_v5 }
  0xb0   :  { %v281_v12 = vpop.f32.mrf.mxu0 }
  0xb1   :  { %v472_v11 = vmul.f32 %v3409_v9, %v313_v8  ;;  %v282_v13 = vadd.f32 %v2908_v2, %v281_v12 }
  0xb3   :  { %724 = vrot.lane.b32.xlu2 %v472_v11, %s3121_s14  ;;  %1204 = vrot.lane.b32.xlu0 %v472_v11, %s3122_s30  ;;  %v285_v14 = vmax.f32 %v282_v13, 0.0  ;;  %v474_v15 = vsel %vm473_vm6, %v472_v11, 0.0 }
  0xb4   :  { %964 = vrot.lane.b32.xlu1 %v472_v11, %s3123_s6 }
  0xb5   :  { %2853 = vmatmul.msk.f32.vlgmr.msrb.gmra.mxu3 %vm254_vm3, %v284_v10 }
  0xbd   :  { %2854 = vmatmul.msk.f32.gmra.mxu3 %vm254_vm3, %v285_v14 }
  0xde   :  { %475 = vadd.xlane.f32.xlu1 %v474_v15 }
 0x10d   :  { %v725_v27 = vpop.permute.xlu2 %724 }
 0x10e   :  { %v727_v29 = vsel %vm473_vm6, %v725_v27, 0.0 }
 0x125   :  { %v1205_v20 = vpop.permute.xlu0 %1204 }
 0x126   :  { %v965_v22 = vpop.permute.xlu1 %964  ;;  %v1207_v23 = vsel %vm473_vm6, %v1205_v20, 0.0 }
 0x127   :  { %v967_v24 = vsel %vm473_vm6, %v965_v22, 0.0  ;;  %1208 = vadd.xlane.f32.xlu1 %v1207_v23 }
 0x128   :  { %v236_v25 = vpop.f32.mrf.mxu3  ;;  %968 = vadd.xlane.f32.xlu0 %v967_v24 }
 0x129   :  { %v237_v26 = vadd.f32 %v2910_v21, %v236_v25 }
 0x12b   :  { %v242_v28 = vmax.f32 %v237_v26, 0.0 }
 0x12d   :  { %2851 = vmatmul.msk.f32.vlgmr.msrb.gmra.mxu2 %vm254_vm3, %v242_v28 }
 0x12f   :  { %728 = vadd.xlane.f32.xlu1 %v727_v29 }
 0x130   :  { %v239_v30 = vpop.f32.mrf.mxu3 }
 0x131   :  { %v240_v31 = vadd.f32 %v2910_v21, %v239_v30 }
 0x133   :  { %v243_v32 = vmax.f32 %v240_v31, 0.0 }
 0x135   :  { %2852 = vmatmul.msk.f32.gmra.mxu2 %vm254_vm3, %v243_v32 }
 0x138   :  { %v375_v34 = vpop.f32.mrf.mxu3 }
 0x139   :  { %v3437_v36 = vadd.f32 %v2909_v33, %v375_v34 }
 0x13b   :  { %v443_v39 = vmul.f32 %v412_v35, %v3437_v36 }
 0x13d   :  { %1188 = vrot.lane.b32.xlu0 %v443_v39, %s3122_s30  ;;  %v445_v40 = vsel %vm415_vm7, %v443_v39, 0.0 }
 0x13e   :  { %446 = vadd.xlane.f32.xlu2 %v445_v40 }
 0x140   :  { %v378_v41 = vpop.f32.mrf.mxu3 }
 0x141   :  { %v3443_v42 = vadd.f32 %v2909_v33, %v378_v41 }
 0x143   :  { %v444_v43 = vmul.f32 %v412_v35, %v3443_v42 }
 0x145   :  { %v448_v44 = vsel %vm415_vm7, %v444_v43, 0.0 }
 0x148   :  { %948 = vrot.lane.b32.xlu1 %v443_v39, %s3123_s6 }
 0x150   :  { %707 = vrot.lane.b32.xlu1 %v443_v39, %s3121_s14 }
 0x151   :  { %v3451_v45 = vpop.xlane.xlu1 %475 }
 0x156   :  { %709 = vrot.lane.b32.xlu2 %v444_v43, %s3121_s14 }
 0x158   :  { %950 = vrot.lane.b32.xlu1 %v444_v43, %s3123_s6 }
 0x160   :  { %1190 = vrot.lane.b32.xlu1 %v444_v43, %s3122_s30 }
 0x167   :  { %449 = vadd.xlane.f32.xlu0 %v448_v44 }
 0x19a   :  { %v3455_v47 = vpop.xlane.xlu1 %1208 }
 0x19b   :  { %v3453_v46 = vpop.xlane.xlu0 %968 }
 0x1a2   :  { %v3458_v50 = vpop.xlane.xlu1 %728 }
 0x1af   :  { %v1189_v48 = vpop.permute.xlu0 %1188 }
 0x1b0   :  { %v1194_v49 = vsel %vm415_vm7, %v1189_v48, 0.0  ;;  %v346_v57 = vpop.f32.mrf.mxu2  ;;  %v3507_v48 = vand.u32 127, %v426_v37 }
 0x1b1   :  { %1195 = vadd.xlane.f32.xlu0 %v1194_v49  ;;  %v3462_v58 = vadd.f32 %v2909_v33, %v346_v57  ;;  %v447_v60 = vpop.xlane.xlu2 %446 }
 0x1b2   :  { %v451_v5 = vmul.f32 0.35355338, %v447_v60 }
 0x1b3   :  { %v413_v62 = vmul.f32 %v412_v35, %v3462_v58 }
 0x1b4   :  { %v3474_v7 = vadd.f32 %v3422_v18, %v451_v5 }
 0x1b5   :  { %v416_v13 = vsel %vm415_vm7, %v413_v62, 0.0 }
 0x1b8   :  { %v349_v0 = vpop.f32.mrf.mxu2 }
 0x1b9   :  { %v710_v1 = vpop.permute.xlu2 %709  ;;  %v3468_v2 = vadd.f32 %v2909_v33, %v349_v0 }
 0x1ba   :  { %v949_v51 = vpop.permute.xlu1 %948  ;;  %v716_v4 = vsel %vm415_vm7, %v710_v1, 0.0 }
 0x1bb   :  { %v954_v52 = vsel %vm415_vm7, %v949_v51, 0.0  ;;  %v414_v6 = vmul.f32 %v412_v35, %v3468_v2 }
 0x1bc   :  { %955 = vadd.xlane.f32.xlu2 %v954_v52 }
 0x1bd   :  { %v419_v8 = vsel %vm415_vm7, %v414_v6, 0.0 }
 0x1c2   :  { %v708_v54 = vpop.permute.xlu1 %707 }
 0x1c3   :  { %v713_v55 = vsel %vm415_vm7, %v708_v54, 0.0 }
 0x1c4   :  { %714 = vadd.xlane.f32.xlu0 %v713_v55 }
 0x1ca   :  { %v951_v56 = vpop.permute.xlu1 %950 }
 0x1cb   :  { %v957_v14 = vsel %vm415_vm7, %v951_v56, 0.0 }
 0x1d2   :  { %v1191_v61 = vpop.permute.xlu1 %1190 }
 0x1d3   :  { %v1197_v63 = vsel %vm415_vm7, %v1191_v61, 0.0 }
 0x1d4   :  { %1198 = vadd.xlane.f32.xlu1 %v1197_v63  ;;  %1172 = vrot.lane.b32.xlu2 %v413_v62, %s3122_s30 }
 0x1d8   :  { %932 = vrot.lane.b32.xlu0 %v413_v62, %s3123_s6 }
 0x1da   :  { %v450_v10 = vpop.xlane.xlu0 %449 }
 0x1db   :  { %v452_v11 = vmul.f32 0.35355338, %v450_v10 }
 0x1dc   :  { %689 = vrot.lane.b32.xlu2 %v413_v62, %s3121_s14  ;;  %717 = vadd.xlane.f32.xlu1 %v716_v4 }
 0x1dd   :  { %v3479_v12 = vadd.f32 %v3424_v19, %v452_v11 }
 0x1e4   :  { %500 = vperm.xlu2 %2901, %v3474_v7   ;;  %420 = vadd.xlane.f32.xlu1 %v419_v8 }
 0x1fd   :  { %503 = vperm.xlu1 %2902, %v3479_v12  }
 0x202   :  { %417 = vadd.xlane.f32.xlu0 %v416_v13 }
 0x20d   :  { %958 = vadd.xlane.f32.xlu2 %v957_v14 }
 0x216   :  { %934 = vrot.lane.b32.xlu0 %v414_v6, %s3123_s6 }
 0x21e   :  { %691 = vrot.lane.b32.xlu0 %v414_v6, %s3121_s14 }
 0x224   :  { %v1196_v22 = vpop.xlane.xlu0 %1195 }
 0x225   :  { %1174 = vrot.lane.b32.xlu2 %v414_v6, %s3122_s30  ;;  %v1200_v28 = vmul.f32 0.35355338, %v1196_v22 }
 0x227   :  { %v3491_v29 = vadd.f32 %v1200_v28, %v3422_v18 }
 0x22f   :  { %v956_v15 = vpop.xlane.xlu2 %955 }
 0x230   :  { %v960_v30 = vmul.f32 0.35355338, %v956_v15 }
 0x232   :  { %v3495_v31 = vadd.f32 %v960_v30, %v3422_v18 }
 0x237   :  { %v1173_v20 = vpop.permute.xlu2 %1172  ;;  %v715_v25 = vpop.xlane.xlu0 %714 }
 0x238   :  { %v1178_v21 = vsel %vm415_vm7, %v1173_v20, 0.0  ;;  %v719_v32 = vmul.f32 0.35355338, %v715_v25 }
 0x239   :  { %1179 = vadd.xlane.f32.xlu1 %v1178_v21 }
 0x23a   :  { %v3499_v33 = vadd.f32 %v719_v32, %v3422_v18 }
 0x23f   :  { %v690_v23 = vpop.permute.xlu2 %689 }
 0x240   :  { %v695_v24 = vsel %vm415_vm7, %v690_v23, 0.0 }
 0x241   :  { %696 = vadd.xlane.f32.xlu1 %v695_v24 }
 0x247   :  { %v1199_v34 = vpop.xlane.xlu1 %1198  ;;  %v501_v51 = vpop.permute.xlu2 %500 }
 0x248   :  { %v505_v53 = vperm.slane %v501_v51, %v3507_v48  ;;  %v1201_v13 = vmul.f32 0.35355338, %v1199_v34 }
 0x24a   :  { %v933_v26 = vpop.permute.xlu0 %932  ;;  %v3533_v14 = vadd.f32 %v1201_v13, %v3424_v19 }
 0x24b   :  { %v938_v27 = vsel %vm415_vm7, %v933_v26, 0.0 }
 0x24c   :  { %939 = vadd.xlane.f32.xlu0 %v938_v27 }
 0x24f   :  { %v718_v35 = vpop.xlane.xlu1 %717 }
 0x250   :  { %v720_v57 = vmul.f32 0.35355338, %v718_v35 }
 0x252   :  { %v3515_v60 = vadd.f32 %v720_v57, %v3424_v19 }
 0x257   :  { %v421_v43 = vpop.xlane.xlu1 %420 }
 0x258   :  { %v423_v62 = vmul.f32 0.35355338, %v421_v43 }
 0x25a   :  { %1229 = vperm.xlu1 %2902, %v3491_v29   ;;  %v3520_v0 = vadd.f32 %v3420_v17, %v423_v62 }
 0x260   :  { %989 = vperm.xlu0 %2903, %v3495_v31  }
 0x268   :  { %749 = vperm.xlu0 %2903, %v3499_v33  }
 0x26f   :  { %v504_v44 = vpop.permute.xlu1 %503 }
 0x270   :  { %v506_v52 = vperm.slane %v504_v44, %v3507_v48 }
 0x272   :  { %v507_v54 = vsel %vm490_vm8, %v506_v52, %v505_v53 }
 0x273   :  { %v509_v55 = vsel %vm493_vm9, %v507_v54, -inf }
 0x275   :  { %v418_v39 = vpop.xlane.xlu0 %417 }
 0x276   :  { %v422_v40 = vmul.f32 0.35355338, %v418_v39 }
 0x278   :  { %v3503_v41 = vadd.f32 %v3418_v16, %v422_v40 }
 0x27a   :  { %481 = vperm.xlu2 %2901, %v3503_v41  }
 0x280   :  { %v959_v56 = vpop.xlane.xlu2 %958 }
 0x281   :  { %v961_v10 = vmul.f32 0.35355338, %v959_v56 }
 0x283   :  { %v3529_v11 = vadd.f32 %v961_v10, %v3424_v19 }
 0x288   :  { %v935_v49 = vpop.permute.xlu0 %934  ;;  %v1175_v37 = vpop.permute.xlu2 %1174 }
 0x289   :  { %v941_v18 = vsel %vm415_vm7, %v935_v49, 0.0  ;;  %v1181_v61 = vsel %vm415_vm7, %v1175_v37, 0.0 }
 0x28a   :  { %942 = vadd.xlane.f32.xlu1 %v941_v18 }
 0x290   :  { %v692_v63 = vpop.permute.xlu0 %691 }
 0x291   :  { %v698_v1 = vsel %vm415_vm7, %v692_v63, 0.0 }
 0x292   :  { %510 = vmax.xlane.f32.xlu0 %v509_v55 }
 0x2a3   :  { %1182 = vadd.xlane.f32.xlu2 %v1181_v61  ;;  %752 = vperm.xlu1 %2902, %v3515_v60  }
 0x2ab   :  { %699 = vadd.xlane.f32.xlu2 %v698_v1  ;;  %484 = vperm.xlu1 %2902, %v3520_v0  }
 0x2ac   :  { %v1180_v4 = vpop.xlane.xlu1 %1179 }
 0x2ad   :  { %v1184_v22 = vmul.f32 0.35355338, %v1180_v4 }
 0x2af   :  { %v3541_v23 = vadd.f32 %v1184_v22, %v3418_v16 }
 0x2b4   :  { %v697_v5 = vpop.xlane.xlu1 %696 }
 0x2b5   :  { %v701_v6 = vmul.f32 0.35355338, %v697_v5 }
 0x2b7   :  { %v3525_v8 = vadd.f32 %v701_v6, %v3418_v16 }
 0x2b9   :  { %734 = vperm.xlu1 %2902, %v3525_v8  }
 0x2bf   :  { %v940_v15 = vpop.xlane.xlu0 %939 }
 0x2c0   :  { %v944_v20 = vmul.f32 0.35355338, %v940_v15 }
 0x2c2   :  { %v3537_v21 = vadd.f32 %v944_v20, %v3418_v16 }
 0x2c3   :  { %992 = vperm.xlu2 %2901, %v3529_v11  }
 0x2cb   :  { %1232 = vperm.xlu2 %2901, %v3533_v14  }
 0x2cc   :  { %v1230_v24 = vpop.permute.xlu1 %1229 }
 0x2cd   :  { %v1234_v5 = vperm.slane %v1230_v24, %v3507_v48 }
 0x2d2   :  { %v990_v27 = vpop.permute.xlu0 %989 }
 0x2d3   :  { %974 = vperm.xlu2 %2901, %v3537_v21   ;;  %v994_v49 = vperm.slane %v990_v27, %v3507_v48 }
 0x2d4   :  { %v482_v28 = vpop.permute.xlu2 %481 }
 0x2d5   :  { %v488_v61 = vperm.slane %v482_v28, %v3507_v48 }
 0x2da   :  { %v750_v30 = vpop.permute.xlu0 %749 }
 0x2db   :  { %1214 = vperm.xlu2 %2901, %v3541_v23   ;;  %v754_v34 = vperm.slane %v750_v30, %v3507_v48 }
 0x2fd   :  { %v943_v25 = vpop.xlane.xlu1 %942 }
 0x2fe   :  { %v945_v26 = vmul.f32 0.35355338, %v943_v25 }
 0x300   :  { %v3545_v19 = vadd.f32 %v945_v26, %v3420_v17 }
 0x302   :  { %977 = vperm.xlu1 %2902, %v3545_v19  }
 0x315   :  { %v753_v32 = vpop.permute.xlu1 %752 }
 0x316   :  { %v755_v35 = vperm.slane %v753_v32, %v3507_v48  ;;  %v1183_v16 = vpop.xlane.xlu2 %1182 }
 0x317   :  { %v1185_v55 = vmul.f32 0.35355338, %v1183_v16  ;;  %v511_v16 = vpop.xlane.xlu0 %510 }
 0x318   :  { %v756_v39 = vsel %vm490_vm8, %v755_v35, %v754_v34 }
 0x319   :  { %v758_v40 = vsel %vm493_vm9, %v756_v39, -inf  ;;  %v3561_v56 = vadd.f32 %v1185_v55, %v3420_v17 }
 0x31a   :  { %759 = vmax.xlane.f32.xlu2 %v758_v40 }
 0x31d   :  { %v485_v57 = vpop.permute.xlu1 %484 }
 0x31e   :  { %v700_v43 = vpop.xlane.xlu2 %699  ;;  %v489_v37 = vperm.slane %v485_v57, %v3507_v48 }
 0x31f   :  { %v702_v53 = vmul.f32 0.35355338, %v700_v43 }
 0x320   :  { %v491_v62 = vsel %vm490_vm8, %v489_v37, %v488_v61 }
 0x321   :  { %v3557_v54 = vadd.f32 %v702_v53, %v3420_v17  ;;  %v494_v63 = vsel %vm493_vm9, %v491_v62, -inf }
 0x326   :  { %v993_v44 = vpop.permute.xlu2 %992 }
 0x327   :  { %v995_v51 = vperm.slane %v993_v44, %v3507_v48 }
 0x329   :  { %v996_v18 = vsel %vm490_vm8, %v995_v51, %v994_v49 }
 0x32a   :  { %v998_v52 = vsel %vm493_vm9, %v996_v18, -inf  ;;  %v477_v18 = vmul.f32 0.35355338, %v3451_v45 }
 0x32b   :  { %999 = vmax.xlane.f32.xlu0 %v998_v52  ;;  %v735_v10 = vpop.permute.xlu1 %734 }
 0x32c   :  { %v739_v30 = vperm.slane %v735_v10, %v3507_v48  ;;  %v513_v53 = vperm.slane %v477_v18, 0 }
 0x32e   :  { %v1233_v1 = vpop.permute.xlu2 %1232 }
 0x32f   :  { %v1235_v4 = vperm.slane %v1233_v1, %v3507_v48 }
 0x331   :  { %v1236_v17 = vsel %vm490_vm8, %v1235_v4, %v1234_v5 }
 0x332   :  { %737 = vperm.xlu2 %2901, %v3557_v54   ;;  %v1238_v6 = vsel %vm493_vm9, %v1236_v17, -inf }
 0x336   :  { %v975_v13 = vpop.permute.xlu2 %974 }
 0x337   :  { %v979_v20 = vperm.slane %v975_v13, %v3507_v48 }
 0x33e   :  { %v1215_v27 = vpop.permute.xlu2 %1214 }
 0x33f   :  { %1217 = vperm.xlu0 %2903, %v3561_v56   ;;  %v1219_v43 = vperm.slane %v1215_v27, %v3507_v48 }
 0x35b   :  { %495 = vmax.xlane.f32.xlu2 %v494_v63 }
 0x369   :  { %1239 = vmax.xlane.f32.xlu0 %v1238_v6 }
 0x374   :  { %v978_v15 = vpop.permute.xlu1 %977 }
 0x375   :  { %v980_v22 = vperm.slane %v978_v15, %v3507_v48 }
 0x377   :  { %v981_v25 = vsel %vm490_vm8, %v980_v22, %v979_v20 }
 0x378   :  { %v983_v26 = vsel %vm493_vm9, %v981_v25, -inf }
 0x379   :  { %984 = vmax.xlane.f32.xlu2 %v983_v26 }
 0x38d   :  { %v3576_v28 = vpop.xlane.xlu2 %759 }
 0x395   :  { %v738_v24 = vpop.permute.xlu2 %737 }
 0x396   :  { %v740_v32 = vperm.slane %v738_v24, %v3507_v48 }
 0x398   :  { %v741_v34 = vsel %vm490_vm8, %v740_v32, %v739_v30 }
 0x399   :  { %v743_v35 = vsel %vm493_vm9, %v741_v34, -inf }
 0x39a   :  { %744 = vmax.xlane.f32.xlu1 %v743_v35 }
 0x39e   :  { %v1000_v39 = vpop.xlane.xlu0 %999 }
 0x3b1   :  { %v1218_v40 = vpop.permute.xlu0 %1217 }
 0x3b2   :  { %v1220_v44 = vperm.slane %v1218_v40, %v3507_v48 }
 0x3b4   :  { %v1221_v49 = vsel %vm490_vm8, %v1220_v44, %v1219_v43 }
 0x3b5   :  { %v1223_v51 = vsel %vm493_vm9, %v1221_v49, -inf }
 0x3b6   :  { %1224 = vmax.xlane.f32.xlu2 %v1223_v51 }
 0x3ce   :  { %v496_v52 = vpop.xlane.xlu2 %495 }
 0x3cf   :  { %v512_v55 = vmax.f32 %v496_v52, %v511_v16 }
 0x3d1   :  { %v514_v57 = vmax.f32 %v512_v55, %v513_v53 }
 0x3d3   :  { %v516_v37 = vperm.slane %v514_v57, 0  ;;  %v517_v61 = vperm.slane %v514_v57, 1  ;;  %v3587_v62 = vsub.f32 %v513_v53, %v514_v57  ;;  %v1210_v53 = vmul.f32 0.35355338, %v3455_v47 }
 0x3d5   :  { %v520_v63 = vsub.f32 %v3503_v41, %v516_v37  ;;  %v521_v1 = vsub.f32 %v3520_v0, %v517_v61  ;;  %v526_v4 = vsub.f32 %v3474_v7, %v516_v37  ;;  %v527_v45 = vsub.f32 %v3479_v12, %v517_v61 }
 0x3d6   :  { %v970_v12 = vmul.f32 0.35355338, %v3453_v46  ;;  %v1242_v37 = vperm.slane %v1210_v53, 0 }
 0x3d7   :  { %v522_v5 = vmul.f32 1.442695, %v520_v63  ;;  %v524_v17 = vmul.f32 1.442695, %v521_v1  ;;  %v528_v6 = vmul.f32 1.442695, %v526_v4 }
 0x3d8   :  { %v530_v10 = vmul.f32 1.442695, %v527_v45  ;;  %v1002_v20 = vperm.slane %v970_v12, 0 }
 0x3d9   :  { %2915 = vpow2.f32 %v522_v5 }
 0x3da   :  { %2917 = vpow2.f32 %v524_v17 }
 0x3db   :  { %2919 = vpow2.f32 %v528_v6 }
 0x3dc   :  { %2921 = vpow2.f32 %v530_v10  ;;  %v1240_v55 = vpop.xlane.xlu0 %1239 }
 0x3df   :  { %v3593_v13 = vpop.eup %2915 }
 0x3e0   :  { %v3595_v15 = vpop.eup %2917  ;;  %538 = vperm.xlu1 %2902, %v3593_v13  }
 0x3e1   :  { %v3598_v41 = vpop.eup %2919  ;;  %541 = vperm.xlu0 %2903, %v3595_v15  }
 0x3e2   :  { %553 = vperm.xlu2 %2901, %v3598_v41   ;;  %v3602_v7 = vpop.eup %2921 }
 0x3e8   :  { %556 = vperm.xlu1 %2902, %v3602_v7  }
 0x3ec   :  { %v985_v0 = vpop.xlane.xlu2 %984 }
 0x3ed   :  { %v1001_v22 = vmax.f32 %v985_v0, %v1000_v39 }
 0x3ef   :  { %v1003_v25 = vmax.f32 %v1001_v22, %v1002_v20 }
 0x3f1   :  { %v1005_v26 = vperm.slane %v1003_v25, 0  ;;  %v1006_v27 = vperm.slane %v1003_v25, 1  ;;  %v3606_v24 = vsub.f32 %v1002_v20, %v1003_v25 }
 0x3f3   :  { %v1009_v30 = vsub.f32 %v3537_v21, %v1005_v26  ;;  %v1010_v32 = vsub.f32 %v3545_v19, %v1006_v27  ;;  %v1015_v34 = vsub.f32 %v3495_v31, %v1005_v26  ;;  %v1016_v46 = vsub.f32 %v3529_v11, %v1006_v27 }
 0x3f4   :  { %v730_v11 = vmul.f32 0.35355338, %v3458_v50 }
 0x3f5   :  { %v1011_v35 = vmul.f32 1.442695, %v1009_v30  ;;  %v1013_v16 = vmul.f32 1.442695, %v1010_v32  ;;  %v1017_v40 = vmul.f32 1.442695, %v1015_v34 }
 0x3f6   :  { %v1019_v39 = vmul.f32 1.442695, %v1016_v46  ;;  %v762_v49 = vperm.slane %v730_v11, 0 }
 0x3f7   :  { %2923 = vpow2.f32 %v1011_v35 }
 0x3f8   :  { %2925 = vpow2.f32 %v1013_v16 }
 0x3f9   :  { %2927 = vpow2.f32 %v1017_v40 }
 0x3fa   :  { %2929 = vpow2.f32 %v1019_v39 }
 0x3fd   :  { %v3612_v43 = vpop.eup %2923 }
 0x3fe   :  { %v3614_v44 = vpop.eup %2925  ;;  %1027 = vperm.xlu0 %2903, %v3612_v43  }
 0x3ff   :  { %v3617_v21 = vpop.eup %2927  ;;  %1030 = vperm.xlu1 %2902, %v3614_v44  }
 0x400   :  { %1042 = vperm.xlu2 %2901, %v3617_v21   ;;  %v3621_v31 = vpop.eup %2929 }
 0x406   :  { %1045 = vperm.xlu0 %2903, %v3621_v31  }
 0x40d   :  { %v745_v19 = vpop.xlane.xlu1 %744 }
 0x40e   :  { %v761_v51 = vmax.f32 %v745_v19, %v3576_v28 }
 0x410   :  { %v763_v18 = vmax.f32 %v761_v51, %v762_v49 }
 0x412   :  { %v3626_v52 = vsub.f32 %v762_v49, %v763_v18  ;;  %v765_v6 = vperm.slane %v763_v18, 0  ;;  %v766_v45 = vperm.slane %v763_v18, 1 }
 0x414   :  { %v769_v20 = vsub.f32 %v3525_v8, %v765_v6  ;;  %v770_v22 = vsub.f32 %v3557_v54, %v766_v45  ;;  %v775_v30 = vsub.f32 %v3499_v33, %v765_v6  ;;  %v776_v8 = vsub.f32 %v3515_v60, %v766_v45 }
 0x416   :  { %v779_v54 = vmul.f32 1.442695, %v776_v8 }
 0x429   :  { %v1225_v57 = vpop.xlane.xlu2 %1224 }
 0x42a   :  { %v1241_v61 = vmax.f32 %v1225_v57, %v1240_v55 }
 0x42c   :  { %v1243_v63 = vmax.f32 %v1241_v61, %v1242_v37 }
 0x42e   :  { %v1245_v1 = vperm.slane %v1243_v63, 0  ;;  %v1246_v4 = vperm.slane %v1243_v63, 1  ;;  %v3629_v5 = vsub.f32 %v1242_v37, %v1243_v63 }
 0x430   :  { %v1249_v50 = vsub.f32 %v3541_v23, %v1245_v1  ;;  %v1250_v17 = vsub.f32 %v3561_v56, %v1246_v4  ;;  %v1255_v28 = vsub.f32 %v3491_v29, %v1245_v1  ;;  %v1256_v0 = vsub.f32 %v3533_v14, %v1246_v4 }
 0x431   :  { %v771_v23 = vmul.f32 1.442695, %v769_v20  ;;  %v773_v56 = vmul.f32 1.442695, %v770_v22  ;;  %v777_v14 = vmul.f32 1.442695, %v775_v30 }
 0x432   :  { %v1251_v10 = vmul.f32 1.442695, %v1249_v50  ;;  %v1253_v12 = vmul.f32 1.442695, %v1250_v17  ;;  %v1257_v47 = vmul.f32 1.442695, %v1255_v28 }
 0x433   :  { %v1259_v25 = vmul.f32 1.442695, %v1256_v0 }
 0x434   :  { %2931 = vpow2.f32 %v1251_v10 }
 0x435   :  { %2933 = vpow2.f32 %v1253_v12 }
 0x436   :  { %2935 = vpow2.f32 %v1257_v47 }
 0x437   :  { %2937 = vpow2.f32 %v1259_v25 }
 0x438   :  { %2939 = vpow2.f32 %v771_v23 }
 0x439   :  { %2941 = vpow2.f32 %v773_v56 }
 0x43a   :  { %v3637_v26 = vpop.eup %2931  ;;  %2943 = vpow2.f32 %v777_v14 }
 0x43b   :  { %v3639_v29 = vpop.eup %2933  ;;  %1267 = vperm.xlu0 %2903, %v3637_v26   ;;  %2945 = vpow2.f32 %v779_v54 }
 0x43c   :  { %v3642_v27 = vpop.eup %2935  ;;  %1270 = vperm.xlu2 %2901, %v3639_v29   ;;  %v554_v46 = vpop.permute.xlu2 %553 }
 0x43d   :  { %1282 = vperm.xlu1 %2902, %v3642_v27   ;;  %v3648_v32 = vpop.eup %2937  ;;  %v558_v19 = vperm.slane %v554_v46, %v3507_v48 }
 0x43e   :  { %v3650_v34 = vpop.eup %2939 }
 0x43f   :  { %v3653_v35 = vpop.eup %2941 }
 0x440   :  { %v3657_v33 = vpop.eup %2943 }
 0x441   :  { %v3659_v60 = vpop.eup %2945 }
 0x443   :  { %1285 = vperm.xlu0 %2903, %v3648_v32  }
 0x444   :  { %787 = vperm.xlu2 %2901, %v3650_v34  }
 0x445   :  { %790 = vperm.xlu1 %2902, %v3653_v35  }
 0x44b   :  { %802 = vperm.xlu0 %2903, %v3657_v33  }
 0x44c   :  { %805 = vperm.xlu2 %2901, %v3659_v60  }
 0x452   :  { %v539_v16 = vpop.permute.xlu1 %538 }
 0x453   :  { %v542_v11 = vpop.permute.xlu0 %541  ;;  %v543_v18 = vperm.slane %v539_v16, %v3507_v48 }
 0x454   :  { %v544_v51 = vperm.slane %v542_v11, %v3507_v48 }
 0x456   :  { %v545_v61 = vsel %vm490_vm8, %v544_v51, %v543_v18 }
 0x457   :  { %v547_v1 = vsel %vm493_vm9, %v545_v61, 0.0  ;;  %v533_v61 = vmul.f32 1.442695, %v3587_v62 }
 0x459   :  { %2947 = vpow2.f32 %v533_v61 }
 0x45a   :  { %v557_v40 = vpop.permute.xlu1 %556  ;;  %v1043_v17 = vpop.permute.xlu2 %1042 }
 0x45b   :  { %v559_v39 = vperm.slane %v557_v40, %v3507_v48  ;;  %v1047_v6 = vperm.slane %v1043_v17, %v3507_v48 }
 0x45d   :  { %v560_v49 = vsel %vm490_vm8, %v559_v39, %v558_v19 }
 0x45e   :  { %v562_v53 = vsel %vm493_vm9, %v560_v49, 0.0 }
 0x45f   :  { %v2948_v17 = vpop.eup %2947 }
 0x46f   :  { %563 = vadd.xlane.f32.xlu1 %v562_v53 }
 0x470   :  { %v1028_v55 = vpop.permute.xlu0 %1027 }
 0x471   :  { %v1032_v57 = vperm.slane %v1028_v55, %v3507_v48  ;;  %v1031_v37 = vpop.permute.xlu1 %1030 }
 0x472   :  { %v1033_v63 = vperm.slane %v1031_v37, %v3507_v48 }
 0x474   :  { %v1034_v4 = vsel %vm490_vm8, %v1033_v63, %v1032_v57 }
 0x475   :  { %548 = vadd.xlane.f32.xlu2 %v547_v1  ;;  %v1036_v50 = vsel %vm493_vm9, %v1034_v4, 0.0  ;;  %v1022_v1 = vmul.f32 1.442695, %v3606_v24 }
 0x477   :  { %1037 = vadd.xlane.f32.xlu1 %v1036_v50  ;;  %2949 = vpow2.f32 %v1022_v1 }
 0x478   :  { %v1046_v28 = vpop.permute.xlu0 %1045 }
 0x479   :  { %v1048_v45 = vperm.slane %v1046_v28, %v3507_v48 }
 0x47b   :  { %v1049_v10 = vsel %vm490_vm8, %v1048_v45, %v1047_v6 }
 0x47c   :  { %v1051_v12 = vsel %vm493_vm9, %v1049_v10, 0.0 }
 0x47d   :  { %1052 = vadd.xlane.f32.xlu0 %v1051_v12  ;;  %v2950_v12 = vpop.eup %2949 }
 0x496   :  { %v1271_v47 = vpop.permute.xlu2 %1270 }
 0x497   :  { %v1273_v20 = vperm.slane %v1271_v47, %v3507_v48 }
 0x49e   :  { %v788_v56 = vpop.permute.xlu2 %787 }
 0x49f   :  { %v792_v40 = vperm.slane %v788_v56, %v3507_v48 }
 0x4a6   :  { %v806_v49 = vpop.permute.xlu2 %805 }
 0x4a7   :  { %v808_v53 = vperm.slane %v806_v49, %v3507_v48 }
 0x4ad   :  { %v1268_v0 = vpop.permute.xlu0 %1267 }
 0x4ae   :  { %v1272_v22 = vperm.slane %v1268_v0, %v3507_v48 }
 0x4af   :  { %v1283_v25 = vpop.permute.xlu1 %1282 }
 0x4b0   :  { %v1274_v23 = vsel %vm490_vm8, %v1273_v20, %v1272_v22  ;;  %v1287_v14 = vperm.slane %v1283_v25, %v3507_v48 }
 0x4b1   :  { %v1276_v30 = vsel %vm493_vm9, %v1274_v23, 0.0 }
 0x4b2   :  { %1277 = vadd.xlane.f32.xlu0 %v1276_v30 }
 0x4b5   :  { %v1286_v8 = vpop.permute.xlu0 %1285 }
 0x4b6   :  { %v1288_v54 = vperm.slane %v1286_v8, %v3507_v48 }
 0x4b7   :  { %v791_v16 = vpop.permute.xlu1 %790 }
 0x4b8   :  { %v793_v46 = vperm.slane %v791_v16, %v3507_v48  ;;  %v1289_v39 = vsel %vm490_vm8, %v1288_v54, %v1287_v14 }
 0x4b9   :  { %v1291_v11 = vsel %vm493_vm9, %v1289_v39, 0.0 }
 0x4ba   :  { %1292 = vadd.xlane.f32.xlu2 %v1291_v11  ;;  %v794_v19 = vsel %vm490_vm8, %v793_v46, %v792_v40 }
 0x4bb   :  { %v796_v51 = vsel %vm493_vm9, %v794_v19, 0.0 }
 0x4bc   :  { %797 = vadd.xlane.f32.xlu1 %v796_v51 }
 0x4bd   :  { %v803_v18 = vpop.permute.xlu0 %802 }
 0x4be   :  { %v807_v55 = vperm.slane %v803_v18, %v3507_v48 }
 0x4c0   :  { %v809_v57 = vsel %vm490_vm8, %v808_v53, %v807_v55 }
 0x4c1   :  { %v811_v37 = vsel %vm493_vm9, %v809_v57, 0.0 }
 0x4c2   :  { %812 = vadd.xlane.f32.xlu0 %v811_v37 }
 0x4e2   :  { %v564_v63 = vpop.xlane.xlu1 %563 }
 0x4e8   :  { %v549_v4 = vpop.xlane.xlu2 %548 }
 0x4e9   :  { %v565_v50 = vadd.f32 %v564_v63, %v549_v4 }
 0x4ea   :  { %v1038_v6 = vpop.xlane.xlu1 %1037 }
 0x4eb   :  { %v566_v28 = vadd.f32 %v2948_v17, %v565_v50 }
 0x4ed   :  { %2951 = vrcp.f32 %v566_v28  ;;  %v578_v62 = vand.u32 2147483648, %v566_v28  ;;  %v576_v23 = vand.u32 2147483647, %v566_v28  ;;  %vm572_vm11 = vweird.f32 %v566_v28 }
 0x4ef   :  { %v579_v30 = vor.u32 1.1754944e-38, %v578_v62  ;;  %vm577_vm13 = vcmp.eq.f32.partialorder %v576_v23, 8.507059e+37 }
 0x4f0   :  { %v1053_v45 = vpop.xlane.xlu0 %1052 }
 0x4f1   :  { %v1054_v10 = vadd.f32 %v1053_v45, %v1038_v6  ;;  %v1262_v6 = vmul.f32 1.442695, %v3629_v5 }
 0x4f3   :  { %v2952_v47 = vpop.eup %2951  ;;  %v1055_v0 = vadd.f32 %v2950_v12, %v1054_v10 }
 0x4f4   :  { %v568_v20 = vmul.f32 %v2952_v47, %v566_v28  ;;  %vm573_vm10 = vweird.f32 %v2952_v47 }
 0x4f5   :  { %2953 = vrcp.f32 %v1055_v0  ;;  %vm574_vm12 = vmor %vm572_vm11, %vm573_vm10  ;;  %v1065_v39 = vand.u32 2147483647, %v1055_v0  ;;  %v1067_v11 = vand.u32 2147483648, %v1055_v0  ;;  %vm1061_vm15 = vweird.f32 %v1055_v0 }
 0x4f6   :  { %v569_v22 = vsub.f32 1.0, %v568_v20  ;;  %2955 = vpow2.f32 %v1262_v6 }
 0x4f7   :  { %v1068_v53 = vor.u32 1.1754944e-38, %v1067_v11  ;;  %vm1066_vm2 = vcmp.eq.f32.partialorder %v1065_v39, 8.507059e+37 }
 0x4f8   :  { %v570_v25 = vmul.f32 %v2952_v47, %v569_v22 }
 0x4fa   :  { %v571_v24 = vadd.f32 %v2952_v47, %v570_v25 }
 0x4fb   :  { %v2954_v56 = vpop.eup %2953 }
 0x4fc   :  { %v1057_v8 = vmul.f32 %v2954_v56, %v1055_v0  ;;  %v575_v14 = vsel %vm574_vm12, %v2952_v47, %v571_v24  ;;  %vm1062_vm14 = vweird.f32 %v2954_v56  ;;  %v2956_v10 = vpop.eup %2955 }
 0x4fd   :  { %v580_v54 = vsel %vm577_vm13, %v579_v30, %v575_v14  ;;  %vm1063_vm1 = vmor %vm1061_vm15, %vm1062_vm14  ;;  %vm601_vm15 = vcmask 326912  }
 0x4fe   :  { %v1058_v16 = vsub.f32 1.0, %v1057_v8  ;;  %v584_v40 = vperm.slane %v580_v54, 1  ;;  %v3697_v46 = vmul.f32 %v2948_v17, %v580_v54  ;;  %v583_v55 = vperm.slane %v580_v54, 0 }
 0x500   :  { %v626_v19 = vmul.f32 %v3602_v7, %v584_v40  ;;  %v588_v49 = vmul.f32 %v3595_v15, %v584_v40  ;;  %v1059_v51 = vmul.f32 %v2954_v56, %v1058_v16  ;;  %v587_v7 = vmul.f32 %v3593_v13, %v583_v55 }
 0x501   :  { %v625_v50 = vmul.f32 %v3598_v41, %v583_v55  ;;  %v782_v13 = vmul.f32 1.442695, %v3626_v52 }
 0x502   :  { %634 = vperm.xlu2 %2901, %v626_v19   ;;  %596 = vperm.xlu1 %2902, %v588_v49   ;;  %v1060_v18 = vadd.f32 %v2954_v56, %v1059_v51 }
 0x503   :  { %2957 = vpow2.f32 %v782_v13 }
 0x504   :  { %v1064_v57 = vsel %vm1063_vm1, %v2954_v56, %v1060_v18  ;;  %vm1090_vm1 = vcmask 458112  }
 0x505   :  { %v1069_v37 = vsel %vm1066_vm2, %v1068_v53, %v1064_v57  ;;  %vm1330_vm2 = vcmask 523712  }
 0x506   :  { %v1073_v61 = vperm.slane %v1069_v37, 1  ;;  %v3701_v63 = vmul.f32 %v2950_v12, %v1069_v37  ;;  %v1072_v1 = vperm.slane %v1069_v37, 0 }
 0x508   :  { %v1077_v15 = vmul.f32 %v3614_v44, %v1073_v61  ;;  %v1076_v4 = vmul.f32 %v3612_v43, %v1072_v1  ;;  %v1114_v17 = vmul.f32 %v3621_v31, %v1073_v61  ;;  %v1113_v28 = vmul.f32 %v3617_v21, %v1072_v1 }
 0x509   :  { %v2958_v0 = vpop.eup %2957 }
 0x50a   :  { %591 = vperm.xlu1 %2902, %v587_v7   ;;  %1085 = vperm.xlu2 %2901, %v1077_v15  }
 0x50b   :  { %1080 = vperm.xlu0 %2903, %v1076_v4  }
 0x512   :  { %629 = vperm.xlu1 %2902, %v625_v50   ;;  %1122 = vperm.xlu2 %2901, %v1114_v17  }
 0x51a   :  { %1117 = vperm.xlu1 %2902, %v1113_v28  }
 0x525   :  { %v1278_v44 = vpop.xlane.xlu0 %1277 }
 0x52d   :  { %v1293_v45 = vpop.xlane.xlu2 %1292 }
 0x52e   :  { %v1294_v43 = vadd.f32 %v1293_v45, %v1278_v44 }
 0x52f   :  { %v798_v41 = vpop.xlane.xlu1 %797 }
 0x530   :  { %v1295_v12 = vadd.f32 %v2956_v10, %v1294_v43 }
 0x532   :  { %2959 = vrcp.f32 %v1295_v12  ;;  %v1307_v5 = vand.u32 2147483648, %v1295_v12  ;;  %v1305_v52 = vand.u32 2147483647, %v1295_v12  ;;  %vm1301_vm5 = vweird.f32 %v1295_v12 }
 0x534   :  { %v1308_v56 = vor.u32 1.1754944e-38, %v1307_v5  ;;  %vm1306_vm10 = vcmp.eq.f32.partialorder %v1305_v52, 8.507059e+37 }
 0x535   :  { %v813_v47 = vpop.xlane.xlu0 %812 }
 0x536   :  { %v814_v31 = vadd.f32 %v813_v47, %v798_v41 }
 0x538   :  { %v2960_v20 = vpop.eup %2959  ;;  %v815_v22 = vadd.f32 %v2958_v0, %v814_v31 }
 0x539   :  { %v1297_v21 = vmul.f32 %v2960_v20, %v1295_v12  ;;  %vm1302_vm4 = vweird.f32 %v2960_v20 }
 0x53a   :  { %2961 = vrcp.f32 %v815_v22  ;;  %vm1303_vm6 = vmor %vm1301_vm5, %vm1302_vm4  ;;  %v825_v11 = vand.u32 2147483647, %v815_v22  ;;  %v827_v19 = vand.u32 2147483648, %v815_v22  ;;  %vm821_vm12 = vweird.f32 %v815_v22 }
 0x53b   :  { %v1298_v62 = vsub.f32 1.0, %v1297_v21  ;;  %vm850_vm4 = vcmask 392512  }
 0x53c   :  { %v828_v57 = vor.u32 1.1754944e-38, %v827_v19  ;;  %vm826_vm14 = vcmp.eq.f32.partialorder %v825_v11, 8.507059e+37 }
 0x53d   :  { %v1299_v25 = vmul.f32 %v2960_v20, %v1298_v62 }
 0x53f   :  { %v1300_v23 = vadd.f32 %v2960_v20, %v1299_v25 }
 0x540   :  { %v2962_v24 = vpop.eup %2961 }
 0x541   :  { %v817_v30 = vmul.f32 %v2962_v24, %v815_v22  ;;  %v1304_v8 = vsel %vm1303_vm6, %v2960_v20, %v1300_v23  ;;  %vm822_vm11 = vweird.f32 %v2962_v24 }
 0x542   :  { %v1309_v14 = vsel %vm1306_vm10, %v1308_v56, %v1304_v8  ;;  %vm823_vm13 = vmor %vm821_vm12, %vm822_vm11 }
 0x543   :  { %v818_v54 = vsub.f32 1.0, %v817_v30  ;;  %v1312_v16 = vperm.slane %v1309_v14, 0  ;;  %v3711_v40 = vmul.f32 %v2956_v10, %v1309_v14  ;;  %v1313_v39 = vperm.slane %v1309_v14, 1 }
 0x545   :  { %v1316_v49 = vmul.f32 %v3637_v26, %v1312_v16  ;;  %v1353_v51 = vmul.f32 %v3642_v27, %v1312_v16  ;;  %v1317_v18 = vmul.f32 %v3639_v29, %v1313_v39  ;;  %v819_v53 = vmul.f32 %v2962_v24, %v818_v54 }
 0x546   :  { %v1354_v4 = vmul.f32 %v3648_v32, %v1313_v39  ;;  %v3736_v54 = vperm.slane %v3409_v9, 0 }
 0x547   :  { %1320 = vperm.xlu2 %2901, %v1316_v49   ;;  %1357 = vperm.xlu1 %2902, %v1353_v51   ;;  %v820_v55 = vadd.f32 %v2962_v24, %v819_v53 }
 0x548   :  { %1325 = vperm.xlu0 %2903, %v1317_v18   ;;  %v618_v18 = vmul.f32 %v3736_v54, %v3697_v46 }
 0x549   :  { %v824_v37 = vsel %vm823_vm13, %v2962_v24, %v820_v55 }
 0x54a   :  { %v829_v61 = vsel %vm826_vm14, %v828_v57, %v824_v37 }
 0x54b   :  { %v833_v1 = vperm.slane %v829_v61, 1  ;;  %v3716_v7 = vmul.f32 %v2958_v0, %v829_v61  ;;  %v832_v15 = vperm.slane %v829_v61, 0 }
 0x54d   :  { %v837_v26 = vmul.f32 %v3653_v35, %v833_v1  ;;  %v836_v27 = vmul.f32 %v3650_v34, %v832_v15  ;;  %v873_v29 = vmul.f32 %v3657_v33, %v832_v15  ;;  %v874_v50 = vmul.f32 %v3659_v60, %v833_v1 }
 0x54f   :  { %840 = vperm.xlu2 %2901, %v836_v27  }
 0x550   :  { %845 = vperm.xlu0 %2903, %v837_v26   ;;  %v620_v26 = vrot.slane %v618_v18, 1 }
 0x557   :  { %877 = vperm.xlu2 %2901, %v873_v29  }
 0x558   :  { %1362 = vperm.xlu0 %2903, %v1354_v4  }
 0x55c   :  { %v635_v17 = vpop.permute.xlu2 %634 }
 0x55d   :  { %v638_v6 = vmul.f32 %v635_v17, %v3443_v42 }
 0x55f   :  { %v646_v33 = vsel %vm601_vm15, %v638_v6, 0.0 }
 0x560   :  { %882 = vperm.xlu0 %2903, %v874_v50   ;;  %v647_v43 = vrot.slane %v646_v33, 4 }
 0x562   :  { %v648_v21 = vadd.f32 %v647_v43, %v646_v33 }
 0x564   :  { %v1086_v28 = vpop.permute.xlu2 %1085  ;;  %v649_v30 = vrot.slane %v648_v21, 2 }
 0x565   :  { %v1089_v34 = vmul.f32 %v1086_v28, %v3468_v2 }
 0x566   :  { %v650_v53 = vadd.f32 %v649_v30, %v648_v21 }
 0x567   :  { %v1098_v10 = vsel %vm1090_vm1, %v1089_v34, 0.0 }
 0x568   :  { %v1099_v31 = vrot.slane %v1098_v10, 4  ;;  %v651_v27 = vrot.slane %v650_v53, 1 }
 0x56a   :  { %v1100_v56 = vadd.f32 %v1099_v31, %v1098_v10  ;;  %v652_v34 = vadd.f32 %v651_v27, %v650_v53 }
 0x56c   :  { %v1123_v44 = vpop.permute.xlu2 %1122  ;;  %v1101_v49 = vrot.slane %v1100_v56, 2 }
 0x56d   :  { %v1126_v60 = vmul.f32 %v1123_v44, %v3443_v42 }
 0x56e   :  { %v1102_v9 = vadd.f32 %v1101_v49, %v1100_v56 }
 0x56f   :  { %v1134_v0 = vsel %vm1090_vm1, %v1126_v60, 0.0  ;;  %v1106_v60 = vmul.f32 %v3701_v63, %v3736_v54 }
 0x570   :  { %v1135_v25 = vrot.slane %v1134_v0, 4 }
 0x571   :  { %v1108_v21 = vrot.slane %v1106_v60, 1 }
 0x572   :  { %v1136_v16 = vadd.f32 %v1135_v25, %v1134_v0 }
 0x574   :  { %v597_v13 = vpop.permute.xlu1 %596  ;;  %v1137_v61 = vrot.slane %v1136_v16, 2 }
 0x575   :  { %v600_v35 = vmul.f32 %v597_v13, %v3468_v2 }
 0x576   :  { %v1138_v17 = vadd.f32 %v1137_v61, %v1136_v16 }
 0x577   :  { %v609_v32 = vsel %vm601_vm15, %v600_v35, 0.0  ;;  %v1103_v35 = vrot.slane %v1102_v9, 1 }
 0x578   :  { %v610_v45 = vrot.slane %v609_v32, 4  ;;  %v1139_v43 = vrot.slane %v1138_v17, 1 }
 0x57a   :  { %v611_v12 = vadd.f32 %v610_v45, %v609_v32 }
 0x57c   :  { %v612_v41 = vrot.slane %v611_v12, 2  ;;  %v592_v47 = vpop.permute.xlu1 %591 }
 0x57d   :  { %v599_v20 = vmul.f32 %v592_v47, %v3462_v58  ;;  %v1081_v22 = vpop.permute.xlu0 %1080  ;;  %v1104_v47 = vadd.f32 %v1103_v35, %v1102_v9 }
 0x57e   :  { %v1088_v62 = vmul.f32 %v1081_v22, %v3462_v58  ;;  %v613_v52 = vadd.f32 %v612_v41, %v611_v12 }
 0x57f   :  { %v602_v5 = vsel %vm601_vm15, %v599_v20, 0.0  ;;  %v1112_v30 = vadd.f32 %v1108_v21, %v1104_v47 }
 0x580   :  { %v603_v23 = vrot.slane %v602_v5, 4  ;;  %v1091_v24 = vsel %vm1090_vm1, %v1088_v62, 0.0  ;;  %v614_v39 = vrot.slane %v613_v52, 1  ;;  %v1140_v62 = vadd.f32 %v1139_v43, %v1138_v17 }
 0x581   :  { %v1092_v14 = vrot.slane %v1091_v24, 4 }
 0x582   :  { %v604_v8 = vadd.f32 %v603_v23, %v602_v5  ;;  %v615_v1 = vadd.f32 %v614_v39, %v613_v52 }
 0x583   :  { %v1093_v57 = vadd.f32 %v1092_v14, %v1091_v24 }
 0x584   :  { %v605_v11 = vrot.slane %v604_v8, 2  ;;  %v630_v19 = vpop.permute.xlu1 %629  ;;  %v624_v13 = vadd.f32 %v620_v26, %v615_v1 }
 0x585   :  { %v637_v51 = vmul.f32 %v630_v19, %v3437_v36  ;;  %v1094_v4 = vrot.slane %v1093_v57, 2 }
 0x586   :  { %v606_v55 = vadd.f32 %v605_v11, %v604_v8  ;;  %v654_v41 = vadd.f32 %v652_v34, %v624_v13  ;;  %v1142_v8 = vadd.f32 %v1140_v62, %v1112_v30 }
 0x587   :  { %v639_v37 = vsel %vm601_vm15, %v637_v51, 0.0  ;;  %v1095_v33 = vadd.f32 %v1094_v4, %v1093_v57 }
 0x588   :  { %v640_v15 = vrot.slane %v639_v37, 4  ;;  %v607_v29 = vrot.slane %v606_v55, 1  ;;  %v657_v52 = vrot.slane %v654_v41, 7  ;;  %v1145_v11 = vrot.slane %v1142_v8, 7 }
 0x589   :  { %v1096_v31 = vrot.slane %v1095_v33, 1 }
 0x58a   :  { %v641_v50 = vadd.f32 %v640_v15, %v639_v37  ;;  %v608_v44 = vadd.f32 %v607_v29, %v606_v55 }
 0x58b   :  { %v1097_v23 = vadd.f32 %v1096_v31, %v1095_v33 }
 0x58c   :  { %v642_v28 = vrot.slane %v641_v50, 2  ;;  %v1118_v6 = vpop.permute.xlu1 %1117  ;;  %v623_v22 = vadd.f32 %v618_v18, %v608_v44  ;;  %v407_v44 = vld [vmem:[%s4130_s17] sm:$0xff] }
 0x58d   :  { %v1125_v46 = vmul.f32 %v1118_v6, %v3437_v36  ;;  %v1111_v16 = vadd.f32 %v1106_v60, %v1097_v23  ;;  %678 = vmatpush.msra.mxu0 %v407_v44 }
 0x58e   :  { %v643_v32 = vadd.f32 %v642_v28, %v641_v50 }
 0x58f   :  { %v1127_v45 = vsel %vm1090_vm1, %v1125_v46, 0.0 }
 0x590   :  { %v644_v10 = vrot.slane %v643_v32, 1  ;;  %v1128_v12 = vrot.slane %v1127_v45, 4 }
 0x592   :  { %v645_v0 = vadd.f32 %v644_v10, %v643_v32  ;;  %v1129_v20 = vadd.f32 %v1128_v12, %v1127_v45 }
 0x594   :  { %v1130_v5 = vrot.slane %v1129_v20, 2  ;;  %v653_v25 = vadd.f32 %v645_v0, %v623_v22 }
 0x596   :  { %v1131_v24 = vadd.f32 %v1130_v5, %v1129_v20  ;;  %v658_v56 = vsel %vm490_vm8, %v657_v52, %v653_v25  ;;  %v1346_v52 = vmul.f32 %v3711_v40, %v3736_v54 }
 0x597   :  { %659 = vrot.lane.b32.xlu1 %v658_v56, %s3125_s16 }
 0x598   :  { %v1132_v63 = vrot.slane %v1131_v24, 1 }
 0x59a   :  { %v1133_v14 = vadd.f32 %v1132_v63, %v1131_v24 }
 0x59c   :  { %v1141_v39 = vadd.f32 %v1133_v14, %v1111_v16 }
 0x59e   :  { %v1146_v19 = vsel %vm490_vm8, %v1145_v11, %v1141_v39 }
 0x59f   :  { %1147 = vrot.lane.b32.xlu0 %v1146_v19, %s3126_s8 }
 0x5a1   :  { %v1321_v49 = vpop.permute.xlu2 %1320 }
 0x5a2   :  { %v1328_v55 = vmul.f32 %v1321_v49, %v3462_v58  ;;  %v1348_v49 = vrot.slane %v1346_v52, 1 }
 0x5a4   :  { %v1331_v1 = vsel %vm1330_vm2, %v1328_v55, 0.0 }
 0x5a5   :  { %v1332_v27 = vrot.slane %v1331_v1, 4 }
 0x5a7   :  { %v1333_v35 = vadd.f32 %v1332_v27, %v1331_v1 }
 0x5a9   :  { %v841_v51 = vpop.permute.xlu2 %840 }
 0x5aa   :  { %v848_v4 = vmul.f32 %v841_v51, %v3462_v58 }
 0x5ac   :  { %v851_v46 = vsel %vm850_vm4, %v848_v4, 0.0 }
 0x5ad   :  { %v852_v45 = vrot.slane %v851_v46, 4 }
 0x5af   :  { %v853_v0 = vadd.f32 %v852_v45, %v851_v46 }
 0x5b1   :  { %v878_v26 = vpop.permute.xlu2 %877  ;;  %v854_v24 = vrot.slane %v853_v0, 2 }
 0x5b2   :  { %v885_v28 = vmul.f32 %v878_v26, %v3437_v36 }
 0x5b4   :  { %v887_v33 = vsel %vm850_vm4, %v885_v28, 0.0 }
 0x5b9   :  { %v1358_v18 = vpop.permute.xlu1 %1357 }
 0x5ba   :  { %v1326_v53 = vpop.permute.xlu0 %1325  ;;  %v1365_v37 = vmul.f32 %v1358_v18, %v3437_v36  ;;  %v888_v36 = vrot.slane %v887_v33, 4  ;;  %v855_v18 = vadd.f32 %v854_v24, %v853_v0 }
 0x5bb   :  { %v1329_v57 = vmul.f32 %v1326_v53, %v3468_v2 }
 0x5bc   :  { %v1367_v9 = vsel %vm1330_vm2, %v1365_v37, 0.0  ;;  %v889_v22 = vadd.f32 %v888_v36, %v887_v33  ;;  %v410_v36 = vld [vmem:[%s4130_s17 + $0x18] sm:$0xff] }
 0x5bd   :  { %v1338_v61 = vsel %vm1330_vm2, %v1329_v57, 0.0  ;;  %v1368_v50 = vrot.slane %v1367_v9, 4  ;;  %1406 = vmatpush.msra.mxu3 %v410_v36 }
 0x5be   :  { %v1339_v15 = vrot.slane %v1338_v61, 4  ;;  %v890_v63 = vrot.slane %v889_v22, 2 }
 0x5bf   :  { %v1369_v34 = vadd.f32 %v1368_v50, %v1367_v9  ;;  %v866_v9 = vmul.f32 %v3716_v7, %v3736_v54 }
 0x5c0   :  { %v1340_v6 = vadd.f32 %v1339_v15, %v1338_v61  ;;  %v891_v57 = vadd.f32 %v890_v63, %v889_v22  ;;  %v1414_v22 = vld [vmem:[%s4135_s19 + $0x10] sm:$0xff] }
 0x5c1   :  { %v1370_v43 = vrot.slane %v1369_v34, 2 }
 0x5c2   :  { %v846_v29 = vpop.permute.xlu0 %845  ;;  %v1341_v58 = vrot.slane %v1340_v6, 2  ;;  %v892_v4 = vrot.slane %v891_v57, 1 }
 0x5c3   :  { %v849_v17 = vmul.f32 %v846_v29, %v3468_v2  ;;  %v1334_v2 = vrot.slane %v1333_v35, 2  ;;  %v1371_v21 = vadd.f32 %v1370_v43, %v1369_v34  ;;  %v868_v34 = vrot.slane %v866_v9, 1 }
 0x5c4   :  { %v1342_v12 = vadd.f32 %v1341_v58, %v1340_v6  ;;  %v893_v44 = vadd.f32 %v892_v4, %v891_v57 }
 0x5c5   :  { %v858_v13 = vsel %vm850_vm4, %v849_v17, 0.0  ;;  %v1335_v31 = vadd.f32 %v1334_v2, %v1333_v35  ;;  %v1372_v8 = vrot.slane %v1371_v21, 1 }
 0x5c6   :  { %v859_v32 = vrot.slane %v858_v13, 4  ;;  %v1343_v62 = vrot.slane %v1342_v12, 1 }
 0x5c7   :  { %v1336_v23 = vrot.slane %v1335_v31, 1  ;;  %v1373_v40 = vadd.f32 %v1372_v8, %v1371_v21  ;;  %v1413_v21 = vld [vmem:[%s4135_s19 + $0x8] sm:$0xff] }
 0x5c8   :  { %v860_v41 = vadd.f32 %v859_v32, %v858_v13  ;;  %v1344_v16 = vadd.f32 %v1343_v62, %v1342_v12  ;;  %v408_v12 = vld [vmem:[%s4130_s17 + $0x8] sm:$0xff]  ;;  %v1412_v62 = vld [vmem:[%s4135_s19] sm:$0xff] }
 0x5c9   :  { %v1337_v51 = vadd.f32 %v1336_v23, %v1335_v31  ;;  %926 = vmatpush.msrb.mxu1 %v408_v12  ;;  %v1443_v31 = vld [vmem:[%s4132_s21] sm:$0xff] }
 0x5ca   :  { %v1363_v60 = vpop.permute.xlu0 %1362  ;;  %v861_v5 = vrot.slane %v860_v41, 2  ;;  %v1352_v15 = vadd.f32 %v1348_v49, %v1344_v16  ;;  %v2913_v16 = vld [vmem:[%s4134_s20] ss:$0 sm:$0xff] }
 0x5cb   :  { %v1366_v10 = vmul.f32 %v1363_v60, %v3443_v42  ;;  %v1351_v27 = vadd.f32 %v1346_v52, %v1337_v51  ;;  %v409_v60 = vld [vmem:[%s4130_s17 + $0x10] sm:$0xff] }
 0x5cc   :  { %v862_v39 = vadd.f32 %v861_v5, %v860_v41  ;;  %1166 = vmatpush.msra.mxu2 %v409_v60  ;;  %v2911_v5 = vld [vmem:[%s4131_s18] ss:$0 sm:$0xff] }
 0x5cd   :  { %v1374_v47 = vsel %vm1330_vm2, %v1366_v10, 0.0  ;;  %v1381_v28 = vadd.f32 %v1373_v40, %v1351_v27 }
 0x5ce   :  { %v1375_v20 = vrot.slane %v1374_v47, 4  ;;  %v863_v37 = vrot.slane %v862_v39, 1 }
 0x5d0   :  { %v1376_v25 = vadd.f32 %v1375_v20, %v1374_v47  ;;  %v864_v50 = vadd.f32 %v863_v37, %v862_v39  ;;  %v1444_v47 = vld [vmem:[%s4132_s21 + $0x8] sm:$0xff]  ;;  %v1415_v20 = vld [vmem:[%s4135_s19 + $0x18] sm:$0xff]  ;;  %v2912_v39 = vld [vmem:[%s4173_s2] ss:$0 sm:$0xff] }
 0x5d1   :  { %1463 = vmatpush.msra.mxu1 %v1444_v47  ;;  %1435 = vmatpush.msrb.mxu0 %v1415_v20 }
 0x5d2   :  { %v1377_v56 = vrot.slane %v1376_v25, 2  ;;  %v883_v30 = vpop.permute.xlu0 %882  ;;  %v872_v58 = vadd.f32 %v868_v34, %v864_v50 }
 0x5d3   :  { %v886_v14 = vmul.f32 %v883_v30, %v3443_v42  ;;  %v856_v42 = vrot.slane %v855_v18, 1  ;;  %1464 = vmatpush.msra.mxu1 %v1443_v31  ;;  %1436 = vmatpush.msrb.mxu0 %v1414_v22 }
 0x5d4   :  { %v1378_v11 = vadd.f32 %v1377_v56, %v1376_v25 }
 0x5d5   :  { %v894_v19 = vsel %vm850_vm4, %v886_v14, 0.0  ;;  %v857_v13 = vadd.f32 %v856_v42, %v855_v18  ;;  %1437 = vmatpush.msrb.mxu0 %v1413_v21 }
 0x5d6   :  { %v1379_v53 = vrot.slane %v1378_v11, 1  ;;  %v895_v55 = vrot.slane %v894_v19, 4 }
 0x5d7   :  { %v871_v7 = vadd.f32 %v866_v9, %v857_v13  ;;  %1438 = vmatpush.msrb.mxu0 %v1412_v62 }
 0x5d8   :  { %v1380_v61 = vadd.f32 %v1379_v53, %v1378_v11  ;;  %v896_v1 = vadd.f32 %v895_v55, %v894_v19 }
 0x5d9   :  { %v901_v32 = vadd.f32 %v893_v44, %v871_v7 }
 0x5da   :  { %v897_v26 = vrot.slane %v896_v1, 2  ;;  %v1382_v29 = vadd.f32 %v1380_v61, %v1352_v15 }
 0x5dc   :  { %v898_v17 = vadd.f32 %v897_v26, %v896_v1  ;;  %v1385_v6 = vrot.slane %v1382_v29, 7 }
 0x5de   :  { %v899_v35 = vrot.slane %v898_v17, 1  ;;  %v1386_v46 = vsel %vm490_vm8, %v1385_v6, %v1381_v28 }
 0x5df   :  { %1387 = vrot.lane.b32.xlu2 %v1386_v46, %s3127_s3 }
 0x5e0   :  { %v900_v33 = vadd.f32 %v899_v35, %v898_v17 }
 0x5e2   :  { %v902_v54 = vadd.f32 %v900_v33, %v872_v58 }
 0x5e4   :  { %v905_v2 = vrot.slane %v902_v54, 7 }
 0x5e6   :  { %v906_v45 = vsel %vm490_vm8, %v905_v2, %v901_v32 }
 0x5e7   :  { %907 = vrot.lane.b32.xlu0 %v906_v45, %s3128_s0 }
 0x609   :  { %v660_v43 = vpop.permute.xlu1 %659 }
 0x60a   :  { %2856 = vmatmul.msk.f32.vlgmr.msra.gmra.mxu0 %vm415_vm7, %v660_v43 }
 0x611   :  { %v1148_v10 = vpop.permute.xlu0 %1147 }
 0x612   :  { %2858 = vmatmul.msk.f32.vlgmr.msra.gmra.mxu2 %vm415_vm7, %v1148_v10 }
 0x639   :  { %v1388_v41 = vpop.permute.xlu2 %1387 }
 0x63a   :  { %2859 = vmatmul.msk.f32.vlgmr.msra.gmra.mxu3 %vm415_vm7, %v1388_v41 }
 0x659   :  { %v908_v0 = vpop.permute.xlu0 %907 }
 0x65a   :  { %2857 = vmatmul.msk.f32.vlgmr.msrb.gmra.mxu1 %vm415_vm7, %v908_v0 }
 0x662   :  { %2861 = vmatmul.msk.f32.vlgmr.msra.gmra.mxu1 %vm111_vm0, %v3382_v59 }
 0x66a   :  { %2862 = vmatmul.msk.f32.gmra.mxu1 %vm111_vm0, %v3394_v3 }
 0x687   :  { %v680_v25 = vpop.f32.mrf.mxu0 }
 0x688   :  { %v686_v52 = vadd.f32 %v2911_v5, %v680_v25 }
 0x695   :  { %v1168_v56 = vpop.f32.mrf.mxu2 }
 0x6bd   :  { %v1408_v63 = vpop.f32.mrf.mxu3 }
 0x6d7   :  { %v928_v23 = vpop.f32.mrf.mxu1 }
 0x6d8   :  { %v931_v24 = vadd.f32 %v928_v23, %v686_v52 }
 0x6da   :  { %v1171_v30 = vadd.f32 %v1168_v56, %v931_v24 }
 0x6dc   :  { %v1411_v8 = vadd.f32 %v1408_v63, %v1171_v30 }
 0x6de   :  { %2860 = vmatmul.msk.f32.vlgmr.msrb.gmra.mxu0 %vm254_vm3, %v1411_v8 }
 0x6df   :  { %v1466_v14 = vpop.f32.mrf.mxu1 }
 0x6e0   :  { %v1467_v51 = vadd.f32 %v2912_v39, %v1466_v14 }
 0x6e7   :  { %v1469_v49 = vpop.f32.mrf.mxu1 }
 0x6e8   :  { %v1470_v55 = vadd.f32 %v2912_v39, %v1469_v49 }
 0x75b   :  { %v1440_v11 = vpop.f32.mrf.mxu0 }
 0x75c   :  { %v1441_v19 = vadd.f32 %v2913_v16, %v1440_v11 }
 0x75e   :  { %v1474_v18 = vrot.slane %v1441_v19, 1  ;;  %v1475_v53 = vperm.slane %v1441_v19, 0 }
 0x760   :  { %v1476_v57 = vperm.slane %v1474_v18, 0  ;;  %v1479_v40 = vmul.f32 %v1475_v53, %v1467_v51 }
 0x762   :  { %v1480_v37 = vmul.f32 %v1476_v57, %v1470_v55  ;;  %1675 = vrot.lane.b32.xlu0 %v1479_v40, %s3123_s6  ;;  %1576 = vrot.lane.b32.xlu1 %v1479_v40, %s3121_s14  ;;  %v1481_v61 = vsel %vm415_vm7, %v1479_v40, 0.0 }
 0x764   :  { %1578 = vrot.lane.b32.xlu2 %v1480_v37, %s3121_s14  ;;  %v1484_v1 = vsel %vm415_vm7, %v1480_v37, 0.0 }
 0x76a   :  { %1776 = vrot.lane.b32.xlu0 %v1480_v37, %s3122_s30  ;;  %1677 = vrot.lane.b32.xlu1 %v1480_v37, %s3123_s6 }
 0x76c   :  { %1774 = vrot.lane.b32.xlu2 %v1479_v40, %s3122_s30 }
 0x794   :  { %1482 = vadd.xlane.f32.xlu1 %v1481_v61 }
 0x795   :  { %1485 = vadd.xlane.f32.xlu2 %v1484_v1 }
 0x7be   :  { %v1579_v15 = vpop.permute.xlu2 %1578 }
 0x7bf   :  { %v1585_v9 = vsel %vm415_vm7, %v1579_v15, 0.0 }
 0x7c0   :  { %1586 = vadd.xlane.f32.xlu2 %v1585_v9 }
 0x7c6   :  { %v1775_v42 = vpop.permute.xlu2 %1774 }
 0x7c7   :  { %v1780_v26 = vsel %vm415_vm7, %v1775_v42, 0.0 }
 0x7c8   :  { %1781 = vadd.xlane.f32.xlu2 %v1780_v26 }
 0x7d4   :  { %v1676_v27 = vpop.permute.xlu0 %1675  ;;  %v1577_v29 = vpop.permute.xlu1 %1576 }
 0x7d5   :  { %v1582_v4 = vsel %vm415_vm7, %v1577_v29, 0.0  ;;  %v1681_v50 = vsel %vm415_vm7, %v1676_v27, 0.0 }
 0x7d6   :  { %1583 = vadd.xlane.f32.xlu0 %v1582_v4  ;;  %1682 = vadd.xlane.f32.xlu1 %v1681_v50 }
 0x7dc   :  { %v1777_v17 = vpop.permute.xlu0 %1776  ;;  %v1678_v28 = vpop.permute.xlu1 %1677 }
 0x7dd   :  { %v1783_v6 = vsel %vm415_vm7, %v1777_v17, 0.0  ;;  %v1684_v13 = vsel %vm415_vm7, %v1678_v28, 0.0 }
 0x7de   :  { %1784 = vadd.xlane.f32.xlu1 %v1783_v6  ;;  %1685 = vadd.xlane.f32.xlu0 %v1684_v13 }
 0x807   :  { %v1483_v35 = vpop.xlane.xlu1 %1482 }
 0x808   :  { %v1487_v46 = vmul.f32 0.35355338, %v1483_v35  ;;  %v1486_v34 = vpop.xlane.xlu2 %1485 }
 0x809   :  { %v1488_v44 = vmul.f32 0.35355338, %v1486_v34 }
 0x80a   :  { %v1491_v33 = vperm.slane %v1487_v46, %v3507_v48 }
 0x80b   :  { %v1492_v58 = vperm.slane %v1488_v44, %v3507_v48 }
 0x80d   :  { %v1493_v7 = vsel %vm490_vm8, %v1492_v58, %v1491_v33 }
 0x80e   :  { %v1495_v54 = vsel %vm493_vm9, %v1493_v7, -inf }
 0x80f   :  { %1496 = vmax.xlane.f32.xlu0 %v1495_v54 }
 0x833   :  { %v1587_v32 = vpop.xlane.xlu2 %1586 }
 0x834   :  { %v1589_v2 = vmul.f32 0.35355338, %v1587_v32 }
 0x836   :  { %v1593_v43 = vperm.slane %v1589_v2, %v3507_v48 }
 0x83b   :  { %v1782_v12 = vpop.xlane.xlu2 %1781 }
 0x83c   :  { %v1786_v31 = vmul.f32 0.35355338, %v1782_v12 }
 0x83e   :  { %v1790_v5 = vperm.slane %v1786_v31, %v3507_v48 }
 0x849   :  { %v1584_v45 = vpop.xlane.xlu0 %1583  ;;  %v1683_v60 = vpop.xlane.xlu1 %1682 }
 0x84a   :  { %v1588_v36 = vmul.f32 0.35355338, %v1584_v45  ;;  %v1687_v0 = vmul.f32 0.35355338, %v1683_v60 }
 0x84c   :  { %v1592_v10 = vperm.slane %v1588_v36, %v3507_v48  ;;  %v1691_v25 = vperm.slane %v1687_v0, %v3507_v48 }
 0x84e   :  { %v1594_v41 = vsel %vm490_vm8, %v1593_v43, %v1592_v10 }
 0x84f   :  { %v1596_v47 = vsel %vm493_vm9, %v1594_v41, -inf }
 0x850   :  { %1597 = vmax.xlane.f32.xlu2 %v1596_v47 }
 0x851   :  { %v1686_v20 = vpop.xlane.xlu0 %1685  ;;  %v1785_v22 = vpop.xlane.xlu1 %1784 }
 0x852   :  { %v1688_v21 = vmul.f32 0.35355338, %v1686_v20  ;;  %v1787_v62 = vmul.f32 0.35355338, %v1785_v22 }
 0x854   :  { %v1692_v52 = vperm.slane %v1688_v21, %v3507_v48  ;;  %v1791_v23 = vperm.slane %v1787_v62, %v3507_v48 }
 0x856   :  { %v1693_v24 = vsel %vm490_vm8, %v1692_v52, %v1691_v25  ;;  %v1792_v56 = vsel %vm490_vm8, %v1791_v23, %v1790_v5 }
 0x857   :  { %v1695_v30 = vsel %vm493_vm9, %v1693_v24, -inf  ;;  %v1794_v63 = vsel %vm493_vm9, %v1792_v56, -inf }
 0x858   :  { %1696 = vmax.xlane.f32.xlu1 %v1695_v30  ;;  %1795 = vmax.xlane.f32.xlu0 %v1794_v63 }
 0x882   :  { %v1497_v8 = vpop.xlane.xlu0 %1496 }
 0x883   :  { %v1499_v14 = vperm.slane %v1497_v8, 0  ;;  %v1500_v16 = vperm.slane %v1497_v8, 1 }
 0x885   :  { %v1503_v39 = vsub.f32 %v1487_v46, %v1499_v14  ;;  %v1504_v11 = vsub.f32 %v1488_v44, %v1500_v16 }
 0x887   :  { %v1505_v19 = vmul.f32 1.442695, %v1503_v39  ;;  %v1507_v49 = vmul.f32 1.442695, %v1504_v11 }
 0x889   :  { %2963 = vpow2.f32 %v1505_v19 }
 0x88a   :  { %2965 = vpow2.f32 %v1507_v49 }
 0x88f   :  { %v3848_v51 = vpop.eup %2963 }
 0x890   :  { %v3850_v18 = vpop.eup %2965  ;;  %1512 = vperm.xlu2 %2901, %v3848_v51  }
 0x891   :  { %1515 = vperm.xlu1 %2902, %v3850_v18  }
 0x8c3   :  { %v1598_v53 = vpop.xlane.xlu2 %1597 }
 0x8c4   :  { %v1600_v55 = vperm.slane %v1598_v53, 0  ;;  %v1601_v57 = vperm.slane %v1598_v53, 1 }
 0x8c6   :  { %v1604_v40 = vsub.f32 %v1588_v36, %v1600_v55  ;;  %v1605_v37 = vsub.f32 %v1589_v2, %v1601_v57 }
 0x8c8   :  { %v1606_v61 = vmul.f32 1.442695, %v1604_v40  ;;  %v1608_v1 = vmul.f32 1.442695, %v1605_v37 }
 0x8ca   :  { %2967 = vpow2.f32 %v1606_v61 }
 0x8cb   :  { %2969 = vpow2.f32 %v1608_v1  ;;  %v1697_v15 = vpop.xlane.xlu1 %1696  ;;  %v1796_v9 = vpop.xlane.xlu0 %1795 }
 0x8cc   :  { %v1699_v42 = vperm.slane %v1697_v15, 0  ;;  %v1700_v26 = vperm.slane %v1697_v15, 1  ;;  %v1798_v27 = vperm.slane %v1796_v9, 0  ;;  %v1799_v50 = vperm.slane %v1796_v9, 1 }
 0x8ce   :  { %v1703_v29 = vsub.f32 %v1687_v0, %v1699_v42  ;;  %v1704_v4 = vsub.f32 %v1688_v21, %v1700_v26  ;;  %v1802_v17 = vsub.f32 %v1786_v31, %v1798_v27  ;;  %v1803_v34 = vsub.f32 %v1787_v62, %v1799_v50 }
 0x8d0   :  { %v3854_v28 = vpop.eup %2967  ;;  %v1705_v6 = vmul.f32 1.442695, %v1703_v29  ;;  %v1707_v13 = vmul.f32 1.442695, %v1704_v4  ;;  %v1804_v35 = vmul.f32 1.442695, %v1802_v17 }
 0x8d1   :  { %v3856_v46 = vpop.eup %2969  ;;  %1613 = vperm.xlu0 %2903, %v3854_v28   ;;  %v1806_v44 = vmul.f32 1.442695, %v1803_v34 }
 0x8d2   :  { %2971 = vpow2.f32 %v1705_v6  ;;  %1616 = vperm.xlu2 %2901, %v3856_v46  }
 0x8d3   :  { %2973 = vpow2.f32 %v1707_v13  ;;  %v1873_v13 = vld [vmem:[%s4136_s24] sm:$0xff] }
 0x8d4   :  { %2975 = vpow2.f32 %v1804_v35  ;;  %1893 = vmatpush.msrb.mxu2 %v1873_v13  ;;  %2006 = vmatpush.msrb.mxu3 %v1873_v13  ;;  %v3129_v35 = vmov 0.0  }
 0x8d5   :  { %2977 = vpow2.f32 %v1806_v44  ;;  %1894 = vmatmul.f32.vlgmr.msrb.gmra.mxu2 %v3129_v35  ;;  %2122 = vmatpush.msra.mxu0 %v1873_v13 }
 0x8d6   :  { %2240 = vmatpush.msra.mxu2 %v1873_v13  ;;  %2358 = vmatpush.msra.mxu3 %v1873_v13 }
 0x8d7   :  { %2476 = vmatpush.msrb.mxu0 %v1873_v13  ;;  %2594 = vmatpush.msrb.mxu1 %v1873_v13 }
 0x8d8   :  { %v3860_v33 = vpop.eup %2971  ;;  %2712 = vmatpush.msrb.mxu2 %v1873_v13 }
 0x8d9   :  { %v3862_v58 = vpop.eup %2973  ;;  %1712 = vperm.xlu0 %2903, %v3860_v33  }
 0x8da   :  { %v3865_v7 = vpop.eup %2975  ;;  %1715 = vperm.xlu1 %2902, %v3862_v58  }
 0x8db   :  { %1811 = vperm.xlu2 %2901, %v3865_v7   ;;  %v3869_v54 = vpop.eup %2977 }
 0x8e1   :  { %1814 = vperm.xlu0 %2903, %v3869_v54  }
 0x8ea   :  { %v1513_v32 = vpop.permute.xlu2 %1512 }
 0x8eb   :  { %v1517_v45 = vperm.slane %v1513_v32, %v3507_v48 }
 0x903   :  { %v1516_v2 = vpop.permute.xlu1 %1515 }
 0x904   :  { %v1518_v60 = vperm.slane %v1516_v2, %v3507_v48 }
 0x906   :  { %v1519_v36 = vsel %vm490_vm8, %v1518_v60, %v1517_v45 }
 0x907   :  { %v1521_v43 = vsel %vm493_vm9, %v1519_v36, 0.0 }
 0x908   :  { %1522 = vadd.xlane.f32.xlu1 %v1521_v43 }
 0x92c   :  { %v1617_v10 = vpop.permute.xlu2 %1616 }
 0x92d   :  { %v1619_v41 = vperm.slane %v1617_v10, %v3507_v48 }
 0x935   :  { %v1812_v52 = vpop.permute.xlu2 %1811 }
 0x936   :  { %v1816_v24 = vperm.slane %v1812_v52, %v3507_v48 }
 0x943   :  { %v1614_v12 = vpop.permute.xlu0 %1613 }
 0x944   :  { %v1618_v47 = vperm.slane %v1614_v12, %v3507_v48 }
 0x946   :  { %v1620_v31 = vsel %vm490_vm8, %v1619_v41, %v1618_v47 }
 0x947   :  { %v1622_v0 = vsel %vm493_vm9, %v1620_v31, 0.0 }
 0x948   :  { %1623 = vadd.xlane.f32.xlu2 %v1622_v0 }
 0x94b   :  { %v1713_v20 = vpop.permute.xlu0 %1712 }
 0x94c   :  { %v1716_v22 = vpop.permute.xlu1 %1715  ;;  %v1717_v21 = vperm.slane %v1713_v20, %v3507_v48 }
 0x94d   :  { %v1718_v62 = vperm.slane %v1716_v22, %v3507_v48 }
 0x94f   :  { %v1719_v5 = vsel %vm490_vm8, %v1718_v62, %v1717_v21 }
 0x950   :  { %v1721_v25 = vsel %vm493_vm9, %v1719_v5, 0.0 }
 0x951   :  { %1722 = vadd.xlane.f32.xlu0 %v1721_v25 }
 0x953   :  { %v1815_v23 = vpop.permute.xlu0 %1814 }
 0x954   :  { %v1817_v56 = vperm.slane %v1815_v23, %v3507_v48 }
 0x956   :  { %v1818_v30 = vsel %vm490_vm8, %v1817_v56, %v1816_v24 }
 0x957   :  { %v1820_v63 = vsel %vm493_vm9, %v1818_v30, 0.0 }
 0x958   :  { %1821 = vadd.xlane.f32.xlu1 %v1820_v63 }
 0x97b   :  { %v1523_v8 = vpop.xlane.xlu1 %1522 }
 0x97c   :  { %v1525_v14 = vperm.slane %v1523_v8, 0  ;;  %v1526_v16 = vperm.slane %v1523_v8, 1 }
 0x97e   :  { %2979 = vrcp.f32 %v1525_v14  ;;  %v1540_v57 = vand.u32 2147483648, %v1525_v14  ;;  %v1555_v40 = vand.u32 2147483648, %v1526_v16  ;;  %v1538_v48 = vand.u32 2147483647, %v1525_v14 }
 0x97f   :  { %2981 = vrcp.f32 %v1526_v16  ;;  %v1553_v1 = vand.u32 2147483647, %v1526_v16  ;;  %vm1534_vm9 = vweird.f32 %v1525_v14  ;;  %vm1549_vm6 = vweird.f32 %v1526_v16 }
 0x980   :  { %v1541_v42 = vor.u32 1.1754944e-38, %v1540_v57  ;;  %v1556_v26 = vor.u32 1.1754944e-38, %v1555_v40  ;;  %vm1539_vm12 = vcmp.eq.f32.partialorder %v1538_v48, 8.507059e+37 }
 0x981   :  { %vm1554_vm13 = vcmp.eq.f32.partialorder %v1553_v1, 8.507059e+37 }
 0x984   :  { %v2980_v39 = vpop.eup %2979 }
 0x985   :  { %v2982_v11 = vpop.eup %2981  ;;  %v1530_v19 = vmul.f32 %v2980_v39, %v1525_v14  ;;  %vm1535_vm3 = vweird.f32 %v2980_v39 }
 0x986   :  { %v1545_v49 = vmul.f32 %v2982_v11, %v1526_v16  ;;  %vm1550_vm5 = vweird.f32 %v2982_v11  ;;  %vm1536_vm10 = vmor %vm1534_vm9, %vm1535_vm3 }
 0x987   :  { %v1531_v53 = vsub.f32 1.0, %v1530_v19  ;;  %vm1551_vm11 = vmor %vm1549_vm6, %vm1550_vm5 }
 0x988   :  { %v1546_v55 = vsub.f32 1.0, %v1545_v49 }
 0x989   :  { %v1532_v37 = vmul.f32 %v2980_v39, %v1531_v53 }
 0x98a   :  { %v1547_v61 = vmul.f32 %v2982_v11, %v1546_v55 }
 0x98b   :  { %v1533_v15 = vadd.f32 %v2980_v39, %v1532_v37 }
 0x98c   :  { %v1548_v9 = vadd.f32 %v2982_v11, %v1547_v61 }
 0x98d   :  { %v1537_v27 = vsel %vm1536_vm10, %v2980_v39, %v1533_v15 }
 0x98e   :  { %v1552_v29 = vsel %vm1551_vm11, %v2982_v11, %v1548_v9  ;;  %v1542_v4 = vsel %vm1539_vm12, %v1541_v42, %v1537_v27 }
 0x98f   :  { %v1557_v50 = vsel %vm1554_vm13, %v1556_v26, %v1552_v29  ;;  %v1543_v17 = vmul.f32 %v3848_v51, %v1542_v4 }
 0x990   :  { %v1558_v6 = vmul.f32 %v3850_v18, %v1557_v50 }
 0x991   :  { %1561 = vperm.xlu1 %2902, %v1543_v17  }
 0x992   :  { %1566 = vperm.xlu2 %2901, %v1558_v6  }
 0x9bb   :  { %v1624_v34 = vpop.xlane.xlu2 %1623 }
 0x9bc   :  { %v1626_v51 = vperm.slane %v1624_v34, 0  ;;  %v1627_v44 = vperm.slane %v1624_v34, 1 }
 0x9be   :  { %2983 = vrcp.f32 %v1626_v51  ;;  %v1656_v41 = vand.u32 2147483648, %v1627_v44  ;;  %v1654_v0 = vand.u32 2147483647, %v1627_v44  ;;  %vm1650_vm15 = vweird.f32 %v1627_v44 }
 0x9bf   :  { %2985 = vrcp.f32 %v1627_v44  ;;  %vm1635_vm4 = vweird.f32 %v1626_v51  ;;  %v1639_v23 = vand.u32 2147483647, %v1626_v51  ;;  %v1641_v24 = vand.u32 2147483648, %v1626_v51 }
 0x9c0   :  { %v1657_v52 = vor.u32 1.1754944e-38, %v1656_v41  ;;  %vm1655_vm3 = vcmp.eq.f32.partialorder %v1654_v0, 8.507059e+37 }
 0x9c1   :  { %v1642_v40 = vor.u32 1.1754944e-38, %v1641_v24  ;;  %vm1640_vm6 = vcmp.eq.f32.partialorder %v1639_v23, 8.507059e+37 }
 0x9c4   :  { %v2984_v18 = vpop.eup %2983  ;;  %v1723_v32 = vpop.xlane.xlu0 %1722 }
 0x9c5   :  { %v2986_v2 = vpop.eup %2985  ;;  %v1631_v45 = vmul.f32 %v2984_v18, %v1626_v51  ;;  %v3893_v60 = vperm.slane %v1723_v32, 0  ;;  %v1726_v36 = vperm.slane %v1723_v32, 1  ;;  %vm1636_vm1 = vweird.f32 %v2984_v18 }
 0x9c6   :  { %v1646_v43 = vmul.f32 %v2986_v2, %v1627_v44  ;;  %vm1651_vm14 = vweird.f32 %v2986_v2  ;;  %vm3904_vm5 = vmor %vm1635_vm4, %vm1636_vm1 }
 0x9c7   :  { %v1632_v10 = vsub.f32 1.0, %v1631_v45  ;;  %2987 = vrcp.f32 %v3893_v60  ;;  %vm1652_vm2 = vmor %vm1650_vm15, %vm1651_vm14  ;;  %v1753_v19 = vand.u32 2147483647, %v1726_v36  ;;  %v1755_v55 = vand.u32 2147483648, %v1726_v36 }
 0x9c8   :  { %v1647_v12 = vsub.f32 1.0, %v1646_v43  ;;  %2989 = vrcp.f32 %v1726_v36  ;;  %v1740_v57 = vand.u32 2147483648, %v3893_v60  ;;  %v1738_v48 = vand.u32 2147483647, %v3893_v60 }
 0x9c9   :  { %v1633_v47 = vmul.f32 %v2984_v18, %v1632_v10  ;;  %vm1749_vm11 = vweird.f32 %v1726_v36  ;;  %vm3913_vm12 = vcmp.eq.f32.partialorder %v1753_v19, 8.507059e+37  ;;  %vm1734_vm13 = vweird.f32 %v3893_v60 }
 0x9ca   :  { %v1648_v31 = vmul.f32 %v2986_v2, %v1647_v12  ;;  %v1756_v29 = vor.u32 1.1754944e-38, %v1755_v55  ;;  %v1741_v4 = vor.u32 1.1754944e-38, %v1740_v57  ;;  %vm1739_vm1 = vcmp.eq.f32.partialorder %v1738_v48, 8.507059e+37  ;;  %v1895_v57 = vpop.f32.mrf.mxu2  ;;  %v3944_v48 = vld [vmem:[%s4137_s25] ss:$0 sm:$0xff] }
 0x9cb   :  { %v1822_v20 = vpop.xlane.xlu1 %1821  ;;  %v1634_v5 = vadd.f32 %v2984_v18, %v1633_v47  ;;  %v2799_v47 = vadd.s32 8, %v3362_v38  ;;  %v1472_v38 = vld [vmem:[%s4138_s23] sm:$0xf] }
 0x9cc   :  { %v3896_v22 = vperm.slane %v1822_v20, 0  ;;  %v3898_v21 = vperm.slane %v1822_v20, 1  ;;  %v1649_v62 = vadd.f32 %v2986_v2, %v1648_v31  ;;  %v1670_v23 = vperm.slane %v1472_v38, 1 }
 0x9cd   :  { %v2988_v25 = vpop.eup %2987  ;;  %v1638_v49 = vsel %vm3904_vm5, %v2984_v18, %v1634_v5  ;;  %v1569_v24 = vperm.slane %v1472_v38, 0 }
 0x9ce   :  { %v2990_v56 = vpop.eup %2989  ;;  %v1730_v30 = vmul.f32 %v2988_v25, %v3893_v60  ;;  %2991 = vrcp.f32 %v3896_v22  ;;  %v1653_v63 = vsel %vm1652_vm2, %v2986_v2, %v1649_v62  ;;  %vm1735_vm9 = vweird.f32 %v2988_v25 }
 0x9cf   :  { %v1745_v8 = vmul.f32 %v2990_v56, %v1726_v36  ;;  %2993 = vrcp.f32 %v3898_v21  ;;  %v1658_v14 = vsel %vm1655_vm3, %v1657_v52, %v1653_v63  ;;  %vm1750_vm10 = vweird.f32 %v2990_v56  ;;  %vm1736_vm14 = vmor %vm1734_vm13, %vm1735_vm9 }
 0x9d0   :  { %v1731_v39 = vsub.f32 1.0, %v1730_v30  ;;  %v1659_v11 = vmul.f32 %v3856_v46, %v1658_v14  ;;  %v1643_v1 = vsel %vm1640_vm6, %v1642_v40, %v1638_v49  ;;  %vm1751_vm15 = vmor %vm1749_vm11, %vm1750_vm10  ;;  %v1837_v51 = vand.u32 2147483647, %v3896_v22 }
 0x9d1   :  { %v1746_v53 = vsub.f32 1.0, %v1745_v8  ;;  %v1644_v6 = vmul.f32 %v3854_v28, %v1643_v1  ;;  %v1839_v2 = vand.u32 2147483648, %v3896_v22  ;;  %v1854_v36 = vand.u32 2147483648, %v3898_v21 }
 0x9d2   :  { %1667 = vperm.xlu0 %2903, %v1659_v11   ;;  %v1732_v37 = vmul.f32 %v2988_v25, %v1731_v39  ;;  %v1852_v43 = vand.u32 2147483647, %v3898_v21  ;;  %vm1833_vm3 = vweird.f32 %v3896_v22  ;;  %vm1848_vm9 = vweird.f32 %v3898_v21 }
 0x9d3   :  { %v1747_v61 = vmul.f32 %v2990_v56, %v1746_v53  ;;  %vm1838_vm6 = vcmp.eq.f32.partialorder %v1837_v51, 8.507059e+37  ;;  %v1899_v1 = vrot.slane %v1895_v57, 1 }
 0x9d4   :  { %v2992_v15 = vpop.eup %2991  ;;  %v1733_v9 = vadd.f32 %v2988_v25, %v1732_v37  ;;  %vm1853_vm11 = vcmp.eq.f32.partialorder %v1852_v43, 8.507059e+37 }
 0x9d5   :  { %v2994_v42 = vpop.eup %2993  ;;  %v1829_v26 = vmul.f32 %v2992_v15, %v3896_v22  ;;  %v1748_v27 = vadd.f32 %v2990_v56, %v1747_v61  ;;  %vm1834_vm2 = vweird.f32 %v2992_v15 }
 0x9d6   :  { %v1844_v50 = vmul.f32 %v2994_v42, %v3898_v21  ;;  %v1737_v17 = vsel %vm1736_vm14, %v2988_v25, %v1733_v9  ;;  %vm1849_vm4 = vweird.f32 %v2994_v42  ;;  %vm1835_vm5 = vmor %vm1833_vm3, %vm1834_vm2 }
 0x9d7   :  { %v1830_v13 = vsub.f32 1.0, %v1829_v26  ;;  %v1752_v35 = vsel %vm1751_vm15, %v2990_v56, %v1748_v27  ;;  %v1742_v34 = vsel %vm1739_vm1, %v1741_v4, %v1737_v17  ;;  %vm1850_vm10 = vmor %vm1848_vm9, %vm1849_vm4  ;;  %v1769_v56 = vperm.slane %v1472_v38, 2 }
 0x9d8   :  { %v1845_v44 = vsub.f32 1.0, %v1844_v50  ;;  %v1757_v18 = vsel %vm3913_vm12, %v1756_v29, %v1752_v35  ;;  %v1743_v32 = vmul.f32 %v3860_v33, %v1742_v34  ;;  %v1840_v33 = vor.u32 1.1754944e-38, %v1839_v2 }
 0x9d9   :  { %v1831_v45 = vmul.f32 %v2992_v15, %v1830_v13  ;;  %v1758_v60 = vmul.f32 %v3862_v58, %v1757_v18  ;;  %v1855_v58 = vor.u32 1.1754944e-38, %v1854_v36 }
 0x9da   :  { %1761 = vperm.xlu1 %2902, %v1743_v32   ;;  %1662 = vperm.xlu0 %2903, %v1644_v6   ;;  %v1846_v28 = vmul.f32 %v2994_v42, %v1845_v44 }
 0x9db   :  { %1766 = vperm.xlu2 %2901, %v1758_v60   ;;  %v1832_v10 = vadd.f32 %v2992_v15, %v1831_v45 }
 0x9dc   :  { %v1847_v12 = vadd.f32 %v2994_v42, %v1846_v28 }
 0x9dd   :  { %v1836_v41 = vsel %vm1835_vm5, %v2992_v15, %v1832_v10 }
 0x9de   :  { %v1841_v31 = vsel %vm1838_vm6, %v1840_v33, %v1836_v41  ;;  %v1851_v0 = vsel %vm1850_vm10, %v2994_v42, %v1847_v12 }
 0x9df   :  { %v1842_v20 = vmul.f32 %v3865_v7, %v1841_v31  ;;  %v1856_v62 = vsel %vm1853_vm11, %v1855_v58, %v1851_v0 }
 0x9e0   :  { %v1857_v5 = vmul.f32 %v3869_v54, %v1856_v62  ;;  %v1868_v54 = vperm.slane %v1472_v38, 3 }
 0x9e2   :  { %1865 = vperm.xlu0 %2903, %v1857_v5   ;;  %2905 = vset.pattern.permute.xlu1 %v2799_v47 }
 0x9e3   :  { %1860 = vperm.xlu2 %2901, %v1842_v20  }
 0x9ea   :  { %2906 = vset.pattern.permute.xlu0 %v2799_v47 }
 0x9eb   :  { %2904 = vset.pattern.permute.xlu2 %v2799_v47 }
 0x9ec   :  { %v1567_v22 = vpop.permute.xlu2 %1566 }
 0x9ed   :  { %v1571_v39 = vmul.f32 %v1569_v24, %v1567_v22 }
 0xa03   :  { %v1562_v21 = vpop.permute.xlu1 %1561 }
 0xa04   :  { %v1570_v63 = vmul.f32 %v1569_v24, %v1562_v21 }
 0xa35   :  { %v1767_v25 = vpop.permute.xlu2 %1766 }
 0xa36   :  { %v1771_v40 = vmul.f32 %v1769_v56, %v1767_v25 }
 0xa3d   :  { %v1861_v16 = vpop.permute.xlu2 %1860 }
 0xa3e   :  { %v1869_v49 = vmul.f32 %v1868_v54, %v1861_v16 }
 0xa44   :  { %v1668_v52 = vpop.permute.xlu0 %1667 }
 0xa45   :  { %v1672_v8 = vmul.f32 %v1670_v23, %v1668_v52 }
 0xa47   :  { %v1674_v53 = vadd.f32 %v1672_v8, %v1571_v39 }
 0xa49   :  { %v1773_v46 = vadd.f32 %v1771_v40, %v1674_v53 }
 0xa4c   :  { %v1762_v7 = vpop.permute.xlu1 %1761  ;;  %v1663_v30 = vpop.permute.xlu0 %1662 }
 0xa4d   :  { %v1671_v14 = vmul.f32 %v1670_v23, %v1663_v30  ;;  %v1770_v11 = vmul.f32 %v1769_v56, %v1762_v7 }
 0xa4f   :  { %v1673_v19 = vadd.f32 %v1671_v14, %v1570_v63 }
 0xa51   :  { %v1772_v55 = vadd.f32 %v1770_v11, %v1673_v19 }
 0xa53   :  { %v3939_v37 = vadd.f32 %v1869_v49, %v1772_v55 }
 0xa54   :  { %v1866_v61 = vpop.permute.xlu0 %1865 }
 0xa55   :  { %v1902_v15 = vadd.f32 %v1895_v57, %v3939_v37  ;;  %v1870_v9 = vmul.f32 %v1868_v54, %v1866_v61 }
 0xa57   :  { %v1907_v42 = vadd.f32 %v3944_v48, %v1902_v15  ;;  %v3948_v26 = vadd.f32 %v1870_v9, %v1773_v46 }
 0xa59   :  { %2995 = vtanh.f32 %v1907_v42  ;;  %v1903_v27 = vadd.f32 %v1899_v1, %v3948_v26  ;;  %v2863_v17 = vmul.f32 -1.442695, %v1907_v42 }
 0xa5b   :  { %v1908_v29 = vadd.f32 %v3944_v48, %v1903_v27 }
 0xa5d   :  { %2997 = vtanh.f32 %v1908_v29  ;;  %v2864_v6 = vmul.f32 -1.442695, %v1908_v29 }
 0xa5e   :  { %2999 = vpow2.f32 %v2863_v17 }
 0xa5f   :  { %v2996_v4 = vpop.eup %2995  ;;  %3001 = vpow2.f32 %v2864_v6 }
 0xa60   :  { %1953 = vrot.lane.b32.xlu0 %v2996_v4, %s3123_s6 }
 0xa63   :  { %v2998_v50 = vpop.eup %2997 }
 0xa64   :  { %1955 = vrot.lane.b32.xlu1 %v2998_v50, %s3123_s6  ;;  %v3000_v13 = vpop.eup %2999 }
 0xa65   :  { %v1915_v35 = vadd.f32 1.0, %v3000_v13  ;;  %v3002_v34 = vpop.eup %3001 }
 0xa66   :  { %v1916_v51 = vadd.f32 1.0, %v3002_v34 }
 0xa67   :  { %3003 = vrcp.f32 %v1915_v35  ;;  %v1928_v10 = vand.u32 2147483648, %v1915_v35  ;;  %vm1922_vm13 = vweird.f32 %v1915_v35  ;;  %v1926_v33 = vand.u32 2147483647, %v1915_v35 }
 0xa68   :  { %3005 = vrcp.f32 %v1916_v51  ;;  %v1943_v47 = vand.u32 2147483648, %v1916_v51  ;;  %vm1937_vm2 = vweird.f32 %v1916_v51  ;;  %v1941_v31 = vand.u32 2147483647, %v1916_v51 }
 0xa69   :  { %v1929_v58 = vor.u32 1.1754944e-38, %v1928_v10  ;;  %vm1927_vm1 = vcmp.eq.f32.partialorder %v1926_v33, 8.507059e+37 }
 0xa6a   :  { %v1944_v22 = vor.u32 1.1754944e-38, %v1943_v47  ;;  %vm1942_vm3 = vcmp.eq.f32.partialorder %v1941_v31, 8.507059e+37 }
 0xa6d   :  { %v3004_v44 = vpop.eup %3003 }
 0xa6e   :  { %v1918_v18 = vmul.f32 %v3004_v44, %v1915_v35  ;;  %v3006_v32 = vpop.eup %3005  ;;  %vm1923_vm12 = vweird.f32 %v3004_v44 }
 0xa6f   :  { %v1933_v45 = vmul.f32 %v3006_v32, %v1916_v51  ;;  %vm1924_vm14 = vmor %vm1922_vm13, %vm1923_vm12  ;;  %vm1938_vm15 = vweird.f32 %v3006_v32 }
 0xa70   :  { %v1919_v2 = vsub.f32 1.0, %v1918_v18  ;;  %vm1939_vm4 = vmor %vm1937_vm2, %vm1938_vm15 }
 0xa71   :  { %v1934_v36 = vsub.f32 1.0, %v1933_v45 }
 0xa72   :  { %v1920_v60 = vmul.f32 %v3004_v44, %v1919_v2 }
 0xa73   :  { %v1935_v43 = vmul.f32 %v3006_v32, %v1934_v36 }
 0xa74   :  { %v1921_v28 = vadd.f32 %v3004_v44, %v1920_v60 }
 0xa75   :  { %v1936_v41 = vadd.f32 %v3006_v32, %v1935_v43 }
 0xa76   :  { %v1925_v12 = vsel %vm1924_vm14, %v3004_v44, %v1921_v28 }
 0xa77   :  { %v1930_v20 = vsel %vm1927_vm1, %v1929_v58, %v1925_v12  ;;  %v1940_v5 = vsel %vm1939_vm4, %v3006_v32, %v1936_v41 }
 0xa78   :  { %v1945_v25 = vsel %vm1942_vm3, %v1944_v22, %v1940_v5  ;;  %v1949_v7 = vmul.f32 0.0, %v1930_v20 }
 0xa79   :  { %v1950_v38 = vmul.f32 0.0, %v1945_v25 }
 0xad2   :  { %v1954_v0 = vpop.permute.xlu0 %1953 }
 0xad3   :  { %v1959_v62 = vmul.f32 %v1954_v0, %v1930_v20 }
 0xad5   :  { %1963 = vrot.lane.b32.xlu1 %v1959_v62, %s3130_s22 }
 0xad6   :  { %v1956_v21 = vpop.permute.xlu1 %1955 }
 0xad7   :  { %v1960_v52 = vmul.f32 %v1956_v21, %v1945_v25 }
 0xad9   :  { %1965 = vrot.lane.b32.xlu2 %v1960_v52, %s3130_s22 }
 0xb33   :  { %v1966_v23 = vpop.permute.xlu2 %1965 }
 0xb34   :  { %v3956_v24 = vadd.f32 %v1966_v23, %v1950_v38 }
 0xb36   :  { %3007 = vtanh.f32 %v3956_v24  ;;  %v2062_v62 = vrot.slane %v3956_v24, 7 }
 0xb3c   :  { %v3008_v56 = vpop.eup %3007 }
 0xb3d   :  { %1977 = vrot.lane.b32.xlu0 %v3008_v56, %s3131_s4 }
 0xb47   :  { %v1964_v30 = vpop.permute.xlu1 %1963 }
 0xb48   :  { %v3960_v63 = vadd.f32 %v1964_v30, %v1949_v7 }
 0xb4a   :  { %3009 = vtanh.f32 %v3960_v63  ;;  %v2061_v52 = vrot.slane %v3960_v63, 7 }
 0xb50   :  { %v3010_v54 = vpop.eup %3009 }
 0xb51   :  { %1975 = vrot.lane.b32.xlu2 %v3010_v54, %s3131_s4 }
 0xbab   :  { %v1976_v8 = vpop.permute.xlu2 %1975 }
 0xbac   :  { %v1981_v39 = vmul.f32 %v1976_v8, %v1930_v20 }
 0xbaf   :  { %v1978_v14 = vpop.permute.xlu0 %1977 }
 0xbb0   :  { %v1982_v16 = vmul.f32 %v1978_v14, %v1945_v25 }
 0xbb2   :  { %v1985_v11 = vrot.slane %v1982_v16, 7 }
 0xbb4   :  { %v1986_v19 = vsel %vm490_vm8, %v1985_v11, %v1981_v39 }
 0xbb5   :  { %1987 = vrot.lane.b32.xlu1 %v1986_v19, %s3122_s30 }
 0xc27   :  { %v1988_v49 = vpop.permute.xlu1 %1987 }
 0xc28   :  { %2865 = vmatmul.msk.f32.vlgmr.msrb.gmra.mxu3 %vm415_vm7, %v1988_v49 }
 0xcab   :  { %v2008_v53 = vpop.f32.mrf.mxu3 }
 0xcac   :  { %v2012_v55 = vrot.slane %v2008_v53, 7  ;;  %v2016_v57 = vadd.f32 %v2008_v53, %v3948_v26 }
 0xcae   :  { %v2015_v40 = vadd.f32 %v2012_v55, %v3939_v37  ;;  %v2018_v61 = vadd.f32 %v3944_v48, %v2016_v57 }
 0xcb0   :  { %v2017_v1 = vadd.f32 %v3944_v48, %v2015_v40  ;;  %3011 = vtanh.f32 %v2018_v61  ;;  %v2867_v9 = vmul.f32 -1.442695, %v2018_v61 }
 0xcb2   :  { %3013 = vtanh.f32 %v2017_v1  ;;  %v2866_v50 = vmul.f32 -1.442695, %v2017_v1 }
 0xcb3   :  { %3015 = vpow2.f32 %v2867_v9 }
 0xcb6   :  { %v3012_v15 = vpop.eup %3011 }
 0xcb7   :  { %2071 = vrot.lane.b32.xlu2 %v3012_v15, %s3123_s6 }
 0xcb8   :  { %v3014_v46 = vpop.eup %3013 }
 0xcb9   :  { %2069 = vrot.lane.b32.xlu0 %v3014_v46, %s3123_s6  ;;  %v3016_v42 = vpop.eup %3015 }
 0xcba   :  { %v2026_v27 = vadd.f32 1.0, %v3016_v42 }
 0xcbc   :  { %3017 = vrcp.f32 %v2026_v27  ;;  %v2053_v34 = vand.u32 2147483648, %v2026_v27  ;;  %vm2047_vm9 = vweird.f32 %v2026_v27  ;;  %v2051_v44 = vand.u32 2147483647, %v2026_v27 }
 0xcbd   :  { %3019 = vpow2.f32 %v2866_v50 }
 0xcbe   :  { %v2054_v32 = vor.u32 1.1754944e-38, %v2053_v34  ;;  %vm2052_vm10 = vcmp.eq.f32.partialorder %v2051_v44, 8.507059e+37 }
 0xcc2   :  { %v3018_v29 = vpop.eup %3017 }
 0xcc3   :  { %v2043_v4 = vmul.f32 %v3018_v29, %v2026_v27  ;;  %v3020_v13 = vpop.eup %3019  ;;  %vm2048_vm5 = vweird.f32 %v3018_v29 }
 0xcc4   :  { %v2025_v51 = vadd.f32 1.0, %v3020_v13  ;;  %vm2049_vm6 = vmor %vm2047_vm9, %vm2048_vm5 }
 0xcc5   :  { %v2044_v17 = vsub.f32 1.0, %v2043_v4 }
 0xcc6   :  { %3021 = vrcp.f32 %v2025_v51  ;;  %v2038_v12 = vand.u32 2147483648, %v2025_v51  ;;  %vm2032_vm12 = vweird.f32 %v2025_v51  ;;  %v2036_v41 = vand.u32 2147483647, %v2025_v51 }
 0xcc7   :  { %v2045_v6 = vmul.f32 %v3018_v29, %v2044_v17 }
 0xcc8   :  { %v2039_v47 = vor.u32 1.1754944e-38, %v2038_v12  ;;  %vm2037_vm14 = vcmp.eq.f32.partialorder %v2036_v41, 8.507059e+37 }
 0xcc9   :  { %v2046_v35 = vadd.f32 %v3018_v29, %v2045_v6 }
 0xccb   :  { %v2050_v18 = vsel %vm2049_vm6, %v3018_v29, %v2046_v35 }
 0xccc   :  { %v2055_v45 = vsel %vm2052_vm10, %v2054_v32, %v2050_v18  ;;  %v3022_v36 = vpop.eup %3021 }
 0xccd   :  { %v2028_v28 = vmul.f32 %v3022_v36, %v2025_v51  ;;  %vm2033_vm11 = vweird.f32 %v3022_v36  ;;  %v2066_v5 = vmul.f32 %v2062_v62, %v2055_v45 }
 0xcce   :  { %vm2034_vm13 = vmor %vm2032_vm12, %vm2033_vm11 }
 0xccf   :  { %v2029_v43 = vsub.f32 1.0, %v2028_v28 }
 0xcd1   :  { %v2030_v10 = vmul.f32 %v3022_v36, %v2029_v43 }
 0xcd3   :  { %v2031_v33 = vadd.f32 %v3022_v36, %v2030_v10 }
 0xcd5   :  { %v2035_v58 = vsel %vm2034_vm13, %v3022_v36, %v2031_v33 }
 0xcd6   :  { %v2040_v0 = vsel %vm2037_vm14, %v2039_v47, %v2035_v58 }
 0xcd7   :  { %v2065_v38 = vmul.f32 %v2061_v52, %v2040_v0 }
 0xd11   :  { %v2072_v2 = vpop.permute.xlu2 %2071 }
 0xd12   :  { %v2076_v60 = vmul.f32 %v2072_v2, %v2055_v45 }
 0xd14   :  { %2081 = vrot.lane.b32.xlu0 %v2076_v60, %s3130_s22 }
 0xd2b   :  { %v2070_v31 = vpop.permute.xlu0 %2069 }
 0xd2c   :  { %v2075_v20 = vmul.f32 %v2070_v31, %v2040_v0 }
 0xd2e   :  { %2079 = vrot.lane.b32.xlu1 %v2075_v20, %s3130_s22 }
 0xd86   :  { %v2082_v22 = vpop.permute.xlu0 %2081 }
 0xd87   :  { %v3976_v21 = vadd.f32 %v2082_v22, %v2066_v5 }
 0xd89   :  { %3023 = vtanh.f32 %v3976_v21 }
 0xd8f   :  { %v3024_v25 = vpop.eup %3023 }
 0xd90   :  { %2093 = vrot.lane.b32.xlu1 %v3024_v25, %s3131_s4 }
 0xda0   :  { %v2080_v23 = vpop.permute.xlu1 %2079 }
 0xda1   :  { %v3981_v56 = vadd.f32 %v2080_v23, %v2065_v38 }
 0xda3   :  { %3025 = vtanh.f32 %v3981_v56  ;;  %v2178_v31 = vrot.slane %v3981_v56, 7 }
 0xda9   :  { %v3026_v7 = vpop.eup %3025 }
 0xdaa   :  { %2091 = vrot.lane.b32.xlu2 %v3026_v7, %s3131_s4 }
 0xe02   :  { %v2094_v24 = vpop.permute.xlu1 %2093 }
 0xe03   :  { %v2098_v8 = vmul.f32 %v2094_v24, %v2055_v45 }
 0xe04   :  { %v2092_v30 = vpop.permute.xlu2 %2091 }
 0xe05   :  { %v2097_v54 = vmul.f32 %v2092_v30, %v2040_v0  ;;  %v2179_v0 = vrot.slane %v3976_v21, 7 }
 0xe07   :  { %v2101_v14 = vrot.slane %v2097_v54, 1 }
 0xe09   :  { %v2102_v16 = vsel %vm490_vm8, %v2098_v8, %v2101_v14 }
 0xe0a   :  { %2103 = vrot.lane.b32.xlu0 %v2102_v16, %s3122_s30 }
 0xe7c   :  { %v2104_v39 = vpop.permute.xlu0 %2103 }
 0xe7d   :  { %2868 = vmatmul.msk.f32.vlgmr.msra.gmra.mxu0 %vm415_vm7, %v2104_v39 }
 0xefa   :  { %v2124_v63 = vpop.f32.mrf.mxu0 }
 0xefb   :  { %v2128_v11 = vrot.slane %v2124_v63, 6  ;;  %v2129_v19 = vrot.slane %v2124_v63, 7 }
 0xefd   :  { %v2132_v49 = vadd.f32 %v2128_v11, %v3939_v37  ;;  %v2133_v53 = vadd.f32 %v2129_v19, %v3948_v26 }
 0xeff   :  { %v2134_v55 = vadd.f32 %v3944_v48, %v2132_v49  ;;  %v2135_v57 = vadd.f32 %v3944_v48, %v2133_v53 }
 0xf01   :  { %3027 = vtanh.f32 %v2134_v55  ;;  %v2869_v1 = vmul.f32 -1.442695, %v2134_v55  ;;  %v2870_v42 = vmul.f32 -1.442695, %v2135_v57 }
 0xf02   :  { %3029 = vtanh.f32 %v2135_v57 }
 0xf03   :  { %3031 = vpow2.f32 %v2869_v1 }
 0xf07   :  { %v3028_v40 = vpop.eup %3027 }
 0xf08   :  { %v3030_v61 = vpop.eup %3029  ;;  %2186 = vrot.lane.b32.xlu2 %v3028_v40, %s3123_s6 }
 0xf09   :  { %2188 = vrot.lane.b32.xlu1 %v3030_v61, %s3123_s6  ;;  %v3032_v15 = vpop.eup %3031 }
 0xf0a   :  { %v2142_v46 = vadd.f32 1.0, %v3032_v15 }
 0xf0c   :  { %3033 = vrcp.f32 %v2142_v46  ;;  %v2155_v13 = vand.u32 2147483648, %v2142_v46  ;;  %vm2149_vm1 = vweird.f32 %v2142_v46  ;;  %v2153_v35 = vand.u32 2147483647, %v2142_v46 }
 0xf0d   :  { %3035 = vpow2.f32 %v2870_v42 }
 0xf0e   :  { %v2156_v51 = vor.u32 1.1754944e-38, %v2155_v13  ;;  %vm2154_vm4 = vcmp.eq.f32.partialorder %v2153_v35, 8.507059e+37 }
 0xf12   :  { %v3034_v9 = vpop.eup %3033 }
 0xf13   :  { %v2145_v27 = vmul.f32 %v3034_v9, %v2142_v46  ;;  %v3036_v50 = vpop.eup %3035  ;;  %vm2150_vm15 = vweird.f32 %v3034_v9 }
 0xf14   :  { %v2143_v17 = vadd.f32 1.0, %v3036_v50  ;;  %vm2151_vm2 = vmor %vm2149_vm1, %vm2150_vm15 }
 0xf15   :  { %v2146_v29 = vsub.f32 1.0, %v2145_v27 }
 0xf16   :  { %3037 = vrcp.f32 %v2143_v17  ;;  %v2170_v43 = vand.u32 2147483648, %v2143_v17  ;;  %vm2164_vm5 = vweird.f32 %v2143_v17  ;;  %v2168_v10 = vand.u32 2147483647, %v2143_v17 }
 0xf17   :  { %v2147_v4 = vmul.f32 %v3034_v9, %v2146_v29 }
 0xf18   :  { %v2171_v12 = vor.u32 1.1754944e-38, %v2170_v43  ;;  %vm2169_vm6 = vcmp.eq.f32.partialorder %v2168_v10, 8.507059e+37 }
 0xf19   :  { %v2148_v6 = vadd.f32 %v3034_v9, %v2147_v4 }
 0xf1b   :  { %v2152_v34 = vsel %vm2151_vm2, %v3034_v9, %v2148_v6 }
 0xf1c   :  { %v2157_v18 = vsel %vm2154_vm4, %v2156_v51, %v2152_v34  ;;  %v3038_v2 = vpop.eup %3037 }
 0xf1d   :  { %v2160_v45 = vmul.f32 %v3038_v2, %v2143_v17  ;;  %vm2165_vm3 = vweird.f32 %v3038_v2  ;;  %v2182_v20 = vmul.f32 %v2178_v31, %v2157_v18 }
 0xf1e   :  { %vm2166_vm9 = vmor %vm2164_vm5, %vm2165_vm3 }
 0xf1f   :  { %v2161_v60 = vsub.f32 1.0, %v2160_v45 }
 0xf21   :  { %v2162_v36 = vmul.f32 %v3038_v2, %v2161_v60 }
 0xf23   :  { %v2163_v28 = vadd.f32 %v3038_v2, %v2162_v36 }
 0xf25   :  { %v2167_v33 = vsel %vm2166_vm9, %v3038_v2, %v2163_v28 }
 0xf26   :  { %v2172_v58 = vsel %vm2169_vm6, %v2171_v12, %v2167_v33 }
 0xf27   :  { %v2183_v62 = vmul.f32 %v2179_v0, %v2172_v58 }
 0xf62   :  { %v2187_v44 = vpop.permute.xlu2 %2186 }
 0xf63   :  { %v2192_v32 = vmul.f32 %v2187_v44, %v2157_v18 }
 0xf65   :  { %2196 = vrot.lane.b32.xlu0 %v2192_v32, %s3130_s22 }
 0xf7b   :  { %v2189_v41 = vpop.permute.xlu1 %2188 }
 0xf7c   :  { %v2193_v47 = vmul.f32 %v2189_v41, %v2172_v58 }
 0xf7e   :  { %2198 = vrot.lane.b32.xlu2 %v2193_v47, %s3130_s22 }
 0xfd7   :  { %v2197_v5 = vpop.permute.xlu0 %2196 }
 0xfd8   :  { %v2199_v22 = vpop.permute.xlu2 %2198  ;;  %v3998_v25 = vadd.f32 %v2197_v5, %v2182_v20 }
 0xfd9   :  { %v4000_v52 = vadd.f32 %v2199_v22, %v2183_v62 }
 0xfda   :  { %3039 = vtanh.f32 %v3998_v25 }
 0xfdb   :  { %3041 = vtanh.f32 %v4000_v52  ;;  %v2297_v62 = vrot.slane %v4000_v52, 7 }
 0xfe0   :  { %v3040_v38 = vpop.eup %3039 }
 0xfe1   :  { %v3042_v23 = vpop.eup %3041  ;;  %2208 = vrot.lane.b32.xlu1 %v3040_v38, %s3131_s4 }
 0xfe2   :  { %2210 = vrot.lane.b32.xlu0 %v3042_v23, %s3131_s4 }
0x1053   :  { %v2209_v56 = vpop.permute.xlu1 %2208 }
0x1054   :  { %v2211_v21 = vpop.permute.xlu0 %2210  ;;  %v2214_v7 = vmul.f32 %v2209_v56, %v2157_v18 }
0x1055   :  { %v2215_v24 = vmul.f32 %v2211_v21, %v2172_v58  ;;  %v2296_v58 = vrot.slane %v3998_v25, 7 }
0x1056   :  { %v2218_v30 = vrot.slane %v2214_v7, 2 }
0x1057   :  { %v2219_v54 = vrot.slane %v2215_v24, 1 }
0x1059   :  { %v2220_v8 = vsel %vm490_vm8, %v2219_v54, %v2218_v30 }
0x105a   :  { %2221 = vrot.lane.b32.xlu2 %v2220_v8, %s3122_s30 }
0x10b4   :  { %v2222_v14 = vpop.permute.xlu2 %2221 }
0x10b5   :  { %2871 = vmatmul.msk.f32.vlgmr.msra.gmra.mxu2 %vm415_vm7, %v2222_v14 }
0x1138   :  { %v2242_v16 = vpop.f32.mrf.mxu2 }
0x1139   :  { %v2246_v39 = vrot.slane %v2242_v16, 5  ;;  %v2247_v63 = vrot.slane %v2242_v16, 6 }
0x113b   :  { %v2250_v11 = vadd.f32 %v2246_v39, %v3939_v37  ;;  %v2251_v19 = vadd.f32 %v2247_v63, %v3948_v26 }
0x113d   :  { %v2252_v49 = vadd.f32 %v3944_v48, %v2250_v11  ;;  %v2253_v53 = vadd.f32 %v3944_v48, %v2251_v19 }
0x113f   :  { %3043 = vtanh.f32 %v2252_v49  ;;  %v2872_v40 = vmul.f32 -1.442695, %v2252_v49  ;;  %v2873_v61 = vmul.f32 -1.442695, %v2253_v53 }
0x1140   :  { %3045 = vtanh.f32 %v2253_v53 }
0x1141   :  { %3047 = vpow2.f32 %v2872_v40 }
0x1142   :  { %3049 = vpow2.f32 %v2873_v61 }
0x1145   :  { %v3044_v55 = vpop.eup %3043 }
0x1146   :  { %v3046_v57 = vpop.eup %3045  ;;  %2304 = vrot.lane.b32.xlu1 %v3044_v55, %s3123_s6 }
0x1147   :  { %2306 = vrot.lane.b32.xlu0 %v3046_v57, %s3123_s6  ;;  %v3048_v1 = vpop.eup %3047 }
0x1148   :  { %v3050_v15 = vpop.eup %3049  ;;  %v2260_v46 = vadd.f32 1.0, %v3048_v1 }
0x1149   :  { %v2261_v9 = vadd.f32 1.0, %v3050_v15 }
0x114a   :  { %3051 = vrcp.f32 %v2260_v46  ;;  %v2273_v51 = vand.u32 2147483648, %v2260_v46  ;;  %vm2267_vm12 = vweird.f32 %v2260_v46  ;;  %v2271_v18 = vand.u32 2147483647, %v2260_v46 }
0x114b   :  { %3053 = vrcp.f32 %v2261_v9  ;;  %v2288_v44 = vand.u32 2147483648, %v2261_v9  ;;  %vm2282_vm13 = vweird.f32 %v2261_v9  ;;  %v2286_v32 = vand.u32 2147483647, %v2261_v9 }
0x114c   :  { %v2274_v60 = vor.u32 1.1754944e-38, %v2273_v51  ;;  %vm2272_vm1 = vcmp.eq.f32.partialorder %v2271_v18, 8.507059e+37 }
0x114d   :  { %v2289_v36 = vor.u32 1.1754944e-38, %v2288_v44  ;;  %vm2287_vm2 = vcmp.eq.f32.partialorder %v2286_v32, 8.507059e+37 }
0x1150   :  { %v3052_v42 = vpop.eup %3051 }
0x1151   :  { %v3054_v27 = vpop.eup %3053  ;;  %v2263_v29 = vmul.f32 %v3052_v42, %v2260_v46  ;;  %vm2268_vm10 = vweird.f32 %v3052_v42 }
0x1152   :  { %v2278_v4 = vmul.f32 %v3054_v27, %v2261_v9  ;;  %vm2283_vm11 = vweird.f32 %v3054_v27  ;;  %vm2269_vm14 = vmor %vm2267_vm12, %vm2268_vm10 }
0x1153   :  { %v2264_v50 = vsub.f32 1.0, %v2263_v29  ;;  %vm2284_vm15 = vmor %vm2282_vm13, %vm2283_vm11 }
0x1154   :  { %v2279_v17 = vsub.f32 1.0, %v2278_v4 }
0x1155   :  { %v2265_v6 = vmul.f32 %v3052_v42, %v2264_v50 }
0x1156   :  { %v2280_v13 = vmul.f32 %v3054_v27, %v2279_v17 }
0x1157   :  { %v2266_v35 = vadd.f32 %v3052_v42, %v2265_v6 }
0x1158   :  { %v2281_v34 = vadd.f32 %v3054_v27, %v2280_v13 }
0x1159   :  { %v2270_v2 = vsel %vm2269_vm14, %v3052_v42, %v2266_v35 }
0x115a   :  { %v2285_v45 = vsel %vm2284_vm15, %v3054_v27, %v2281_v34  ;;  %v2275_v43 = vsel %vm2272_vm1, %v2274_v60, %v2270_v2 }
0x115b   :  { %v2290_v33 = vsel %vm2287_vm2, %v2289_v36, %v2285_v45  ;;  %v2300_v47 = vmul.f32 %v2296_v58, %v2275_v43 }
0x115c   :  { %v2301_v5 = vmul.f32 %v2297_v62, %v2290_v33 }
0x11b8   :  { %v2305_v28 = vpop.permute.xlu1 %2304 }
0x11b9   :  { %v2307_v10 = vpop.permute.xlu0 %2306  ;;  %v2310_v12 = vmul.f32 %v2305_v28, %v2275_v43 }
0x11ba   :  { %v2311_v41 = vmul.f32 %v2307_v10, %v2290_v33 }
0x11bb   :  { %2314 = vrot.lane.b32.xlu2 %v2310_v12, %s3130_s22 }
0x11bc   :  { %2316 = vrot.lane.b32.xlu1 %v2311_v41, %s3130_s22 }
0x1215   :  { %v2315_v31 = vpop.permute.xlu2 %2314 }
0x1216   :  { %v4018_v0 = vadd.f32 %v2315_v31, %v2300_v47 }
0x1218   :  { %3055 = vtanh.f32 %v4018_v0 }
0x121e   :  { %v3056_v20 = vpop.eup %3055 }
0x121f   :  { %2326 = vrot.lane.b32.xlu0 %v3056_v20, %s3131_s4  ;;  %v2414_v20 = vrot.slane %v4018_v0, 7 }
0x122e   :  { %v2317_v22 = vpop.permute.xlu1 %2316 }
0x122f   :  { %v4023_v38 = vadd.f32 %v2317_v22, %v2301_v5 }
0x1231   :  { %3057 = vtanh.f32 %v4023_v38  ;;  %v2415_v12 = vrot.slane %v4023_v38, 7 }
0x1237   :  { %v3058_v23 = vpop.eup %3057 }
0x1238   :  { %2328 = vrot.lane.b32.xlu2 %v3058_v23, %s3131_s4 }
0x1291   :  { %v2327_v25 = vpop.permute.xlu0 %2326 }
0x1292   :  { %v2329_v56 = vpop.permute.xlu2 %2328  ;;  %v2332_v21 = vmul.f32 %v2327_v25, %v2275_v43 }
0x1293   :  { %v2333_v7 = vmul.f32 %v2329_v56, %v2290_v33 }
0x1294   :  { %v2336_v24 = vrot.slane %v2332_v21, 3 }
0x1295   :  { %v2337_v30 = vrot.slane %v2333_v7, 2 }
0x1297   :  { %v2338_v54 = vsel %vm490_vm8, %v2337_v30, %v2336_v24 }
0x1298   :  { %2339 = vrot.lane.b32.xlu1 %v2338_v54, %s3122_s30 }
0x130a   :  { %v2340_v52 = vpop.permute.xlu1 %2339 }
0x130b   :  { %2874 = vmatmul.msk.f32.vlgmr.msra.gmra.mxu3 %vm415_vm7, %v2340_v52 }
0x138e   :  { %v2360_v8 = vpop.f32.mrf.mxu3 }
0x138f   :  { %v2364_v14 = vrot.slane %v2360_v8, 4  ;;  %v2365_v16 = vrot.slane %v2360_v8, 5 }
0x1391   :  { %v2368_v39 = vadd.f32 %v2364_v14, %v3939_v37  ;;  %v2369_v63 = vadd.f32 %v2365_v16, %v3948_v26 }
0x1393   :  { %v2370_v11 = vadd.f32 %v3944_v48, %v2368_v39  ;;  %v2371_v19 = vadd.f32 %v3944_v48, %v2369_v63 }
0x1395   :  { %3059 = vtanh.f32 %v2370_v11  ;;  %v2876_v55 = vmul.f32 -1.442695, %v2371_v19  ;;  %v2875_v1 = vmul.f32 -1.442695, %v2370_v11 }
0x1396   :  { %3061 = vtanh.f32 %v2371_v19 }
0x1397   :  { %3063 = vpow2.f32 %v2876_v55 }
0x139b   :  { %v3060_v49 = vpop.eup %3059 }
0x139c   :  { %v3062_v53 = vpop.eup %3061  ;;  %2422 = vrot.lane.b32.xlu0 %v3060_v49, %s3123_s6 }
0x139d   :  { %2424 = vrot.lane.b32.xlu2 %v3062_v53, %s3123_s6  ;;  %v3064_v57 = vpop.eup %3063 }
0x139e   :  { %v2379_v40 = vadd.f32 1.0, %v3064_v57 }
0x13a0   :  { %3065 = vrcp.f32 %v2379_v40  ;;  %v2406_v4 = vand.u32 2147483648, %v2379_v40  ;;  %vm2400_vm3 = vweird.f32 %v2379_v40  ;;  %v2404_v50 = vand.u32 2147483647, %v2379_v40 }
0x13a1   :  { %3067 = vpow2.f32 %v2875_v1 }
0x13a2   :  { %v2407_v6 = vor.u32 1.1754944e-38, %v2406_v4  ;;  %vm2405_vm9 = vcmp.eq.f32.partialorder %v2404_v50, 8.507059e+37 }
0x13a6   :  { %v3066_v61 = vpop.eup %3065 }
0x13a7   :  { %v2396_v15 = vmul.f32 %v3066_v61, %v2379_v40  ;;  %v3068_v9 = vpop.eup %3067  ;;  %vm2401_vm4 = vweird.f32 %v3066_v61 }
0x13a8   :  { %v2378_v27 = vadd.f32 1.0, %v3068_v9  ;;  %vm2402_vm5 = vmor %vm2400_vm3, %vm2401_vm4 }
0x13a9   :  { %v2397_v46 = vsub.f32 1.0, %v2396_v15 }
0x13aa   :  { %3069 = vrcp.f32 %v2378_v27  ;;  %v2391_v45 = vand.u32 2147483648, %v2378_v27  ;;  %vm2385_vm10 = vweird.f32 %v2378_v27  ;;  %v2389_v60 = vand.u32 2147483647, %v2378_v27 }
0x13ab   :  { %v2398_v42 = vmul.f32 %v3066_v61, %v2397_v46 }
0x13ac   :  { %v2392_v28 = vor.u32 1.1754944e-38, %v2391_v45  ;;  %vm2390_vm12 = vcmp.eq.f32.partialorder %v2389_v60, 8.507059e+37 }
0x13ad   :  { %v2399_v29 = vadd.f32 %v3066_v61, %v2398_v42 }
0x13af   :  { %v2403_v17 = vsel %vm2402_vm5, %v3066_v61, %v2399_v29 }
0x13b0   :  { %v2408_v35 = vsel %vm2405_vm9, %v2407_v6, %v2403_v17  ;;  %v3070_v34 = vpop.eup %3069 }
0x13b1   :  { %v2381_v44 = vmul.f32 %v3070_v34, %v2378_v27  ;;  %vm2386_vm6 = vweird.f32 %v3070_v34  ;;  %v2419_v41 = vmul.f32 %v2415_v12, %v2408_v35 }
0x13b2   :  { %vm2387_vm11 = vmor %vm2385_vm10, %vm2386_vm6 }
0x13b3   :  { %v2382_v18 = vsub.f32 1.0, %v2381_v44 }
0x13b5   :  { %v2383_v32 = vmul.f32 %v3070_v34, %v2382_v18 }
0x13b7   :  { %v2384_v2 = vadd.f32 %v3070_v34, %v2383_v32 }
0x13b9   :  { %v2388_v36 = vsel %vm2387_vm11, %v3070_v34, %v2384_v2 }
0x13ba   :  { %v2393_v10 = vsel %vm2390_vm12, %v2392_v28, %v2388_v36 }
0x13bb   :  { %v2418_v62 = vmul.f32 %v2414_v20, %v2393_v10 }
0x13f7   :  { %v2425_v13 = vpop.permute.xlu2 %2424 }
0x13f8   :  { %v2429_v51 = vmul.f32 %v2425_v13, %v2408_v35 }
0x13fa   :  { %2434 = vrot.lane.b32.xlu0 %v2429_v51, %s3130_s22 }
0x140e   :  { %v2423_v43 = vpop.permute.xlu0 %2422 }
0x140f   :  { %v2428_v33 = vmul.f32 %v2423_v43, %v2393_v10 }
0x1411   :  { %2432 = vrot.lane.b32.xlu1 %v2428_v33, %s3130_s22 }
0x146c   :  { %v2435_v58 = vpop.permute.xlu0 %2434 }
0x146d   :  { %v4039_v47 = vadd.f32 %v2435_v58, %v2419_v41 }
0x146f   :  { %3071 = vtanh.f32 %v4039_v47  ;;  %v2533_v33 = vrot.slane %v4039_v47, 7 }
0x1475   :  { %v3072_v31 = vpop.eup %3071 }
0x1476   :  { %2446 = vrot.lane.b32.xlu1 %v3072_v31, %s3131_s4 }
0x1483   :  { %v2433_v5 = vpop.permute.xlu1 %2432 }
0x1484   :  { %v4044_v22 = vadd.f32 %v2433_v5, %v2418_v62 }
0x1486   :  { %3073 = vtanh.f32 %v4044_v22 }
0x148c   :  { %v3074_v23 = vpop.eup %3073 }
0x148d   :  { %2444 = vrot.lane.b32.xlu2 %v3074_v23, %s3131_s4 }
0x14e7   :  { %v2445_v38 = vpop.permute.xlu2 %2444 }
0x14e8   :  { %v2447_v25 = vpop.permute.xlu1 %2446  ;;  %v2450_v56 = vmul.f32 %v2445_v38, %v2393_v10  ;;  %v2532_v10 = vrot.slane %v4044_v22, 7 }
0x14e9   :  { %v2451_v21 = vmul.f32 %v2447_v25, %v2408_v35 }
0x14ea   :  { %v2454_v7 = vrot.slane %v2450_v56, 4 }
0x14eb   :  { %v2455_v24 = vrot.slane %v2451_v21, 3 }
0x14ed   :  { %v2456_v30 = vsel %vm490_vm8, %v2455_v24, %v2454_v7 }
0x14ee   :  { %2457 = vrot.lane.b32.xlu0 %v2456_v30, %s3122_s30 }
0x1560   :  { %v2458_v0 = vpop.permute.xlu0 %2457 }
0x1561   :  { %2877 = vmatmul.msk.f32.vlgmr.msrb.gmra.mxu0 %vm415_vm7, %v2458_v0 }
0x15de   :  { %v2478_v54 = vpop.f32.mrf.mxu0 }
0x15df   :  { %v2482_v52 = vrot.slane %v2478_v54, 3  ;;  %v2483_v8 = vrot.slane %v2478_v54, 4 }
0x15e1   :  { %v2486_v14 = vadd.f32 %v2482_v52, %v3939_v37  ;;  %v2487_v16 = vadd.f32 %v2483_v8, %v3948_v26 }
0x15e3   :  { %v2488_v39 = vadd.f32 %v3944_v48, %v2486_v14  ;;  %v2489_v63 = vadd.f32 %v3944_v48, %v2487_v16 }
0x15e5   :  { %3075 = vtanh.f32 %v2488_v39  ;;  %v2878_v49 = vmul.f32 -1.442695, %v2488_v39  ;;  %v2879_v40 = vmul.f32 -1.442695, %v2489_v63 }
0x15e6   :  { %3077 = vtanh.f32 %v2489_v63 }
0x15e7   :  { %3079 = vpow2.f32 %v2878_v49 }
0x15eb   :  { %v3076_v11 = vpop.eup %3075 }
0x15ec   :  { %v3078_v19 = vpop.eup %3077  ;;  %2540 = vrot.lane.b32.xlu2 %v3076_v11, %s3123_s6 }
0x15ed   :  { %2542 = vrot.lane.b32.xlu1 %v3078_v19, %s3123_s6  ;;  %v3080_v53 = vpop.eup %3079 }
0x15ee   :  { %v2496_v55 = vadd.f32 1.0, %v3080_v53 }
0x15f0   :  { %3081 = vrcp.f32 %v2496_v55  ;;  %v2509_v27 = vand.u32 2147483648, %v2496_v55  ;;  %vm2503_vm14 = vweird.f32 %v2496_v55  ;;  %v2507_v29 = vand.u32 2147483647, %v2496_v55 }
0x15f1   :  { %3083 = vpow2.f32 %v2879_v40 }
0x15f2   :  { %v2510_v50 = vor.u32 1.1754944e-38, %v2509_v27  ;;  %vm2508_vm1 = vcmp.eq.f32.partialorder %v2507_v29, 8.507059e+37 }
0x15f6   :  { %v3082_v57 = vpop.eup %3081 }
0x15f7   :  { %v2499_v61 = vmul.f32 %v3082_v57, %v2496_v55  ;;  %v3084_v46 = vpop.eup %3083  ;;  %vm2504_vm13 = vweird.f32 %v3082_v57 }
0x15f8   :  { %v2497_v9 = vadd.f32 1.0, %v3084_v46  ;;  %vm2505_vm15 = vmor %vm2503_vm14, %vm2504_vm13 }
0x15f9   :  { %v2500_v1 = vsub.f32 1.0, %v2499_v61 }
0x15fa   :  { %3085 = vrcp.f32 %v2497_v9  ;;  %v2524_v32 = vand.u32 2147483648, %v2497_v9  ;;  %vm2518_vm4 = vweird.f32 %v2497_v9  ;;  %v2522_v2 = vand.u32 2147483647, %v2497_v9 }
0x15fb   :  { %v2501_v15 = vmul.f32 %v3082_v57, %v2500_v1 }
0x15fc   :  { %v2525_v60 = vor.u32 1.1754944e-38, %v2524_v32  ;;  %vm2523_vm5 = vcmp.eq.f32.partialorder %v2522_v2, 8.507059e+37 }
0x15fd   :  { %v2502_v42 = vadd.f32 %v3082_v57, %v2501_v15 }
0x15ff   :  { %v2506_v4 = vsel %vm2505_vm15, %v3082_v57, %v2502_v42 }
0x1600   :  { %v2511_v6 = vsel %vm2508_vm1, %v2510_v50, %v2506_v4  ;;  %v3086_v35 = vpop.eup %3085 }
0x1601   :  { %v2514_v34 = vmul.f32 %v3086_v35, %v2497_v9  ;;  %vm2519_vm2 = vweird.f32 %v3086_v35  ;;  %v2536_v12 = vmul.f32 %v2532_v10, %v2511_v6 }
0x1602   :  { %vm2520_vm3 = vmor %vm2518_vm4, %vm2519_vm2 }
0x1603   :  { %v2515_v51 = vsub.f32 1.0, %v2514_v34 }
0x1605   :  { %v2516_v44 = vmul.f32 %v3086_v35, %v2515_v51 }
0x1607   :  { %v2517_v18 = vadd.f32 %v3086_v35, %v2516_v44 }
0x1609   :  { %v2521_v45 = vsel %vm2520_vm3, %v3086_v35, %v2517_v18 }
0x160a   :  { %v2526_v28 = vsel %vm2523_vm5, %v2525_v60, %v2521_v45 }
0x160b   :  { %v2537_v41 = vmul.f32 %v2533_v33, %v2526_v28 }
0x1646   :  { %v2541_v17 = vpop.permute.xlu2 %2540 }
0x1647   :  { %v2546_v13 = vmul.f32 %v2541_v17, %v2511_v6 }
0x1649   :  { %2550 = vrot.lane.b32.xlu0 %v2546_v13, %s3130_s22 }
0x165f   :  { %v2543_v36 = vpop.permute.xlu1 %2542 }
0x1660   :  { %v2547_v43 = vmul.f32 %v2543_v36, %v2526_v28 }
0x1662   :  { %2552 = vrot.lane.b32.xlu2 %v2547_v43, %s3130_s22 }
0x16bb   :  { %v2551_v58 = vpop.permute.xlu0 %2550 }
0x16bc   :  { %v2553_v31 = vpop.permute.xlu2 %2552  ;;  %v4061_v20 = vadd.f32 %v2551_v58, %v2536_v12 }
0x16bd   :  { %v4063_v62 = vadd.f32 %v2553_v31, %v2537_v41 }
0x16be   :  { %3087 = vtanh.f32 %v4061_v20  ;;  %v2650_v36 = vrot.slane %v4061_v20, 7 }
0x16bf   :  { %3089 = vtanh.f32 %v4063_v62  ;;  %v2651_v12 = vrot.slane %v4063_v62, 7 }
0x16c4   :  { %v3088_v5 = vpop.eup %3087 }
0x16c5   :  { %v3090_v23 = vpop.eup %3089  ;;  %2562 = vrot.lane.b32.xlu1 %v3088_v5, %s3131_s4 }
0x16c6   :  { %2564 = vrot.lane.b32.xlu0 %v3090_v23, %s3131_s4 }
0x1737   :  { %v2563_v22 = vpop.permute.xlu1 %2562 }
0x1738   :  { %v2565_v47 = vpop.permute.xlu0 %2564  ;;  %v2568_v38 = vmul.f32 %v2563_v22, %v2511_v6 }
0x1739   :  { %v2569_v25 = vmul.f32 %v2565_v47, %v2526_v28 }
0x173a   :  { %v2572_v56 = vrot.slane %v2568_v38, 5 }
0x173b   :  { %v2573_v21 = vrot.slane %v2569_v25, 4 }
0x173d   :  { %v2574_v7 = vsel %vm490_vm8, %v2573_v21, %v2572_v56 }
0x173e   :  { %2575 = vrot.lane.b32.xlu2 %v2574_v7, %s3122_s30 }
0x1798   :  { %v2576_v24 = vpop.permute.xlu2 %2575 }
0x1799   :  { %2880 = vmatmul.msk.f32.vlgmr.msrb.gmra.mxu1 %vm415_vm7, %v2576_v24 }
0x1816   :  { %v2596_v30 = vpop.f32.mrf.mxu1 }
0x1817   :  { %v2600_v0 = vrot.slane %v2596_v30, 2  ;;  %v2601_v54 = vrot.slane %v2596_v30, 3 }
0x1819   :  { %v2604_v52 = vadd.f32 %v2600_v0, %v3939_v37  ;;  %v2605_v8 = vadd.f32 %v2601_v54, %v3948_v26  ;;  %v3119_v54 = vld [vmem:[%s4137_s25] ss:$0 sm:$0xff] }
0x181b   :  { %v2606_v14 = vadd.f32 %v3944_v48, %v2604_v52  ;;  %v2607_v16 = vadd.f32 %v3944_v48, %v2605_v8 }
0x181d   :  { %3091 = vtanh.f32 %v2606_v14  ;;  %v2881_v11 = vmul.f32 -1.442695, %v2606_v14  ;;  %v2882_v19 = vmul.f32 -1.442695, %v2607_v16 }
0x181e   :  { %3093 = vtanh.f32 %v2607_v16 }
0x181f   :  { %3095 = vpow2.f32 %v2881_v11 }
0x1820   :  { %3097 = vpow2.f32 %v2882_v19 }
0x1823   :  { %v3092_v39 = vpop.eup %3091 }
0x1824   :  { %v3094_v63 = vpop.eup %3093  ;;  %2658 = vrot.lane.b32.xlu1 %v3092_v39, %s3123_s6 }
0x1825   :  { %2660 = vrot.lane.b32.xlu0 %v3094_v63, %s3123_s6  ;;  %v3096_v49 = vpop.eup %3095 }
0x1826   :  { %v3098_v53 = vpop.eup %3097  ;;  %v2614_v55 = vadd.f32 1.0, %v3096_v49 }
0x1827   :  { %v2615_v57 = vadd.f32 1.0, %v3098_v53 }
0x1828   :  { %3099 = vrcp.f32 %v2614_v55  ;;  %v2627_v4 = vand.u32 2147483648, %v2614_v55  ;;  %vm2621_vm10 = vweird.f32 %v2614_v55  ;;  %v2625_v17 = vand.u32 2147483647, %v2614_v55 }
0x1829   :  { %3101 = vrcp.f32 %v2615_v57  ;;  %v2642_v50 = vand.u32 2147483648, %v2615_v57  ;;  %vm2636_vm11 = vweird.f32 %v2615_v57  ;;  %v2640_v6 = vand.u32 2147483647, %v2615_v57 }
0x182a   :  { %v2628_v34 = vor.u32 1.1754944e-38, %v2627_v4  ;;  %vm2626_vm14 = vcmp.eq.f32.partialorder %v2625_v17, 8.507059e+37 }
0x182b   :  { %v2643_v51 = vor.u32 1.1754944e-38, %v2642_v50  ;;  %vm2641_vm15 = vcmp.eq.f32.partialorder %v2640_v6, 8.507059e+37 }
0x182e   :  { %v3100_v40 = vpop.eup %3099 }
0x182f   :  { %v3102_v48 = vpop.eup %3101  ;;  %v2617_v61 = vmul.f32 %v3100_v40, %v2614_v55  ;;  %vm2622_vm9 = vweird.f32 %v3100_v40 }
0x1830   :  { %v2632_v1 = vmul.f32 %v3102_v48, %v2615_v57  ;;  %vm2637_vm6 = vweird.f32 %v3102_v48  ;;  %vm2623_vm12 = vmor %vm2621_vm10, %vm2622_vm9  ;;  %vm2830_vm10 = vcmask 123904  }
0x1831   :  { %v2618_v15 = vsub.f32 1.0, %v2617_v61  ;;  %vm2638_vm13 = vmor %vm2636_vm11, %vm2637_vm6 }
0x1832   :  { %v2633_v46 = vsub.f32 1.0, %v2632_v1 }
0x1833   :  { %v2619_v9 = vmul.f32 %v3100_v40, %v2618_v15 }
0x1834   :  { %v2634_v42 = vmul.f32 %v3102_v48, %v2633_v46 }
0x1835   :  { %v2620_v27 = vadd.f32 %v3100_v40, %v2619_v9 }
0x1836   :  { %v2635_v29 = vadd.f32 %v3102_v48, %v2634_v42 }
0x1837   :  { %v2624_v13 = vsel %vm2623_vm12, %v3100_v40, %v2620_v27 }
0x1838   :  { %v2639_v35 = vsel %vm2638_vm13, %v3102_v48, %v2635_v29  ;;  %v2629_v18 = vsel %vm2626_vm14, %v2628_v34, %v2624_v13 }
0x1839   :  { %v2644_v2 = vsel %vm2641_vm15, %v2643_v51, %v2639_v35  ;;  %v2654_v28 = vmul.f32 %v2650_v36, %v2629_v18 }
0x183a   :  { %v2655_v41 = vmul.f32 %v2651_v12, %v2644_v2 }
0x1896   :  { %v2659_v44 = vpop.permute.xlu1 %2658 }
0x1897   :  { %v2661_v32 = vpop.permute.xlu0 %2660  ;;  %v2664_v45 = vmul.f32 %v2659_v44, %v2629_v18 }
0x1898   :  { %v2665_v60 = vmul.f32 %v2661_v32, %v2644_v2 }
0x1899   :  { %2668 = vrot.lane.b32.xlu2 %v2664_v45, %s3130_s22 }
0x189a   :  { %2670 = vrot.lane.b32.xlu1 %v2665_v60, %s3130_s22 }
0x18f3   :  { %v2669_v43 = vpop.permute.xlu2 %2668 }
0x18f4   :  { %v4081_v10 = vadd.f32 %v2669_v43, %v2654_v28 }
0x18f6   :  { %3103 = vtanh.f32 %v4081_v10  ;;  %v2768_v43 = vrot.slane %v4081_v10, 7 }
0x18fc   :  { %v3104_v33 = vpop.eup %3103 }
0x18fd   :  { %2680 = vrot.lane.b32.xlu0 %v3104_v33, %s3131_s4 }
0x190c   :  { %v2671_v58 = vpop.permute.xlu1 %2670 }
0x190d   :  { %v4086_v31 = vadd.f32 %v2671_v58, %v2655_v41 }
0x190f   :  { %3105 = vtanh.f32 %v4086_v31  ;;  %v2769_v32 = vrot.slane %v4086_v31, 7 }
0x1915   :  { %v3106_v5 = vpop.eup %3105 }
0x1916   :  { %2682 = vrot.lane.b32.xlu2 %v3106_v5, %s3131_s4 }
0x196f   :  { %v2681_v20 = vpop.permute.xlu0 %2680 }
0x1970   :  { %v2683_v23 = vpop.permute.xlu2 %2682  ;;  %v2686_v22 = vmul.f32 %v2681_v20, %v2629_v18 }
0x1971   :  { %v2687_v47 = vmul.f32 %v2683_v23, %v2644_v2 }
0x1972   :  { %v2690_v38 = vrot.slane %v2686_v22, 6 }
0x1973   :  { %v2691_v25 = vrot.slane %v2687_v47, 5 }
0x1975   :  { %v2692_v56 = vsel %vm490_vm8, %v2691_v25, %v2690_v38 }
0x1976   :  { %2693 = vrot.lane.b32.xlu1 %v2692_v56, %s3122_s30 }
0x19e8   :  { %v2694_v62 = vpop.permute.xlu1 %2693 }
0x19e9   :  { %2883 = vmatmul.msk.f32.vlgmr.msrb.gmra.mxu2 %vm415_vm7, %v2694_v62 }
0x1a6c   :  { %v2714_v21 = vpop.f32.mrf.mxu2 }
0x1a6d   :  { %v2718_v7 = vrot.slane %v2714_v21, 1  ;;  %v2719_v24 = vrot.slane %v2714_v21, 2 }
0x1a6f   :  { %v2722_v30 = vadd.f32 %v2718_v7, %v3939_v37  ;;  %v2723_v0 = vadd.f32 %v2719_v24, %v3948_v26 }
0x1a71   :  { %v2724_v52 = vadd.f32 %v3119_v54, %v2722_v30  ;;  %v2725_v8 = vadd.f32 %v3119_v54, %v2723_v0 }
0x1a73   :  { %3107 = vtanh.f32 %v2724_v52  ;;  %v2885_v39 = vmul.f32 -1.442695, %v2725_v8  ;;  %v2884_v11 = vmul.f32 -1.442695, %v2724_v52 }
0x1a74   :  { %3109 = vtanh.f32 %v2725_v8 }
0x1a75   :  { %3111 = vpow2.f32 %v2885_v39 }
0x1a79   :  { %v3108_v14 = vpop.eup %3107 }
0x1a7a   :  { %v3110_v16 = vpop.eup %3109  ;;  %2776 = vrot.lane.b32.xlu0 %v3108_v14, %s3123_s6 }
0x1a7b   :  { %2778 = vrot.lane.b32.xlu2 %v3110_v16, %s3123_s6  ;;  %v3112_v63 = vpop.eup %3111 }
0x1a7c   :  { %v2733_v37 = vadd.f32 1.0, %v3112_v63 }
0x1a7e   :  { %3113 = vrcp.f32 %v2733_v37  ;;  %v2760_v48 = vand.u32 2147483648, %v2733_v37  ;;  %vm2754_vm1 = vweird.f32 %v2733_v37  ;;  %v2758_v61 = vand.u32 2147483647, %v2733_v37 }
0x1a7f   :  { %3115 = vpow2.f32 %v2884_v11 }
0x1a80   :  { %v2761_v15 = vor.u32 1.1754944e-38, %v2760_v48  ;;  %vm2759_vm4 = vcmp.eq.f32.partialorder %v2758_v61, 8.507059e+37 }
0x1a84   :  { %v3114_v26 = vpop.eup %3113 }
0x1a85   :  { %v2750_v19 = vmul.f32 %v3114_v26, %v2733_v37  ;;  %v3116_v53 = vpop.eup %3115  ;;  %vm2755_vm7 = vweird.f32 %v3114_v26 }
0x1a86   :  { %v2732_v57 = vadd.f32 1.0, %v3116_v53  ;;  %vm2756_vm2 = vmor %vm2754_vm1, %vm2755_vm7 }
0x1a87   :  { %v2751_v49 = vsub.f32 1.0, %v2750_v19 }
0x1a88   :  { %3117 = vrcp.f32 %v2732_v57  ;;  %v2745_v6 = vand.u32 2147483648, %v2732_v57  ;;  %vm2739_vm5 = vweird.f32 %v2732_v57  ;;  %v2743_v13 = vand.u32 2147483647, %v2732_v57 }
0x1a89   :  { %v2752_v55 = vmul.f32 %v3114_v26, %v2751_v49 }
0x1a8a   :  { %v2746_v34 = vor.u32 1.1754944e-38, %v2745_v6  ;;  %vm2744_vm6 = vcmp.eq.f32.partialorder %v2743_v13, 8.507059e+37 }
0x1a8b   :  { %v2753_v40 = vadd.f32 %v3114_v26, %v2752_v55 }
0x1a8d   :  { %v2757_v1 = vsel %vm2756_vm2, %v3114_v26, %v2753_v40 }
0x1a8e   :  { %v2762_v9 = vsel %vm2759_vm4, %v2761_v15, %v2757_v1  ;;  %v3118_v42 = vpop.eup %3117 }
0x1a8f   :  { %v2735_v29 = vmul.f32 %v3118_v42, %v2732_v57  ;;  %vm2740_vm3 = vweird.f32 %v3118_v42  ;;  %v2773_v2 = vmul.f32 %v2769_v32, %v2762_v9 }
0x1a90   :  { %vm2741_vm9 = vmor %vm2739_vm5, %vm2740_vm3 }
0x1a91   :  { %v2736_v4 = vsub.f32 1.0, %v2735_v29 }
0x1a93   :  { %v2737_v50 = vmul.f32 %v3118_v42, %v2736_v4 }
0x1a95   :  { %v2738_v17 = vadd.f32 %v3118_v42, %v2737_v50 }
0x1a97   :  { %v2742_v35 = vsel %vm2741_vm9, %v3118_v42, %v2738_v17 }
0x1a98   :  { %v2747_v44 = vsel %vm2744_vm6, %v2746_v34, %v2742_v35 }
0x1a99   :  { %v2772_v33 = vmul.f32 %v2768_v43, %v2747_v44 }
0x1ad5   :  { %v2779_v46 = vpop.permute.xlu2 %2778 }
0x1ad6   :  { %v2783_v27 = vmul.f32 %v2779_v46, %v2762_v9 }
0x1ad8   :  { %2788 = vrot.lane.b32.xlu0 %v2783_v27, %s3130_s22 }
0x1aec   :  { %v2777_v51 = vpop.permute.xlu0 %2776 }
0x1aed   :  { %v2782_v18 = vmul.f32 %v2777_v51, %v2747_v44 }
0x1aef   :  { %2786 = vrot.lane.b32.xlu1 %v2782_v18, %s3130_s22 }
0x1b4a   :  { %v2789_v45 = vpop.permute.xlu0 %2788 }
0x1b4b   :  { %v2793_v60 = vadd.f32 %v2789_v45, %v2773_v2 }
0x1b4d   :  { %v2795_v36 = vmax.f32 %v2793_v60, 0.0 }
0x1b4f   :  { %v2803_v28 = vperm.slane %v2795_v36, 7 }
0x1b51   :  { %2808 = vperm.xlu1 %2905, %v2803_v28  }
0x1b61   :  { %v2787_v12 = vpop.permute.xlu1 %2786 }
0x1b62   :  { %v2792_v41 = vadd.f32 %v2787_v12, %v2772_v33 }
0x1b64   :  { %v2794_v58 = vmax.f32 %v2792_v41, 0.0 }
0x1b66   :  { %v2796_v5 = vperm.slane %v2794_v58, 7 }
0x1b68   :  { %2801 = vperm.xlu2 %2904, %v2796_v5  }
0x1bc2   :  { %v2802_v20 = vpop.permute.xlu2 %2801 }
0x1bc3   :  { %v2809_v23 = vpop.permute.xlu1 %2808  ;;  %v2810_v22 = vmul.f32 %v2802_v20, %v3382_v59 }
0x1bc4   :  { %v2811_v31 = vmul.f32 %v2809_v23, %v3394_v3 }
0x1bc5   :  { %v2812_v47 = vsel %vm111_vm0, %v2810_v22, 0.0 }
0x1bc6   :  { %v2819_v38 = vsel %vm111_vm0, %v2811_v31, 0.0  ;;  %v2813_v25 = vrot.slane %v2812_v47, 4 }
0x1bc7   :  { %v2820_v56 = vrot.slane %v2819_v38, 4 }
0x1bc8   :  { %v2814_v62 = vadd.f32 %v2813_v25, %v2812_v47 }
0x1bc9   :  { %v2821_v10 = vadd.f32 %v2820_v56, %v2819_v38 }
0x1bca   :  { %v2815_v21 = vrot.slane %v2814_v62, 2 }
0x1bcb   :  { %v2822_v7 = vrot.slane %v2821_v10, 2 }
0x1bcc   :  { %v2816_v24 = vadd.f32 %v2815_v21, %v2814_v62 }
0x1bcd   :  { %v2823_v30 = vadd.f32 %v2822_v7, %v2821_v10 }
0x1bce   :  { %v2817_v0 = vrot.slane %v2816_v24, 1 }
0x1bcf   :  { %v2824_v54 = vrot.slane %v2823_v30, 1 }
0x1bd0   :  { %v2818_v52 = vadd.f32 %v2817_v0, %v2816_v24 }
0x1bd1   :  { %v2825_v8 = vadd.f32 %v2824_v54, %v2823_v30 }
0x1bd3   :  { %v2828_v59 = vsel %vm490_vm8, %v2825_v8, %v2818_v52 }
0x1bd4   :  { %2831 = vst.msk [vmem:[%s4139_s27] sm:$0x3] %vm2830_vm10, %v2828_v59 }

</bundles_post_ra>
